<compile_context>
chip_gen: v6e
topology: v6e:2x2x1
jax: 0.10.0
libtpu: 0.0.40
codegen_flags: <defaults>
</compile_context>

<pallas_src>
import functools

import numpy as np
import jax
import jax.numpy as jnp
from jax import lax
from jax.experimental import pallas as pl
from jax.experimental.pallas import tpu as pltpu

POOL_ITER = 2
SIGMA = 0.2
BN_EPS = 1e-5


# ----------------------------- Pallas kernels -------------------------------

def proj_bn_relu_kernel(x_ref, w_ref, b_ref, g_ref, beta_ref, o_ref, *, n_key):
    # x_ref: (N*HW, Cin); w_ref: (Cin, Ck+Cv) lanes ordered [key | value].
    # Training-mode BN + ReLU applied to the key lanes only; value lanes raw.
    y = jnp.dot(x_ref[...], w_ref[...],
                preferred_element_type=jnp.float32) + b_ref[...]
    mean = jnp.mean(y, axis=0, keepdims=True)
    var = jnp.mean((y - mean) ** 2, axis=0, keepdims=True)        # biased var
    normed = (y - mean) * lax.rsqrt(var + BN_EPS) * g_ref[...] + beta_ref[...]
    keyed = jnp.maximum(normed, 0.0)
    lane = lax.broadcasted_iota(jnp.int32, y.shape, 1)
    o_ref[...] = jnp.where(lane < n_key, keyed, y)


def attn_kernel(x_ref, kv_ref, psp_ref, logw_ref, p0_ref,
                w_W_ref, b_W_ref, w_oc_ref, w_ox_ref, b_o_ref,
                ypre_ref, dp_ref, *, n_key, n_val, scale):
    # Per-batch block. kv: (1,HW,Ck+Cv) [key|value]; psp: (1,S,Ck+Cv+2)
    # [key|value|Pp]; x: (1,HW,Cin).
    q = kv_ref[0][:, :n_key]                                       # (HW, Ck)
    kvp = psp_ref[0]
    k = kvp[:, :n_key]                                             # (S, Ck)
    v_pp = kvp[:, n_key:]                                          # (S, Cv+2)

    # q @ k^T without any host-side transpose (MXU handles trans_b natively).
    sim = lax.dot_general(q, k, (((1,), (1,)), ((), ())),
                          preferred_element_type=jnp.float32)      # (HW, S)
    sim = sim * scale + logw_ref[...]
    m = jnp.max(sim, axis=-1, keepdims=True)
    e = jnp.exp(sim - m)
    p = e * pl.reciprocal(jnp.sum(e, axis=-1, keepdims=True), approx=True)

    # Single MXU push for context and the positional term.
    cols = jnp.dot(p, v_pp, preferred_element_type=jnp.float32)    # (HW, Cv+2)
    ctx = cols[:, :n_val]
    dp_ref[0] = p0_ref[...] - cols[:, n_val:]

    # self.W (zero-initialized 1x1 conv) + [context | feats] part of the
    # final 1x1 conv (the dp part is added after the torch-style .view glue).
    ctx_w = jnp.dot(ctx, w_W_ref[...],
                    preferred_element_type=jnp.float32) + b_W_ref[...]
    ypre_ref[0] = (jnp.dot(ctx_w, w_oc_ref[...], preferred_element_type=jnp.float32)
                   + jnp.dot(x_ref[0], w_ox_ref[...], preferred_element_type=jnp.float32)
                   + b_o_ref[...])


def finish_bn_relu_kernel(ypre_ref, dpcl_ref, w_dp_ref, g_ref, b_ref, o_ref):
    # Add the dp contribution of the final conv, then training-mode BN + ReLU.
    y = ypre_ref[...] + jnp.dot(dpcl_ref[...], w_dp_ref[...],
                                preferred_element_type=jnp.float32)
    mean = jnp.mean(y, axis=0, keepdims=True)
    var = jnp.mean((y - mean) ** 2, axis=0, keepdims=True)
    o_ref[...] = jnp.maximum(
        (y - mean) * lax.rsqrt(var + BN_EPS) * g_ref[...] + b_ref[...], 0.0)


# ----------------------------- pallas_call wrappers --------------------------

def fused_projection(x_flat, w_vk, b_vk, g_full, beta_full, n_key):
    NT = x_flat.shape[0]
    Cvk = w_vk.shape[1]
    kern = functools.partial(proj_bn_relu_kernel, n_key=n_key)
    return pl.pallas_call(
        kern,
        out_shape=jax.ShapeDtypeStruct((NT, Cvk), jnp.float32),
    )(x_flat, w_vk, b_vk, g_full, beta_full)


def fused_attention(x_tok, kv_tok, psp_cat, logW, P0,
                    w_W, b_W, w_oc, w_ox, b_o, n_key, n_val):
    N, HW, Cin = x_tok.shape
    Ckv = kv_tok.shape[2]
    S, Cpp = psp_cat.shape[1], psp_cat.shape[2]
    Cout = w_oc.shape[1]
    kern = functools.partial(attn_kernel, n_key=n_key, n_val=n_val,
                             scale=float(n_key) ** -0.5)
    return pl.pallas_call(
        kern,
        out_shape=(jax.ShapeDtypeStruct((N, HW, Cout), jnp.float32),
                   jax.ShapeDtypeStruct((N, HW, 2), jnp.float32)),
        grid=(N,),
        in_specs=[
            pl.BlockSpec((1, HW, Cin), lambda n: (n, 0, 0)),
            pl.BlockSpec((1, HW, Ckv), lambda n: (n, 0, 0)),
            pl.BlockSpec((1, S, Cpp), lambda n: (n, 0, 0)),
            pl.BlockSpec((HW, S), lambda n: (0, 0)),
            pl.BlockSpec((HW, 2), lambda n: (0, 0)),
            pl.BlockSpec(w_W.shape, lambda n: (0, 0)),
            pl.BlockSpec(b_W.shape, lambda n: (0, 0)),
            pl.BlockSpec(w_oc.shape, lambda n: (0, 0)),
            pl.BlockSpec(w_ox.shape, lambda n: (0, 0)),
            pl.BlockSpec(b_o.shape, lambda n: (0, 0)),
        ],
        out_specs=(pl.BlockSpec((1, HW, Cout), lambda n: (n, 0, 0)),
                   pl.BlockSpec((1, HW, 2), lambda n: (n, 0, 0))),
        compiler_params=pltpu.CompilerParams(
            dimension_semantics=("parallel",)),     # uses both TCs on v7x
    )(x_tok, kv_tok, psp_cat, logW, P0, w_W, b_W, w_oc, w_ox, b_o)


def fused_finish(ypre_flat, dp_cl, w_dp, g_out, bt_out):
    NT, Cout = ypre_flat.shape
    return pl.pallas_call(
        finish_bn_relu_kernel,
        out_shape=jax.ShapeDtypeStruct((NT, Cout), jnp.float32),
    )(ypre_flat, dp_cl, w_dp, g_out, bt_out)


# ----------------------------- PSP constants ---------------------------------

def _create_grid(hh, ww):
    X, Y = np.meshgrid(np.arange(ww), np.arange(hh))
    X = X.astype(np.float32) / ww
    Y = Y.astype(np.float32) / hh
    return X.ravel(), Y.ravel()


def make_psp_constants(H, W, pool_iter=POOL_ITER, sigma=SIGMA):
    X0, Y0 = _create_grid(H, W)
    Xp, Yp = [], []
    hh, ww = H, W
    for _ in range(pool_iter):
        hh //= 2
        ww //= 2
        X, Y = _create_grid(hh, ww)
        Xp.append(X)
        Yp.append(Y)
    Xp = np.hstack(Xp)
    Yp = np.hstack(Yp)
    dx = np.reshape(X0, (-1, 1)) - np.reshape(Xp, (1, -1))
    dy = np.reshape(Y0, (-1, 1)) - np.reshape(Yp, (1, -1))
    d2 = dx * dx + dy * dy
    logW = -0.5 * d2 / sigma / sigma                       # (HW, S)
    P0 = np.stack([X0, Y0], axis=1)                        # (HW, 2)
    Pp = np.stack([Xp, Yp], axis=1)                        # (S, 2)
    return (jnp.asarray(logW, jnp.float32),
            jnp.asarray(P0, jnp.float32),
            jnp.asarray(Pp, jnp.float32))


# ----------------------------- APNB forward ----------------------------------

@functools.partial(jax.jit, static_argnames=("key_channels", "value_channels"))
def apnb_forward(x_nchw, params, logW, P0, Pp, key_channels, value_channels):
    N, Cin, H, W = x_nchw.shape
    HW = H * W
    Ck, Cv = key_channels, value_channels

    x_tok = jnp.transpose(x_nchw, (0, 2, 3, 1)).reshape(N, HW, Cin)
    x_flat = x_tok.reshape(N * HW, Cin)

    # --- K1: fused f_key/f_query + f_value projection (+BN+ReLU on key lanes)
    w_vk = jnp.concatenate([params["w_key"], params["w_val"]], axis=1)
    b_vk = jnp.concatenate([params["b_key"], params["b_val"]], axis=1)
    g_full = jnp.concatenate([params["g_key"],
                              jnp.ones((1, Cv), jnp.float32)], axis=1)
    beta_full = jnp.concatenate([params["bt_key"],
                                 jnp.zeros((1, Cv), jnp.float32)], axis=1)
    kv_flat = fused_projection(x_flat, w_vk, b_vk, g_full, beta_full, Ck)
    kv_tok = kv_flat.reshape(N, HW, Ck + Cv)

    # --- PSP pyramid pooling: MaxPool2d(3, 2, 0) x POOL_ITER, tokens concat.
    # Delegated to XLA reduce_window (single fused op, no 9x window staging).
    # TODO(synk): could be folded into the attention kernel with strided VMEM
    # slices if launch overhead of this XLA op ever matters.
    feat = kv_tok.reshape(N, H, W, Ck + Cv)
    pieces = []
    neg_inf = jnp.float32(-jnp.inf)
    for _ in range(POOL_ITER):
        feat = lax.reduce_window(feat, neg_inf, lax.max,
                                 (1, 3, 3, 1), (1, 2, 2, 1), "VALID")
        pieces.append(feat.reshape(N, -1, Ck + Cv))
    psp = jnp.concatenate(pieces, axis=1)                           # (N, S, Ck+Cv)
    S = psp.shape[1]
    psp_cat = jnp.concatenate(
        [psp, jnp.broadcast_to(Pp[None], (N, S, 2))], axis=-1)      # (N,S,Ck+Cv+2)

    # Split the final conv weight over its [context | dp | feats] input blocks.
    Cout = params["w_W"].shape[1]
    w_oc = params["w_out"][:Cout]
    w_dp = params["w_out"][Cout:Cout + 2]
    w_ox = params["w_out"][Cout + 2:]

    # --- K2: attention + W conv + ctx/feats part of the final conv
    ypre, dp = fused_attention(x_tok, kv_tok, psp_cat, logW, P0,
                               params["w_W"], params["b_W"],
                               w_oc, w_ox, params["b_out"], Ck, Cv)

    # dp: reproduce torch's raw .view(N, 2, H, W) reinterpretation exactly,
    # then back to channel-last tokens for the final 1x1 conv.
    dp_cl = jnp.transpose(dp.reshape(N, 2, H, W), (0, 2, 3, 1)).reshape(N * HW, 2)

    # --- K3: + dp contribution, BN(train), ReLU
    out_flat = fused_finish(ypre.reshape(N * HW, Cout), dp_cl, w_dp,
                            params["g_out"], params["bt_out"])      # (N*HW, Cout)
    return jnp.transpose(out_flat.reshape(N, H, W, Cout), (0, 3, 1, 2))  # NCHW


# ----------------------------- main -------------------------------------------

if __name__ == "__main__":
    # APNB's final conv expects 2*in_channels+2 inputs, which only closes when
    # out_channels == in_channels.  H = W = 15 so the PSPModule grid math
    # matches the MaxPool output sizes (7*7 + 3*3 = 58 pooled tokens).
    N, Cin, H, W = 2, 8, 15, 15
    Cout = Cin
    Ck, Cv = 4, 4

    key = jax.random.PRNGKey(0)
    ks = jax.random.split(key, 8)

    params = {
        # f_value: Conv2d(Cin, Cv, 1)
        "w_val": 0.1 * jax.random.normal(ks[0], (Cin, Cv), jnp.float32),
        "b_val": 0.05 * jax.random.normal(ks[1], (1, Cv), jnp.float32),
        # f_key (= f_query): Conv2d(Cin, Ck, 1) + BN + ReLU
        "w_key": 0.1 * jax.random.normal(ks[2], (Cin, Ck), jnp.float32),
        "b_key": 0.05 * jax.random.normal(ks[3], (1, Ck), jnp.float32),
        "g_key": jnp.ones((1, Ck), jnp.float32),
        "bt_key": jnp.zeros((1, Ck), jnp.float32),
        # W: Conv2d(Cv, Cout, 1), zero-initialized (nn.init.constant_ 0)
        "w_W": jnp.zeros((Cv, Cout), jnp.float32),
        "b_W": jnp.zeros((1, Cout), jnp.float32),
        # conv_bn_dropout: Conv2d(2*Cin+2, Cout, 1) + BN + ReLU
        "w_out": 0.1 * jax.random.normal(ks[4], (2 * Cin + 2, Cout), jnp.float32),
        "b_out": 0.05 * jax.random.normal(ks[5], (1, Cout), jnp.float32),
        "g_out": jnp.ones((1, Cout), jnp.float32),
        "bt_out": jnp.zeros((1, Cout), jnp.float32),
    }

    logW, P0, Pp = make_psp_constants(H, W)
    x = jax.random.normal(ks[6], (N, Cin, H, W), jnp.float32)

    out = apnb_forward(x, params, logW, P0, Pp,
                       key_channels=Ck, value_channels=Cv)
    jax.block_until_ready(out)
    assert out.shape == (N, Cout, H, W)
    assert bool(jnp.all(jnp.isfinite(out)))
    print("KERNEL_OK")
</pallas_src>

<mosaic_0001>
module attributes {stable_mosaic.version = 11 : i64} {
  func.func @proj_bn_relu_kernel(%arg0: memref<450x8xf32, #tpu.memory_space<vmem>>, %arg1: memref<8x8xf32, #tpu.memory_space<vmem>>, %arg2: memref<1x8xf32, #tpu.memory_space<vmem>>, %arg3: memref<1x8xf32, #tpu.memory_space<vmem>>, %arg4: memref<1x8xf32, #tpu.memory_space<vmem>>, %arg5: memref<450x8xf32, #tpu.memory_space<vmem>>) attributes {dimension_semantics = [], scalar_prefetch = 0 : i64, scratch_operands = 0 : i64, tpu.core_type = #tpu.core_type<tc>} {
    %c0 = arith.constant 0 : index
    %c0_0 = arith.constant 0 : index
    %0 = vector.load %arg0[%c0, %c0_0] : memref<450x8xf32, #tpu.memory_space<vmem>>, vector<450x8xf32>
    %c0_1 = arith.constant 0 : index
    %c0_2 = arith.constant 0 : index
    %1 = vector.load %arg1[%c0_1, %c0_2] : memref<8x8xf32, #tpu.memory_space<vmem>>, vector<8x8xf32>
    %cst = arith.constant dense<0.000000e+00> : vector<450x8xf32>
    %2 = tpu.matmul %0, %1, %cst {dimension_numbers = #tpu.dot_dimension_numbers<[1], [0], [0], [1], [0, 0, 1, 1], [], []>} : vector<450x8xf32>, vector<8x8xf32>, vector<450x8xf32> -> vector<450x8xf32>
    %c0_3 = arith.constant 0 : index
    %c0_4 = arith.constant 0 : index
    %3 = vector.load %arg2[%c0_3, %c0_4] : memref<1x8xf32, #tpu.memory_space<vmem>>, vector<1x8xf32>
    %4 = vector.broadcast %3 : vector<1x8xf32> to vector<450x8xf32>
    %5 = arith.addf %2, %4 : vector<450x8xf32>
    %cst_5 = arith.constant dense<0.000000e+00> : vector<8xf32>
    %6 = vector.multi_reduction <add>, %5, %cst_5 [0] : vector<450x8xf32> to vector<8xf32>
    %7 = vector.shape_cast %6 : vector<8xf32> to vector<1x8xf32>
    %cst_6 = arith.constant 4.500000e+02 : f32
    %8 = vector.broadcast %cst_6 : f32 to vector<1x8xf32>
    %9 = arith.divf %7, %8 : vector<1x8xf32>
    %10 = vector.broadcast %9 : vector<1x8xf32> to vector<450x8xf32>
    %11 = arith.subf %5, %10 : vector<450x8xf32>
    %12 = arith.mulf %11, %11 : vector<450x8xf32>
    %cst_7 = arith.constant dense<0.000000e+00> : vector<8xf32>
    %13 = vector.multi_reduction <add>, %12, %cst_7 [0] : vector<450x8xf32> to vector<8xf32>
    %14 = vector.shape_cast %13 : vector<8xf32> to vector<1x8xf32>
    %cst_8 = arith.constant 4.500000e+02 : f32
    %15 = vector.broadcast %cst_8 : f32 to vector<1x8xf32>
    %16 = arith.divf %14, %15 : vector<1x8xf32>
    %17 = vector.broadcast %9 : vector<1x8xf32> to vector<450x8xf32>
    %18 = arith.subf %5, %17 : vector<450x8xf32>
    %cst_9 = arith.constant 9.99999974E-6 : f32
    %19 = vector.broadcast %cst_9 : f32 to vector<1x8xf32>
    %20 = arith.addf %16, %19 : vector<1x8xf32>
    %21 = math.rsqrt %20 : vector<1x8xf32>
    %22 = vector.broadcast %21 : vector<1x8xf32> to vector<450x8xf32>
    %23 = arith.mulf %18, %22 : vector<450x8xf32>
    %c0_10 = arith.constant 0 : index
    %c0_11 = arith.constant 0 : index
    %24 = vector.load %arg3[%c0_10, %c0_11] : memref<1x8xf32, #tpu.memory_space<vmem>>, vector<1x8xf32>
    %25 = vector.broadcast %24 : vector<1x8xf32> to vector<450x8xf32>
    %26 = arith.mulf %23, %25 : vector<450x8xf32>
    %c0_12 = arith.constant 0 : index
    %c0_13 = arith.constant 0 : index
    %27 = vector.load %arg4[%c0_12, %c0_13] : memref<1x8xf32, #tpu.memory_space<vmem>>, vector<1x8xf32>
    %28 = vector.broadcast %27 : vector<1x8xf32> to vector<450x8xf32>
    %29 = arith.addf %26, %28 : vector<450x8xf32>
    %cst_14 = arith.constant 0.000000e+00 : f32
    %30 = vector.broadcast %cst_14 : f32 to vector<450x8xf32>
    %31 = arith.maximumf %29, %30 : vector<450x8xf32>
    %32 = tpu.iota {dimensions = array<i32: 1>} : vector<450x8xi32>
    %c4_i32 = arith.constant 4 : i32
    %33 = vector.broadcast %c4_i32 : i32 to vector<450x8xi32>
    %34 = arith.cmpi slt, %32, %33 : vector<450x8xi32>
    %35 = arith.select %34, %31, %5 : vector<450x8xi1>, vector<450x8xf32>
    %c0_15 = arith.constant 0 : index
    %c0_16 = arith.constant 0 : index
    %36 = vector.load %arg5[%c0_15, %c0_16] : memref<450x8xf32, #tpu.memory_space<vmem>>, vector<450x8xf32>
    tpu.vector_store %arg5[%c0_15, %c0_16], %35 {strides = array<i32>} : memref<450x8xf32, #tpu.memory_space<vmem>>, vector<450x8xf32>,
    return
  }
}

module attributes {stable_mosaic.version = 11 : i64} {
  func.func @attn_kernel(%arg0: i32, %arg1: memref<1x225x8xf32, #tpu.memory_space<vmem>>, %arg2: memref<1x225x8xf32, #tpu.memory_space<vmem>>, %arg3: memref<1x58x10xf32, #tpu.memory_space<vmem>>, %arg4: memref<225x58xf32, #tpu.memory_space<vmem>>, %arg5: memref<225x2xf32, #tpu.memory_space<vmem>>, %arg6: memref<4x8xf32, #tpu.memory_space<vmem>>, %arg7: memref<1x8xf32, #tpu.memory_space<vmem>>, %arg8: memref<8x8xf32, #tpu.memory_space<vmem>>, %arg9: memref<8x8xf32, #tpu.memory_space<vmem>>, %arg10: memref<1x8xf32, #tpu.memory_space<vmem>>, %arg11: memref<1x225x8xf32, #tpu.memory_space<vmem>>, %arg12: memref<1x225x2xf32, #tpu.memory_space<vmem>>) attributes {dimension_semantics = [#tpu.dimension_semantics<parallel>], iteration_bounds = array<i64: 2>, scalar_prefetch = 0 : i64, scratch_operands = 0 : i64, tpu.core_type = #tpu.core_type<tc>, window_params = [{transform_indices = @transform_0, window_bounds = array<i64: 1, 225, 8>}, {transform_indices = @transform_1, window_bounds = array<i64: 1, 225, 8>}, {transform_indices = @transform_2, window_bounds = array<i64: 1, 58, 10>}, {pipeline_mode = #tpu.pipeline_mode<synchronous>, transform_indices = @transform_3, window_bounds = array<i64: 225, 58>}, {pipeline_mode = #tpu.pipeline_mode<synchronous>, transform_indices = @transform_4, window_bounds = array<i64: 225, 2>}, {pipeline_mode = #tpu.pipeline_mode<synchronous>, transform_indices = @transform_5, window_bounds = array<i64: 4, 8>}, {pipeline_mode = #tpu.pipeline_mode<synchronous>, transform_indices = @transform_6, window_bounds = array<i64: 1, 8>}, {pipeline_mode = #tpu.pipeline_mode<synchronous>, transform_indices = @transform_7, window_bounds = array<i64: 8, 8>}, {pipeline_mode = #tpu.pipeline_mode<synchronous>, transform_indices = @transform_8, window_bounds = array<i64: 8, 8>}, {pipeline_mode = #tpu.pipeline_mode<synchronous>, transform_indices = @transform_9, window_bounds = array<i64: 1, 8>}, {transform_indices = @transform_10, window_bounds = array<i64: 1, 225, 8>}, {transform_indices = @transform_11, window_bounds = array<i64: 1, 225, 2>}]} {
    %c0 = arith.constant 0 : index
    %c0_0 = arith.constant 0 : index
    %c0_1 = arith.constant 0 : index
    %0 = vector.load %arg2[%c0, %c0_0, %c0_1] : memref<1x225x8xf32, #tpu.memory_space<vmem>>, vector<1x225x8xf32>
    %1 = vector.shape_cast %0 : vector<1x225x8xf32> to vector<225x8xf32>
    %2 = vector.extract_strided_slice %1 {offsets = [0, 0], sizes = [225, 4], strides = [1, 1]} : vector<225x8xf32> to vector<225x4xf32>
    %c0_2 = arith.constant 0 : index
    %c0_3 = arith.constant 0 : index
    %c0_4 = arith.constant 0 : index
    %3 = vector.load %arg3[%c0_2, %c0_3, %c0_4] : memref<1x58x10xf32, #tpu.memory_space<vmem>>, vector<1x58x10xf32>
    %4 = vector.shape_cast %3 : vector<1x58x10xf32> to vector<58x10xf32>
    %5 = vector.extract_strided_slice %4 {offsets = [0, 0], sizes = [58, 4], strides = [1, 1]} : vector<58x10xf32> to vector<58x4xf32>
    %6 = vector.extract_strided_slice %4 {offsets = [0, 4], sizes = [58, 6], strides = [1, 1]} : vector<58x10xf32> to vector<58x6xf32>
    %cst = arith.constant dense<0.000000e+00> : vector<225x58xf32>
    %7 = tpu.matmul %2, %5, %cst {dimension_numbers = #tpu.dot_dimension_numbers<[1], [1], [0], [0], [0, 0, 1, 0], [], []>} : vector<225x4xf32>, vector<58x4xf32>, vector<225x58xf32> -> vector<225x58xf32>
    %cst_5 = arith.constant 5.000000e-01 : f32
    %8 = vector.broadcast %cst_5 : f32 to vector<225x58xf32>
    %9 = arith.mulf %7, %8 : vector<225x58xf32>
    %c0_6 = arith.constant 0 : index
    %c0_7 = arith.constant 0 : index
    %10 = vector.load %arg4[%c0_6, %c0_7] : memref<225x58xf32, #tpu.memory_space<vmem>>, vector<225x58xf32>
    %11 = arith.addf %9, %10 : vector<225x58xf32>
    %cst_8 = arith.constant dense<0xFF800000> : vector<225xf32>
    %12 = vector.multi_reduction <maximumf>, %11, %cst_8 [1] : vector<225x58xf32> to vector<225xf32>
    %13 = vector.shape_cast %12 : vector<225xf32> to vector<225x1xf32>
    %14 = vector.broadcast %13 : vector<225x1xf32> to vector<225x58xf32>
    %15 = arith.subf %11, %14 : vector<225x58xf32>
    %16 = math.exp %15 : vector<225x58xf32>
    %cst_9 = arith.constant dense<0.000000e+00> : vector<225xf32>
    %17 = vector.multi_reduction <add>, %16, %cst_9 [1] : vector<225x58xf32> to vector<225xf32>
    %18 = vector.shape_cast %17 : vector<225xf32> to vector<225x1xf32>
    %19 = tpu.reciprocal %18 {approx = true} : vector<225x1xf32> -> vector<225x1xf32>
    %20 = vector.broadcast %19 : vector<225x1xf32> to vector<225x58xf32>
    %21 = arith.mulf %16, %20 : vector<225x58xf32>
    %cst_10 = arith.constant dense<0.000000e+00> : vector<225x6xf32>
    %22 = tpu.matmul %21, %6, %cst_10 {dimension_numbers = #tpu.dot_dimension_numbers<[1], [0], [0], [1], [0, 0, 1, 1], [], []>} : vector<225x58xf32>, vector<58x6xf32>, vector<225x6xf32> -> vector<225x6xf32>
    %23 = vector.extract_strided_slice %22 {offsets = [0, 0], sizes = [225, 4], strides = [1, 1]} : vector<225x6xf32> to vector<225x4xf32>
    %c0_11 = arith.constant 0 : index
    %c0_12 = arith.constant 0 : index
    %24 = vector.load %arg5[%c0_11, %c0_12] : memref<225x2xf32, #tpu.memory_space<vmem>>, vector<225x2xf32>
    %25 = vector.extract_strided_slice %22 {offsets = [0, 4], sizes = [225, 2], strides = [1, 1]} : vector<225x6xf32> to vector<225x2xf32>
    %26 = arith.subf %24, %25 : vector<225x2xf32>
    %c0_13 = arith.constant 0 : index
    %c0_14 = arith.constant 0 : index
    %c0_15 = arith.constant 0 : index
    %27 = vector.load %arg12[%c0_13, %c0_14, %c0_15] : memref<1x225x2xf32, #tpu.memory_space<vmem>>, vector<1x225x2xf32>
    %28 = vector.shape_cast %27 : vector<1x225x2xf32> to vector<225x2xf32>
    %29 = vector.shape_cast %26 : vector<225x2xf32> to vector<1x225x2xf32>
    tpu.vector_store %arg12[%c0_13, %c0_14, %c0_15], %29 {strides = array<i32>} : memref<1x225x2xf32, #tpu.memory_space<vmem>>, vector<1x225x2xf32>,
    %c0_16 = arith.constant 0 : index
    %c0_17 = arith.constant 0 : index
    %30 = vector.load %arg6[%c0_16, %c0_17] : memref<4x8xf32, #tpu.memory_space<vmem>>, vector<4x8xf32>
    %cst_18 = arith.constant dense<0.000000e+00> : vector<225x8xf32>
    %31 = tpu.matmul %23, %30, %cst_18 {dimension_numbers = #tpu.dot_dimension_numbers<[1], [0], [0], [1], [0, 0, 1, 1], [], []>} : vector<225x4xf32>, vector<4x8xf32>, vector<225x8xf32> -> vector<225x8xf32>
    %c0_19 = arith.constant 0 : index
    %c0_20 = arith.constant 0 : index
    %32 = vector.load %arg7[%c0_19, %c0_20] : memref<1x8xf32, #tpu.memory_space<vmem>>, vector<1x8xf32>
    %33 = vector.broadcast %32 : vector<1x8xf32> to vector<225x8xf32>
    %34 = arith.addf %31, %33 : vector<225x8xf32>
    %c0_21 = arith.constant 0 : index
    %c0_22 = arith.constant 0 : index
    %35 = vector.load %arg8[%c0_21, %c0_22] : memref<8x8xf32, #tpu.memory_space<vmem>>, vector<8x8xf32>
    %cst_23 = arith.constant dense<0.000000e+00> : vector<225x8xf32>
    %36 = tpu.matmul %34, %35, %cst_23 {dimension_numbers = #tpu.dot_dimension_numbers<[1], [0], [0], [1], [0, 0, 1, 1], [], []>} : vector<225x8xf32>, vector<8x8xf32>, vector<225x8xf32> -> vector<225x8xf32>
    %c0_24 = arith.constant 0 : index
    %c0_25 = arith.constant 0 : index
    %c0_26 = arith.constant 0 : index
    %37 = vector.load %arg1[%c0_24, %c0_25, %c0_26] : memref<1x225x8xf32, #tpu.memory_space<vmem>>, vector<1x225x8xf32>
    %38 = vector.shape_cast %37 : vector<1x225x8xf32> to vector<225x8xf32>
    %c0_27 = arith.constant 0 : index
    %c0_28 = arith.constant 0 : index
    %39 = vector.load %arg9[%c0_27, %c0_28] : memref<8x8xf32, #tpu.memory_space<vmem>>, vector<8x8xf32>
    %cst_29 = arith.constant dense<0.000000e+00> : vector<225x8xf32>
    %40 = tpu.matmul %38, %39, %cst_29 {dimension_numbers = #tpu.dot_dimension_numbers<[1], [0], [0], [1], [0, 0, 1, 1], [], []>} : vector<225x8xf32>, vector<8x8xf32>, vector<225x8xf32> -> vector<225x8xf32>
    %41 = arith.addf %36, %40 : vector<225x8xf32>
    %c0_30 = arith.constant 0 : index
    %c0_31 = arith.constant 0 : index
    %42 = vector.load %arg10[%c0_30, %c0_31] : memref<1x8xf32, #tpu.memory_space<vmem>>, vector<1x8xf32>
    %43 = vector.broadcast %42 : vector<1x8xf32> to vector<225x8xf32>
    %44 = arith.addf %41, %43 : vector<225x8xf32>
    %c0_32 = arith.constant 0 : index
    %c0_33 = arith.constant 0 : index
    %c0_34 = arith.constant 0 : index
    %45 = vector.load %arg11[%c0_32, %c0_33, %c0_34] : memref<1x225x8xf32, #tpu.memory_space<vmem>>, vector<1x225x8xf32>
    %46 = vector.shape_cast %45 : vector<1x225x8xf32> to vector<225x8xf32>
    %47 = vector.shape_cast %44 : vector<225x8xf32> to vector<1x225x8xf32>
    tpu.vector_store %arg11[%c0_32, %c0_33, %c0_34], %47 {strides = array<i32>} : memref<1x225x8xf32, #tpu.memory_space<vmem>>, vector<1x225x8xf32>,
    return
  }
  func.func @transform_0(%arg0: i32) -> (i32, i32, i32) {
    %c0_i32 = arith.constant 0 : i32
    %c0_i32_0 = arith.constant 0 : i32
    %c0_i32_1 = arith.constant 0 : i32
    return %arg0, %c0_i32, %c0_i32_0 : i32, i32, i32
  }
  func.func @transform_1(%arg0: i32) -> (i32, i32, i32) {
    %c0_i32 = arith.constant 0 : i32
    %c0_i32_0 = arith.constant 0 : i32
    %c0_i32_1 = arith.constant 0 : i32
    return %arg0, %c0_i32, %c0_i32_0 : i32, i32, i32
  }
  func.func @transform_2(%arg0: i32) -> (i32, i32, i32) {
    %c0_i32 = arith.constant 0 : i32
    %c0_i32_0 = arith.constant 0 : i32
    %c0_i32_1 = arith.constant 0 : i32
    return %arg0, %c0_i32, %c0_i32_0 : i32, i32, i32
  }
  func.func @transform_3(%arg0: i32) -> (i32, i32) {
    %c0_i32 = arith.constant 0 : i32
    %c0_i32_0 = arith.constant 0 : i32
    %c0_i32_1 = arith.constant 0 : i32
    return %c0_i32, %c0_i32_0 : i32, i32
  }
  func.func @transform_4(%arg0: i32) -> (i32, i32) {
    %c0_i32 = arith.constant 0 : i32
    %c0_i32_0 = arith.constant 0 : i32
    %c0_i32_1 = arith.constant 0 : i32
    return %c0_i32, %c0_i32_0 : i32, i32
  }
  func.func @transform_5(%arg0: i32) -> (i32, i32) {
    %c0_i32 = arith.constant 0 : i32
    %c0_i32_0 = arith.constant 0 : i32
    %c0_i32_1 = arith.constant 0 : i32
    return %c0_i32, %c0_i32_0 : i32, i32
  }
  func.func @transform_6(%arg0: i32) -> (i32, i32) {
    %c0_i32 = arith.constant 0 : i32
    %c0_i32_0 = arith.constant 0 : i32
    %c0_i32_1 = arith.constant 0 : i32
    return %c0_i32, %c0_i32_0 : i32, i32
  }
  func.func @transform_7(%arg0: i32) -> (i32, i32) {
    %c0_i32 = arith.constant 0 : i32
    %c0_i32_0 = arith.constant 0 : i32
    %c0_i32_1 = arith.constant 0 : i32
    return %c0_i32, %c0_i32_0 : i32, i32
  }
  func.func @transform_8(%arg0: i32) -> (i32, i32) {
    %c0_i32 = arith.constant 0 : i32
    %c0_i32_0 = arith.constant 0 : i32
    %c0_i32_1 = arith.constant 0 : i32
    return %c0_i32, %c0_i32_0 : i32, i32
  }
  func.func @transform_9(%arg0: i32) -> (i32, i32) {
    %c0_i32 = arith.constant 0 : i32
    %c0_i32_0 = arith.constant 0 : i32
    %c0_i32_1 = arith.constant 0 : i32
    return %c0_i32, %c0_i32_0 : i32, i32
  }
  func.func @transform_10(%arg0: i32) -> (i32, i32, i32) {
    %c0_i32 = arith.constant 0 : i32
    %c0_i32_0 = arith.constant 0 : i32
    %c0_i32_1 = arith.constant 0 : i32
    return %arg0, %c0_i32, %c0_i32_0 : i32, i32, i32
  }
  func.func @transform_11(%arg0: i32) -> (i32, i32, i32) {
    %c0_i32 = arith.constant 0 : i32
    %c0_i32_0 = arith.constant 0 : i32
    %c0_i32_1 = arith.constant 0 : i32
    return %arg0, %c0_i32, %c0_i32_0 : i32, i32, i32
  }
}

module attributes {stable_mosaic.version = 11 : i64} {
  func.func @finish_bn_relu_kernel(%arg0: memref<450x8xf32, #tpu.memory_space<vmem>>, %arg1: memref<450x2xf32, #tpu.memory_space<vmem>>, %arg2: memref<2x8xf32, #tpu.memory_space<vmem>>, %arg3: memref<1x8xf32, #tpu.memory_space<vmem>>, %arg4: memref<1x8xf32, #tpu.memory_space<vmem>>, %arg5: memref<450x8xf32, #tpu.memory_space<vmem>>) attributes {dimension_semantics = [], scalar_prefetch = 0 : i64, scratch_operands = 0 : i64, tpu.core_type = #tpu.core_type<tc>} {
    %c0 = arith.constant 0 : index
    %c0_0 = arith.constant 0 : index
    %0 = vector.load %arg0[%c0, %c0_0] : memref<450x8xf32, #tpu.memory_space<vmem>>, vector<450x8xf32>
    %c0_1 = arith.constant 0 : index
    %c0_2 = arith.constant 0 : index
    %1 = vector.load %arg1[%c0_1, %c0_2] : memref<450x2xf32, #tpu.memory_space<vmem>>, vector<450x2xf32>
    %c0_3 = arith.constant 0 : index
    %c0_4 = arith.constant 0 : index
    %2 = vector.load %arg2[%c0_3, %c0_4] : memref<2x8xf32, #tpu.memory_space<vmem>>, vector<2x8xf32>
    %cst = arith.constant dense<0.000000e+00> : vector<450x8xf32>
    %3 = tpu.matmul %1, %2, %cst {dimension_numbers = #tpu.dot_dimension_numbers<[1], [0], [0], [1], [0, 0, 1, 1], [], []>} : vector<450x2xf32>, vector<2x8xf32>, vector<450x8xf32> -> vector<450x8xf32>
    %4 = arith.addf %0, %3 : vector<450x8xf32>
    %cst_5 = arith.constant dense<0.000000e+00> : vector<8xf32>
    %5 = vector.multi_reduction <add>, %4, %cst_5 [0] : vector<450x8xf32> to vector<8xf32>
    %6 = vector.shape_cast %5 : vector<8xf32> to vector<1x8xf32>
    %cst_6 = arith.constant 4.500000e+02 : f32
    %7 = vector.broadcast %cst_6 : f32 to vector<1x8xf32>
    %8 = arith.divf %6, %7 : vector<1x8xf32>
    %9 = vector.broadcast %8 : vector<1x8xf32> to vector<450x8xf32>
    %10 = arith.subf %4, %9 : vector<450x8xf32>
    %11 = arith.mulf %10, %10 : vector<450x8xf32>
    %cst_7 = arith.constant dense<0.000000e+00> : vector<8xf32>
    %12 = vector.multi_reduction <add>, %11, %cst_7 [0] : vector<450x8xf32> to vector<8xf32>
    %13 = vector.shape_cast %12 : vector<8xf32> to vector<1x8xf32>
    %cst_8 = arith.constant 4.500000e+02 : f32
    %14 = vector.broadcast %cst_8 : f32 to vector<1x8xf32>
    %15 = arith.divf %13, %14 : vector<1x8xf32>
    %16 = vector.broadcast %8 : vector<1x8xf32> to vector<450x8xf32>
    %17 = arith.subf %4, %16 : vector<450x8xf32>
    %cst_9 = arith.constant 9.99999974E-6 : f32
    %18 = vector.broadcast %cst_9 : f32 to vector<1x8xf32>
    %19 = arith.addf %15, %18 : vector<1x8xf32>
    %20 = math.rsqrt %19 : vector<1x8xf32>
    %21 = vector.broadcast %20 : vector<1x8xf32> to vector<450x8xf32>
    %22 = arith.mulf %17, %21 : vector<450x8xf32>
    %c0_10 = arith.constant 0 : index
    %c0_11 = arith.constant 0 : index
    %23 = vector.load %arg3[%c0_10, %c0_11] : memref<1x8xf32, #tpu.memory_space<vmem>>, vector<1x8xf32>
    %24 = vector.broadcast %23 : vector<1x8xf32> to vector<450x8xf32>
    %25 = arith.mulf %22, %24 : vector<450x8xf32>
    %c0_12 = arith.constant 0 : index
    %c0_13 = arith.constant 0 : index
    %26 = vector.load %arg4[%c0_12, %c0_13] : memref<1x8xf32, #tpu.memory_space<vmem>>, vector<1x8xf32>
    %27 = vector.broadcast %26 : vector<1x8xf32> to vector<450x8xf32>
    %28 = arith.addf %25, %27 : vector<450x8xf32>
    %cst_14 = arith.constant 0.000000e+00 : f32
    %29 = vector.broadcast %cst_14 : f32 to vector<450x8xf32>
    %30 = arith.maximumf %28, %29 : vector<450x8xf32>
    %c0_15 = arith.constant 0 : index
    %c0_16 = arith.constant 0 : index
    %31 = vector.load %arg5[%c0_15, %c0_16] : memref<450x8xf32, #tpu.memory_space<vmem>>, vector<450x8xf32>
    tpu.vector_store %arg5[%c0_15, %c0_16], %30 {strides = array<i32>} : memref<450x8xf32, #tpu.memory_space<vmem>>, vector<450x8xf32>,
    return
  }
}

</mosaic_0001>

<bundles_post_ra>
// kernel: apnb_forward.3
= control target key start
LH: loop header
LB: loop body
LE: loop exit
PB: predicated region body
PF: predicated region fallthrough
CT: control target
= control target key end

     0   :  { %vm85_vm0 = vcmask 64512   ;;  %v1625_v0 = vmov 0.0   ;;  %vm1626_vm1 = vmmov 0   ;;  %vm718_vm2 = vcmask 58368   ;;  %s3637_s1 = inlined_call_operand.vmem [shape: f32[8,8], index: 1, kind: input, shape index: {}]   ;;  %s3638_s0 = inlined_call_operand.vmem [shape: f32[450,8], index: 0, kind: input, shape index: {}]   ;;  %s3639_s2 = inlined_call_operand.vmem [shape: f32[1,8], index: 2, kind: input, shape index: {}]   ;;  %s3640_s3 = inlined_call_operand.vmem [shape: f32[1,8], index: 3, kind: input, shape index: {}]   ;;  %s3641_s4 = inlined_call_operand.vmem [shape: f32[1,8], index: 4, kind: input, shape index: {}]   ;;  %s3642_s5 = inlined_call_operand.vmem [shape: f32[450,8], index: 5, kind: output, shape index: {}]  }
   0x1   :  { %1446 = vmatprep.subr.mxu0 %v1625_v0  ;;  %v77_v1 = vld [vmem:[%s3637_s1] sm:$0xff]  ;;  %1448 = vmatprep.mubr.msk.f32.mxu0 %vm1626_vm1, %v1625_v0  ;;  %v21_v3 = vld [vmem:[%s3638_s0 + $0x8] sm:$0xff]  ;;  %v22_v5 = vld [vmem:[%s3638_s0 + $0x10] sm:$0xff] }
   0x2   :  { %v20_v2 = vld [vmem:[%s3638_s0] sm:$0xff]  ;;  %1447 = vmatpush3.msra.mxu0 %v77_v1  ;;  %1619 = vmatprep.subr.mxu1 %v1625_v0  ;;  %v49_v4 = vld [vmem:[%s3638_s0 + $0xe8] sm:$0xff]  ;;  %v50_v6 = vld [vmem:[%s3638_s0 + $0xf0] sm:$0xff] }
   0x3   :  { %1449 = vmatmul.mubr.msk.f32.vlgmr.msra.gmra.mxu0 %vm85_vm0, %v20_v2  ;;  %1620 = vmatpush3.msra.mxu1 %v77_v1  ;;  %v23_v7 = vld [vmem:[%s3638_s0 + $0x18] sm:$0xff]  ;;  %v24_v9 = vld [vmem:[%s3638_s0 + $0x20] sm:$0xff]  ;;  %v25_v11 = vld [vmem:[%s3638_s0 + $0x28] sm:$0xff] }
   0x4   :  { %1451 = vmatprep.mubr.msk.f32.mxu0 %vm1626_vm1, %v1625_v0  ;;  %1535 = vmatprep.mubr.msk.f32.mxu1 %vm1626_vm1, %v1625_v0  ;;  %v51_v8 = vld [vmem:[%s3638_s0 + $0xf8] sm:$0xff]  ;;  %v52_v10 = vld [vmem:[%s3638_s0 + $0x100] sm:$0xff]  ;;  %v53_v12 = vld [vmem:[%s3638_s0 + $0x108] sm:$0xff] }
   0x5   :  { %1536 = vmatmul.mubr.msk.f32.vlgmr.msra.gmra.mxu1 %vm85_vm0, %v49_v4  ;;  %v26_v13 = vld [vmem:[%s3638_s0 + $0x30] sm:$0xff]  ;;  %v27_v15 = vld [vmem:[%s3638_s0 + $0x38] sm:$0xff]  ;;  %v28_v17 = vld [vmem:[%s3638_s0 + $0x40] sm:$0xff] }
   0x6   :  { %1538 = vmatprep.mubr.msk.f32.mxu1 %vm1626_vm1, %v1625_v0  ;;  %v54_v14 = vld [vmem:[%s3638_s0 + $0x110] sm:$0xff]  ;;  %v55_v16 = vld [vmem:[%s3638_s0 + $0x118] sm:$0xff]  ;;  %v56_v18 = vld [vmem:[%s3638_s0 + $0x120] sm:$0xff] }
   0x7   :  { %1452 = vmatmul.mubr.msk.f32.gmra.mxu0 %vm85_vm0, %v21_v3  ;;  %v29_v19 = vld [vmem:[%s3638_s0 + $0x48] sm:$0xff]  ;;  %v30_v21 = vld [vmem:[%s3638_s0 + $0x50] sm:$0xff]  ;;  %v31_v23 = vld [vmem:[%s3638_s0 + $0x58] sm:$0xff] }
   0x8   :  { %1454 = vmatprep.mubr.msk.f32.mxu0 %vm1626_vm1, %v1625_v0  ;;  %v57_v20 = vld [vmem:[%s3638_s0 + $0x128] sm:$0xff]  ;;  %v58_v22 = vld [vmem:[%s3638_s0 + $0x130] sm:$0xff]  ;;  %v59_v24 = vld [vmem:[%s3638_s0 + $0x138] sm:$0xff] }
   0x9   :  { %1539 = vmatmul.mubr.msk.f32.gmra.mxu1 %vm85_vm0, %v50_v6  ;;  %v32_v25 = vld [vmem:[%s3638_s0 + $0x60] sm:$0xff]  ;;  %v33_v27 = vld [vmem:[%s3638_s0 + $0x68] sm:$0xff]  ;;  %v34_v29 = vld [vmem:[%s3638_s0 + $0x70] sm:$0xff] }
   0xa   :  { %1541 = vmatprep.mubr.msk.f32.mxu1 %vm1626_vm1, %v1625_v0  ;;  %v60_v26 = vld [vmem:[%s3638_s0 + $0x140] sm:$0xff]  ;;  %v61_v28 = vld [vmem:[%s3638_s0 + $0x148] sm:$0xff]  ;;  %v62_v30 = vld [vmem:[%s3638_s0 + $0x150] sm:$0xff] }
   0xb   :  { %1455 = vmatmul.mubr.msk.f32.gmra.mxu0 %vm85_vm0, %v22_v5  ;;  %v35_v31 = vld [vmem:[%s3638_s0 + $0x78] sm:$0xff]  ;;  %v36_v33 = vld [vmem:[%s3638_s0 + $0x80] sm:$0xff]  ;;  %v37_v35 = vld [vmem:[%s3638_s0 + $0x88] sm:$0xff] }
   0xc   :  { %1457 = vmatprep.mubr.msk.f32.mxu0 %vm1626_vm1, %v1625_v0  ;;  %v63_v32 = vld [vmem:[%s3638_s0 + $0x158] sm:$0xff]  ;;  %v64_v34 = vld [vmem:[%s3638_s0 + $0x160] sm:$0xff]  ;;  %v65_v36 = vld [vmem:[%s3638_s0 + $0x168] sm:$0xff] }
   0xd   :  { %1542 = vmatmul.mubr.msk.f32.gmra.mxu1 %vm85_vm0, %v51_v8  ;;  %v38_v37 = vld [vmem:[%s3638_s0 + $0x90] sm:$0xff]  ;;  %v39_v39 = vld [vmem:[%s3638_s0 + $0x98] sm:$0xff]  ;;  %v40_v41 = vld [vmem:[%s3638_s0 + $0xa0] sm:$0xff] }
   0xe   :  { %1544 = vmatprep.mubr.msk.f32.mxu1 %vm1626_vm1, %v1625_v0  ;;  %v66_v38 = vld [vmem:[%s3638_s0 + $0x170] sm:$0xff]  ;;  %v67_v40 = vld [vmem:[%s3638_s0 + $0x178] sm:$0xff]  ;;  %v68_v42 = vld [vmem:[%s3638_s0 + $0x180] sm:$0xff] }
   0xf   :  { %1458 = vmatmul.mubr.msk.f32.gmra.mxu0 %vm85_vm0, %v23_v7  ;;  %v41_v43 = vld [vmem:[%s3638_s0 + $0xa8] sm:$0xff]  ;;  %v42_v45 = vld [vmem:[%s3638_s0 + $0xb0] sm:$0xff]  ;;  %v43_v47 = vld [vmem:[%s3638_s0 + $0xb8] sm:$0xff] }
  0x10   :  { %1460 = vmatprep.mubr.msk.f32.mxu0 %vm1626_vm1, %v1625_v0  ;;  %v69_v44 = vld [vmem:[%s3638_s0 + $0x188] sm:$0xff]  ;;  %v70_v46 = vld [vmem:[%s3638_s0 + $0x190] sm:$0xff]  ;;  %v71_v48 = vld [vmem:[%s3638_s0 + $0x198] sm:$0xff] }
  0x11   :  { %1545 = vmatmul.mubr.msk.f32.gmra.mxu1 %vm85_vm0, %v52_v10  ;;  %v44_v49 = vld [vmem:[%s3638_s0 + $0xc0] sm:$0xff]  ;;  %v45_v51 = vld [vmem:[%s3638_s0 + $0xc8] sm:$0xff]  ;;  %v46_v53 = vld [vmem:[%s3638_s0 + $0xd0] sm:$0xff] }
  0x12   :  { %1547 = vmatprep.mubr.msk.f32.mxu1 %vm1626_vm1, %v1625_v0  ;;  %v72_v50 = vld [vmem:[%s3638_s0 + $0x1a0] sm:$0xff]  ;;  %v73_v52 = vld [vmem:[%s3638_s0 + $0x1a8] sm:$0xff]  ;;  %v74_v54 = vld [vmem:[%s3638_s0 + $0x1b0] sm:$0xff] }
  0x13   :  { %1461 = vmatmul.mubr.msk.f32.gmra.mxu0 %vm85_vm0, %v24_v9  ;;  %v47_v55 = vld [vmem:[%s3638_s0 + $0xd8] sm:$0xff]  ;;  %v48_v57 = vld [vmem:[%s3638_s0 + $0xe0] sm:$0xff] }
  0x14   :  { %1463 = vmatprep.mubr.msk.f32.mxu0 %vm1626_vm1, %v1625_v0  ;;  %v75_v56 = vld [vmem:[%s3638_s0 + $0x1b8] sm:$0xff]  ;;  %v76_v58 = vld [vmem:[%s3638_s0 + $0x1c0] sm:$0x3] }
  0x15   :  { %1548 = vmatmul.mubr.msk.f32.gmra.mxu1 %vm85_vm0, %v53_v12 }
  0x16   :  { %1550 = vmatprep.mubr.msk.f32.mxu1 %vm1626_vm1, %v1625_v0 }
  0x17   :  { %1464 = vmatmul.mubr.msk.f32.gmra.mxu0 %vm85_vm0, %v25_v11 }
  0x18   :  { %1466 = vmatprep.mubr.msk.f32.mxu0 %vm1626_vm1, %v1625_v0 }
  0x19   :  { %1551 = vmatmul.mubr.msk.f32.gmra.mxu1 %vm85_vm0, %v54_v14 }
  0x1a   :  { %1553 = vmatprep.mubr.msk.f32.mxu1 %vm1626_vm1, %v1625_v0 }
  0x1b   :  { %1467 = vmatmul.mubr.msk.f32.gmra.mxu0 %vm85_vm0, %v26_v13 }
  0x1c   :  { %1469 = vmatprep.mubr.msk.f32.mxu0 %vm1626_vm1, %v1625_v0 }
  0x1d   :  { %1554 = vmatmul.mubr.msk.f32.gmra.mxu1 %vm85_vm0, %v55_v16 }
  0x1e   :  { %1556 = vmatprep.mubr.msk.f32.mxu1 %vm1626_vm1, %v1625_v0 }
  0x1f   :  { %1470 = vmatmul.mubr.msk.f32.gmra.mxu0 %vm85_vm0, %v27_v15 }
  0x20   :  { %1472 = vmatprep.mubr.msk.f32.mxu0 %vm1626_vm1, %v1625_v0 }
  0x21   :  { %1557 = vmatmul.mubr.msk.f32.gmra.mxu1 %vm85_vm0, %v56_v18 }
  0x22   :  { %1559 = vmatprep.mubr.msk.f32.mxu1 %vm1626_vm1, %v1625_v0 }
  0x23   :  { %1473 = vmatmul.mubr.msk.f32.gmra.mxu0 %vm85_vm0, %v28_v17 }
  0x24   :  { %1475 = vmatprep.mubr.msk.f32.mxu0 %vm1626_vm1, %v1625_v0 }
  0x25   :  { %1560 = vmatmul.mubr.msk.f32.gmra.mxu1 %vm85_vm0, %v57_v20 }
  0x26   :  { %1562 = vmatprep.mubr.msk.f32.mxu1 %vm1626_vm1, %v1625_v0 }
  0x27   :  { %1476 = vmatmul.mubr.msk.f32.gmra.mxu0 %vm85_vm0, %v29_v19 }
  0x28   :  { %1478 = vmatprep.mubr.msk.f32.mxu0 %vm1626_vm1, %v1625_v0 }
  0x29   :  { %1563 = vmatmul.mubr.msk.f32.gmra.mxu1 %vm85_vm0, %v58_v22 }
  0x2a   :  { %1565 = vmatprep.mubr.msk.f32.mxu1 %vm1626_vm1, %v1625_v0 }
  0x2b   :  { %1479 = vmatmul.mubr.msk.f32.gmra.mxu0 %vm85_vm0, %v30_v21 }
  0x2c   :  { %1481 = vmatprep.mubr.msk.f32.mxu0 %vm1626_vm1, %v1625_v0 }
  0x2d   :  { %1566 = vmatmul.mubr.msk.f32.gmra.mxu1 %vm85_vm0, %v59_v24 }
  0x2e   :  { %1568 = vmatprep.mubr.msk.f32.mxu1 %vm1626_vm1, %v1625_v0 }
  0x2f   :  { %1482 = vmatmul.mubr.msk.f32.gmra.mxu0 %vm85_vm0, %v31_v23 }
  0x30   :  { %1484 = vmatprep.mubr.msk.f32.mxu0 %vm1626_vm1, %v1625_v0 }
  0x31   :  { %1569 = vmatmul.mubr.msk.f32.gmra.mxu1 %vm85_vm0, %v60_v26 }
  0x32   :  { %1571 = vmatprep.mubr.msk.f32.mxu1 %vm1626_vm1, %v1625_v0 }
  0x33   :  { %1485 = vmatmul.mubr.msk.f32.gmra.mxu0 %vm85_vm0, %v32_v25 }
  0x34   :  { %1487 = vmatprep.mubr.msk.f32.mxu0 %vm1626_vm1, %v1625_v0 }
  0x35   :  { %1572 = vmatmul.mubr.msk.f32.gmra.mxu1 %vm85_vm0, %v61_v28 }
  0x36   :  { %1574 = vmatprep.mubr.msk.f32.mxu1 %vm1626_vm1, %v1625_v0 }
  0x37   :  { %1488 = vmatmul.mubr.msk.f32.gmra.mxu0 %vm85_vm0, %v33_v27 }
  0x38   :  { %1490 = vmatprep.mubr.msk.f32.mxu0 %vm1626_vm1, %v1625_v0 }
  0x39   :  { %1575 = vmatmul.mubr.msk.f32.gmra.mxu1 %vm85_vm0, %v62_v30 }
  0x3a   :  { %1577 = vmatprep.mubr.msk.f32.mxu1 %vm1626_vm1, %v1625_v0 }
  0x3b   :  { %1491 = vmatmul.mubr.msk.f32.gmra.mxu0 %vm85_vm0, %v34_v29 }
  0x3c   :  { %1493 = vmatprep.mubr.msk.f32.mxu0 %vm1626_vm1, %v1625_v0 }
  0x3d   :  { %1578 = vmatmul.mubr.msk.f32.gmra.mxu1 %vm85_vm0, %v63_v32 }
  0x3e   :  { %1580 = vmatprep.mubr.msk.f32.mxu1 %vm1626_vm1, %v1625_v0 }
  0x3f   :  { %1494 = vmatmul.mubr.msk.f32.gmra.mxu0 %vm85_vm0, %v35_v31 }
  0x40   :  { %1496 = vmatprep.mubr.msk.f32.mxu0 %vm1626_vm1, %v1625_v0 }
  0x41   :  { %1581 = vmatmul.mubr.msk.f32.gmra.mxu1 %vm85_vm0, %v64_v34 }
  0x42   :  { %1583 = vmatprep.mubr.msk.f32.mxu1 %vm1626_vm1, %v1625_v0 }
  0x43   :  { %1497 = vmatmul.mubr.msk.f32.gmra.mxu0 %vm85_vm0, %v36_v33 }
  0x44   :  { %1499 = vmatprep.mubr.msk.f32.mxu0 %vm1626_vm1, %v1625_v0 }
  0x45   :  { %1584 = vmatmul.mubr.msk.f32.gmra.mxu1 %vm85_vm0, %v65_v36 }
  0x46   :  { %1586 = vmatprep.mubr.msk.f32.mxu1 %vm1626_vm1, %v1625_v0 }
  0x47   :  { %1500 = vmatmul.mubr.msk.f32.gmra.mxu0 %vm85_vm0, %v37_v35 }
  0x48   :  { %1502 = vmatprep.mubr.msk.f32.mxu0 %vm1626_vm1, %v1625_v0 }
  0x49   :  { %1587 = vmatmul.mubr.msk.f32.gmra.mxu1 %vm85_vm0, %v66_v38 }
  0x4a   :  { %1589 = vmatprep.mubr.msk.f32.mxu1 %vm1626_vm1, %v1625_v0 }
  0x4b   :  { %1503 = vmatmul.mubr.msk.f32.gmra.mxu0 %vm85_vm0, %v38_v37 }
  0x4c   :  { %1505 = vmatprep.mubr.msk.f32.mxu0 %vm1626_vm1, %v1625_v0 }
  0x4d   :  { %1590 = vmatmul.mubr.msk.f32.gmra.mxu1 %vm85_vm0, %v67_v40 }
  0x4e   :  { %1592 = vmatprep.mubr.msk.f32.mxu1 %vm1626_vm1, %v1625_v0 }
  0x4f   :  { %1506 = vmatmul.mubr.msk.f32.gmra.mxu0 %vm85_vm0, %v39_v39 }
  0x50   :  { %1508 = vmatprep.mubr.msk.f32.mxu0 %vm1626_vm1, %v1625_v0 }
  0x51   :  { %1593 = vmatmul.mubr.msk.f32.gmra.mxu1 %vm85_vm0, %v68_v42 }
  0x52   :  { %1595 = vmatprep.mubr.msk.f32.mxu1 %vm1626_vm1, %v1625_v0 }
  0x53   :  { %1509 = vmatmul.mubr.msk.f32.gmra.mxu0 %vm85_vm0, %v40_v41 }
  0x54   :  { %1511 = vmatprep.mubr.msk.f32.mxu0 %vm1626_vm1, %v1625_v0 }
  0x55   :  { %1596 = vmatmul.mubr.msk.f32.gmra.mxu1 %vm85_vm0, %v69_v44 }
  0x56   :  { %1598 = vmatprep.mubr.msk.f32.mxu1 %vm1626_vm1, %v1625_v0 }
  0x57   :  { %1512 = vmatmul.mubr.msk.f32.gmra.mxu0 %vm85_vm0, %v41_v43 }
  0x58   :  { %1514 = vmatprep.mubr.msk.f32.mxu0 %vm1626_vm1, %v1625_v0 }
  0x59   :  { %1599 = vmatmul.mubr.msk.f32.gmra.mxu1 %vm85_vm0, %v70_v46 }
  0x5a   :  { %1601 = vmatprep.mubr.msk.f32.mxu1 %vm1626_vm1, %v1625_v0 }
  0x5b   :  { %1515 = vmatmul.mubr.msk.f32.gmra.mxu0 %vm85_vm0, %v42_v45 }
  0x5c   :  { %1517 = vmatprep.mubr.msk.f32.mxu0 %vm1626_vm1, %v1625_v0 }
  0x5d   :  { %1602 = vmatmul.mubr.msk.f32.gmra.mxu1 %vm85_vm0, %v71_v48 }
  0x5e   :  { %1604 = vmatprep.mubr.msk.f32.mxu1 %vm1626_vm1, %v1625_v0 }
  0x5f   :  { %1518 = vmatmul.mubr.msk.f32.gmra.mxu0 %vm85_vm0, %v43_v47  ;;  %v2037_v47 = vld [vmem:[%s3639_s2] ss:$0 sm:$0xff] }
  0x60   :  { %1520 = vmatprep.mubr.msk.f32.mxu0 %vm1626_vm1, %v1625_v0 }
  0x61   :  { %1605 = vmatmul.mubr.msk.f32.gmra.mxu1 %vm85_vm0, %v72_v50 }
  0x62   :  { %1607 = vmatprep.mubr.msk.f32.mxu1 %vm1626_vm1, %v1625_v0 }
  0x63   :  { %1521 = vmatmul.mubr.msk.f32.gmra.mxu0 %vm85_vm0, %v44_v49 }
  0x64   :  { %1523 = vmatprep.mubr.msk.f32.mxu0 %vm1626_vm1, %v1625_v0 }
  0x65   :  { %1608 = vmatmul.mubr.msk.f32.gmra.mxu1 %vm85_vm0, %v73_v52 }
  0x66   :  { %1610 = vmatprep.mubr.msk.f32.mxu1 %vm1626_vm1, %v1625_v0 }
  0x67   :  { %1524 = vmatmul.mubr.msk.f32.gmra.mxu0 %vm85_vm0, %v45_v51 }
  0x68   :  { %1526 = vmatprep.mubr.msk.f32.mxu0 %vm1626_vm1, %v1625_v0 }
  0x69   :  { %1611 = vmatmul.mubr.msk.f32.gmra.mxu1 %vm85_vm0, %v74_v54 }
  0x6a   :  { %1613 = vmatprep.mubr.msk.f32.mxu1 %vm1626_vm1, %v1625_v0 }
  0x6b   :  { %1527 = vmatmul.mubr.msk.f32.gmra.mxu0 %vm85_vm0, %v46_v53 }
  0x6c   :  { %1529 = vmatprep.mubr.msk.f32.mxu0 %vm1626_vm1, %v1625_v0 }
  0x6d   :  { %1614 = vmatmul.mubr.msk.f32.gmra.mxu1 %vm85_vm0, %v75_v56 }
  0x6e   :  { %1616 = vmatprep.mubr.msk.f32.mxu1 %vm1626_vm1, %v1625_v0 }
  0x6f   :  { %1530 = vmatmul.mubr.msk.f32.gmra.mxu0 %vm85_vm0, %v47_v55 }
  0x70   :  { %1532 = vmatprep.mubr.msk.f32.mxu0 %vm1626_vm1, %v1625_v0 }
  0x71   :  { %1617 = vmatmul.mubr.msk.f32.gmra.mxu1 %vm85_vm0, %v76_v58 }
  0x73   :  { %1533 = vmatmul.mubr.msk.f32.gmra.mxu0 %vm85_vm0, %v48_v57 }
  0xc3   :  { %v323_v59 = vpop.f32.mrf.mxu0 }
  0xc4   :  { %v2045_v53 = vadd.f32 %v2037_v47, %v323_v59 }
  0xc5   :  { %v1450_v60 = vpop.f32.mrf.mxu0  ;;  %v2004_v62 = vpop.f32.mrf.mxu1 }
  0xc6   :  { %3735 = vst [vmem:[#allocation3_spill] sm:$0xff] %v2045_v53 }
  0xc7   :  { %v328_v61 = vpop.f32.mrf.mxu0  ;;  %v1537_v1 = vpop.f32.mrf.mxu1 }
  0xc8   :  { %v2040_v50 = vadd.f32 %v2037_v47, %v328_v61 }
  0xc9   :  { %v1453_v63 = vpop.f32.mrf.mxu0  ;;  %v2006_v3 = vpop.f32.mrf.mxu1 }
  0xca   :  { %3734 = vst [vmem:[#allocation2_spill] sm:$0xff] %v2040_v50  ;;  %v608_v57 = vsel %vm85_vm0, %v2040_v50, 0.0  ;;  %v607_v63 = vsel %vm85_vm0, %v2045_v53, 0.0 }
  0xcb   :  { %v333_v2 = vpop.f32.mrf.mxu0  ;;  %v1540_v0 = vpop.f32.mrf.mxu1 }
  0xcc   :  { %v2048_v54 = vadd.f32 %v2037_v47, %v333_v2  ;;  %v609_v2 = vadd.f32 %v608_v57, %v607_v63 }
  0xcd   :  { %v1456_v4 = vpop.f32.mrf.mxu0  ;;  %v2008_v6 = vpop.f32.mrf.mxu1 }
  0xce   :  { %3736 = vst [vmem:[#allocation4_spill] sm:$0xff] %v2048_v54  ;;  %v610_v59 = vsel %vm85_vm0, %v2048_v54, 0.0 }
  0xcf   :  { %v338_v5 = vpop.f32.mrf.mxu0  ;;  %v1543_v8 = vpop.f32.mrf.mxu1 }
  0xd0   :  { %v2053_v58 = vadd.f32 %v2037_v47, %v338_v5  ;;  %v611_v8 = vadd.f32 %v610_v59, %v609_v2 }
  0xd1   :  { %v1459_v7 = vpop.f32.mrf.mxu0  ;;  %v2010_v10 = vpop.f32.mrf.mxu1 }
  0xd2   :  { %3737 = vst [vmem:[#allocation5_spill] sm:$0xff] %v2053_v58  ;;  %v612_v7 = vsel %vm85_vm0, %v2053_v58, 0.0 }
  0xd3   :  { %v343_v9 = vpop.f32.mrf.mxu0  ;;  %v1546_v12 = vpop.f32.mrf.mxu1 }
  0xd4   :  { %v2062_v1 = vadd.f32 %v2037_v47, %v343_v9  ;;  %v613_v9 = vadd.f32 %v612_v7, %v611_v8 }
  0xd5   :  { %v1462_v11 = vpop.f32.mrf.mxu0  ;;  %v2012_v14 = vpop.f32.mrf.mxu1 }
  0xd6   :  { %3738 = vst [vmem:[#allocation6_spill] sm:$0xff] %v2062_v1 }
  0xd7   :  { %v348_v13 = vpop.f32.mrf.mxu0  ;;  %v1549_v16 = vpop.f32.mrf.mxu1 }
  0xd8   :  { %v2067_v5 = vadd.f32 %v2037_v47, %v348_v13 }
  0xd9   :  { %v1465_v15 = vpop.f32.mrf.mxu0  ;;  %v2014_v18 = vpop.f32.mrf.mxu1 }
  0xda   :  { %3739 = vst [vmem:[#allocation7_spill] sm:$0xff] %v2067_v5  ;;  %v614_v15 = vsel %vm85_vm0, %v2062_v1, 0.0 }
  0xdb   :  { %v353_v17 = vpop.f32.mrf.mxu0  ;;  %v1552_v20 = vpop.f32.mrf.mxu1  ;;  %v615_v13 = vadd.f32 %v614_v15, %v613_v9 }
  0xdc   :  { %v2074_v16 = vadd.f32 %v2037_v47, %v353_v17 }
  0xdd   :  { %v1468_v19 = vpop.f32.mrf.mxu0  ;;  %v2016_v22 = vpop.f32.mrf.mxu1 }
  0xde   :  { %3740 = vst [vmem:[#allocation8_spill] sm:$0xff] %v2074_v16 }
  0xdf   :  { %v358_v21 = vpop.f32.mrf.mxu0  ;;  %v1555_v24 = vpop.f32.mrf.mxu1 }
  0xe0   :  { %v2079_v24 = vadd.f32 %v2037_v47, %v358_v21 }
  0xe1   :  { %v1471_v23 = vpop.f32.mrf.mxu0  ;;  %v2018_v26 = vpop.f32.mrf.mxu1 }
  0xe2   :  { %v616_v23 = vsel %vm85_vm0, %v2067_v5, 0.0  ;;  %3741 = vst [vmem:[#allocation9_spill] sm:$0xff] %v2079_v24 }
  0xe3   :  { %v363_v25 = vpop.f32.mrf.mxu0  ;;  %v1558_v28 = vpop.f32.mrf.mxu1  ;;  %v617_v17 = vadd.f32 %v616_v23, %v615_v13 }
  0xe5   :  { %v1474_v27 = vpop.f32.mrf.mxu0  ;;  %v2020_v30 = vpop.f32.mrf.mxu1 }
  0xe7   :  { %v368_v29 = vpop.f32.mrf.mxu0  ;;  %v1561_v32 = vpop.f32.mrf.mxu1 }
  0xe8   :  { %v2086_v32 = vadd.f32 %v2037_v47, %v363_v25 }
  0xe9   :  { %v1477_v31 = vpop.f32.mrf.mxu0  ;;  %v2022_v34 = vpop.f32.mrf.mxu1 }
  0xea   :  { %v618_v31 = vsel %vm85_vm0, %v2074_v16, 0.0  ;;  %3742 = vst [vmem:[#allocation10_spill] sm:$0xff] %v2086_v32 }
  0xeb   :  { %v373_v33 = vpop.f32.mrf.mxu0  ;;  %v1564_v36 = vpop.f32.mrf.mxu1  ;;  %v619_v21 = vadd.f32 %v618_v31, %v617_v17 }
  0xed   :  { %v1480_v35 = vpop.f32.mrf.mxu0  ;;  %v2024_v38 = vpop.f32.mrf.mxu1 }
  0xef   :  { %v378_v37 = vpop.f32.mrf.mxu0  ;;  %v1567_v40 = vpop.f32.mrf.mxu1 }
  0xf0   :  { %v2091_v40 = vadd.f32 %v2037_v47, %v368_v29  ;;  %v2103_v63 = vadd.f32 %v2037_v47, %v378_v37 }
  0xf1   :  { %v1483_v39 = vpop.f32.mrf.mxu0  ;;  %v2028_v42 = vpop.f32.mrf.mxu1 }
  0xf2   :  { %v620_v39 = vsel %vm85_vm0, %v2079_v24, 0.0  ;;  %3743 = vst [vmem:[#allocation11_spill] sm:$0xff] %v2091_v40  ;;  %v624_v57 = vsel %vm85_vm0, %v2091_v40, 0.0  ;;  %3745 = vst [vmem:[#allocation13_spill] sm:$0xff] %v2103_v63  ;;  %v628_v15 = vsel %vm85_vm0, %v2103_v63, 0.0 }
  0xf3   :  { %v2026_v41 = vpop.f32.mrf.mxu0  ;;  %v1570_v44 = vpop.f32.mrf.mxu1  ;;  %v621_v25 = vadd.f32 %v620_v39, %v619_v21 }
  0xf5   :  { %v1486_v43 = vpop.f32.mrf.mxu0  ;;  %v2032_v46 = vpop.f32.mrf.mxu1 }
  0xf7   :  { %v2030_v45 = vpop.f32.mrf.mxu0  ;;  %v1573_v49 = vpop.f32.mrf.mxu1 }
  0xf8   :  { %v2098_v49 = vadd.f32 %v2037_v47, %v373_v33  ;;  %v2111_v33 = vadd.f32 %v2037_v47, %v2026_v41  ;;  %v2117_v37 = vadd.f32 %v2037_v47, %v2030_v45 }
  0xf9   :  { %v1489_v48 = vpop.f32.mrf.mxu0  ;;  %v2042_v52 = vpop.f32.mrf.mxu1 }
  0xfa   :  { %v622_v48 = vsel %vm85_vm0, %v2086_v32, 0.0  ;;  %3744 = vst [vmem:[#allocation12_spill] sm:$0xff] %v2098_v49  ;;  %3746 = vst [vmem:[#allocation14_spill] sm:$0xff] %v2111_v33  ;;  %v630_v23 = vsel %vm85_vm0, %v2111_v33, 0.0 }
  0xfb   :  { %v393_v51 = vpop.f32.mrf.mxu0  ;;  %v1576_v56 = vpop.f32.mrf.mxu1  ;;  %v623_v29 = vadd.f32 %v622_v48, %v621_v25  ;;  %3747 = vst [vmem:[#allocation15_spill] sm:$0xff] %v2117_v37 }
  0xfc   :  { %v2124_v41 = vadd.f32 %v2037_v47, %v393_v51 }
  0xfd   :  { %v1492_v55 = vpop.f32.mrf.mxu0  ;;  %v2055_v61 = vpop.f32.mrf.mxu1 }
  0xfe   :  { %3748 = vst [vmem:[#allocation16_spill] sm:$0xff] %v2124_v41  ;;  %v634_v48 = vsel %vm85_vm0, %v2124_v41, 0.0 }
  0xff   :  { %v398_v60 = vpop.f32.mrf.mxu0  ;;  %v1579_v0 = vpop.f32.mrf.mxu1 }
 0x100   :  { %v625_v0 = vadd.f32 %v624_v57, %v623_v29 }
 0x101   :  { %v1495_v4 = vpop.f32.mrf.mxu0  ;;  %v2069_v12 = vpop.f32.mrf.mxu1 }
 0x102   :  { %v626_v4 = vsel %vm85_vm0, %v2098_v49, 0.0 }
 0x103   :  { %v403_v11 = vpop.f32.mrf.mxu0  ;;  %v1582_v20 = vpop.f32.mrf.mxu1  ;;  %v627_v9 = vadd.f32 %v626_v4, %v625_v0 }
 0x104   :  { %v2136_v25 = vadd.f32 %v2037_v47, %v403_v11 }
 0x105   :  { %v1498_v19 = vpop.f32.mrf.mxu0  ;;  %v2081_v28 = vpop.f32.mrf.mxu1  ;;  %v629_v13 = vadd.f32 %v628_v15, %v627_v9 }
 0x106   :  { %3750 = vst [vmem:[#allocation18_spill] sm:$0xff] %v2136_v25 }
 0x107   :  { %v408_v27 = vpop.f32.mrf.mxu0  ;;  %v1585_v36 = vpop.f32.mrf.mxu1  ;;  %v631_v45 = vadd.f32 %v630_v23, %v629_v13 }
 0x108   :  { %v2129_v36 = vadd.f32 %v2037_v47, %v398_v60  ;;  %v2141_v29 = vadd.f32 %v2037_v47, %v408_v27 }
 0x109   :  { %v1501_v35 = vpop.f32.mrf.mxu0  ;;  %v2093_v44 = vpop.f32.mrf.mxu1 }
 0x10a   :  { %v632_v35 = vsel %vm85_vm0, %v2117_v37, 0.0  ;;  %3749 = vst [vmem:[#allocation17_spill] sm:$0xff] %v2129_v36  ;;  %v636_v57 = vsel %vm85_vm0, %v2129_v36, 0.0  ;;  %3751 = vst [vmem:[#allocation19_spill] sm:$0xff] %v2141_v29  ;;  %v640_v23 = vsel %vm85_vm0, %v2141_v29, 0.0 }
 0x10b   :  { %v413_v43 = vpop.f32.mrf.mxu0  ;;  %v1588_v56 = vpop.f32.mrf.mxu1  ;;  %v633_v51 = vadd.f32 %v632_v35, %v631_v45 }
 0x10d   :  { %v1504_v55 = vpop.f32.mrf.mxu0  ;;  %v2105_v2 = vpop.f32.mrf.mxu1  ;;  %v635_v60 = vadd.f32 %v634_v48, %v633_v51 }
 0x10f   :  { %v418_v59 = vpop.f32.mrf.mxu0  ;;  %v1591_v8 = vpop.f32.mrf.mxu1  ;;  %v637_v11 = vadd.f32 %v636_v57, %v635_v60 }
 0x110   :  { %v2148_v8 = vadd.f32 %v2037_v47, %v413_v43  ;;  %v2153_v13 = vadd.f32 %v2037_v47, %v418_v59 }
 0x111   :  { %v1507_v7 = vpop.f32.mrf.mxu0  ;;  %v2119_v20 = vpop.f32.mrf.mxu1 }
 0x112   :  { %v638_v7 = vsel %vm85_vm0, %v2136_v25, 0.0  ;;  %3752 = vst [vmem:[#allocation20_spill] sm:$0xff] %v2148_v8  ;;  %3753 = vst [vmem:[#allocation21_spill] sm:$0xff] %v2153_v13  ;;  %v642_v35 = vsel %vm85_vm0, %v2148_v8, 0.0 }
 0x113   :  { %v423_v19 = vpop.f32.mrf.mxu0  ;;  %v1594_v17 = vpop.f32.mrf.mxu1  ;;  %v639_v27 = vadd.f32 %v638_v7, %v637_v11 }
 0x114   :  { %v2160_v45 = vadd.f32 %v2037_v47, %v423_v19 }
 0x115   :  { %v1510_v31 = vpop.f32.mrf.mxu0  ;;  %v2131_v21 = vpop.f32.mrf.mxu1  ;;  %v641_v43 = vadd.f32 %v640_v23, %v639_v27 }
 0x116   :  { %3754 = vst [vmem:[#allocation22_spill] sm:$0xff] %v2160_v45  ;;  %v646_v7 = vsel %vm85_vm0, %v2160_v45, 0.0 }
 0x117   :  { %v428_v39 = vpop.f32.mrf.mxu0  ;;  %v1597_v56 = vpop.f32.mrf.mxu1  ;;  %v643_v59 = vadd.f32 %v642_v35, %v641_v43 }
 0x118   :  { %v2165_v56 = vadd.f32 %v2037_v47, %v428_v39 }
 0x119   :  { %v1513_v55 = vpop.f32.mrf.mxu0  ;;  %v2143_v0 = vpop.f32.mrf.mxu1 }
 0x11a   :  { %v644_v55 = vsel %vm85_vm0, %v2153_v13, 0.0  ;;  %3755 = vst [vmem:[#allocation23_spill] sm:$0xff] %v2165_v56  ;;  %v648_v23 = vsel %vm85_vm0, %v2165_v56, 0.0 }
 0x11b   :  { %v433_v4 = vpop.f32.mrf.mxu0  ;;  %v1600_v9 = vpop.f32.mrf.mxu1  ;;  %v645_v19 = vadd.f32 %v644_v55, %v643_v59 }
 0x11c   :  { %v2172_v11 = vadd.f32 %v2037_v47, %v433_v4 }
 0x11d   :  { %v1516_v15 = vpop.f32.mrf.mxu0  ;;  %v2155_v17 = vpop.f32.mrf.mxu1  ;;  %v647_v39 = vadd.f32 %v646_v7, %v645_v19 }
 0x11e   :  { %3756 = vst [vmem:[#allocation24_spill] sm:$0xff] %v2172_v11 }
 0x11f   :  { %v438_v31 = vpop.f32.mrf.mxu0  ;;  %v1603_v51 = vpop.f32.mrf.mxu1  ;;  %v649_v4 = vadd.f32 %v648_v23, %v647_v39 }
 0x120   :  { %v2177_v27 = vadd.f32 %v2037_v47, %v438_v31 }
 0x121   :  { %v1519_v48 = vpop.f32.mrf.mxu0  ;;  %v2167_v60 = vpop.f32.mrf.mxu1 }
 0x122   :  { %3757 = vst [vmem:[#allocation25_spill] sm:$0xff] %v2177_v27  ;;  %v650_v48 = vsel %vm85_vm0, %v2172_v11, 0.0 }
 0x123   :  { %v443_v57 = vpop.f32.mrf.mxu0  ;;  %v1606_v9 = vpop.f32.mrf.mxu1  ;;  %v651_v31 = vadd.f32 %v650_v48, %v649_v4 }
 0x124   :  { %v2184_v51 = vadd.f32 %v2037_v47, %v443_v57 }
 0x125   :  { %v1522_v15 = vpop.f32.mrf.mxu0  ;;  %v2179_v43 = vpop.f32.mrf.mxu1 }
 0x126   :  { %3758 = vst [vmem:[#allocation26_spill] sm:$0xff] %v2184_v51  ;;  %v652_v15 = vsel %vm85_vm0, %v2177_v27, 0.0  ;;  %v654_v56 = vsel %vm85_vm0, %v2184_v51, 0.0 }
 0x127   :  { %v448_v35 = vpop.f32.mrf.mxu0  ;;  %v1609_v59 = vpop.f32.mrf.mxu1  ;;  %v653_v57 = vadd.f32 %v652_v15, %v651_v31 }
 0x128   :  { %v2189_v9 = vadd.f32 %v2037_v47, %v448_v35 }
 0x129   :  { %v1525_v55 = vpop.f32.mrf.mxu0  ;;  %v2191_v19 = vpop.f32.mrf.mxu1  ;;  %v655_v59 = vadd.f32 %v654_v56, %v653_v57  ;;  %v2213_v56 = vadd.f32 %v2037_v47, %v2004_v62  ;;  %v2228_v62 = vadd.f32 %v2037_v47, %v2008_v6 }
 0x12a   :  { %3759 = vst [vmem:[#allocation27_spill] sm:$0xff] %v2189_v9  ;;  %v656_v55 = vsel %vm85_vm0, %v2189_v9, 0.0 }
 0x12b   :  { %v453_v7 = vpop.f32.mrf.mxu0  ;;  %v1612_v39 = vpop.f32.mrf.mxu1  ;;  %v657_v51 = vadd.f32 %v656_v55, %v655_v59  ;;  %3762 = vst [vmem:[#allocation30_spill] sm:$0xff] %v2213_v56  ;;  %v664_v59 = vsel %vm85_vm0, %v2213_v56, 0.0  ;;  %3765 = vst [vmem:[#allocation33_spill] sm:$0xff] %v2228_v62 }
 0x12c   :  { %v2196_v11 = vadd.f32 %v2037_v47, %v453_v7 }
 0x12d   :  { %v1528_v23 = vpop.f32.mrf.mxu0  ;;  %v2200_v35 = vpop.f32.mrf.mxu1 }
 0x12e   :  { %3760 = vst [vmem:[#allocation28_spill] sm:$0xff] %v2196_v11  ;;  %v658_v48 = vsel %vm85_vm0, %v2196_v11, 0.0 }
 0x12f   :  { %v458_v27 = vpop.f32.mrf.mxu0  ;;  %v1615_v7 = vpop.f32.mrf.mxu1  ;;  %v659_v31 = vadd.f32 %v658_v48, %v657_v51 }
 0x130   :  { %v2205_v4 = vadd.f32 %v2037_v47, %v458_v27 }
 0x131   :  { %v1531_v45 = vpop.f32.mrf.mxu0  ;;  %v2209_v39 = vpop.f32.mrf.mxu1 }
 0x132   :  { %3761 = vst [vmem:[#allocation29_spill] sm:$0xff] %v2205_v4  ;;  %v660_v15 = vsel %vm85_vm0, %v2205_v4, 0.0  ;;  %v2220_v45 = vadd.f32 %v2037_v47, %v2006_v3 }
 0x133   :  { %v463_v23 = vpop.f32.mrf.mxu0  ;;  %v661_v11 = vadd.f32 %v660_v15, %v659_v31  ;;  %v1618_v9 = vpop.f32.mrf.mxu1  ;;  %v668_v15 = vsel %vm85_vm0, %v2228_v62, 0.0 }
 0x134   :  { %v2216_v57 = vadd.f32 %v2037_v47, %v463_v23  ;;  %3764 = vst [vmem:[#allocation32_spill] sm:$0xff] %v2220_v45  ;;  %v666_v7 = vsel %vm85_vm0, %v2220_v45, 0.0  ;;  %v2234_v9 = vadd.f32 %v2037_v47, %v2010_v10  ;;  %v2246_v23 = vadd.f32 %v2037_v47, %v2014_v18 }
 0x135   :  { %v1534_v27 = vpop.f32.mrf.mxu0 }
 0x136   :  { %3763 = vst [vmem:[#allocation31_spill] sm:$0xff] %v2216_v57  ;;  %v662_v51 = vsel %vm85_vm0, %v2216_v57, 0.0  ;;  %3766 = vst [vmem:[#allocation34_spill] sm:$0xff] %v2234_v9  ;;  %v670_v6 = vsel %vm85_vm0, %v2234_v9, 0.0 }
 0x137   :  { %v663_v55 = vadd.f32 %v662_v51, %v661_v11  ;;  %v2240_v11 = vadd.f32 %v2037_v47, %v2012_v14  ;;  %3768 = vst [vmem:[#allocation36_spill] sm:$0xff] %v2246_v23  ;;  %v2252_v51 = vadd.f32 %v2037_v47, %v2016_v22  ;;  %v674_v14 = vsel %vm85_vm0, %v2246_v23, 0.0 }
 0x139   :  { %v665_v48 = vadd.f32 %v664_v59, %v663_v55  ;;  %3767 = vst [vmem:[#allocation35_spill] sm:$0xff] %v2240_v11  ;;  %v672_v10 = vsel %vm85_vm0, %v2240_v11, 0.0  ;;  %3769 = vst [vmem:[#allocation37_spill] sm:$0xff] %v2252_v51  ;;  %v2258_v59 = vadd.f32 %v2037_v47, %v2018_v26  ;;  %v676_v18 = vsel %vm85_vm0, %v2252_v51, 0.0 }
 0x13b   :  { %v667_v3 = vadd.f32 %v666_v7, %v665_v48  ;;  %3770 = vst [vmem:[#allocation38_spill] sm:$0xff] %v2258_v59  ;;  %v2264_v7 = vadd.f32 %v2037_v47, %v2020_v30  ;;  %v678_v22 = vsel %vm85_vm0, %v2258_v59, 0.0 }
 0x13d   :  { %v669_v31 = vadd.f32 %v668_v15, %v667_v3  ;;  %3771 = vst [vmem:[#allocation39_spill] sm:$0xff] %v2264_v7  ;;  %v2270_v15 = vadd.f32 %v2037_v47, %v2022_v34  ;;  %v680_v26 = vsel %vm85_vm0, %v2264_v7, 0.0 }
 0x13f   :  { %v671_v27 = vadd.f32 %v670_v6, %v669_v31  ;;  %3772 = vst [vmem:[#allocation40_spill] sm:$0xff] %v2270_v15  ;;  %v2276_v6 = vadd.f32 %v2037_v47, %v2024_v38  ;;  %v682_v30 = vsel %vm85_vm0, %v2270_v15, 0.0 }
 0x141   :  { %v673_v55 = vadd.f32 %v672_v10, %v671_v27  ;;  %3773 = vst [vmem:[#allocation41_spill] sm:$0xff] %v2276_v6  ;;  %v2282_v10 = vadd.f32 %v2037_v47, %v2028_v42  ;;  %v684_v34 = vsel %vm85_vm0, %v2276_v6, 0.0 }
 0x143   :  { %v675_v48 = vadd.f32 %v674_v14, %v673_v55  ;;  %3774 = vst [vmem:[#allocation42_spill] sm:$0xff] %v2282_v10  ;;  %v2288_v14 = vadd.f32 %v2037_v47, %v2032_v46  ;;  %v686_v38 = vsel %vm85_vm0, %v2282_v10, 0.0 }
 0x145   :  { %v677_v3 = vadd.f32 %v676_v18, %v675_v48  ;;  %3775 = vst [vmem:[#allocation43_spill] sm:$0xff] %v2288_v14  ;;  %v2294_v18 = vadd.f32 %v2037_v47, %v2042_v52  ;;  %v688_v42 = vsel %vm85_vm0, %v2288_v14, 0.0 }
 0x147   :  { %v679_v31 = vadd.f32 %v678_v22, %v677_v3  ;;  %3776 = vst [vmem:[#allocation44_spill] sm:$0xff] %v2294_v18  ;;  %v2300_v22 = vadd.f32 %v2037_v47, %v2055_v61  ;;  %v690_v46 = vsel %vm85_vm0, %v2294_v18, 0.0 }
 0x149   :  { %v681_v27 = vadd.f32 %v680_v26, %v679_v31  ;;  %3777 = vst [vmem:[#allocation45_spill] sm:$0xff] %v2300_v22  ;;  %v2306_v26 = vadd.f32 %v2037_v47, %v2069_v12  ;;  %v692_v52 = vsel %vm85_vm0, %v2300_v22, 0.0 }
 0x14b   :  { %v683_v55 = vadd.f32 %v682_v30, %v681_v27  ;;  %3778 = vst [vmem:[#allocation46_spill] sm:$0xff] %v2306_v26  ;;  %v2312_v30 = vadd.f32 %v2037_v47, %v2081_v28  ;;  %v694_v61 = vsel %vm85_vm0, %v2306_v26, 0.0 }
 0x14d   :  { %v685_v48 = vadd.f32 %v684_v34, %v683_v55  ;;  %3779 = vst [vmem:[#allocation47_spill] sm:$0xff] %v2312_v30  ;;  %v2318_v34 = vadd.f32 %v2037_v47, %v2093_v44  ;;  %v696_v12 = vsel %vm85_vm0, %v2312_v30, 0.0 }
 0x14f   :  { %v687_v3 = vadd.f32 %v686_v38, %v685_v48  ;;  %3780 = vst [vmem:[#allocation48_spill] sm:$0xff] %v2318_v34  ;;  %v2324_v38 = vadd.f32 %v2037_v47, %v2105_v2  ;;  %v698_v28 = vsel %vm85_vm0, %v2318_v34, 0.0 }
 0x151   :  { %v689_v31 = vadd.f32 %v688_v42, %v687_v3  ;;  %3781 = vst [vmem:[#allocation49_spill] sm:$0xff] %v2324_v38  ;;  %v2330_v42 = vadd.f32 %v2037_v47, %v2119_v20  ;;  %v700_v44 = vsel %vm85_vm0, %v2324_v38, 0.0 }
 0x153   :  { %v691_v27 = vadd.f32 %v690_v46, %v689_v31  ;;  %3782 = vst [vmem:[#allocation50_spill] sm:$0xff] %v2330_v42  ;;  %v2336_v46 = vadd.f32 %v2037_v47, %v2131_v21  ;;  %v702_v2 = vsel %vm85_vm0, %v2330_v42, 0.0 }
 0x155   :  { %v693_v55 = vadd.f32 %v692_v52, %v691_v27  ;;  %3783 = vst [vmem:[#allocation51_spill] sm:$0xff] %v2336_v46  ;;  %v2342_v52 = vadd.f32 %v2037_v47, %v2143_v0  ;;  %v704_v20 = vsel %vm85_vm0, %v2336_v46, 0.0 }
 0x157   :  { %v695_v48 = vadd.f32 %v694_v61, %v693_v55  ;;  %3784 = vst [vmem:[#allocation52_spill] sm:$0xff] %v2342_v52  ;;  %v2348_v61 = vadd.f32 %v2037_v47, %v2155_v17  ;;  %v706_v21 = vsel %vm85_vm0, %v2342_v52, 0.0 }
 0x159   :  { %v697_v3 = vadd.f32 %v696_v12, %v695_v48  ;;  %3785 = vst [vmem:[#allocation53_spill] sm:$0xff] %v2348_v61  ;;  %v2354_v12 = vadd.f32 %v2037_v47, %v2167_v60  ;;  %v708_v0 = vsel %vm85_vm0, %v2348_v61, 0.0 }
 0x15b   :  { %v699_v31 = vadd.f32 %v698_v28, %v697_v3  ;;  %3786 = vst [vmem:[#allocation54_spill] sm:$0xff] %v2354_v12  ;;  %v2360_v28 = vadd.f32 %v2037_v47, %v2179_v43  ;;  %v710_v17 = vsel %vm85_vm0, %v2354_v12, 0.0  ;;  %v2374_v43 = vadd.f32 %v2037_v47, %v2200_v35 }
 0x15d   :  { %v701_v27 = vadd.f32 %v700_v44, %v699_v31  ;;  %3787 = vst [vmem:[#allocation55_spill] sm:$0xff] %v2360_v28  ;;  %v2366_v44 = vadd.f32 %v2037_v47, %v2191_v19  ;;  %v712_v60 = vsel %vm85_vm0, %v2360_v28, 0.0  ;;  %3789 = vst [vmem:[#allocation57_spill] sm:$0xff] %v2374_v43  ;;  %v716_v19 = vsel %vm85_vm0, %v2374_v43, 0.0 }
 0x15f   :  { %v703_v55 = vadd.f32 %v702_v2, %v701_v27  ;;  %3788 = vst [vmem:[#allocation56_spill] sm:$0xff] %v2366_v44 }
 0x161   :  { %v705_v48 = vadd.f32 %v704_v20, %v703_v55  ;;  %v714_v55 = vsel %vm85_vm0, %v2366_v44, 0.0 }
 0x163   :  { %v707_v3 = vadd.f32 %v706_v21, %v705_v48  ;;  %v2378_v48 = vadd.f32 %v2037_v47, %v2209_v39 }
 0x165   :  { %v709_v31 = vadd.f32 %v708_v0, %v707_v3  ;;  %3790 = vst [vmem:[#allocation58_spill] sm:$0xff] %v2378_v48  ;;  %v719_v3 = vsel %vm718_vm2, %v2378_v48, 0.0 }
 0x167   :  { %v711_v27 = vadd.f32 %v710_v17, %v709_v31 }
 0x169   :  { %v713_v2 = vadd.f32 %v712_v60, %v711_v27 }
 0x16b   :  { %v715_v20 = vadd.f32 %v714_v55, %v713_v2 }
 0x16d   :  { %v717_v21 = vadd.f32 %v716_v19, %v715_v20 }
 0x16f   :  { %v720_v0 = vadd.f32 %v719_v3, %v717_v21 }
 0x171   :  { %v721_v31 = vrot.slane %v720_v0, 4 }
 0x173   :  { %v722_v17 = vadd.f32 %v721_v31, %v720_v0 }
 0x175   :  { %v723_v27 = vrot.slane %v722_v17, 2 }
 0x177   :  { %v724_v60 = vadd.f32 %v723_v27, %v722_v17 }
 0x179   :  { %v725_v35 = vrot.slane %v724_v60, 1 }
 0x17b   :  { %v726_v44 = vadd.f32 %v725_v35, %v724_v60 }
 0x17d   :  { %v2384_v2 = vmul.f32 0.0022222223, %v726_v44 }
 0x17f   :  { %v2388_v47 = vsub.f32 %v2045_v53, %v2384_v2  ;;  %v2392_v39 = vsub.f32 %v2040_v50, %v2384_v2  ;;  %v2396_v55 = vsub.f32 %v2048_v54, %v2384_v2  ;;  %v2400_v20 = vsub.f32 %v2053_v58, %v2384_v2 }
 0x180   :  { %v2408_v21 = vsub.f32 %v2062_v1, %v2384_v2  ;;  %v2414_v0 = vsub.f32 %v2067_v5, %v2384_v2  ;;  %v2422_v35 = vsub.f32 %v2074_v16, %v2384_v2  ;;  %v2429_v5 = vsub.f32 %v2079_v24, %v2384_v2 }
 0x181   :  { %v786_v44 = vmul.f32 %v2388_v47, %v2388_v47  ;;  %v787_v19 = vmul.f32 %v2392_v39, %v2392_v39  ;;  %v788_v3 = vmul.f32 %v2396_v55, %v2396_v55  ;;  %v789_v31 = vmul.f32 %v2400_v20, %v2400_v20 }
 0x182   :  { %v790_v1 = vmul.f32 %v2408_v21, %v2408_v21  ;;  %v792_v16 = vmul.f32 %v2422_v35, %v2422_v35  ;;  %v793_v24 = vmul.f32 %v2429_v5, %v2429_v5 }
 0x183   :  { %v843_v17 = vsel %vm85_vm0, %v786_v44, 0.0  ;;  %v844_v27 = vsel %vm85_vm0, %v787_v19, 0.0  ;;  %v846_v58 = vsel %vm85_vm0, %v788_v3, 0.0  ;;  %v791_v44 = vmul.f32 %v2414_v0, %v2414_v0 }
 0x184   :  { %v845_v60 = vadd.f32 %v844_v27, %v843_v17  ;;  %v848_v19 = vsel %vm85_vm0, %v789_v31, 0.0  ;;  %v2436_v27 = vsub.f32 %v2086_v32, %v2384_v2  ;;  %v850_v3 = vsel %vm85_vm0, %v790_v1, 0.0 }
 0x185   :  { %v852_v31 = vsel %vm85_vm0, %v791_v44, 0.0  ;;  %v854_v1 = vsel %vm85_vm0, %v792_v16, 0.0  ;;  %v856_v44 = vsel %vm85_vm0, %v793_v24, 0.0 }
 0x186   :  { %v847_v54 = vadd.f32 %v846_v58, %v845_v60  ;;  %v2443_v60 = vsub.f32 %v2091_v40, %v2384_v2  ;;  %v794_v32 = vmul.f32 %v2436_v27, %v2436_v27 }
 0x188   :  { %v849_v17 = vadd.f32 %v848_v19, %v847_v54  ;;  %v2450_v19 = vsub.f32 %v2098_v49, %v2384_v2  ;;  %v795_v40 = vmul.f32 %v2443_v60, %v2443_v60  ;;  %v858_v16 = vsel %vm85_vm0, %v794_v32, 0.0 }
 0x18a   :  { %v851_v58 = vadd.f32 %v850_v3, %v849_v17  ;;  %v2457_v3 = vsub.f32 %v2103_v63, %v2384_v2  ;;  %v796_v49 = vmul.f32 %v2450_v19, %v2450_v19  ;;  %v860_v24 = vsel %vm85_vm0, %v795_v40, 0.0 }
 0x18c   :  { %v853_v54 = vadd.f32 %v852_v31, %v851_v58  ;;  %v2464_v31 = vsub.f32 %v2111_v33, %v2384_v2  ;;  %v797_v63 = vmul.f32 %v2457_v3, %v2457_v3  ;;  %v862_v32 = vsel %vm85_vm0, %v796_v49, 0.0 }
 0x18e   :  { %v855_v17 = vadd.f32 %v854_v1, %v853_v54  ;;  %v2471_v1 = vsub.f32 %v2117_v37, %v2384_v2  ;;  %v798_v33 = vmul.f32 %v2464_v31, %v2464_v31  ;;  %v864_v40 = vsel %vm85_vm0, %v797_v63, 0.0 }
 0x190   :  { %v857_v58 = vadd.f32 %v856_v44, %v855_v17  ;;  %v2478_v44 = vsub.f32 %v2124_v41, %v2384_v2  ;;  %v799_v37 = vmul.f32 %v2471_v1, %v2471_v1  ;;  %v866_v49 = vsel %vm85_vm0, %v798_v33, 0.0 }
 0x192   :  { %v859_v54 = vadd.f32 %v858_v16, %v857_v58  ;;  %v2485_v16 = vsub.f32 %v2129_v36, %v2384_v2  ;;  %v800_v41 = vmul.f32 %v2478_v44, %v2478_v44  ;;  %v868_v63 = vsel %vm85_vm0, %v799_v37, 0.0 }
 0x194   :  { %v861_v17 = vadd.f32 %v860_v24, %v859_v54  ;;  %v2492_v24 = vsub.f32 %v2136_v25, %v2384_v2  ;;  %v801_v36 = vmul.f32 %v2485_v16, %v2485_v16  ;;  %v870_v33 = vsel %vm85_vm0, %v800_v41, 0.0 }
 0x196   :  { %v863_v58 = vadd.f32 %v862_v32, %v861_v17  ;;  %v2499_v32 = vsub.f32 %v2141_v29, %v2384_v2  ;;  %v802_v25 = vmul.f32 %v2492_v24, %v2492_v24  ;;  %v872_v37 = vsel %vm85_vm0, %v801_v36, 0.0 }
 0x198   :  { %v865_v54 = vadd.f32 %v864_v40, %v863_v58  ;;  %v2506_v40 = vsub.f32 %v2148_v8, %v2384_v2  ;;  %v803_v29 = vmul.f32 %v2499_v32, %v2499_v32  ;;  %v874_v41 = vsel %vm85_vm0, %v802_v25, 0.0 }
 0x19a   :  { %v867_v17 = vadd.f32 %v866_v49, %v865_v54  ;;  %3791 = vst [vmem:[#allocation59_spill] sm:$0xff] %v2506_v40  ;;  %v2513_v49 = vsub.f32 %v2153_v13, %v2384_v2  ;;  %v804_v50 = vmul.f32 %v2506_v40, %v2506_v40  ;;  %v876_v36 = vsel %vm85_vm0, %v803_v29, 0.0 }
 0x19c   :  { %v869_v58 = vadd.f32 %v868_v63, %v867_v17  ;;  %3792 = vst [vmem:[#allocation60_spill] sm:$0xff] %v2513_v49  ;;  %v3793_v63 = vld [vmem:[#allocation22_spill] sm:$0xff]  ;;  %v805_v53 = vmul.f32 %v2513_v49, %v2513_v49  ;;  %v878_v25 = vsel %vm85_vm0, %v804_v50, 0.0 }
 0x19d   :  { %v2520_v8 = vsub.f32 %v3793_v63, %v2384_v2 }
 0x19e   :  { %v871_v54 = vadd.f32 %v870_v33, %v869_v58  ;;  %v3795_v33 = vld [vmem:[#allocation23_spill] sm:$0xff]  ;;  %v880_v29 = vsel %vm85_vm0, %v805_v53, 0.0 }
 0x19f   :  { %3794 = vst [vmem:[#allocation61_spill] sm:$0xff] %v2520_v8  ;;  %v2527_v13 = vsub.f32 %v3795_v33, %v2384_v2  ;;  %v806_v40 = vmul.f32 %v2520_v8, %v2520_v8 }
 0x1a0   :  { %v873_v17 = vadd.f32 %v872_v37, %v871_v54  ;;  %v3797_v37 = vld [vmem:[#allocation24_spill] sm:$0xff] }
 0x1a1   :  { %3796 = vst [vmem:[#allocation62_spill] sm:$0xff] %v2527_v13  ;;  %v2534_v63 = vsub.f32 %v3797_v37, %v2384_v2  ;;  %v807_v49 = vmul.f32 %v2527_v13, %v2527_v13  ;;  %v882_v50 = vsel %vm85_vm0, %v806_v40, 0.0 }
 0x1a2   :  { %v875_v58 = vadd.f32 %v874_v41, %v873_v17  ;;  %v3799_v41 = vld [vmem:[#allocation25_spill] sm:$0xff] }
 0x1a3   :  { %3798 = vst [vmem:[#allocation63_spill] sm:$0xff] %v2534_v63  ;;  %v2541_v33 = vsub.f32 %v3799_v41, %v2384_v2  ;;  %v808_v8 = vmul.f32 %v2534_v63, %v2534_v63  ;;  %v884_v53 = vsel %vm85_vm0, %v807_v49, 0.0 }
 0x1a4   :  { %v877_v54 = vadd.f32 %v876_v36, %v875_v58  ;;  %v3800_v36 = vld [vmem:[#allocation26_spill] sm:$0xff] }
 0x1a5   :  { %v2548_v37 = vsub.f32 %v3800_v36, %v2384_v2  ;;  %v809_v13 = vmul.f32 %v2541_v33, %v2541_v33  ;;  %v886_v40 = vsel %vm85_vm0, %v808_v8, 0.0 }
 0x1a6   :  { %v879_v17 = vadd.f32 %v878_v25, %v877_v54  ;;  %v3801_v25 = vld [vmem:[#allocation27_spill] sm:$0xff] }
 0x1a7   :  { %v2555_v41 = vsub.f32 %v3801_v25, %v2384_v2  ;;  %v810_v63 = vmul.f32 %v2548_v37, %v2548_v37  ;;  %v888_v49 = vsel %vm85_vm0, %v809_v13, 0.0 }
 0x1a8   :  { %v881_v58 = vadd.f32 %v880_v29, %v879_v17  ;;  %v3802_v29 = vld [vmem:[#allocation28_spill] sm:$0xff] }
 0x1a9   :  { %v2562_v36 = vsub.f32 %v3802_v29, %v2384_v2  ;;  %v811_v25 = vmul.f32 %v2555_v41, %v2555_v41  ;;  %v890_v8 = vsel %vm85_vm0, %v810_v63, 0.0 }
 0x1aa   :  { %v883_v54 = vadd.f32 %v882_v50, %v881_v58  ;;  %v2569_v50 = vsub.f32 %v2205_v4, %v2384_v2 }
 0x1ab   :  { %v812_v29 = vmul.f32 %v2562_v36, %v2562_v36  ;;  %v892_v13 = vsel %vm85_vm0, %v811_v25, 0.0 }
 0x1ac   :  { %v885_v17 = vadd.f32 %v884_v53, %v883_v54  ;;  %v2576_v53 = vsub.f32 %v2216_v57, %v2384_v2  ;;  %v813_v4 = vmul.f32 %v2569_v50, %v2569_v50 }
 0x1ad   :  { %v894_v63 = vsel %vm85_vm0, %v812_v29, 0.0 }
 0x1ae   :  { %v887_v58 = vadd.f32 %v886_v40, %v885_v17  ;;  %v2583_v40 = vsub.f32 %v2213_v56, %v2384_v2  ;;  %v814_v57 = vmul.f32 %v2576_v53, %v2576_v53  ;;  %v896_v25 = vsel %vm85_vm0, %v813_v4, 0.0 }
 0x1b0   :  { %v889_v54 = vadd.f32 %v888_v49, %v887_v58  ;;  %v2590_v49 = vsub.f32 %v2220_v45, %v2384_v2  ;;  %v815_v56 = vmul.f32 %v2583_v40, %v2583_v40  ;;  %v898_v29 = vsel %vm85_vm0, %v814_v57, 0.0 }
 0x1b2   :  { %v891_v17 = vadd.f32 %v890_v8, %v889_v54  ;;  %v2597_v8 = vsub.f32 %v2228_v62, %v2384_v2  ;;  %v816_v45 = vmul.f32 %v2590_v49, %v2590_v49  ;;  %v900_v4 = vsel %vm85_vm0, %v815_v56, 0.0 }
 0x1b4   :  { %v893_v58 = vadd.f32 %v892_v13, %v891_v17  ;;  %v2604_v13 = vsub.f32 %v2234_v9, %v2384_v2  ;;  %v817_v62 = vmul.f32 %v2597_v8, %v2597_v8  ;;  %v902_v57 = vsel %vm85_vm0, %v816_v45, 0.0 }
 0x1b6   :  { %v895_v54 = vadd.f32 %v894_v63, %v893_v58  ;;  %v2611_v63 = vsub.f32 %v2240_v11, %v2384_v2  ;;  %v818_v9 = vmul.f32 %v2604_v13, %v2604_v13  ;;  %v904_v56 = vsel %vm85_vm0, %v817_v62, 0.0 }
 0x1b8   :  { %v897_v17 = vadd.f32 %v896_v25, %v895_v54  ;;  %v2618_v25 = vsub.f32 %v2246_v23, %v2384_v2  ;;  %v819_v11 = vmul.f32 %v2611_v63, %v2611_v63  ;;  %v906_v45 = vsel %vm85_vm0, %v818_v9, 0.0 }
 0x1ba   :  { %v899_v58 = vadd.f32 %v898_v29, %v897_v17  ;;  %v2625_v29 = vsub.f32 %v2252_v51, %v2384_v2  ;;  %v820_v23 = vmul.f32 %v2618_v25, %v2618_v25  ;;  %v908_v62 = vsel %vm85_vm0, %v819_v11, 0.0 }
 0x1bc   :  { %v901_v54 = vadd.f32 %v900_v4, %v899_v58  ;;  %v2632_v4 = vsub.f32 %v2258_v59, %v2384_v2  ;;  %v821_v51 = vmul.f32 %v2625_v29, %v2625_v29  ;;  %v910_v9 = vsel %vm85_vm0, %v820_v23, 0.0 }
 0x1be   :  { %v903_v17 = vadd.f32 %v902_v57, %v901_v54  ;;  %v2639_v57 = vsub.f32 %v2264_v7, %v2384_v2  ;;  %v822_v59 = vmul.f32 %v2632_v4, %v2632_v4  ;;  %v912_v11 = vsel %vm85_vm0, %v821_v51, 0.0 }
 0x1c0   :  { %v905_v58 = vadd.f32 %v904_v56, %v903_v17  ;;  %v2646_v56 = vsub.f32 %v2270_v15, %v2384_v2  ;;  %v823_v7 = vmul.f32 %v2639_v57, %v2639_v57  ;;  %v914_v23 = vsel %vm85_vm0, %v822_v59, 0.0 }
 0x1c2   :  { %v907_v54 = vadd.f32 %v906_v45, %v905_v58  ;;  %v2653_v45 = vsub.f32 %v2276_v6, %v2384_v2  ;;  %v824_v15 = vmul.f32 %v2646_v56, %v2646_v56  ;;  %v916_v51 = vsel %vm85_vm0, %v823_v7, 0.0 }
 0x1c4   :  { %v909_v17 = vadd.f32 %v908_v62, %v907_v54  ;;  %v2660_v62 = vsub.f32 %v2282_v10, %v2384_v2  ;;  %v825_v6 = vmul.f32 %v2653_v45, %v2653_v45  ;;  %v918_v59 = vsel %vm85_vm0, %v824_v15, 0.0 }
 0x1c6   :  { %v911_v58 = vadd.f32 %v910_v9, %v909_v17  ;;  %v2667_v9 = vsub.f32 %v2288_v14, %v2384_v2  ;;  %v826_v10 = vmul.f32 %v2660_v62, %v2660_v62  ;;  %v920_v7 = vsel %vm85_vm0, %v825_v6, 0.0 }
 0x1c8   :  { %v913_v54 = vadd.f32 %v912_v11, %v911_v58  ;;  %v2674_v11 = vsub.f32 %v2294_v18, %v2384_v2  ;;  %v827_v14 = vmul.f32 %v2667_v9, %v2667_v9  ;;  %v922_v15 = vsel %vm85_vm0, %v826_v10, 0.0 }
 0x1ca   :  { %v915_v17 = vadd.f32 %v914_v23, %v913_v54  ;;  %v2681_v23 = vsub.f32 %v2300_v22, %v2384_v2  ;;  %v828_v18 = vmul.f32 %v2674_v11, %v2674_v11  ;;  %v924_v6 = vsel %vm85_vm0, %v827_v14, 0.0 }
 0x1cc   :  { %v917_v58 = vadd.f32 %v916_v51, %v915_v17  ;;  %v2688_v51 = vsub.f32 %v2306_v26, %v2384_v2  ;;  %v829_v22 = vmul.f32 %v2681_v23, %v2681_v23  ;;  %v926_v10 = vsel %vm85_vm0, %v828_v18, 0.0 }
 0x1ce   :  { %v919_v54 = vadd.f32 %v918_v59, %v917_v58  ;;  %v2695_v59 = vsub.f32 %v2312_v30, %v2384_v2  ;;  %v830_v26 = vmul.f32 %v2688_v51, %v2688_v51  ;;  %v928_v14 = vsel %vm85_vm0, %v829_v22, 0.0 }
 0x1d0   :  { %v921_v17 = vadd.f32 %v920_v7, %v919_v54  ;;  %v2702_v7 = vsub.f32 %v2318_v34, %v2384_v2  ;;  %v831_v30 = vmul.f32 %v2695_v59, %v2695_v59  ;;  %v930_v18 = vsel %vm85_vm0, %v830_v26, 0.0 }
 0x1d2   :  { %v923_v58 = vadd.f32 %v922_v15, %v921_v17  ;;  %v2709_v15 = vsub.f32 %v2324_v38, %v2384_v2  ;;  %v832_v34 = vmul.f32 %v2702_v7, %v2702_v7  ;;  %v932_v22 = vsel %vm85_vm0, %v831_v30, 0.0 }
 0x1d4   :  { %v925_v54 = vadd.f32 %v924_v6, %v923_v58  ;;  %v2716_v6 = vsub.f32 %v2330_v42, %v2384_v2  ;;  %v833_v38 = vmul.f32 %v2709_v15, %v2709_v15  ;;  %v934_v26 = vsel %vm85_vm0, %v832_v34, 0.0 }
 0x1d6   :  { %v927_v17 = vadd.f32 %v926_v10, %v925_v54  ;;  %3803 = vst [vmem:[#allocation64_spill] sm:$0xff] %v2716_v6  ;;  %v2723_v10 = vsub.f32 %v2336_v46, %v2384_v2  ;;  %v834_v42 = vmul.f32 %v2716_v6, %v2716_v6  ;;  %v936_v30 = vsel %vm85_vm0, %v833_v38, 0.0 }
 0x1d8   :  { %v929_v58 = vadd.f32 %v928_v14, %v927_v17  ;;  %3804 = vst [vmem:[#allocation65_spill] sm:$0xff] %v2723_v10  ;;  %v2730_v14 = vsub.f32 %v2342_v52, %v2384_v2  ;;  %v835_v46 = vmul.f32 %v2723_v10, %v2723_v10  ;;  %v938_v34 = vsel %vm85_vm0, %v834_v42, 0.0 }
 0x1da   :  { %v931_v54 = vadd.f32 %v930_v18, %v929_v58  ;;  %3805 = vst [vmem:[#allocation66_spill] sm:$0xff] %v2730_v14  ;;  %v2737_v18 = vsub.f32 %v2348_v61, %v2384_v2  ;;  %v836_v52 = vmul.f32 %v2730_v14, %v2730_v14  ;;  %v940_v38 = vsel %vm85_vm0, %v835_v46, 0.0 }
 0x1dc   :  { %v933_v17 = vadd.f32 %v932_v22, %v931_v54  ;;  %3806 = vst [vmem:[#allocation67_spill] sm:$0xff] %v2737_v18  ;;  %v2744_v22 = vsub.f32 %v2354_v12, %v2384_v2  ;;  %v837_v61 = vmul.f32 %v2737_v18, %v2737_v18  ;;  %v942_v42 = vsel %vm85_vm0, %v836_v52, 0.0 }
 0x1de   :  { %v935_v58 = vadd.f32 %v934_v26, %v933_v17  ;;  %3807 = vst [vmem:[#allocation68_spill] sm:$0xff] %v2744_v22  ;;  %v2751_v26 = vsub.f32 %v2360_v28, %v2384_v2  ;;  %v838_v14 = vmul.f32 %v2744_v22, %v2744_v22  ;;  %v944_v46 = vsel %vm85_vm0, %v837_v61, 0.0 }
 0x1e0   :  { %v937_v54 = vadd.f32 %v936_v30, %v935_v58  ;;  %3808 = vst [vmem:[#allocation69_spill] sm:$0xff] %v2751_v26  ;;  %v3809_v30 = vld [vmem:[#allocation56_spill] sm:$0xff]  ;;  %v839_v28 = vmul.f32 %v2751_v26, %v2751_v26  ;;  %v946_v52 = vsel %vm85_vm0, %v838_v14, 0.0 }
 0x1e1   :  { %v2758_v12 = vsub.f32 %v3809_v30, %v2384_v2 }
 0x1e2   :  { %v939_v17 = vadd.f32 %v938_v34, %v937_v54  ;;  %v2765_v34 = vsub.f32 %v2374_v43, %v2384_v2  ;;  %v948_v43 = vsel %vm85_vm0, %v839_v28, 0.0 }
 0x1e3   :  { %3810 = vst [vmem:[#allocation70_spill] sm:$0xff] %v2758_v12  ;;  %v840_v30 = vmul.f32 %v2758_v12, %v2758_v12 }
 0x1e4   :  { %v941_v58 = vadd.f32 %v940_v38, %v939_v17  ;;  %3811 = vst [vmem:[#allocation71_spill] sm:$0xff] %v2765_v34  ;;  %v2772_v38 = vsub.f32 %v2378_v48, %v2384_v2 }
 0x1e6   :  { %v943_v54 = vadd.f32 %v942_v42, %v941_v58  ;;  %3812 = vst [vmem:[#allocation72_spill] sm:$0xff] %v2772_v38  ;;  %v841_v42 = vmul.f32 %v2765_v34, %v2765_v34  ;;  %v842_v61 = vmul.f32 %v2772_v38, %v2772_v38 }
 0x1e8   :  { %v945_v17 = vadd.f32 %v944_v46, %v943_v54  ;;  %v950_v54 = vsel %vm85_vm0, %v840_v30, 0.0  ;;  %v952_v2 = vsel %vm85_vm0, %v841_v42, 0.0  ;;  %v954_v12 = vsel %vm718_vm2, %v842_v61, 0.0 }
 0x1ea   :  { %v947_v58 = vadd.f32 %v946_v52, %v945_v17 }
 0x1ec   :  { %v949_v22 = vadd.f32 %v948_v43, %v947_v58  ;;  %v1207_v58 = vlaneseq }
 0x1ee   :  { %v951_v46 = vadd.f32 %v950_v54, %v949_v22  ;;  %v2785_v6 = vand.u32 127, %v1207_v58  ;;  %v3814_v54 = vld [vmem:[#allocation59_spill] sm:$0xff] }
 0x1f0   :  { %v953_v48 = vadd.f32 %v952_v2, %v951_v46  ;;  %3813 = vst [vmem:[#allocation73_spill] sm:$0xff] %v2785_v6  ;;  %v3815_v46 = vld [vmem:[#allocation60_spill] sm:$0xff]  ;;  %v3816_v2 = vld [vmem:[#allocation61_spill] sm:$0xff] }
 0x1f2   :  { %v955_v26 = vadd.f32 %v954_v12, %v953_v48 }
 0x1f4   :  { %v956_v14 = vrot.slane %v955_v26, 4 }
 0x1f6   :  { %v957_v17 = vadd.f32 %v956_v14, %v955_v26  ;;  %v3817_v14 = vld [vmem:[#allocation62_spill] sm:$0xff] }
 0x1f8   :  { %v958_v52 = vrot.slane %v957_v17, 2 }
 0x1fa   :  { %v959_v18 = vadd.f32 %v958_v52, %v957_v17  ;;  %v3818_v17 = vld [vmem:[#allocation63_spill] sm:$0xff] }
 0x1fc   :  { %v960_v34 = vrot.slane %v959_v18, 1 }
 0x1fe   :  { %v961_v10 = vadd.f32 %v960_v34, %v959_v18 }
 0x200   :  { %v962_v28 = vmul.f32 0.0022222223, %v961_v10 }
 0x202   :  { %v963_v43 = vadd.f32 1e-05, %v962_v28 }
 0x204   :  { %1623 = vrsqrt.f32 %v963_v43 }
 0x211   :  { %v1624_v38 = vpop.eup %1623 }
 0x212   :  { %v965_v22 = vmul.f32 %v1624_v38, %v2388_v47  ;;  %v966_v30 = vmul.f32 %v1624_v38, %v2392_v39  ;;  %v967_v42 = vmul.f32 %v1624_v38, %v2396_v55  ;;  %v968_v12 = vmul.f32 %v1624_v38, %v2400_v20 }
 0x213   :  { %v969_v48 = vmul.f32 %v1624_v38, %v2408_v21  ;;  %v970_v26 = vmul.f32 %v1624_v38, %v2414_v0  ;;  %v971_v10 = vmul.f32 %v1624_v38, %v2422_v35  ;;  %v972_v18 = vmul.f32 %v1624_v38, %v2429_v5 }
 0x214   :  { %v973_v34 = vmul.f32 %v1624_v38, %v2436_v27  ;;  %v974_v61 = vmul.f32 %v1624_v38, %v2443_v60  ;;  %v975_v47 = vmul.f32 %v1624_v38, %v2450_v19  ;;  %v976_v39 = vmul.f32 %v1624_v38, %v2457_v3 }
 0x215   :  { %v977_v55 = vmul.f32 %v1624_v38, %v2464_v31  ;;  %v978_v20 = vmul.f32 %v1624_v38, %v2471_v1  ;;  %v979_v21 = vmul.f32 %v1624_v38, %v2478_v44  ;;  %v980_v0 = vmul.f32 %v1624_v38, %v2485_v16 }
 0x216   :  { %v981_v35 = vmul.f32 %v1624_v38, %v2492_v24  ;;  %v982_v5 = vmul.f32 %v1624_v38, %v2499_v32  ;;  %v983_v27 = vmul.f32 %v1624_v38, %v3814_v54  ;;  %v984_v60 = vmul.f32 %v1624_v38, %v3815_v46 }
 0x217   :  { %v985_v19 = vmul.f32 %v1624_v38, %v3816_v2  ;;  %v986_v3 = vmul.f32 %v1624_v38, %v3817_v14  ;;  %v987_v31 = vmul.f32 %v1624_v38, %v3818_v17  ;;  %v988_v1 = vmul.f32 %v1624_v38, %v2541_v33 }
 0x218   :  { %v989_v44 = vmul.f32 %v1624_v38, %v2548_v37  ;;  %v990_v16 = vmul.f32 %v1624_v38, %v2555_v41  ;;  %v991_v24 = vmul.f32 %v1624_v38, %v2562_v36  ;;  %v992_v32 = vmul.f32 %v1624_v38, %v2569_v50 }
 0x219   :  { %v993_v52 = vmul.f32 %v1624_v38, %v2576_v53  ;;  %v994_v28 = vmul.f32 %v1624_v38, %v2583_v40  ;;  %v995_v43 = vmul.f32 %v1624_v38, %v2590_v49  ;;  %v996_v58 = vmul.f32 %v1624_v38, %v2597_v8 }
 0x21a   :  { %v997_v54 = vmul.f32 %v1624_v38, %v2604_v13  ;;  %v998_v33 = vmul.f32 %v1624_v38, %v2611_v63  ;;  %v999_v37 = vmul.f32 %v1624_v38, %v2618_v25  ;;  %v1000_v41 = vmul.f32 %v1624_v38, %v2625_v29 }
 0x21b   :  { %v1001_v36 = vmul.f32 %v1624_v38, %v2632_v4  ;;  %v1002_v50 = vmul.f32 %v1624_v38, %v2639_v57  ;;  %v1003_v53 = vmul.f32 %v1624_v38, %v2646_v56  ;;  %v1004_v40 = vmul.f32 %v1624_v38, %v2653_v45  ;;  %v2838_v56 = vld [vmem:[%s3640_s3] ss:$0 sm:$0xff]  ;;  %v3820_v45 = vld [vmem:[#allocation64_spill] sm:$0xff] }
 0x21c   :  { %v1005_v49 = vmul.f32 %v1624_v38, %v2660_v62  ;;  %v1006_v8 = vmul.f32 %v1624_v38, %v2667_v9  ;;  %v1007_v13 = vmul.f32 %v1624_v38, %v2674_v11  ;;  %v1008_v63 = vmul.f32 %v1624_v38, %v2681_v23  ;;  %3819 = vst [vmem:[#allocation59_spill] sm:$0xff] %v2838_v56  ;;  %v3821_v9 = vld [vmem:[#allocation65_spill] sm:$0xff]  ;;  %v3822_v11 = vld [vmem:[#allocation66_spill] sm:$0xff]  ;;  %v3823_v23 = vld [vmem:[#allocation67_spill] sm:$0xff] }
 0x21d   :  { %v1009_v25 = vmul.f32 %v1624_v38, %v2688_v51  ;;  %v1010_v29 = vmul.f32 %v1624_v38, %v2695_v59  ;;  %v1011_v4 = vmul.f32 %v1624_v38, %v2702_v7  ;;  %v1012_v57 = vmul.f32 %v1624_v38, %v2709_v15  ;;  %v3824_v51 = vld [vmem:[#allocation68_spill] sm:$0xff]  ;;  %v3825_v59 = vld [vmem:[#allocation69_spill] sm:$0xff]  ;;  %v3826_v7 = vld [vmem:[#allocation70_spill] sm:$0xff] }
 0x21e   :  { %v1013_v62 = vmul.f32 %v1624_v38, %v3820_v45  ;;  %v1014_v46 = vmul.f32 %v1624_v38, %v3821_v9  ;;  %v1015_v2 = vmul.f32 %v1624_v38, %v3822_v11  ;;  %v1016_v14 = vmul.f32 %v1624_v38, %v3823_v23  ;;  %v3827_v56 = vld [vmem:[#allocation71_spill] sm:$0xff]  ;;  %v3828_v9 = vld [vmem:[#allocation72_spill] sm:$0xff] }
 0x21f   :  { %v1017_v17 = vmul.f32 %v1624_v38, %v3824_v51  ;;  %v1018_v6 = vmul.f32 %v1624_v38, %v3825_v59  ;;  %v1019_v15 = vmul.f32 %v1624_v38, %v3826_v7  ;;  %v1020_v45 = vmul.f32 %v1624_v38, %v3827_v56 }
 0x220   :  { %v1021_v11 = vmul.f32 %v1624_v38, %v3828_v9 }
 0x223   :  { %v3829_v23 = vld [vmem:[#allocation59_spill] sm:$0xff] }
 0x224   :  { %v1029_v51 = vmul.f32 %v3829_v23, %v965_v22  ;;  %v1030_v59 = vmul.f32 %v3829_v23, %v966_v30  ;;  %v1031_v7 = vmul.f32 %v3829_v23, %v967_v42  ;;  %v1032_v56 = vmul.f32 %v3829_v23, %v968_v12 }
 0x225   :  { %v1033_v9 = vmul.f32 %v3829_v23, %v969_v48  ;;  %v1034_v38 = vmul.f32 %v3829_v23, %v970_v26  ;;  %v1035_v22 = vmul.f32 %v3829_v23, %v971_v10  ;;  %v1036_v30 = vmul.f32 %v3829_v23, %v972_v18 }
 0x226   :  { %v1037_v42 = vmul.f32 %v3829_v23, %v973_v34  ;;  %v1038_v12 = vmul.f32 %v3829_v23, %v974_v61  ;;  %v1039_v48 = vmul.f32 %v3829_v23, %v975_v47  ;;  %v1040_v26 = vmul.f32 %v3829_v23, %v976_v39 }
 0x227   :  { %v1041_v10 = vmul.f32 %v3829_v23, %v977_v55  ;;  %v1042_v18 = vmul.f32 %v3829_v23, %v978_v20  ;;  %v1043_v34 = vmul.f32 %v3829_v23, %v979_v21  ;;  %v1044_v61 = vmul.f32 %v3829_v23, %v980_v0 }
 0x228   :  { %v1045_v47 = vmul.f32 %v3829_v23, %v981_v35  ;;  %v1046_v39 = vmul.f32 %v3829_v23, %v982_v5  ;;  %v1047_v55 = vmul.f32 %v3829_v23, %v983_v27  ;;  %v1048_v20 = vmul.f32 %v3829_v23, %v984_v60 }
 0x229   :  { %v1049_v21 = vmul.f32 %v3829_v23, %v985_v19  ;;  %v1050_v0 = vmul.f32 %v3829_v23, %v986_v3  ;;  %v1051_v35 = vmul.f32 %v3829_v23, %v987_v31  ;;  %v1052_v5 = vmul.f32 %v3829_v23, %v988_v1 }
 0x22a   :  { %v1053_v27 = vmul.f32 %v3829_v23, %v989_v44  ;;  %v1054_v60 = vmul.f32 %v3829_v23, %v990_v16  ;;  %v1055_v19 = vmul.f32 %v3829_v23, %v991_v24  ;;  %v1056_v3 = vmul.f32 %v3829_v23, %v992_v32 }
 0x22b   :  { %v1057_v31 = vmul.f32 %v3829_v23, %v993_v52  ;;  %v1058_v1 = vmul.f32 %v3829_v23, %v994_v28  ;;  %v1059_v44 = vmul.f32 %v3829_v23, %v995_v43  ;;  %v1060_v16 = vmul.f32 %v3829_v23, %v996_v58 }
 0x22c   :  { %v1061_v24 = vmul.f32 %v3829_v23, %v997_v54  ;;  %v1062_v32 = vmul.f32 %v3829_v23, %v998_v33  ;;  %v1063_v52 = vmul.f32 %v3829_v23, %v999_v37  ;;  %v1064_v28 = vmul.f32 %v3829_v23, %v1000_v41 }
 0x22d   :  { %v1065_v43 = vmul.f32 %v3829_v23, %v1001_v36  ;;  %v1066_v58 = vmul.f32 %v3829_v23, %v1002_v50  ;;  %v1067_v54 = vmul.f32 %v3829_v23, %v1003_v53  ;;  %v1068_v33 = vmul.f32 %v3829_v23, %v1004_v40 }
 0x22e   :  { %v1069_v37 = vmul.f32 %v3829_v23, %v1005_v49  ;;  %v1070_v41 = vmul.f32 %v3829_v23, %v1006_v8  ;;  %v1071_v36 = vmul.f32 %v3829_v23, %v1007_v13  ;;  %v1072_v50 = vmul.f32 %v3829_v23, %v1008_v63  ;;  %v2899_v8 = vld [vmem:[%s3641_s4] ss:$0 sm:$0xff] }
 0x22f   :  { %v1073_v53 = vmul.f32 %v3829_v23, %v1009_v25  ;;  %v1074_v40 = vmul.f32 %v3829_v23, %v1010_v29  ;;  %v1075_v49 = vmul.f32 %v3829_v23, %v1011_v4  ;;  %3830 = vst [vmem:[#allocation60_spill] sm:$0xff] %v2899_v8  ;;  %v1076_v13 = vmul.f32 %v3829_v23, %v1012_v57 }
 0x230   :  { %v1077_v63 = vmul.f32 %v3829_v23, %v1013_v62  ;;  %v1078_v25 = vmul.f32 %v3829_v23, %v1014_v46  ;;  %v1079_v29 = vmul.f32 %v3829_v23, %v1015_v2  ;;  %v1080_v4 = vmul.f32 %v3829_v23, %v1016_v14 }
 0x231   :  { %v1081_v8 = vmul.f32 %v3829_v23, %v1017_v17  ;;  %v1082_v57 = vmul.f32 %v3829_v23, %v1018_v6  ;;  %v1083_v62 = vmul.f32 %v3829_v23, %v1019_v15  ;;  %v1084_v46 = vmul.f32 %v3829_v23, %v1020_v45 }
 0x232   :  { %v1085_v2 = vmul.f32 %v3829_v23, %v1021_v11 }
 0x236   :  { %v3831_v14 = vld [vmem:[#allocation60_spill] sm:$0xff] }
 0x237   :  { %v2912_v17 = vadd.f32 %v3831_v14, %v1029_v51  ;;  %v2915_v6 = vadd.f32 %v3831_v14, %v1030_v59  ;;  %v2918_v15 = vadd.f32 %v3831_v14, %v1031_v7  ;;  %v2921_v45 = vadd.f32 %v3831_v14, %v1032_v56 }
 0x238   :  { %v2924_v11 = vadd.f32 %v3831_v14, %v1033_v9  ;;  %v2927_v23 = vadd.f32 %v3831_v14, %v1034_v38  ;;  %v2930_v51 = vadd.f32 %v3831_v14, %v1035_v22  ;;  %v2936_v59 = vadd.f32 %v3831_v14, %v1037_v42 }
 0x239   :  { %3832 = vst [vmem:[#allocation61_spill] sm:$0xff] %v2912_v17  ;;  %v2933_v17 = vadd.f32 %v3831_v14, %v1036_v30  ;;  %v2939_v7 = vadd.f32 %v3831_v14, %v1038_v12  ;;  %v2942_v56 = vadd.f32 %v3831_v14, %v1039_v48  ;;  %v2945_v9 = vadd.f32 %v3831_v14, %v1040_v26 }
 0x23a   :  { %v2948_v38 = vadd.f32 %v3831_v14, %v1041_v10  ;;  %v2951_v22 = vadd.f32 %v3831_v14, %v1042_v18  ;;  %v2954_v30 = vadd.f32 %v3831_v14, %v1043_v34  ;;  %v2957_v42 = vadd.f32 %v3831_v14, %v1044_v61 }
 0x23b   :  { %v2960_v12 = vadd.f32 %v3831_v14, %v1045_v47  ;;  %v2963_v48 = vadd.f32 %v3831_v14, %v1046_v39  ;;  %v2966_v26 = vadd.f32 %v3831_v14, %v1047_v55  ;;  %v2969_v10 = vadd.f32 %v3831_v14, %v1048_v20 }
 0x23c   :  { %v2972_v18 = vadd.f32 %v3831_v14, %v1049_v21  ;;  %v2975_v34 = vadd.f32 %v3831_v14, %v1050_v0  ;;  %v2978_v61 = vadd.f32 %v3831_v14, %v1051_v35  ;;  %v2981_v47 = vadd.f32 %v3831_v14, %v1052_v5 }
 0x23d   :  { %v2984_v39 = vadd.f32 %v3831_v14, %v1053_v27  ;;  %v2987_v55 = vadd.f32 %v3831_v14, %v1054_v60  ;;  %v2990_v20 = vadd.f32 %v3831_v14, %v1055_v19  ;;  %v2993_v21 = vadd.f32 %v3831_v14, %v1056_v3 }
 0x23e   :  { %v2996_v0 = vadd.f32 %v3831_v14, %v1057_v31  ;;  %v2999_v35 = vadd.f32 %v3831_v14, %v1058_v1  ;;  %v3002_v5 = vadd.f32 %v3831_v14, %v1059_v44  ;;  %v3005_v27 = vadd.f32 %v3831_v14, %v1060_v16 }
 0x23f   :  { %v3008_v60 = vadd.f32 %v3831_v14, %v1061_v24  ;;  %v3011_v19 = vadd.f32 %v3831_v14, %v1062_v32  ;;  %v3014_v3 = vadd.f32 %v3831_v14, %v1063_v52  ;;  %v3017_v31 = vadd.f32 %v3831_v14, %v1064_v28 }
 0x240   :  { %v3020_v1 = vadd.f32 %v3831_v14, %v1065_v43  ;;  %v3023_v44 = vadd.f32 %v3831_v14, %v1066_v58  ;;  %v3026_v16 = vadd.f32 %v3831_v14, %v1067_v54  ;;  %v3029_v24 = vadd.f32 %v3831_v14, %v1068_v33 }
 0x241   :  { %v3032_v32 = vadd.f32 %v3831_v14, %v1069_v37  ;;  %v3035_v52 = vadd.f32 %v3831_v14, %v1070_v41  ;;  %v3038_v28 = vadd.f32 %v3831_v14, %v1071_v36  ;;  %v3041_v43 = vadd.f32 %v3831_v14, %v1072_v50 }
 0x242   :  { %3833 = vst [vmem:[#allocation62_spill] sm:$0xff] %v3029_v24  ;;  %v3044_v58 = vadd.f32 %v3831_v14, %v1073_v53  ;;  %v3047_v54 = vadd.f32 %v3831_v14, %v1074_v40  ;;  %v3050_v33 = vadd.f32 %v3831_v14, %v1075_v49  ;;  %v3053_v37 = vadd.f32 %v3831_v14, %v1076_v13 }
 0x243   :  { %3834 = vst [vmem:[#allocation63_spill] sm:$0xff] %v3032_v32  ;;  %3835 = vst [vmem:[#allocation64_spill] sm:$0xff] %v3038_v28  ;;  %v3056_v41 = vadd.f32 %v3831_v14, %v1077_v63  ;;  %v3059_v36 = vadd.f32 %v3831_v14, %v1078_v25  ;;  %v3062_v50 = vadd.f32 %v3831_v14, %v1079_v29  ;;  %v3842_v29 = vld [vmem:[#allocation61_spill] sm:$0xff] }
 0x244   :  { %3836 = vst [vmem:[#allocation65_spill] sm:$0xff] %v3044_v58  ;;  %3837 = vst [vmem:[#allocation66_spill] sm:$0xff] %v3050_v33  ;;  %v3065_v53 = vadd.f32 %v3831_v14, %v1080_v4  ;;  %v3068_v40 = vadd.f32 %v3831_v14, %v1081_v8  ;;  %v3071_v49 = vadd.f32 %v3831_v14, %v1082_v57  ;;  %v1151_v4 = vmax.f32 %v2915_v6, 0.0  ;;  %v3848_v33 = vld [vmem:[#allocation3_spill] sm:$0xff] }
 0x245   :  { %3838 = vst [vmem:[#allocation67_spill] sm:$0xff] %v3062_v50  ;;  %v3074_v13 = vadd.f32 %v3831_v14, %v1083_v62  ;;  %v3077_v63 = vadd.f32 %v3831_v14, %v1084_v46  ;;  %v3080_v25 = vadd.f32 %v3831_v14, %v1085_v2  ;;  %v1150_v50 = vmax.f32 %v3842_v29, 0.0  ;;  %v3843_v29 = vld [vmem:[#allocation73_spill] sm:$0xff]  ;;  %v3850_v14 = vld [vmem:[#allocation4_spill] sm:$0xff] }
 0x246   :  { %3839 = vst [vmem:[#allocation68_spill] sm:$0xff] %v3065_v53  ;;  %3840 = vst [vmem:[#allocation69_spill] sm:$0xff] %v3071_v49  ;;  %v1152_v53 = vmax.f32 %v2918_v15, 0.0  ;;  %v1153_v8 = vmax.f32 %v2921_v45, 0.0  ;;  %v1154_v57 = vmax.f32 %v2924_v11, 0.0  ;;  %v1155_v49 = vmax.f32 %v2927_v23, 0.0 }
 0x247   :  { %3841 = vst [vmem:[#allocation70_spill] sm:$0xff] %v3077_v63  ;;  %v1156_v62 = vmax.f32 %v2930_v51, 0.0  ;;  %v1157_v46 = vmax.f32 %v2933_v17, 0.0  ;;  %vm1209_vm3 = vcmp.lt.s32.totalorder %v3843_v29, 4  ;;  %v3847_v58 = vmov %v3077_v63  ;;  %v3849_v17 = vld [vmem:[#allocation2_spill] sm:$0xff]  ;;  %v3851_v15 = vld [vmem:[#allocation5_spill] sm:$0xff] }
 0x248   :  { %v1210_v2 = vsel %vm1209_vm3, %v1150_v50, %v3848_v33  ;;  %v1211_v6 = vsel %vm1209_vm3, %v1151_v4, %v3849_v17  ;;  %v1212_v45 = vsel %vm1209_vm3, %v1152_v53, %v3850_v14  ;;  %v1213_v23 = vsel %vm1209_vm3, %v1153_v8, %v3851_v15  ;;  %v3852_v11 = vld [vmem:[#allocation6_spill] sm:$0xff]  ;;  %v3853_v51 = vld [vmem:[#allocation7_spill] sm:$0xff]  ;;  %v3854_v50 = vld [vmem:[#allocation8_spill] sm:$0xff] }
 0x249   :  { %v1214_v63 = vsel %vm1209_vm3, %v1154_v57, %v3852_v11  ;;  %v1215_v33 = vsel %vm1209_vm3, %v1155_v49, %v3853_v51  ;;  %v1216_v4 = vsel %vm1209_vm3, %v1156_v62, %v3854_v50  ;;  %v3855_v17 = vld [vmem:[#allocation9_spill] sm:$0xff]  ;;  %1267 = vst.msk [vmem:[%s3642_s5] sm:$0xff] %vm85_vm0, %v1210_v2  ;;  %1268 = vst.msk [vmem:[%s3642_s5 + $0x8] sm:$0xff] %vm85_vm0, %v1211_v6  ;;  %v3856_v49 = vld [vmem:[#allocation10_spill] sm:$0xff]  ;;  %v3857_v8 = vmax.f32 %v2936_v59, 0.0 }
 0x24a   :  { %v1217_v53 = vsel %vm1209_vm3, %v1157_v46, %v3855_v17  ;;  %1269 = vst.msk [vmem:[%s3642_s5 + $0x10] sm:$0xff] %vm85_vm0, %v1212_v45  ;;  %1270 = vst.msk [vmem:[%s3642_s5 + $0x18] sm:$0xff] %vm85_vm0, %v1213_v23  ;;  %v3858_v62 = vld [vmem:[#allocation11_spill] sm:$0xff]  ;;  %v3859_v46 = vmax.f32 %v2939_v7, 0.0  ;;  %v3860_v14 = vld [vmem:[#allocation12_spill] sm:$0xff]  ;;  %v3861_v6 = vmax.f32 %v2942_v56, 0.0 }
 0x24b   :  { %v1218_v57 = vsel %vm1209_vm3, %v3857_v8, %v3856_v49  ;;  %v3862_v45 = vld [vmem:[#allocation13_spill] sm:$0xff]  ;;  %v3863_v11 = vmax.f32 %v2945_v9, 0.0  ;;  %1271 = vst.msk [vmem:[%s3642_s5 + $0x20] sm:$0xff] %vm85_vm0, %v1214_v63  ;;  %1272 = vst.msk [vmem:[%s3642_s5 + $0x28] sm:$0xff] %vm85_vm0, %v1215_v33  ;;  %v3864_v7 = vld [vmem:[#allocation14_spill] sm:$0xff]  ;;  %v3865_v56 = vmax.f32 %v2948_v38, 0.0 }
 0x24c   :  { %v3844_v24 = vld [vmem:[#allocation67_spill] sm:$0xff]  ;;  %v1219_v2 = vsel %vm1209_vm3, %v3859_v46, %v3858_v62  ;;  %v1220_v15 = vsel %vm1209_vm3, %v3861_v6, %v3860_v14  ;;  %1273 = vst.msk [vmem:[%s3642_s5 + $0x30] sm:$0xff] %vm85_vm0, %v1216_v4  ;;  %1274 = vst.msk [vmem:[%s3642_s5 + $0x38] sm:$0xff] %vm85_vm0, %v1217_v53  ;;  %v3867_v23 = vmax.f32 %v2951_v22, 0.0  ;;  %v3868_v33 = vld [vmem:[#allocation16_spill] sm:$0xff]  ;;  %v3869_v50 = vmax.f32 %v2954_v30, 0.0 }
 0x24d   :  { %v3845_v32 = vld [vmem:[#allocation68_spill] sm:$0xff]  ;;  %v3846_v28 = vld [vmem:[#allocation69_spill] sm:$0xff]  ;;  %v1221_v59 = vsel %vm1209_vm3, %v3863_v11, %v3862_v45  ;;  %v1222_v9 = vsel %vm1209_vm3, %v3865_v56, %v3864_v7  ;;  %v3866_v63 = vld [vmem:[#allocation15_spill] sm:$0xff]  ;;  %v3871_v53 = vmax.f32 %v2957_v42, 0.0  ;;  %1275 = vst.msk [vmem:[%s3642_s5 + $0x40] sm:$0xff] %vm85_vm0, %v1218_v57  ;;  %v3873_v30 = vmax.f32 %v2960_v12, 0.0 }
 0x24e   :  { %v1223_v51 = vsel %vm1209_vm3, %v3867_v23, %v3866_v63  ;;  %v1224_v4 = vsel %vm1209_vm3, %v3869_v50, %v3868_v33  ;;  %v3870_v17 = vld [vmem:[#allocation17_spill] sm:$0xff]  ;;  %1276 = vst.msk [vmem:[%s3642_s5 + $0x48] sm:$0xff] %vm85_vm0, %v1219_v2  ;;  %1277 = vst.msk [vmem:[%s3642_s5 + $0x50] sm:$0xff] %vm85_vm0, %v1220_v15  ;;  %v3872_v22 = vld [vmem:[#allocation18_spill] sm:$0xff]  ;;  %v3875_v8 = vmax.f32 %v2963_v48, 0.0  ;;  %v3877_v46 = vmax.f32 %v2966_v26, 0.0 }
 0x24f   :  { %v1225_v38 = vsel %vm1209_vm3, %v3871_v53, %v3870_v17  ;;  %1278 = vst.msk [vmem:[%s3642_s5 + $0x58] sm:$0xff] %vm85_vm0, %v1221_v59  ;;  %v1226_v42 = vsel %vm1209_vm3, %v3873_v30, %v3872_v22  ;;  %v3874_v49 = vld [vmem:[#allocation19_spill] sm:$0xff]  ;;  %v3876_v62 = vld [vmem:[#allocation20_spill] sm:$0xff]  ;;  %v3878_v14 = vld [vmem:[#allocation21_spill] sm:$0xff]  ;;  %v3879_v6 = vmax.f32 %v2969_v10, 0.0  ;;  %v3881_v26 = vmax.f32 %v2972_v18, 0.0 }
 0x250   :  { %v1227_v57 = vsel %vm1209_vm3, %v3875_v8, %v3874_v49  ;;  %v1228_v2 = vsel %vm1209_vm3, %v3877_v46, %v3876_v62  ;;  %1279 = vst.msk [vmem:[%s3642_s5 + $0x60] sm:$0xff] %vm85_vm0, %v1222_v9  ;;  %1280 = vst.msk [vmem:[%s3642_s5 + $0x68] sm:$0xff] %vm85_vm0, %v1223_v51  ;;  %v3880_v48 = vld [vmem:[#allocation22_spill] sm:$0xff]  ;;  %v3882_v15 = vld [vmem:[#allocation23_spill] sm:$0xff]  ;;  %v3883_v45 = vmax.f32 %v2975_v34, 0.0  ;;  %v3885_v7 = vmax.f32 %v2978_v61, 0.0 }
 0x251   :  { %v1229_v12 = vsel %vm1209_vm3, %v3879_v6, %v3878_v14  ;;  %1281 = vst.msk [vmem:[%s3642_s5 + $0x70] sm:$0xff] %vm85_vm0, %v1224_v4  ;;  %1282 = vst.msk [vmem:[%s3642_s5 + $0x78] sm:$0xff] %vm85_vm0, %v1225_v38  ;;  %v1230_v10 = vsel %vm1209_vm3, %v3881_v26, %v3880_v48  ;;  %v3884_v59 = vld [vmem:[#allocation24_spill] sm:$0xff]  ;;  %v3886_v9 = vld [vmem:[#allocation25_spill] sm:$0xff]  ;;  %v3887_v63 = vmax.f32 %v2981_v47, 0.0  ;;  %v3889_v61 = vmax.f32 %v2984_v39, 0.0 }
 0x252   :  { %v1231_v11 = vsel %vm1209_vm3, %v3883_v45, %v3882_v15  ;;  %v1232_v56 = vsel %vm1209_vm3, %v3885_v7, %v3884_v59  ;;  %1283 = vst.msk [vmem:[%s3642_s5 + $0x80] sm:$0xff] %vm85_vm0, %v1226_v42  ;;  %1284 = vst.msk [vmem:[%s3642_s5 + $0x88] sm:$0xff] %vm85_vm0, %v1227_v57  ;;  %v3888_v34 = vld [vmem:[#allocation26_spill] sm:$0xff]  ;;  %v3890_v23 = vld [vmem:[#allocation27_spill] sm:$0xff]  ;;  %v3891_v51 = vmax.f32 %v2987_v55, 0.0  ;;  %v3893_v4 = vmax.f32 %v2990_v20, 0.0 }
 0x253   :  { %v1233_v18 = vsel %vm1209_vm3, %v3887_v63, %v3886_v9  ;;  %1285 = vst.msk [vmem:[%s3642_s5 + $0x90] sm:$0xff] %vm85_vm0, %v1228_v2  ;;  %1286 = vst.msk [vmem:[%s3642_s5 + $0x98] sm:$0xff] %vm85_vm0, %v1229_v12  ;;  %v1234_v47 = vsel %vm1209_vm3, %v3889_v61, %v3888_v34  ;;  %v3892_v50 = vld [vmem:[#allocation28_spill] sm:$0xff]  ;;  %v3894_v53 = vld [vmem:[#allocation29_spill] sm:$0xff]  ;;  %v3895_v38 = vmax.f32 %v2993_v21, 0.0  ;;  %v3897_v20 = vmax.f32 %v2996_v0, 0.0 }
 0x254   :  { %v1235_v33 = vsel %vm1209_vm3, %v3891_v51, %v3890_v23  ;;  %v1236_v17 = vsel %vm1209_vm3, %v3893_v4, %v3892_v50  ;;  %1287 = vst.msk [vmem:[%s3642_s5 + $0xa0] sm:$0xff] %vm85_vm0, %v1230_v10  ;;  %1288 = vst.msk [vmem:[%s3642_s5 + $0xa8] sm:$0xff] %vm85_vm0, %v1231_v11  ;;  %v3896_v55 = vld [vmem:[#allocation31_spill] sm:$0xff]  ;;  %v3898_v22 = vld [vmem:[#allocation30_spill] sm:$0xff]  ;;  %v3899_v30 = vmax.f32 %v2999_v35, 0.0  ;;  %v3901_v8 = vmax.f32 %v3002_v5, 0.0 }
 0x255   :  { %v1237_v39 = vsel %vm1209_vm3, %v3895_v38, %v3894_v53  ;;  %1289 = vst.msk [vmem:[%s3642_s5 + $0xb0] sm:$0xff] %vm85_vm0, %v1232_v56  ;;  %1290 = vst.msk [vmem:[%s3642_s5 + $0xb8] sm:$0xff] %vm85_vm0, %v1233_v18  ;;  %v1238_v21 = vsel %vm1209_vm3, %v3897_v20, %v3896_v55  ;;  %v3900_v49 = vld [vmem:[#allocation32_spill] sm:$0xff]  ;;  %v3902_v62 = vld [vmem:[#allocation33_spill] sm:$0xff]  ;;  %v3903_v46 = vmax.f32 %v3005_v27, 0.0  ;;  %v3905_v5 = vmax.f32 %v3008_v60, 0.0 }
 0x256   :  { %v1239_v42 = vsel %vm1209_vm3, %v3899_v30, %v3898_v22  ;;  %v1240_v57 = vsel %vm1209_vm3, %v3901_v8, %v3900_v49  ;;  %1291 = vst.msk [vmem:[%s3642_s5 + $0xc0] sm:$0xff] %vm85_vm0, %v1234_v47  ;;  %1292 = vst.msk [vmem:[%s3642_s5 + $0xc8] sm:$0xff] %vm85_vm0, %v1235_v33  ;;  %v3904_v35 = vld [vmem:[#allocation34_spill] sm:$0xff]  ;;  %v3906_v2 = vld [vmem:[#allocation35_spill] sm:$0xff]  ;;  %v3907_v14 = vmax.f32 %v3011_v19, 0.0  ;;  %v3909_v48 = vmax.f32 %v3014_v3, 0.0 }
 0x257   :  { %v1241_v0 = vsel %vm1209_vm3, %v3903_v46, %v3902_v62  ;;  %1293 = vst.msk [vmem:[%s3642_s5 + $0xd0] sm:$0xff] %vm85_vm0, %v1236_v17  ;;  %1294 = vst.msk [vmem:[%s3642_s5 + $0xd8] sm:$0xff] %vm85_vm0, %v1237_v39  ;;  %v1242_v27 = vsel %vm1209_vm3, %v3905_v5, %v3904_v35  ;;  %v3908_v12 = vld [vmem:[#allocation36_spill] sm:$0xff]  ;;  %v3910_v10 = vld [vmem:[#allocation37_spill] sm:$0xff]  ;;  %v3911_v15 = vmax.f32 %v3017_v31, 0.0  ;;  %v3913_v3 = vmax.f32 %v3020_v1, 0.0 }
 0x258   :  { %v1243_v6 = vsel %vm1209_vm3, %v3907_v14, %v3906_v2  ;;  %v1244_v26 = vsel %vm1209_vm3, %v3909_v48, %v3908_v12  ;;  %1295 = vst.msk [vmem:[%s3642_s5 + $0xe0] sm:$0xff] %vm85_vm0, %v1238_v21  ;;  %1296 = vst.msk [vmem:[%s3642_s5 + $0xe8] sm:$0xff] %vm85_vm0, %v1239_v42  ;;  %v3912_v19 = vld [vmem:[#allocation38_spill] sm:$0xff]  ;;  %v3914_v45 = vld [vmem:[#allocation39_spill] sm:$0xff]  ;;  %v3915_v11 = vmax.f32 %v3023_v44, 0.0  ;;  %v3917_v56 = vmax.f32 %v3026_v16, 0.0 }
 0x259   :  { %v1245_v60 = vsel %vm1209_vm3, %v3911_v15, %v3910_v10  ;;  %1297 = vst.msk [vmem:[%s3642_s5 + $0xf0] sm:$0xff] %vm85_vm0, %v1240_v57  ;;  %1298 = vst.msk [vmem:[%s3642_s5 + $0xf8] sm:$0xff] %vm85_vm0, %v1241_v0  ;;  %v1246_v31 = vsel %vm1209_vm3, %v3913_v3, %v3912_v19  ;;  %v3916_v7 = vld [vmem:[#allocation40_spill] sm:$0xff]  ;;  %v3918_v63 = vld [vmem:[#allocation41_spill] sm:$0xff]  ;;  %v3925_v51 = vmax.f32 %v3035_v52, 0.0  ;;  %v3930_v39 = vmax.f32 %v3041_v43, 0.0 }
 0x25a   :  { %v1247_v59 = vsel %vm1209_vm3, %v3915_v11, %v3914_v45  ;;  %v1248_v9 = vsel %vm1209_vm3, %v3917_v56, %v3916_v7  ;;  %v3919_v18 = vld [vmem:[#allocation62_spill] sm:$0xff]  ;;  %1299 = vst.msk [vmem:[%s3642_s5 + $0x100] sm:$0xff] %vm85_vm0, %v1242_v27  ;;  %1300 = vst.msk [vmem:[%s3642_s5 + $0x108] sm:$0xff] %vm85_vm0, %v1243_v6  ;;  %v3922_v16 = vld [vmem:[#allocation63_spill] sm:$0xff]  ;;  %v3935_v30 = vmax.f32 %v3047_v54, 0.0  ;;  %v3940_v0 = vmax.f32 %v3053_v37, 0.0 }
 0x25b   :  { %v3920_v34 = vmax.f32 %v3919_v18, 0.0  ;;  %1301 = vst.msk [vmem:[%s3642_s5 + $0x110] sm:$0xff] %vm85_vm0, %v1244_v26  ;;  %1302 = vst.msk [vmem:[%s3642_s5 + $0x118] sm:$0xff] %vm85_vm0, %v1245_v60  ;;  %v3921_v44 = vld [vmem:[#allocation42_spill] sm:$0xff]  ;;  %v3923_v61 = vmax.f32 %v3922_v16, 0.0  ;;  %v3924_v23 = vld [vmem:[#allocation43_spill] sm:$0xff] }
 0x25c   :  { %v1251_v33 = vsel %vm1209_vm3, %v3925_v51, %v3924_v23  ;;  %v3926_v50 = vld [vmem:[#allocation44_spill] sm:$0xff]  ;;  %v3929_v38 = vld [vmem:[#allocation45_spill] sm:$0xff]  ;;  %1303 = vst.msk [vmem:[%s3642_s5 + $0x120] sm:$0xff] %vm85_vm0, %v1246_v31  ;;  %1304 = vst.msk [vmem:[%s3642_s5 + $0x128] sm:$0xff] %vm85_vm0, %v1247_v59  ;;  %v3942_v37 = vmax.f32 %v3056_v41, 0.0  ;;  %v3944_v2 = vmax.f32 %v3059_v36, 0.0 }
 0x25d   :  { %v1249_v1 = vsel %vm1209_vm3, %v3920_v34, %v3918_v63  ;;  %v1250_v47 = vsel %vm1209_vm3, %v3923_v61, %v3921_v44  ;;  %v3927_v4 = vld [vmem:[#allocation64_spill] sm:$0xff]  ;;  %v1253_v55 = vsel %vm1209_vm3, %v3930_v39, %v3929_v38  ;;  %1305 = vst.msk [vmem:[%s3642_s5 + $0x130] sm:$0xff] %vm85_vm0, %v1248_v9  ;;  %v3931_v52 = vld [vmem:[#allocation46_spill] sm:$0xff]  ;;  %v3932_v43 = vld [vmem:[#allocation65_spill] sm:$0xff]  ;;  %v3946_v12 = vmax.f32 %v3844_v24, 0.0 }
 0x25e   :  { %v3928_v17 = vmax.f32 %v3927_v4, 0.0  ;;  %1306 = vst.msk [vmem:[%s3642_s5 + $0x138] sm:$0xff] %vm85_vm0, %v1249_v1  ;;  %v3933_v20 = vmax.f32 %v3932_v43, 0.0  ;;  %v3934_v22 = vld [vmem:[#allocation47_spill] sm:$0xff]  ;;  %v3936_v49 = vld [vmem:[#allocation48_spill] sm:$0xff]  ;;  %v3937_v8 = vld [vmem:[#allocation66_spill] sm:$0xff] }
 0x25f   :  { %v1255_v42 = vsel %vm1209_vm3, %v3935_v30, %v3934_v22  ;;  %v3938_v57 = vmax.f32 %v3937_v8, 0.0  ;;  %v3939_v46 = vld [vmem:[#allocation49_spill] sm:$0xff]  ;;  %1307 = vst.msk [vmem:[%s3642_s5 + $0x140] sm:$0xff] %vm85_vm0, %v1250_v47  ;;  %1308 = vst.msk [vmem:[%s3642_s5 + $0x148] sm:$0xff] %vm85_vm0, %v1251_v33  ;;  %v3941_v54 = vld [vmem:[#allocation50_spill] sm:$0xff]  ;;  %v3948_v10 = vmax.f32 %v3845_v32, 0.0 }
 0x260   :  { %v1252_v53 = vsel %vm1209_vm3, %v3928_v17, %v3926_v50  ;;  %v1254_v21 = vsel %vm1209_vm3, %v3933_v20, %v3931_v52  ;;  %v1257_v35 = vsel %vm1209_vm3, %v3940_v0, %v3939_v46  ;;  %1310 = vst.msk [vmem:[%s3642_s5 + $0x158] sm:$0xff] %vm85_vm0, %v1253_v55  ;;  %v1258_v5 = vsel %vm1209_vm3, %v3942_v37, %v3941_v54  ;;  %v3943_v27 = vld [vmem:[#allocation51_spill] sm:$0xff]  ;;  %v3945_v6 = vld [vmem:[#allocation52_spill] sm:$0xff]  ;;  %v3947_v26 = vld [vmem:[#allocation53_spill] sm:$0xff] }
 0x261   :  { %v1256_v62 = vsel %vm1209_vm3, %v3938_v57, %v3936_v49  ;;  %1309 = vst.msk [vmem:[%s3642_s5 + $0x150] sm:$0xff] %vm85_vm0, %v1252_v53  ;;  %v1259_v14 = vsel %vm1209_vm3, %v3944_v2, %v3943_v27  ;;  %v1260_v48 = vsel %vm1209_vm3, %v3946_v12, %v3945_v6  ;;  %v1261_v41 = vsel %vm1209_vm3, %v3948_v10, %v3947_v26  ;;  %v3949_v24 = vld [vmem:[#allocation54_spill] sm:$0xff]  ;;  %v3951_v15 = vld [vmem:[#allocation55_spill] sm:$0xff]  ;;  %v3953_v3 = vld [vmem:[#allocation56_spill] sm:$0xff] }
 0x262   :  { %1311 = vst.msk [vmem:[%s3642_s5 + $0x160] sm:$0xff] %vm85_vm0, %v1254_v21  ;;  %1312 = vst.msk [vmem:[%s3642_s5 + $0x168] sm:$0xff] %vm85_vm0, %v1255_v42  ;;  %v3950_v32 = vmax.f32 %v3068_v40, 0.0  ;;  %v3952_v60 = vmax.f32 %v3846_v28, 0.0  ;;  %v3954_v31 = vmax.f32 %v3074_v13, 0.0  ;;  %v3955_v11 = vld [vmem:[#allocation57_spill] sm:$0xff] }
 0x263   :  { %1313 = vst.msk [vmem:[%s3642_s5 + $0x170] sm:$0xff] %vm85_vm0, %v1256_v62  ;;  %1314 = vst.msk [vmem:[%s3642_s5 + $0x178] sm:$0xff] %vm85_vm0, %v1257_v35  ;;  %v3956_v59 = vmax.f32 %v3847_v58, 0.0  ;;  %v3957_v28 = vld [vmem:[#allocation58_spill] sm:$0xff]  ;;  %v3958_v58 = vmax.f32 %v3080_v25, 0.0 }
 0x264   :  { %v1262_v36 = vsel %vm1209_vm3, %v3950_v32, %v3949_v24  ;;  %v1263_v19 = vsel %vm1209_vm3, %v3952_v60, %v3951_v15  ;;  %v1264_v45 = vsel %vm1209_vm3, %v3954_v31, %v3953_v3  ;;  %1315 = vst.msk [vmem:[%s3642_s5 + $0x180] sm:$0xff] %vm85_vm0, %v1258_v5  ;;  %1316 = vst.msk [vmem:[%s3642_s5 + $0x188] sm:$0xff] %vm85_vm0, %v1259_v14 }
 0x265   :  { %v1265_v40 = vsel %vm1209_vm3, %v3956_v59, %v3955_v11  ;;  %1317 = vst.msk [vmem:[%s3642_s5 + $0x190] sm:$0xff] %vm85_vm0, %v1260_v48  ;;  %1318 = vst.msk [vmem:[%s3642_s5 + $0x198] sm:$0xff] %vm85_vm0, %v1261_v41  ;;  %v1266_v13 = vsel %vm1209_vm3, %v3958_v58, %v3957_v28 }
 0x266   :  { %1319 = vst.msk [vmem:[%s3642_s5 + $0x1a0] sm:$0xff] %vm85_vm0, %v1262_v36  ;;  %1320 = vst.msk [vmem:[%s3642_s5 + $0x1a8] sm:$0xff] %vm85_vm0, %v1263_v19 }
 0x267   :  { %1321 = vst.msk [vmem:[%s3642_s5 + $0x1b0] sm:$0xff] %vm85_vm0, %v1264_v45  ;;  %1322 = vst.msk [vmem:[%s3642_s5 + $0x1b8] sm:$0xff] %vm85_vm0, %v1265_v40 }
 0x268   :  { %1323 = vst.msk [vmem:[%s3642_s5 + $0x1c0] sm:$0x3] %vm718_vm2, %v1266_v13 }

// kernel: apnb_forward.4
= control target key start
LH: loop header
LB: loop body
LE: loop exit
PB: predicated region body
PF: predicated region fallthrough
CT: control target
= control target key end

     0   :  { %s3842_s17 = smov 0   ;;  %s5201_s0 = inlined_call_operand.vmem [shape: f32[2,225,8], index: 0, kind: input, shape index: {}]   ;;  %s5202_s1 = inlined_call_operand.vmem [shape: f32[2,225,8], index: 1, kind: input, shape index: {}]   ;;  %s5203_s2 = inlined_call_operand.vmem [shape: f32[2,58,10], index: 2, kind: input, shape index: {}]   ;;  %s5204_s3 = inlined_call_operand.vmem [shape: f32[225,58], index: 3, kind: input, shape index: {}]   ;;  %s5205_s4 = inlined_call_operand.vmem [shape: f32[225,2], index: 4, kind: input, shape index: {}]   ;;  %s5206_s5 = inlined_call_operand.vmem [shape: f32[4,8], index: 5, kind: input, shape index: {}]   ;;  %s5207_s6 = inlined_call_operand.vmem [shape: f32[1,8], index: 6, kind: input, shape index: {}]   ;;  %s5208_s7 = inlined_call_operand.vmem [shape: f32[8,8], index: 7, kind: input, shape index: {}]   ;;  %s5209_s8 = inlined_call_operand.vmem [shape: f32[8,8], index: 8, kind: input, shape index: {}]   ;;  %s5210_s9 = inlined_call_operand.vmem [shape: f32[1,8], index: 9, kind: input, shape index: {}]   ;;  %s5211_s10 = inlined_call_operand.vmem [shape: f32[2,225,8], index: 10, kind: output, shape index: {0}]   ;;  %s5212_s11 = inlined_call_operand.vmem [shape: f32[2,225,2], index: 11, kind: output, shape index: {1}]  }
   0x1 LB: > { %s2819_s18 = sadd.s32 4294967295, %s3777_s17   ;;  %p2823_p0 = scmp.ge.s32.totalorder %s3777_s17, 1  ;;  %s3777_s17 = sphi %s3842_s17, %s22_s17  }
   0x2   : > { %p360_p1 = scmp.lt.s32.totalorder %s3777_s17, 3 }
   0x4   : > { %p361_p2 = pnand %p2823_p0, %p360_p1 }
   0x5   : > { %p415_p3 = scmp.lt.s32.totalorder (!%p361_p2), %s2819_s18, 1  ;;  %s3781_s23 = smov (!%p361_p2), 124  }
   0x6   : > { %364 = sbr.rel (%p361_p2) target bundleno = 1340 (0x53c), region = 60 }
   0xb   : > { %v3779_v0 = vmov 0.0   ;;  %vm3780_vm0 = vmmov 0   ;;  %s5214_s18 = smov (!%p415_p3, %s2819_s18), 1  ;;  %vm477_vm1 = vcmask 31744   ;;  %vm1317_vm2 = vcmask 1041408   ;;  %v828_v44 = vld [vmem:[%s5204_s3] sm:$0xff] }
   0xc   : > { %3154 = vmatprep.subr.mxu0 %v3779_v0  ;;  %3170 = vmatprep.mubr.msk.f32.mxu0 %vm3780_vm0, %v3779_v0  ;;  %s2989_s19 = sshll.u32 %s5214_s18, 6  ;;  %s3876_s24 = smul.u32 232, %s5214_s18  ;;  %vm886_vm3 = vcmask 474112   ;;  %v829_v49 = vld [vmem:[%s5204_s3 + $0x8] sm:$0xff]  ;;  %v830_v55 = vld [vmem:[%s5204_s3 + $0x10] sm:$0xff]  ;;  %v831_v61 = vld [vmem:[%s5204_s3 + $0x18] sm:$0xff] }
   0xd   : > { %3627 = vmatprep.subr.mxu1 %v3779_v0  ;;  %3309 = vmatprep.mubr.msk.f32.mxu1 %vm3780_vm0, %v3779_v0  ;;  %s429_s22 = scalar_lea.vmem %s5203_s2, %s2989_s19  ;;  %vm971_vm4 = vcmask 466944   ;;  %vm1801_vm5 = vcmask 1043456   ;;  %vm2046_vm6 = vcmask 64512   ;;  %vm1704_vm7 = vcmask 15360  }
   0xe   : > { %v476_v1 = vld [vmem:[%s429_s22 + $0x38] sm:$0x3]  ;;  %v475_v2 = vld [vmem:[%s429_s22 + $0x30] sm:$0xff]  ;;  %v474_v3 = vld [vmem:[%s429_s22 + $0x28] sm:$0xff]  ;;  %s3892_s27 = scalar_lea.vmem %s5202_s1, %s3876_s24  ;;  %s4547_s30 = scalar_lea.vmem %s5201_s0, %s3876_s24  ;;  %vm1733_vm8 = vcmask 8192   ;;  %vm2705_vm9 = vcmask 57344  }
   0xf   : > { %3155 = vmatpush3.xpose.msk.msra.mxu0 %vm477_vm1, %v476_v1  ;;  %v473_v4 = vld [vmem:[%s429_s22 + $0x20] sm:$0xff]  ;;  %v472_v5 = vld [vmem:[%s429_s22 + $0x18] sm:$0xff]  ;;  %1221 = vrot.lane.b32.xlu0 %v476_v1, %s3781_s23  ;;  %v3870_v6 = vld [vmem:[%s429_s22 + $0x10] sm:$0xff]  ;;  %s4633_s16 = scalar_lea.vmem %s5212_s11, %s3876_s24  ;;  %s5072_s15 = scalar_lea.vmem %s5211_s10, %s3876_s24 }
  0x10   : > { %3156 = vmatprep.subr.mxu0 %v3779_v0  ;;  %1219 = vrot.lane.b32.xlu1 %v475_v2, %s3781_s23  ;;  %v3879_v7 = vld [vmem:[%s429_s22 + $0x8] sm:$0xff]  ;;  %v3886_v8 = vld [vmem:[%s429_s22] sm:$0xff]  ;;  %v442_v11 = vld [vmem:[%s3892_s27 + $0x10] sm:$0xff] }
  0x11   : > { %v440_v9 = vld [vmem:[%s3892_s27] sm:$0xff]  ;;  %v441_v10 = vld [vmem:[%s3892_s27 + $0x8] sm:$0xff]  ;;  %v443_v12 = vld [vmem:[%s3892_s27 + $0x18] sm:$0xff] }
  0x12   : > { %v444_v13 = vld [vmem:[%s3892_s27 + $0x20] sm:$0xff]  ;;  %v445_v14 = vld [vmem:[%s3892_s27 + $0x28] sm:$0xff]  ;;  %v446_v15 = vld [vmem:[%s3892_s27 + $0x30] sm:$0xff] }
  0x13   : > { %3157 = vmatpush3.xpose.msk.msra.mxu0 %vm477_vm1, %v475_v2  ;;  %1217 = vrot.lane.b32.xlu0 %v474_v3, %s3781_s23  ;;  %v447_v16 = vld [vmem:[%s3892_s27 + $0x38] sm:$0xff]  ;;  %v448_v17 = vld [vmem:[%s3892_s27 + $0x40] sm:$0xff]  ;;  %v449_v18 = vld [vmem:[%s3892_s27 + $0x48] sm:$0xff] }
  0x14   : > { %3158 = vmatprep.subr.mxu0 %v3779_v0  ;;  %1213 = vrot.lane.b32.xlu1 %v472_v5, %s3781_s23  ;;  %v450_v19 = vld [vmem:[%s3892_s27 + $0x50] sm:$0xff]  ;;  %v451_v20 = vld [vmem:[%s3892_s27 + $0x58] sm:$0xff]  ;;  %v452_v21 = vld [vmem:[%s3892_s27 + $0x60] sm:$0xff] }
  0x15   : > { %v453_v22 = vld [vmem:[%s3892_s27 + $0x68] sm:$0xff]  ;;  %v454_v23 = vld [vmem:[%s3892_s27 + $0x70] sm:$0xff]  ;;  %v455_v24 = vld [vmem:[%s3892_s27 + $0x78] sm:$0xff] }
  0x16   : > { %v456_v25 = vld [vmem:[%s3892_s27 + $0x80] sm:$0xff]  ;;  %v457_v26 = vld [vmem:[%s3892_s27 + $0x88] sm:$0xff]  ;;  %v458_v27 = vld [vmem:[%s3892_s27 + $0x90] sm:$0xff] }
  0x17   : > { %3159 = vmatpush3.xpose.msk.msra.mxu0 %vm477_vm1, %v474_v3  ;;  %1215 = vrot.lane.b32.xlu0 %v473_v4, %s3781_s23  ;;  %v459_v28 = vld [vmem:[%s3892_s27 + $0x98] sm:$0xff]  ;;  %v460_v29 = vld [vmem:[%s3892_s27 + $0xa0] sm:$0xff]  ;;  %v461_v30 = vld [vmem:[%s3892_s27 + $0xa8] sm:$0xff] }
  0x18   : > { %3160 = vmatprep.subr.mxu0 %v3779_v0  ;;  %v462_v31 = vld [vmem:[%s3892_s27 + $0xb0] sm:$0xff]  ;;  %v463_v32 = vld [vmem:[%s3892_s27 + $0xb8] sm:$0xff]  ;;  %v464_v33 = vld [vmem:[%s3892_s27 + $0xc0] sm:$0xff] }
  0x19   : > { %v465_v34 = vld [vmem:[%s3892_s27 + $0xc8] sm:$0xff]  ;;  %v466_v35 = vld [vmem:[%s3892_s27 + $0xd0] sm:$0xff]  ;;  %v467_v36 = vld [vmem:[%s3892_s27 + $0xd8] sm:$0xff] }
  0x1a   : > { %v468_v37 = vld [vmem:[%s3892_s27 + $0xe0] sm:$0x1] }
  0x1b   : > { %3161 = vmatpush3.xpose.msk.msra.mxu0 %vm477_vm1, %v473_v4 }
  0x1c   : > { %3162 = vmatprep.subr.mxu0 %v3779_v0 }
  0x1f   : > { %3163 = vmatpush3.xpose.msk.msra.mxu0 %vm477_vm1, %v472_v5 }
  0x20   : > { %3164 = vmatprep.subr.mxu0 %v3779_v0 }
  0x23   : > { %3165 = vmatpush3.xpose.msk.msra.mxu0 %vm477_vm1, %v3870_v6 }
  0x24   : > { %3166 = vmatprep.subr.mxu0 %v3779_v0 }
  0x27   : > { %3167 = vmatpush3.xpose.msk.msra.mxu0 %vm477_vm1, %v3879_v7 }
  0x28   : > { %3168 = vmatprep.subr.mxu0 %v3779_v0 }
  0x2b   : > { %3169 = vmatpush3.xpose.msk.msra.mxu0 %vm477_vm1, %v3886_v8 }
  0x2c   : > { %3257 = vmatprep.subr.mxu0 %v3779_v0 }
  0x2e   : > { %3171 = vmatmul.mubr.msk.f32.vlgmr.msra.gmra.mxu0 %vm477_vm1, %v440_v9 }
  0x2f   : > { %3173 = vmatprep.mubr.msk.f32.mxu0 %vm3780_vm0, %v3779_v0 }
  0x32   : > { %3174 = vmatmul.mubr.msk.f32.gmra.mxu0 %vm477_vm1, %v441_v10  ;;  %v833_v10 = vld [vmem:[%s5204_s3 + $0x28] sm:$0xff] }
  0x33   : > { %3176 = vmatprep.mubr.msk.f32.mxu0 %vm3780_vm0, %v3779_v0 }
  0x36   : > { %3177 = vmatmul.mubr.msk.f32.gmra.mxu0 %vm477_vm1, %v442_v11 }
  0x37   : > { %3179 = vmatprep.mubr.msk.f32.mxu0 %vm3780_vm0, %v3779_v0 }
  0x3a   : > { %3180 = vmatmul.mubr.msk.f32.gmra.mxu0 %vm477_vm1, %v443_v12 }
  0x3b   : > { %3182 = vmatprep.mubr.msk.f32.mxu0 %vm3780_vm0, %v3779_v0 }
  0x3e   : > { %3183 = vmatmul.mubr.msk.f32.gmra.mxu0 %vm477_vm1, %v444_v13 }
  0x3f   : > { %3185 = vmatprep.mubr.msk.f32.mxu0 %vm3780_vm0, %v3779_v0 }
  0x42   : > { %3186 = vmatmul.mubr.msk.f32.gmra.mxu0 %vm477_vm1, %v445_v14 }
  0x43   : > { %3188 = vmatprep.mubr.msk.f32.mxu0 %vm3780_vm0, %v3779_v0 }
  0x46   : > { %3189 = vmatmul.mubr.msk.f32.gmra.mxu0 %vm477_vm1, %v446_v15 }
  0x47   : > { %3191 = vmatprep.mubr.msk.f32.mxu0 %vm3780_vm0, %v3779_v0 }
  0x4a   : > { %3192 = vmatmul.mubr.msk.f32.gmra.mxu0 %vm477_vm1, %v447_v16 }
  0x4b   : > { %3194 = vmatprep.mubr.msk.f32.mxu0 %vm3780_vm0, %v3779_v0 }
  0x4e   : > { %3195 = vmatmul.mubr.msk.f32.gmra.mxu0 %vm477_vm1, %v448_v17 }
  0x4f   : > { %3197 = vmatprep.mubr.msk.f32.mxu0 %vm3780_vm0, %v3779_v0 }
  0x52   : > { %3198 = vmatmul.mubr.msk.f32.gmra.mxu0 %vm477_vm1, %v449_v18  ;;  %v835_v18 = vld [vmem:[%s5204_s3 + $0x38] sm:$0xff] }
  0x53   : > { %3200 = vmatprep.mubr.msk.f32.mxu0 %vm3780_vm0, %v3779_v0 }
  0x56   : > { %3201 = vmatmul.mubr.msk.f32.gmra.mxu0 %vm477_vm1, %v450_v19 }
  0x57   : > { %3203 = vmatprep.mubr.msk.f32.mxu0 %vm3780_vm0, %v3779_v0 }
  0x5a   : > { %3204 = vmatmul.mubr.msk.f32.gmra.mxu0 %vm477_vm1, %v451_v20 }
  0x5b   : > { %3206 = vmatprep.mubr.msk.f32.mxu0 %vm3780_vm0, %v3779_v0 }
  0x5e   : > { %3207 = vmatmul.mubr.msk.f32.gmra.mxu0 %vm477_vm1, %v452_v21 }
  0x5f   : > { %3209 = vmatprep.mubr.msk.f32.mxu0 %vm3780_vm0, %v3779_v0 }
  0x62   : > { %3210 = vmatmul.mubr.msk.f32.gmra.mxu0 %vm477_vm1, %v453_v22 }
  0x63   : > { %3212 = vmatprep.mubr.msk.f32.mxu0 %vm3780_vm0, %v3779_v0 }
  0x66   : > { %3213 = vmatmul.mubr.msk.f32.gmra.mxu0 %vm477_vm1, %v454_v23 }
  0x67   : > { %3215 = vmatprep.mubr.msk.f32.mxu0 %vm3780_vm0, %v3779_v0 }
  0x6a   : > { %3216 = vmatmul.mubr.msk.f32.gmra.mxu0 %vm477_vm1, %v455_v24 }
  0x6b   : > { %3218 = vmatprep.mubr.msk.f32.mxu0 %vm3780_vm0, %v3779_v0 }
  0x6e   : > { %3219 = vmatmul.mubr.msk.f32.gmra.mxu0 %vm477_vm1, %v456_v25 }
  0x6f   : > { %3221 = vmatprep.mubr.msk.f32.mxu0 %vm3780_vm0, %v3779_v0 }
  0x72   : > { %3222 = vmatmul.mubr.msk.f32.gmra.mxu0 %vm477_vm1, %v457_v26  ;;  %v837_v26 = vld [vmem:[%s5204_s3 + $0x48] sm:$0xff] }
  0x73   : > { %3224 = vmatprep.mubr.msk.f32.mxu0 %vm3780_vm0, %v3779_v0 }
  0x76   : > { %3225 = vmatmul.mubr.msk.f32.gmra.mxu0 %vm477_vm1, %v458_v27 }
  0x77   : > { %3227 = vmatprep.mubr.msk.f32.mxu0 %vm3780_vm0, %v3779_v0 }
  0x7a   : > { %3228 = vmatmul.mubr.msk.f32.gmra.mxu0 %vm477_vm1, %v459_v28 }
  0x7b   : > { %3230 = vmatprep.mubr.msk.f32.mxu0 %vm3780_vm0, %v3779_v0 }
  0x7e   : > { %3231 = vmatmul.mubr.msk.f32.gmra.mxu0 %vm477_vm1, %v460_v29 }
  0x7f   : > { %3233 = vmatprep.mubr.msk.f32.mxu0 %vm3780_vm0, %v3779_v0 }
  0x81   : > { %v1222_v38 = vpop.permute.xlu0 %1221 }
  0x82   : > { %3234 = vmatmul.mubr.msk.f32.gmra.mxu0 %vm477_vm1, %v461_v30  ;;  %3635 = vmatpush3.msk.msra.mxu1 %vm1317_vm2, %v1222_v38  ;;  %v1220_v39 = vpop.permute.xlu1 %1219 }
  0x83   : > { %3236 = vmatprep.mubr.msk.f32.mxu0 %vm3780_vm0, %v3779_v0  ;;  %3258 = vmatpush3.msk.msra.mxu0 %vm1317_vm2, %v1222_v38 }
  0x84   : > { %3628 = vmatprep.subr.mxu1 %v3779_v0  ;;  %3259 = vmatprep.subr.mxu0 %v3779_v0 }
  0x85   : > { %3260 = vmatpush3.msra.mxu0 %v1220_v39  ;;  %3636 = vmatpush3.msra.mxu1 %v1220_v39  ;;  %v1218_v40 = vpop.permute.xlu0 %1217 }
  0x86   : > { %3237 = vmatmul.mubr.msk.f32.gmra.mxu0 %vm477_vm1, %v462_v31  ;;  %3629 = vmatprep.subr.mxu1 %v3779_v0  ;;  %v1214_v42 = vpop.permute.xlu1 %1213 }
  0x87   : > { %3239 = vmatprep.mubr.msk.f32.mxu0 %vm3780_vm0, %v3779_v0  ;;  %3261 = vmatprep.subr.mxu0 %v3779_v0 }
  0x88   : > { %3262 = vmatpush3.msra.mxu0 %v1218_v40  ;;  %3637 = vmatpush3.msra.mxu1 %v1218_v40 }
  0x89   : > { %3630 = vmatprep.subr.mxu1 %v3779_v0  ;;  %3263 = vmatprep.subr.mxu0 %v3779_v0  ;;  %v1216_v41 = vpop.permute.xlu0 %1215 }
  0x8a   : > { %3240 = vmatmul.mubr.msk.f32.gmra.mxu0 %vm477_vm1, %v463_v32  ;;  %3638 = vmatpush3.msra.mxu1 %v1216_v41 }
  0x8b   : > { %3242 = vmatprep.mubr.msk.f32.mxu0 %vm3780_vm0, %v3779_v0  ;;  %3264 = vmatpush3.msra.mxu0 %v1216_v41 }
  0x8c   : > { %3631 = vmatprep.subr.mxu1 %v3779_v0  ;;  %3265 = vmatprep.subr.mxu0 %v3779_v0 }
  0x8d   : > { %3266 = vmatpush3.msra.mxu0 %v1214_v42  ;;  %3639 = vmatpush3.msra.mxu1 %v1214_v42  ;;  %v841_v42 = vld [vmem:[%s5204_s3 + $0x68] sm:$0xff] }
  0x8e   : > { %3243 = vmatmul.mubr.msk.f32.gmra.mxu0 %vm477_vm1, %v464_v33  ;;  %3267 = vmatprep.subr.mxu0 %v3779_v0  ;;  %v839_v33 = vld [vmem:[%s5204_s3 + $0x58] sm:$0xff] }
  0x8f   : > { %3245 = vmatprep.mubr.msk.f32.mxu0 %vm3780_vm0, %v3779_v0  ;;  %3632 = vmatprep.subr.mxu1 %v3779_v0 }
  0x92   : > { %3246 = vmatmul.mubr.msk.f32.gmra.mxu0 %vm477_vm1, %v465_v34 }
  0x93   : > { %3248 = vmatprep.mubr.msk.f32.mxu0 %vm3780_vm0, %v3779_v0 }
  0x96   : > { %3249 = vmatmul.mubr.msk.f32.gmra.mxu0 %vm477_vm1, %v466_v35 }
  0x97   : > { %3251 = vmatprep.mubr.msk.f32.mxu0 %vm3780_vm0, %v3779_v0 }
  0x9a   : > { %3252 = vmatmul.mubr.msk.f32.gmra.mxu0 %vm477_vm1, %v467_v36 }
  0x9b   : > { %3254 = vmatprep.mubr.msk.f32.mxu0 %vm3780_vm0, %v3779_v0 }
  0x9e   : > { %3255 = vmatmul.mubr.msk.f32.gmra.mxu0 %vm477_vm1, %v468_v37 }
  0x9f   : > { %3273 = vmatprep.mubr.msk.f32.mxu0 %vm3780_vm0, %v3779_v0 }
  0xee   : > { %v655_v43 = vpop.f32.mrf.mxu0 }
  0xef   : > { %v799_v45 = vmul.f32 0.5, %v655_v43 }
  0xf0   : > { %v3172_v46 = vpop.f32.mrf.mxu0 }
  0xf1   : > { %v4026_v47 = vadd.f32 %v828_v44, %v799_v45  ;;  %v832_v44 = vld [vmem:[%s5204_s3 + $0x20] sm:$0xff] }
  0xf2   : > { %v660_v48 = vpop.f32.mrf.mxu0 }
  0xf3   : > { %v800_v50 = vmul.f32 0.5, %v660_v48  ;;  %v887_v51 = vsel %vm886_vm3, %v4026_v47, -inf }
  0xf4   : > { %888 = vmax.xlane.f32.xlu0 %v887_v51  ;;  %v3175_v52 = vpop.f32.mrf.mxu0 }
  0xf5   : > { %v4033_v53 = vadd.f32 %v829_v49, %v800_v50  ;;  %v834_v52 = vld [vmem:[%s5204_s3 + $0x30] sm:$0xff] }
  0xf6   : > { %v665_v54 = vpop.f32.mrf.mxu0 }
  0xf7   : > { %v801_v56 = vmul.f32 0.5, %v665_v54  ;;  %v890_v57 = vsel %vm886_vm3, %v4033_v53, -inf }
  0xf8   : > { %891 = vmax.xlane.f32.xlu0 %v890_v57  ;;  %v3178_v58 = vpop.f32.mrf.mxu0 }
  0xf9   : > { %v4040_v59 = vadd.f32 %v830_v55, %v801_v56  ;;  %v843_v58 = vld [vmem:[%s5204_s3 + $0x78] sm:$0xff] }
  0xfa   : > { %v670_v60 = vpop.f32.mrf.mxu0 }
  0xfb   : > { %v802_v62 = vmul.f32 0.5, %v670_v60  ;;  %v893_v63 = vsel %vm886_vm3, %v4040_v59, -inf }
  0xfc   : > { %894 = vmax.xlane.f32.xlu1 %v893_v63  ;;  %v3181_v1 = vpop.f32.mrf.mxu0 }
  0xfd   : > { %v4047_v2 = vadd.f32 %v831_v61, %v802_v62  ;;  %v836_v62 = vld [vmem:[%s5204_s3 + $0x40] sm:$0xff] }
  0xfe   : > { %v675_v3 = vpop.f32.mrf.mxu0 }
  0xff   : > { %v896_v4 = vsel %vm886_vm3, %v4047_v2, -inf  ;;  %v803_v40 = vmul.f32 0.5, %v675_v3 }
 0x100   : > { %897 = vmax.xlane.f32.xlu1 %v896_v4  ;;  %v3184_v5 = vpop.f32.mrf.mxu0 }
 0x101   : > { %v4089_v50 = vadd.f32 %v832_v44, %v803_v40 }
 0x102   : > { %v680_v9 = vpop.f32.mrf.mxu0 }
 0x103   : > { %v804_v11 = vmul.f32 0.5, %v680_v9  ;;  %v899_v57 = vsel %vm886_vm3, %v4089_v50, -inf }
 0x104   : > { %v3187_v12 = vpop.f32.mrf.mxu0 }
 0x105   : > { %v4054_v13 = vadd.f32 %v833_v10, %v804_v11  ;;  %v838_v11 = vld [vmem:[%s5204_s3 + $0x50] sm:$0xff] }
 0x106   : > { %v685_v14 = vpop.f32.mrf.mxu0 }
 0x107   : > { %v902_v15 = vsel %vm886_vm3, %v4054_v13, -inf  ;;  %v805_v48 = vmul.f32 0.5, %v685_v14 }
 0x108   : > { %903 = vmax.xlane.f32.xlu1 %v902_v15  ;;  %v3190_v16 = vpop.f32.mrf.mxu0 }
 0x109   : > { %v4101_v60 = vadd.f32 %v834_v52, %v805_v48  ;;  %v846_v48 = vld [vmem:[%s5204_s3 + $0x90] sm:$0xff] }
 0x10a   : > { %v690_v17 = vpop.f32.mrf.mxu0 }
 0x10b   : > { %v806_v19 = vmul.f32 0.5, %v690_v17  ;;  %v905_v5 = vsel %vm886_vm3, %v4101_v60, -inf  ;;  %v845_v17 = vld [vmem:[%s5204_s3 + $0x88] sm:$0xff] }
 0x10c   : > { %v3193_v20 = vpop.f32.mrf.mxu0 }
 0x10d   : > { %v4061_v21 = vadd.f32 %v835_v18, %v806_v19  ;;  %v840_v20 = vld [vmem:[%s5204_s3 + $0x60] sm:$0xff] }
 0x10e   : > { %1211 = vrot.lane.b32.xlu0 %v3870_v6, %s3781_s23  ;;  %v695_v22 = vpop.f32.mrf.mxu0 }
 0x10f   : > { %v908_v23 = vsel %vm886_vm3, %v4061_v21, -inf  ;;  %v807_v55 = vmul.f32 0.5, %v695_v22 }
 0x110   : > { %909 = vmax.xlane.f32.xlu1 %v908_v23  ;;  %v3196_v24 = vpop.f32.mrf.mxu0 }
 0x111   : > { %v4110_v9 = vadd.f32 %v836_v62, %v807_v55  ;;  %v849_v55 = vld [vmem:[%s5204_s3 + $0xa8] sm:$0xff] }
 0x112   : > { %v700_v25 = vpop.f32.mrf.mxu0 }
 0x113   : > { %v808_v27 = vmul.f32 0.5, %v700_v25  ;;  %v911_v16 = vsel %vm886_vm3, %v4110_v9, -inf }
 0x114   : > { %v3199_v28 = vpop.f32.mrf.mxu0 }
 0x115   : > { %v4070_v29 = vadd.f32 %v837_v26, %v808_v27 }
 0x116   : > { %v705_v30 = vpop.f32.mrf.mxu0 }
 0x117   : > { %v914_v31 = vsel %vm886_vm3, %v4070_v29, -inf  ;;  %v809_v3 = vmul.f32 0.5, %v705_v30  ;;  %v842_v30 = vld [vmem:[%s5204_s3 + $0x70] sm:$0xff] }
 0x118   : > { %915 = vmax.xlane.f32.xlu1 %v914_v31  ;;  %v3202_v6 = vpop.f32.mrf.mxu0 }
 0x119   : > { %v4122_v18 = vadd.f32 %v838_v11, %v809_v3  ;;  %v850_v11 = vld [vmem:[%s5204_s3 + $0xb0] sm:$0xff] }
 0x11a   : > { %v710_v32 = vpop.f32.mrf.mxu0 }
 0x11b   : > { %v810_v34 = vmul.f32 0.5, %v710_v32  ;;  %v917_v26 = vsel %vm886_vm3, %v4122_v18, -inf }
 0x11c   : > { %v3205_v35 = vpop.f32.mrf.mxu0 }
 0x11d   : > { %v4077_v36 = vadd.f32 %v839_v33, %v810_v34  ;;  %v847_v34 = vld [vmem:[%s5204_s3 + $0x98] sm:$0xff] }
 0x11e   : > { %v715_v37 = vpop.f32.mrf.mxu0 }
 0x11f   : > { %v920_v38 = vsel %vm886_vm3, %v4077_v36, -inf  ;;  %v811_v14 = vmul.f32 0.5, %v715_v37 }
 0x120   : > { %921 = vmax.xlane.f32.xlu1 %v920_v38  ;;  %v3208_v39 = vpop.f32.mrf.mxu0  ;;  %v844_v38 = vld [vmem:[%s5204_s3 + $0x80] sm:$0xff] }
 0x121   : > { %v4131_v27 = vadd.f32 %v840_v20, %v811_v14 }
 0x122   : > { %v720_v41 = vpop.f32.mrf.mxu0 }
 0x123   : > { %v812_v43 = vmul.f32 0.5, %v720_v41  ;;  %v923_v33 = vsel %vm886_vm3, %v4131_v27, -inf }
 0x124   : > { %v3211_v45 = vpop.f32.mrf.mxu0 }
 0x125   : > { %v4087_v46 = vadd.f32 %v841_v42, %v812_v43 }
 0x126   : > { %v725_v49 = vpop.f32.mrf.mxu0 }
 0x127   : > { %v926_v51 = vsel %vm886_vm3, %v4087_v46, -inf  ;;  %v813_v24 = vmul.f32 0.5, %v725_v49 }
 0x128   : > { %927 = vmax.xlane.f32.xlu1 %v926_v51  ;;  %v3214_v54 = vpop.f32.mrf.mxu0 }
 0x129   : > { %v4143_v35 = vadd.f32 %v842_v30, %v813_v24 }
 0x12a   : > { %v730_v56 = vpop.f32.mrf.mxu0 }
 0x12b   : > { %v814_v61 = vmul.f32 0.5, %v730_v56  ;;  %v929_v43 = vsel %vm886_vm3, %v4143_v35, -inf }
 0x12c   : > { %v3217_v63 = vpop.f32.mrf.mxu0 }
 0x12d   : > { %900 = vmax.xlane.f32.xlu0 %v899_v57  ;;  %v4106_v1 = vadd.f32 %v843_v58, %v814_v61  ;;  %v848_v58 = vld [vmem:[%s5204_s3 + $0xa0] sm:$0xff] }
 0x12e   : > { %v735_v4 = vpop.f32.mrf.mxu0 }
 0x12f   : > { %v932_v10 = vsel %vm886_vm3, %v4106_v1, -inf  ;;  %v815_v6 = vmul.f32 0.5, %v735_v4 }
 0x130   : > { %933 = vmax.xlane.f32.xlu1 %v932_v10  ;;  %v3220_v12 = vpop.f32.mrf.mxu0 }
 0x131   : > { %906 = vmax.xlane.f32.xlu0 %v905_v5  ;;  %v4152_v44 = vadd.f32 %v844_v38, %v815_v6 }
 0x132   : > { %v740_v15 = vpop.f32.mrf.mxu0 }
 0x133   : > { %v816_v19 = vmul.f32 0.5, %v740_v15  ;;  %v935_v54 = vsel %vm886_vm3, %v4152_v44, -inf }
 0x134   : > { %v3223_v22 = vpop.f32.mrf.mxu0 }
 0x135   : > { %912 = vmax.xlane.f32.xlu0 %v911_v16  ;;  %v4127_v23 = vadd.f32 %v845_v17, %v816_v19  ;;  %v851_v19 = vld [vmem:[%s5204_s3 + $0xb8] sm:$0xff] }
 0x136   : > { %v745_v25 = vpop.f32.mrf.mxu0 }
 0x137   : > { %v938_v28 = vsel %vm886_vm3, %v4127_v23, -inf  ;;  %v817_v41 = vmul.f32 0.5, %v745_v25 }
 0x138   : > { %939 = vmax.xlane.f32.xlu1 %v938_v28  ;;  %v3226_v31 = vpop.f32.mrf.mxu0  ;;  %v852_v28 = vld [vmem:[%s5204_s3 + $0xc0] sm:$0xff] }
 0x139   : > { %918 = vmax.xlane.f32.xlu0 %v917_v26  ;;  %v4164_v56 = vadd.f32 %v846_v48, %v817_v41  ;;  %v854_v41 = vld [vmem:[%s5204_s3 + $0xd0] sm:$0xff] }
 0x13a   : > { %v750_v32 = vpop.f32.mrf.mxu0 }
 0x13b   : > { %v818_v37 = vmul.f32 0.5, %v750_v32  ;;  %v941_v3 = vsel %vm886_vm3, %v4164_v56, -inf }
 0x13c   : > { %v3229_v39 = vpop.f32.mrf.mxu0 }
 0x13d   : > { %924 = vmax.xlane.f32.xlu0 %v923_v33  ;;  %v4148_v40 = vadd.f32 %v847_v34, %v818_v37  ;;  %v853_v34 = vld [vmem:[%s5204_s3 + $0xc8] sm:$0xff] }
 0x13e   : > { %v755_v42 = vpop.f32.mrf.mxu0 }
 0x13f   : > { %v944_v45 = vsel %vm886_vm3, %v4148_v40, -inf  ;;  %v819_v51 = vmul.f32 0.5, %v755_v42 }
 0x140   : > { %945 = vmax.xlane.f32.xlu1 %v944_v45  ;;  %v3232_v49 = vpop.f32.mrf.mxu0 }
 0x141   : > { %930 = vmax.xlane.f32.xlu0 %v929_v43  ;;  %v4173_v4 = vadd.f32 %v848_v58, %v819_v51 }
 0x142   : > { %v760_v52 = vpop.f32.mrf.mxu0 }
 0x143   : > { %v820_v57 = vmul.f32 0.5, %v760_v52  ;;  %v947_v15 = vsel %vm886_vm3, %v4173_v4, -inf  ;;  %v855_v52 = vld [vmem:[%s5204_s3 + $0xd8] sm:$0xff] }
 0x144   : > { %v3235_v61 = vpop.f32.mrf.mxu0 }
 0x145   : > { %936 = vmax.xlane.f32.xlu0 %v935_v54  ;;  %v4169_v62 = vadd.f32 %v849_v55, %v820_v57 }
 0x146   : > { %v765_v63 = vpop.f32.mrf.mxu0 }
 0x147   : > { %v821_v5 = vmul.f32 0.5, %v765_v63  ;;  %v950_v10 = vsel %vm886_vm3, %v4169_v62, -inf  ;;  %v856_v63 = vld [vmem:[%s5204_s3 + $0xe0] sm:$0x1] }
 0x148   : > { %951 = vmax.xlane.f32.xlu1 %v950_v10  ;;  %v3238_v12 = vpop.f32.mrf.mxu0 }
 0x149   : > { %942 = vmax.xlane.f32.xlu0 %v941_v3  ;;  %v4182_v16 = vadd.f32 %v850_v11, %v821_v5 }
 0x14a   : > { %v770_v14 = vpop.f32.mrf.mxu0 }
 0x14b   : > { %v822_v17 = vmul.f32 0.5, %v770_v14  ;;  %v953_v24 = vsel %vm886_vm3, %v4182_v16, -inf }
 0x14c   : > { %v3241_v20 = vpop.f32.mrf.mxu0 }
 0x14d   : > { %948 = vmax.xlane.f32.xlu0 %v947_v15  ;;  %v4189_v25 = vadd.f32 %v851_v19, %v822_v17 }
 0x14e   : > { %v775_v22 = vpop.f32.mrf.mxu0 }
 0x14f   : > { %v823_v26 = vmul.f32 0.5, %v775_v22  ;;  %v956_v6 = vsel %vm886_vm3, %v4189_v25, -inf }
 0x150   : > { %v3244_v30 = vpop.f32.mrf.mxu0 }
 0x151   : > { %954 = vmax.xlane.f32.xlu0 %v953_v24  ;;  %v4196_v32 = vadd.f32 %v852_v28, %v823_v26 }
 0x152   : > { %v780_v31 = vpop.f32.mrf.mxu0 }
 0x153   : > { %v824_v33 = vmul.f32 0.5, %v780_v31  ;;  %v959_v39 = vsel %vm886_vm3, %v4196_v32, -inf }
 0x154   : > { %v3247_v37 = vpop.f32.mrf.mxu0 }
 0x155   : > { %957 = vmax.xlane.f32.xlu0 %v956_v6  ;;  %v4206_v42 = vadd.f32 %v853_v34, %v824_v33 }
 0x156   : > { %v785_v38 = vpop.f32.mrf.mxu0 }
 0x157   : > { %v825_v43 = vmul.f32 0.5, %v785_v38  ;;  %v962_v51 = vsel %vm886_vm3, %v4206_v42, -inf }
 0x158   : > { %v3250_v45 = vpop.f32.mrf.mxu0 }
 0x159   : > { %960 = vmax.xlane.f32.xlu0 %v959_v39  ;;  %v4208_v48 = vadd.f32 %v854_v41, %v825_v43 }
 0x15a   : > { %v790_v49 = vpop.f32.mrf.mxu0 }
 0x15b   : > { %v826_v54 = vmul.f32 0.5, %v790_v49  ;;  %v965_v55 = vsel %vm886_vm3, %v4208_v48, -inf }
 0x15c   : > { %966 = vmax.xlane.f32.xlu1 %v965_v55  ;;  %v3253_v57 = vpop.f32.mrf.mxu0 }
 0x15d   : > { %963 = vmax.xlane.f32.xlu0 %v962_v51  ;;  %v4217_v58 = vadd.f32 %v855_v52, %v826_v54 }
 0x15e   : > { %v795_v61 = vpop.f32.mrf.mxu0 }
 0x15f   : > { %v827_v3 = vmul.f32 0.5, %v795_v61  ;;  %v968_v5 = vsel %vm886_vm3, %v4217_v58, -inf }
 0x160   : > { %v3256_v10 = vpop.f32.mrf.mxu0 }
 0x161   : > { %969 = vmax.xlane.f32.xlu0 %v968_v5  ;;  %v4224_v11 = vadd.f32 %v856_v63, %v827_v3 }
 0x163   : > { %v972_v12 = vsel %vm971_vm4, %v4224_v11, -inf }
 0x164   : > { %973 = vmax.xlane.f32.xlu1 %v972_v12 }
 0x17d   : > { %v889_v14 = vpop.xlane.xlu0 %888 }
 0x17e   : > { %v975_v15 = vsub.f32 %v4026_v47, %v889_v14 }
 0x180   : > { %v1004_v17 = vmul.f32 1.442695, %v975_v15 }
 0x181   : > { %v892_v19 = vpop.xlane.xlu0 %891 }
 0x182   : > { %3655 = vpow2.f32 %v1004_v17  ;;  %v976_v20 = vsub.f32 %v4033_v53, %v892_v19 }
 0x184   : > { %v1006_v22 = vmul.f32 1.442695, %v976_v20 }
 0x185   : > { %v1212_v24 = vpop.permute.xlu0 %1211  ;;  %v895_v26 = vpop.xlane.xlu1 %894 }
 0x186   : > { %3657 = vpow2.f32 %v1006_v22  ;;  %v977_v28 = vsub.f32 %v4040_v59, %v895_v26  ;;  %3268 = vmatpush3.msra.mxu0 %v1212_v24  ;;  %3640 = vmatpush3.msra.mxu1 %v1212_v24 }
 0x187   : > { %3269 = vmatprep.subr.mxu0 %v3779_v0  ;;  %3633 = vmatprep.subr.mxu1 %v3779_v0 }
 0x188   : > { %v1008_v30 = vmul.f32 1.442695, %v977_v28 }
 0x189   : > { %v898_v31 = vpop.xlane.xlu1 %897 }
 0x18a   : > { %3659 = vpow2.f32 %v1008_v30  ;;  %v978_v47 = vsub.f32 %v4047_v2, %v898_v31 }
 0x18c   : > { %v1010_v6 = vmul.f32 1.442695, %v978_v47 }
 0x18e   : > { %3661 = vpow2.f32 %v1010_v6 }
 0x18f   : > { %v4234_v53 = vpop.eup %3655 }
 0x190   : > { %v1062_v33 = vsel %vm886_vm3, %v4234_v53, 0.0 }
 0x191   : > { %1063 = vadd.xlane.f32.xlu1 %v1062_v33  ;;  %v904_v41 = vpop.xlane.xlu1 %903 }
 0x192   : > { %v980_v43 = vsub.f32 %v4054_v13, %v904_v41 }
 0x193   : > { %v4238_v59 = vpop.eup %3657 }
 0x194   : > { %v1065_v34 = vsel %vm886_vm3, %v4238_v59, 0.0  ;;  %v1014_v51 = vmul.f32 1.442695, %v980_v43 }
 0x195   : > { %1066 = vadd.xlane.f32.xlu1 %v1065_v34 }
 0x197   : > { %v4242_v37 = vpop.eup %3659 }
 0x198   : > { %v1068_v38 = vsel %vm886_vm3, %v4242_v37, 0.0 }
 0x199   : > { %1069 = vadd.xlane.f32.xlu1 %v1068_v38  ;;  %v910_v17 = vpop.xlane.xlu1 %909 }
 0x19a   : > { %v982_v19 = vsub.f32 %v4061_v21, %v910_v17 }
 0x19b   : > { %v4246_v2 = vpop.eup %3661 }
 0x19c   : > { %v1071_v39 = vsel %vm886_vm3, %v4246_v2, 0.0  ;;  %v1018_v26 = vmul.f32 1.442695, %v982_v19 }
 0x19d   : > { %1072 = vadd.xlane.f32.xlu1 %v1071_v39 }
 0x1a1   : > { %v916_v20 = vpop.xlane.xlu1 %915 }
 0x1a2   : > { %v984_v28 = vsub.f32 %v4070_v29, %v916_v20 }
 0x1a9   : > { %v922_v30 = vpop.xlane.xlu1 %921 }
 0x1aa   : > { %v986_v33 = vsub.f32 %v4077_v36, %v922_v30 }
 0x1b6   : > { %v901_v45 = vpop.xlane.xlu0 %900 }
 0x1b7   : > { %v979_v49 = vsub.f32 %v4089_v50, %v901_v45 }
 0x1b9   : > { %v1012_v52 = vmul.f32 1.442695, %v979_v49 }
 0x1ba   : > { %v907_v54 = vpop.xlane.xlu0 %906 }
 0x1bb   : > { %3663 = vpow2.f32 %v1012_v52  ;;  %v981_v55 = vsub.f32 %v4101_v60, %v907_v54 }
 0x1bc   : > { %3665 = vpow2.f32 %v1014_v51 }
 0x1bd   : > { %v1016_v57 = vmul.f32 1.442695, %v981_v55 }
 0x1be   : > { %v913_v50 = vpop.xlane.xlu0 %912 }
 0x1bf   : > { %3667 = vpow2.f32 %v1016_v57  ;;  %v983_v22 = vsub.f32 %v4110_v9, %v913_v50  ;;  %v1026_v9 = vmul.f32 1.442695, %v986_v33 }
 0x1c0   : > { %3669 = vpow2.f32 %v1018_v26 }
 0x1c1   : > { %v1020_v31 = vmul.f32 1.442695, %v983_v22 }
 0x1c2   : > { %v919_v10 = vpop.xlane.xlu0 %918 }
 0x1c3   : > { %v985_v47 = vsub.f32 %v4122_v18, %v919_v10  ;;  %3671 = vpow2.f32 %v1020_v31 }
 0x1c5   : > { %v1024_v34 = vmul.f32 1.442695, %v985_v47 }
 0x1c6   : > { %v925_v12 = vpop.xlane.xlu0 %924 }
 0x1c7   : > { %v987_v21 = vsub.f32 %v4131_v27, %v925_v12 }
 0x1c8   : > { %v4253_v61 = vpop.eup %3663 }
 0x1c9   : > { %v1074_v63 = vsel %vm886_vm3, %v4253_v61, 0.0  ;;  %v4257_v3 = vpop.eup %3665  ;;  %v1028_v29 = vmul.f32 1.442695, %v987_v21 }
 0x1ca   : > { %1075 = vadd.xlane.f32.xlu1 %v1074_v63  ;;  %v1077_v60 = vsel %vm886_vm3, %v4257_v3, 0.0  ;;  %v931_v14 = vpop.xlane.xlu0 %930 }
 0x1cb   : > { %v989_v41 = vsub.f32 %v4143_v35, %v931_v14 }
 0x1cc   : > { %v4259_v13 = vpop.eup %3667 }
 0x1cd   : > { %v1080_v5 = vsel %vm886_vm3, %v4259_v13, 0.0  ;;  %v1032_v49 = vmul.f32 1.442695, %v989_v41  ;;  %v4280_v54 = vpop.eup %3669 }
 0x1ce   : > { %1081 = vadd.xlane.f32.xlu0 %v1080_v5  ;;  %1078 = vadd.xlane.f32.xlu1 %v1077_v60  ;;  %v937_v15 = vpop.xlane.xlu0 %936 }
 0x1cf   : > { %v991_v51 = vsub.f32 %v4152_v44, %v937_v15  ;;  %v1083_v44 = vsel %vm886_vm3, %v4280_v54, 0.0 }
 0x1d0   : > { %v4283_v63 = vpop.eup %3671 }
 0x1d1   : > { %v1036_v35 = vmul.f32 1.442695, %v991_v51 }
 0x1d2   : > { %v943_v24 = vpop.xlane.xlu0 %942 }
 0x1d3   : > { %v993_v57 = vsub.f32 %v4164_v56, %v943_v24  ;;  %v1086_v56 = vsel %vm886_vm3, %v4283_v63, 0.0 }
 0x1d5   : > { %v1040_v60 = vmul.f32 1.442695, %v993_v57 }
 0x1d6   : > { %v949_v6 = vpop.xlane.xlu0 %948 }
 0x1d7   : > { %v995_v10 = vsub.f32 %v4173_v4, %v949_v6 }
 0x1d9   : > { %v1044_v20 = vmul.f32 1.442695, %v995_v10 }
 0x1da   : > { %v955_v18 = vpop.xlane.xlu0 %954 }
 0x1db   : > { %v997_v4 = vsub.f32 %v4182_v16, %v955_v18 }
 0x1dd   : > { %v1048_v47 = vmul.f32 1.442695, %v997_v4 }
 0x1de   : > { %v958_v27 = vpop.xlane.xlu0 %957 }
 0x1df   : > { %1207 = vrot.lane.b32.xlu1 %v3886_v8, %s3781_s23  ;;  %v1022_v8 = vmul.f32 1.442695, %v984_v28 }
 0x1e1   : > { %3673 = vpow2.f32 %v1022_v8 }
 0x1e2   : > { %3675 = vpow2.f32 %v1024_v34  ;;  %v961_v12 = vpop.xlane.xlu0 %960 }
 0x1e3   : > { %3677 = vpow2.f32 %v1026_v9  ;;  %v999_v16 = vsub.f32 %v4196_v32, %v961_v12 }
 0x1e4   : > { %1209 = vrot.lane.b32.xlu0 %v3879_v7, %s3781_s23  ;;  %v928_v7 = vpop.xlane.xlu1 %927  ;;  %3679 = vpow2.f32 %v1028_v29 }
 0x1e5   : > { %v988_v38 = vsub.f32 %v4087_v46, %v928_v7  ;;  %v1052_v9 = vmul.f32 1.442695, %v999_v16 }
 0x1e6   : > { %v964_v26 = vpop.xlane.xlu0 %963 }
 0x1e7   : > { %v1030_v43 = vmul.f32 1.442695, %v988_v38  ;;  %v1000_v32 = vsub.f32 %v4206_v42, %v964_v26 }
 0x1e8   : > { %v934_v39 = vpop.xlane.xlu1 %933 }
 0x1e9   : > { %v990_v45 = vsub.f32 %v4106_v1, %v934_v39  ;;  %3681 = vpow2.f32 %v1030_v43  ;;  %v1054_v42 = vmul.f32 1.442695, %v1000_v32 }
 0x1ea   : > { %3683 = vpow2.f32 %v1032_v49  ;;  %v970_v38 = vpop.xlane.xlu0 %969 }
 0x1eb   : > { %v1034_v52 = vmul.f32 1.442695, %v990_v45  ;;  %v1002_v18 = vsub.f32 %v4217_v58, %v970_v38 }
 0x1ec   : > { %v940_v36 = vpop.xlane.xlu1 %939 }
 0x1ed   : > { %v992_v46 = vsub.f32 %v4127_v23, %v940_v36  ;;  %3685 = vpow2.f32 %v1034_v52 }
 0x1ee   : > { %v4288_v5 = vpop.eup %3673  ;;  %3687 = vpow2.f32 %v1036_v35 }
 0x1ef   : > { %v1038_v1 = vmul.f32 1.442695, %v992_v46  ;;  %v4293_v14 = vpop.eup %3675  ;;  %v1089_v17 = vsel %vm886_vm3, %v4288_v5, 0.0 }
 0x1f0   : > { %v946_v55 = vpop.xlane.xlu1 %945  ;;  %v4298_v19 = vpop.eup %3677  ;;  %v1092_v22 = vsel %vm886_vm3, %v4293_v14, 0.0 }
 0x1f1   : > { %v994_v50 = vsub.f32 %v4148_v40, %v946_v55  ;;  %3689 = vpow2.f32 %v1038_v1  ;;  %v4303_v24 = vpop.eup %3679  ;;  %v1095_v30 = vsel %vm886_vm3, %v4298_v19, 0.0 }
 0x1f2   : > { %3691 = vpow2.f32 %v1040_v60  ;;  %v1098_v8 = vsel %vm886_vm3, %v4303_v24, 0.0 }
 0x1f3   : > { %v1042_v40 = vmul.f32 1.442695, %v994_v50 }
 0x1f4   : > { %v952_v23 = vpop.xlane.xlu1 %951 }
 0x1f5   : > { %v996_v15 = vsub.f32 %v4169_v62, %v952_v23  ;;  %3693 = vpow2.f32 %v1042_v40  ;;  %v998_v62 = vsub.f32 %v4189_v25, %v958_v27  ;;  %v1058_v27 = vmul.f32 1.442695, %v1002_v18 }
 0x1f6   : > { %v4308_v31 = vpop.eup %3681  ;;  %3695 = vpow2.f32 %v1044_v20 }
 0x1f7   : > { %v1046_v28 = vmul.f32 1.442695, %v996_v15  ;;  %v4313_v33 = vpop.eup %3683  ;;  %v1050_v7 = vmul.f32 1.442695, %v998_v62  ;;  %v1101_v34 = vsel %vm886_vm3, %v4308_v31, 0.0 }
 0x1f8   : > { %v967_v6 = vpop.xlane.xlu1 %966  ;;  %v1104_v39 = vsel %vm886_vm3, %v4313_v33, 0.0 }
 0x1f9   : > { %3697 = vpow2.f32 %v1046_v28  ;;  %v1001_v25 = vsub.f32 %v4208_v48, %v967_v6 }
 0x1fa   : > { %v4318_v21 = vpop.eup %3685  ;;  %3699 = vpow2.f32 %v1048_v47 }
 0x1fb   : > { %v4323_v29 = vpop.eup %3687  ;;  %3701 = vpow2.f32 %v1050_v7  ;;  %v1056_v48 = vmul.f32 1.442695, %v1001_v25  ;;  %v1107_v43 = vsel %vm886_vm3, %v4318_v21, 0.0 }
 0x1fc   : > { %v974_v41 = vpop.xlane.xlu1 %973  ;;  %3703 = vpow2.f32 %v1052_v9  ;;  %v1110_v49 = vsel %vm886_vm3, %v4323_v29, 0.0 }
 0x1fd   : > { %v1003_v36 = vsub.f32 %v4224_v11, %v974_v41  ;;  %3705 = vpow2.f32 %v1056_v48 }
 0x1fe   : > { %v4328_v45 = vpop.eup %3689  ;;  %3707 = vpow2.f32 %v1054_v42 }
 0x1ff   : > { %v4333_v51 = vpop.eup %3691  ;;  %v1060_v58 = vmul.f32 1.442695, %v1003_v36  ;;  %v1113_v46 = vsel %vm886_vm3, %v4328_v45, 0.0  ;;  %3709 = vpow2.f32 %v1058_v27 }
 0x200   : > { %v1116_v55 = vsel %vm886_vm3, %v4333_v51, 0.0 }
 0x201   : > { %3711 = vpow2.f32 %v1060_v58 }
 0x202   : > { %v4335_v52 = vpop.eup %3693 }
 0x203   : > { %1087 = vadd.xlane.f32.xlu0 %v1086_v56  ;;  %1084 = vadd.xlane.f32.xlu1 %v1083_v44  ;;  %v4341_v11 = vpop.eup %3695  ;;  %v1119_v57 = vsel %vm886_vm3, %v4335_v52, 0.0 }
 0x204   : > { %v1122_v1 = vsel %vm886_vm3, %v4341_v11, 0.0 }
 0x206   : > { %v4343_v35 = vpop.eup %3697 }
 0x207   : > { %1090 = vadd.xlane.f32.xlu0 %v1089_v17  ;;  %1093 = vadd.xlane.f32.xlu1 %v1092_v22  ;;  %v4349_v50 = vpop.eup %3699  ;;  %v1125_v23 = vsel %vm886_vm3, %v4343_v35, 0.0 }
 0x208   : > { %v4351_v44 = vpop.eup %3701  ;;  %v1128_v60 = vsel %vm886_vm3, %v4349_v50, 0.0 }
 0x209   : > { %v4357_v10 = vpop.eup %3703  ;;  %v1131_v56 = vsel %vm886_vm3, %v4351_v44, 0.0 }
 0x20a   : > { %v4359_v12 = vpop.eup %3705  ;;  %v1134_v40 = vsel %vm886_vm3, %v4357_v10, 0.0 }
 0x20b   : > { %1096 = vadd.xlane.f32.xlu0 %v1095_v30  ;;  %1099 = vadd.xlane.f32.xlu1 %v1098_v8  ;;  %v4365_v15 = vpop.eup %3707  ;;  %v1140_v4 = vsel %vm886_vm3, %v4359_v12, 0.0 }
 0x20c   : > { %v4367_v17 = vpop.eup %3709  ;;  %v1137_v20 = vsel %vm886_vm3, %v4365_v15, 0.0 }
 0x20d   : > { %v1143_v26 = vsel %vm886_vm3, %v4367_v17, 0.0 }
 0x20e   : > { %v4373_v22 = vpop.eup %3711 }
 0x20f   : > { %1102 = vadd.xlane.f32.xlu0 %v1101_v34  ;;  %1105 = vadd.xlane.f32.xlu1 %v1104_v39  ;;  %v1146_v28 = vsel %vm971_vm4, %v4373_v22, 0.0 }
 0x213   : > { %1108 = vadd.xlane.f32.xlu0 %v1107_v43  ;;  %1111 = vadd.xlane.f32.xlu1 %v1110_v49 }
 0x217   : > { %1114 = vadd.xlane.f32.xlu0 %v1113_v46  ;;  %1117 = vadd.xlane.f32.xlu1 %v1116_v55 }
 0x21a   : > { %v1064_v62 = vpop.xlane.xlu1 %1063 }
 0x21b   : > { %1120 = vadd.xlane.f32.xlu0 %v1119_v57  ;;  %1123 = vadd.xlane.f32.xlu1 %v1122_v1  ;;  %3713 = vrcp.f32 %v1064_v62 }
 0x21e   : > { %v1067_v30 = vpop.xlane.xlu1 %1066 }
 0x21f   : > { %1126 = vadd.xlane.f32.xlu0 %v1125_v23  ;;  %1129 = vadd.xlane.f32.xlu1 %v1128_v60  ;;  %3715 = vrcp.f32 %v1067_v30  ;;  %v1735_v30 = vld [vmem:[%s5206_s5] sm:$0xf] }
 0x222   : > { %v1070_v47 = vpop.xlane.xlu1 %1069 }
 0x223   : > { %1132 = vadd.xlane.f32.xlu0 %v1131_v56  ;;  %1135 = vadd.xlane.f32.xlu1 %v1134_v40  ;;  %3717 = vrcp.f32 %v1070_v47 }
 0x226   : > { %v1073_v16 = vpop.xlane.xlu1 %1072 }
 0x227   : > { %1138 = vadd.xlane.f32.xlu0 %v1137_v20  ;;  %1141 = vadd.xlane.f32.xlu1 %v1140_v4  ;;  %3719 = vrcp.f32 %v1073_v16 }
 0x228   : > { %v3714_v25 = vpop.eup %3713 }
 0x229   : > { %v1178_v9 = vmul.f32 %v3714_v25, %v4234_v53 }
 0x22b   : > { %1144 = vadd.xlane.f32.xlu0 %v1143_v26  ;;  %1147 = vadd.xlane.f32.xlu1 %v1146_v28 }
 0x22c   : > { %v3716_v38 = vpop.eup %3715 }
 0x22d   : > { %v1179_v53 = vmul.f32 %v3716_v38, %v4238_v59 }
 0x230   : > { %v3718_v39 = vpop.eup %3717 }
 0x231   : > { %v1180_v41 = vmul.f32 %v3718_v39, %v4242_v37 }
 0x234   : > { %v3720_v48 = vpop.eup %3719 }
 0x235   : > { %v1181_v18 = vmul.f32 %v3720_v48, %v4246_v2 }
 0x253   : > { %v1076_v6 = vpop.xlane.xlu1 %1075 }
 0x254   : > { %3721 = vrcp.f32 %v1076_v6 }
 0x257   : > { %v1082_v8 = vpop.xlane.xlu0 %1081  ;;  %v1079_v7 = vpop.xlane.xlu1 %1078 }
 0x258   : > { %3723 = vrcp.f32 %v1079_v7 }
 0x259   : > { %3725 = vrcp.f32 %v1082_v8 }
 0x25b   : > { %v1210_v34 = vpop.permute.xlu0 %1209  ;;  %v1208_v32 = vpop.permute.xlu1 %1207 }
 0x25c   : > { %3270 = vmatpush3.msra.mxu0 %v1210_v34  ;;  %3641 = vmatpush3.msra.mxu1 %v1210_v34 }
 0x25d   : > { %3271 = vmatprep.subr.mxu0 %v3779_v0  ;;  %3634 = vmatprep.subr.mxu1 %v3779_v0 }
 0x25e   : > { %3272 = vmatpush3.msra.mxu0 %v1208_v32  ;;  %3642 = vmatpush3.msra.mxu1 %v1208_v32 }
 0x25f   : > { %3274 = vmatmul.mubr.msk.f32.vlgmr.msra.gmra.mxu0 %vm886_vm3, %v1178_v9  ;;  %3360 = vmatprep.subr.mxu1 %v3779_v0 }
 0x260   : > { %3276 = vmatprep.mubr.msk.f32.mxu0 %vm3780_vm0, %v3779_v0  ;;  %3449 = vmatprep.subr.mxu0 %v3779_v0 }
 0x261   : > { %v3722_v43 = vpop.eup %3721 }
 0x262   : > { %v1182_v59 = vmul.f32 %v3722_v43, %v4253_v61 }
 0x263   : > { %3277 = vmatmul.mubr.msk.f32.gmra.mxu0 %vm886_vm3, %v1179_v53 }
 0x264   : > { %3279 = vmatprep.mubr.msk.f32.mxu0 %vm3780_vm0, %v3779_v0 }
 0x265   : > { %v3724_v42 = vpop.eup %3723 }
 0x266   : > { %v1183_v37 = vmul.f32 %v3724_v42, %v4257_v3  ;;  %v3726_v36 = vpop.eup %3725 }
 0x267   : > { %3280 = vmatmul.mubr.msk.f32.gmra.mxu0 %vm886_vm3, %v1180_v41  ;;  %v1184_v2 = vmul.f32 %v3726_v36, %v4259_v13 }
 0x268   : > { %3282 = vmatprep.mubr.msk.f32.mxu0 %vm3780_vm0, %v3779_v0 }
 0x26b   : > { %3283 = vmatmul.mubr.msk.f32.gmra.mxu0 %vm886_vm3, %v1181_v18 }
 0x26c   : > { %3285 = vmatprep.mubr.msk.f32.mxu0 %vm3780_vm0, %v3779_v0 }
 0x26f   : > { %3286 = vmatmul.mubr.msk.f32.gmra.mxu0 %vm886_vm3, %v1182_v59 }
 0x270   : > { %3288 = vmatprep.mubr.msk.f32.mxu0 %vm3780_vm0, %v3779_v0 }
 0x273   : > { %3289 = vmatmul.mubr.msk.f32.gmra.mxu0 %vm886_vm3, %v1183_v37 }
 0x274   : > { %3291 = vmatprep.mubr.msk.f32.mxu0 %vm3780_vm0, %v3779_v0 }
 0x277   : > { %3292 = vmatmul.mubr.msk.f32.gmra.mxu0 %vm886_vm3, %v1184_v2 }
 0x278   : > { %3294 = vmatprep.mubr.msk.f32.mxu0 %vm3780_vm0, %v3779_v0 }
 0x28c   : > { %v1088_v61 = vpop.xlane.xlu0 %1087  ;;  %v1085_v49 = vpop.xlane.xlu1 %1084 }
 0x28d   : > { %3727 = vrcp.f32 %v1085_v49 }
 0x28e   : > { %3729 = vrcp.f32 %v1088_v61 }
 0x290   : > { %v1091_v27 = vpop.xlane.xlu0 %1090  ;;  %v1094_v58 = vpop.xlane.xlu1 %1093 }
 0x291   : > { %3731 = vrcp.f32 %v1091_v27 }
 0x294   : > { %v1097_v3 = vpop.xlane.xlu0 %1096  ;;  %v1100_v46 = vpop.xlane.xlu1 %1099 }
 0x295   : > { %3733 = vrcp.f32 %v1100_v46 }
 0x296   : > { %3735 = vrcp.f32 %v1094_v58 }
 0x298   : > { %v1103_v55 = vpop.xlane.xlu0 %1102  ;;  %v1106_v57 = vpop.xlane.xlu1 %1105 }
 0x299   : > { %3737 = vrcp.f32 %v1103_v55 }
 0x29a   : > { %v3728_v13 = vpop.eup %3727  ;;  %3739 = vrcp.f32 %v1097_v3 }
 0x29b   : > { %3741 = vrcp.f32 %v1106_v57  ;;  %v1185_v1 = vmul.f32 %v3728_v13, %v4280_v54  ;;  %v3730_v23 = vpop.eup %3729 }
 0x29c   : > { %v1109_v60 = vpop.xlane.xlu0 %1108  ;;  %v1186_v56 = vmul.f32 %v3730_v23, %v4283_v63  ;;  %v1112_v20 = vpop.xlane.xlu1 %1111 }
 0x29d   : > { %3295 = vmatmul.mubr.msk.f32.gmra.mxu0 %vm886_vm3, %v1185_v1  ;;  %3743 = vrcp.f32 %v1109_v60 }
 0x29e   : > { %3297 = vmatprep.mubr.msk.f32.mxu0 %vm3780_vm0, %v3779_v0  ;;  %v3732_v40 = vpop.eup %3731  ;;  %3745 = vrcp.f32 %v1112_v20 }
 0x29f   : > { %v1187_v54 = vmul.f32 %v3732_v40, %v4288_v5 }
 0x2a0   : > { %v1115_v62 = vpop.xlane.xlu0 %1114  ;;  %v1118_v6 = vpop.xlane.xlu1 %1117 }
 0x2a1   : > { %3298 = vmatmul.mubr.msk.f32.gmra.mxu0 %vm886_vm3, %v1186_v56  ;;  %3747 = vrcp.f32 %v1115_v62  ;;  %v2045_v62 = vld [vmem:[%s5209_s8] sm:$0xff] }
 0x2a2   : > { %v3734_v4 = vpop.eup %3733  ;;  %3300 = vmatprep.mubr.msk.f32.mxu0 %vm3780_vm0, %v3779_v0  ;;  %3749 = vrcp.f32 %v1118_v6  ;;  %3450 = vmatpush3.msra.mxu0 %v2045_v62 }
 0x2a3   : > { %v1190_v26 = vmul.f32 %v3734_v4, %v4303_v24  ;;  %v3736_v28 = vpop.eup %3735 }
 0x2a4   : > { %v1188_v47 = vmul.f32 %v3736_v28, %v4293_v14  ;;  %v1121_v7 = vpop.xlane.xlu0 %1120  ;;  %v1124_v9 = vpop.xlane.xlu1 %1123 }
 0x2a5   : > { %3301 = vmatmul.mubr.msk.f32.gmra.mxu0 %vm886_vm3, %v1187_v54  ;;  %3310 = vmatmul.mubr.msk.f32.vlgmr.msra.gmra.mxu1 %vm886_vm3, %v1190_v26  ;;  %3751 = vrcp.f32 %v1121_v7 }
 0x2a6   : > { %v3738_v63 = vpop.eup %3737  ;;  %3303 = vmatprep.mubr.msk.f32.mxu0 %vm3780_vm0, %v3779_v0  ;;  %3312 = vmatprep.mubr.msk.f32.mxu1 %vm3780_vm0, %v3779_v0  ;;  %3753 = vrcp.f32 %v1124_v9 }
 0x2a7   : > { %v1191_v5 = vmul.f32 %v3738_v63, %v4308_v31  ;;  %v3740_v24 = vpop.eup %3739  ;;  %3361 = vmatpush3.msk.msra.mxu1 %vm1801_vm5, %v1735_v30 }
 0x2a8   : > { %v3742_v16 = vpop.eup %3741  ;;  %3538 = vmatprep.subr.mxu1 %v3779_v0  ;;  %v1189_v31 = vmul.f32 %v3740_v24, %v4298_v19  ;;  %v1127_v32 = vpop.xlane.xlu0 %1126 }
 0x2a9   : > { %3304 = vmatmul.mubr.msk.f32.gmra.mxu0 %vm886_vm3, %v1188_v47  ;;  %3313 = vmatmul.mubr.msk.f32.gmra.mxu1 %vm886_vm3, %v1191_v5  ;;  %v1192_v14 = vmul.f32 %v3742_v16, %v4313_v33  ;;  %3755 = vrcp.f32 %v1127_v32  ;;  %v1130_v53 = vpop.xlane.xlu1 %1129  ;;  %v2016_v47 = vld [vmem:[%s4547_s30] sm:$0xff] }
 0x2aa   : > { %3306 = vmatprep.mubr.msk.f32.mxu0 %vm3780_vm0, %v3779_v0  ;;  %3315 = vmatprep.mubr.msk.f32.mxu1 %vm3780_vm0, %v3779_v0  ;;  %v3744_v8 = vpop.eup %3743  ;;  %3757 = vrcp.f32 %v1130_v53  ;;  %v2019_v53 = vld [vmem:[%s4547_s30 + $0x18] sm:$0xff] }
 0x2ab   : > { %v1193_v25 = vmul.f32 %v3744_v8, %v4318_v21  ;;  %v3746_v34 = vpop.eup %3745  ;;  %v2017_v8 = vld [vmem:[%s4547_s30 + $0x8] sm:$0xff] }
 0x2ac   : > { %v1194_v19 = vmul.f32 %v3746_v34, %v4323_v29  ;;  %v1133_v41 = vpop.xlane.xlu0 %1132 }
 0x2ad   : > { %3307 = vmatmul.mubr.msk.f32.gmra.mxu0 %vm886_vm3, %v1189_v31  ;;  %3316 = vmatmul.mubr.msk.f32.gmra.mxu1 %vm886_vm3, %v1192_v14  ;;  %3759 = vrcp.f32 %v1133_v41  ;;  %v1136_v18 = vpop.xlane.xlu1 %1135  ;;  %v2020_v41 = vld [vmem:[%s4547_s30 + $0x20] sm:$0xff] }
 0x2ae   : > { %3318 = vmatprep.mubr.msk.f32.mxu1 %vm3780_vm0, %v3779_v0  ;;  %3451 = vmatprep.mubr.msk.f32.mxu0 %vm3780_vm0, %v3779_v0  ;;  %v3748_v33 = vpop.eup %3747  ;;  %3761 = vrcp.f32 %v1136_v18  ;;  %v2021_v18 = vld [vmem:[%s4547_s30 + $0x28] sm:$0xff] }
 0x2af   : > { %v1195_v21 = vmul.f32 %v3748_v33, %v4328_v45  ;;  %v3750_v38 = vpop.eup %3749 }
 0x2b0   : > { %v1196_v29 = vmul.f32 %v3750_v38, %v4333_v51  ;;  %v1139_v59 = vpop.xlane.xlu0 %1138 }
 0x2b1   : > { %3319 = vmatmul.mubr.msk.f32.gmra.mxu1 %vm886_vm3, %v1193_v25  ;;  %3763 = vrcp.f32 %v1139_v59  ;;  %v1142_v37 = vpop.xlane.xlu1 %1141  ;;  %3452 = vmatmul.mubr.msk.f32.vlgmr.msra.gmra.mxu0 %vm2046_vm6, %v2016_v47  ;;  %v2022_v59 = vld [vmem:[%s4547_s30 + $0x30] sm:$0xff] }
 0x2b2   : > { %3321 = vmatprep.mubr.msk.f32.mxu1 %vm3780_vm0, %v3779_v0  ;;  %v3752_v39 = vpop.eup %3751  ;;  %3765 = vrcp.f32 %v1142_v37  ;;  %3454 = vmatprep.mubr.msk.f32.mxu0 %vm3780_vm0, %v3779_v0 }
 0x2b3   : > { %v1197_v45 = vmul.f32 %v3752_v39, %v4335_v52  ;;  %v3754_v48 = vpop.eup %3753 }
 0x2b4   : > { %v1198_v51 = vmul.f32 %v3754_v48, %v4341_v11  ;;  %v1145_v2 = vpop.xlane.xlu0 %1144 }
 0x2b5   : > { %3322 = vmatmul.mubr.msk.f32.gmra.mxu1 %vm886_vm3, %v1194_v19  ;;  %3767 = vrcp.f32 %v1145_v2  ;;  %v1148_v49 = vpop.xlane.xlu1 %1147  ;;  %3455 = vmatmul.mubr.msk.f32.gmra.mxu0 %vm2046_vm6, %v2017_v8  ;;  %v2018_v19 = vld [vmem:[%s4547_s30 + $0x10] sm:$0xff]  ;;  %v2025_v8 = vld [vmem:[%s4547_s30 + $0x48] sm:$0xff] }
 0x2b6   : > { %3324 = vmatprep.mubr.msk.f32.mxu1 %vm3780_vm0, %v3779_v0  ;;  %v3756_v43 = vpop.eup %3755  ;;  %3769 = vrcp.f32 %v1148_v49  ;;  %3457 = vmatprep.mubr.msk.f32.mxu0 %vm3780_vm0, %v3779_v0 }
 0x2b7   : > { %v1199_v52 = vmul.f32 %v3756_v43, %v4343_v35  ;;  %v3758_v42 = vpop.eup %3757 }
 0x2b8   : > { %v1200_v11 = vmul.f32 %v3758_v42, %v4349_v50 }
 0x2b9   : > { %3325 = vmatmul.mubr.msk.f32.gmra.mxu1 %vm886_vm3, %v1195_v21  ;;  %3458 = vmatmul.mubr.msk.f32.gmra.mxu0 %vm2046_vm6, %v2018_v19  ;;  %v2028_v19 = vld [vmem:[%s4547_s30 + $0x60] sm:$0xff] }
 0x2ba   : > { %3327 = vmatprep.mubr.msk.f32.mxu1 %vm3780_vm0, %v3779_v0  ;;  %v3760_v36 = vpop.eup %3759  ;;  %3460 = vmatprep.mubr.msk.f32.mxu0 %vm3780_vm0, %v3779_v0 }
 0x2bb   : > { %v1201_v35 = vmul.f32 %v3760_v36, %v4351_v44  ;;  %v3762_v61 = vpop.eup %3761 }
 0x2bc   : > { %v1202_v50 = vmul.f32 %v3762_v61, %v4357_v10 }
 0x2bd   : > { %3328 = vmatmul.mubr.msk.f32.gmra.mxu1 %vm886_vm3, %v1196_v29  ;;  %3461 = vmatmul.mubr.msk.f32.gmra.mxu0 %vm2046_vm6, %v2019_v53  ;;  %v2033_v53 = vld [vmem:[%s4547_s30 + $0x88] sm:$0xff] }
 0x2be   : > { %3330 = vmatprep.mubr.msk.f32.mxu1 %vm3780_vm0, %v3779_v0  ;;  %v3764_v27 = vpop.eup %3763  ;;  %3463 = vmatprep.mubr.msk.f32.mxu0 %vm3780_vm0, %v3779_v0 }
 0x2bf   : > { %v1203_v58 = vmul.f32 %v3764_v27, %v4365_v15  ;;  %v3766_v3 = vpop.eup %3765  ;;  %v1530_v27 = vld [vmem:[%s5205_s4] sm:$0xff] }
 0x2c0   : > { %v1204_v44 = vmul.f32 %v3766_v3, %v4359_v12  ;;  %v2015_v12 = vld [vmem:[%s5208_s7] sm:$0xff] }
 0x2c1   : > { %3331 = vmatmul.mubr.msk.f32.gmra.mxu1 %vm886_vm3, %v1197_v45  ;;  %3464 = vmatmul.mubr.msk.f32.gmra.mxu0 %vm2046_vm6, %v2020_v41  ;;  %v2035_v41 = vld [vmem:[%s4547_s30 + $0x98] sm:$0xff] }
 0x2c2   : > { %3333 = vmatprep.mubr.msk.f32.mxu1 %vm3780_vm0, %v3779_v0  ;;  %v3768_v46 = vpop.eup %3767  ;;  %3466 = vmatprep.mubr.msk.f32.mxu0 %vm3780_vm0, %v3779_v0 }
 0x2c3   : > { %v1205_v10 = vmul.f32 %v3768_v46, %v4367_v17  ;;  %v3770_v55 = vpop.eup %3769 }
 0x2c4   : > { %v1206_v15 = vmul.f32 %v3770_v55, %v4373_v22 }
 0x2c5   : > { %3334 = vmatmul.mubr.msk.f32.gmra.mxu1 %vm886_vm3, %v1198_v51  ;;  %3467 = vmatmul.mubr.msk.f32.gmra.mxu0 %vm2046_vm6, %v2021_v18  ;;  %v1538_v18 = vld [vmem:[%s5205_s4 + $0x40] sm:$0xff] }
 0x2c6   : > { %3336 = vmatprep.mubr.msk.f32.mxu1 %vm3780_vm0, %v3779_v0  ;;  %3469 = vmatprep.mubr.msk.f32.mxu0 %vm3780_vm0, %v3779_v0 }
 0x2c9   : > { %3337 = vmatmul.mubr.msk.f32.gmra.mxu1 %vm886_vm3, %v1199_v52  ;;  %3470 = vmatmul.mubr.msk.f32.gmra.mxu0 %vm2046_vm6, %v2022_v59 }
 0x2ca   : > { %3339 = vmatprep.mubr.msk.f32.mxu1 %vm3780_vm0, %v3779_v0  ;;  %3472 = vmatprep.mubr.msk.f32.mxu0 %vm3780_vm0, %v3779_v0 }
 0x2cd   : > { %3340 = vmatmul.mubr.msk.f32.gmra.mxu1 %vm886_vm3, %v1200_v11 }
 0x2ce   : > { %3342 = vmatprep.mubr.msk.f32.mxu1 %vm3780_vm0, %v3779_v0 }
 0x2d1   : > { %3343 = vmatmul.mubr.msk.f32.gmra.mxu1 %vm886_vm3, %v1201_v35 }
 0x2d2   : > { %3345 = vmatprep.mubr.msk.f32.mxu1 %vm3780_vm0, %v3779_v0 }
 0x2d5   : > { %3346 = vmatmul.mubr.msk.f32.gmra.mxu1 %vm886_vm3, %v1202_v50 }
 0x2d6   : > { %3348 = vmatprep.mubr.msk.f32.mxu1 %vm3780_vm0, %v3779_v0 }
 0x2d9   : > { %3349 = vmatmul.mubr.msk.f32.gmra.mxu1 %vm886_vm3, %v1203_v58 }
 0x2da   : > { %3351 = vmatprep.mubr.msk.f32.mxu1 %vm3780_vm0, %v3779_v0 }
 0x2dd   : > { %3352 = vmatmul.mubr.msk.f32.gmra.mxu1 %vm886_vm3, %v1204_v44 }
 0x2de   : > { %3354 = vmatprep.mubr.msk.f32.mxu1 %vm3780_vm0, %v3779_v0 }
 0x2e1   : > { %3355 = vmatmul.mubr.msk.f32.gmra.mxu1 %vm886_vm3, %v1205_v10  ;;  %v1531_v10 = vld [vmem:[%s5205_s4 + $0x8] sm:$0xff] }
 0x2e2   : > { %3357 = vmatprep.mubr.msk.f32.mxu1 %vm3780_vm0, %v3779_v0 }
 0x2e5   : > { %3358 = vmatmul.mubr.msk.f32.gmra.mxu1 %vm886_vm3, %v1206_v15 }
 0x2e6   : > { %3362 = vmatprep.mubr.msk.f32.mxu1 %vm3780_vm0, %v3779_v0 }
 0x31f   : > { %v1386_v57 = vpop.f32.mrf.mxu0 }
 0x320   : > { %1588 = vrot.lane.b32.xlu0 %v1386_v57, %s3781_s23  ;;  %3363 = vmatmul.mubr.msk.f32.vlgmr.msra.gmra.mxu1 %vm477_vm1, %v1386_v57 }
 0x321   : > { %v3275_v17 = vpop.f32.mrf.mxu0  ;;  %3365 = vmatprep.mubr.msk.f32.mxu1 %vm3780_vm0, %v3779_v0  ;;  %3539 = vmatpush3.msra.mxu1 %v2015_v12 }
 0x322   : > { %v1532_v17 = vld [vmem:[%s5205_s4 + $0x10] sm:$0xff] }
 0x323   : > { %v1391_v22 = vpop.f32.mrf.mxu0 }
 0x324   : > { %1590 = vrot.lane.b32.xlu1 %v1391_v22, %s3781_s23  ;;  %3366 = vmatmul.mubr.msk.f32.gmra.mxu1 %vm477_vm1, %v1391_v22 }
 0x325   : > { %v3278_v13 = vpop.f32.mrf.mxu0  ;;  %3368 = vmatprep.mubr.msk.f32.mxu1 %vm3780_vm0, %v3779_v0 }
 0x327   : > { %v1396_v1 = vpop.f32.mrf.mxu0 }
 0x328   : > { %1592 = vrot.lane.b32.xlu1 %v1396_v1, %s3781_s23  ;;  %3369 = vmatmul.mubr.msk.f32.gmra.mxu1 %vm477_vm1, %v1396_v1 }
 0x329   : > { %v3281_v23 = vpop.f32.mrf.mxu0  ;;  %3371 = vmatprep.mubr.msk.f32.mxu1 %vm3780_vm0, %v3779_v0 }
 0x32b   : > { %v1401_v60 = vpop.f32.mrf.mxu0 }
 0x32c   : > { %1594 = vrot.lane.b32.xlu1 %v1401_v60, %s3781_s23  ;;  %3372 = vmatmul.mubr.msk.f32.gmra.mxu1 %vm477_vm1, %v1401_v60  ;;  %v1533_v60 = vld [vmem:[%s5205_s4 + $0x18] sm:$0xff] }
 0x32d   : > { %v3284_v56 = vpop.f32.mrf.mxu0  ;;  %3374 = vmatprep.mubr.msk.f32.mxu1 %vm3780_vm0, %v3779_v0 }
 0x32f   : > { %v1406_v40 = vpop.f32.mrf.mxu0 }
 0x330   : > { %1596 = vrot.lane.b32.xlu0 %v1406_v40, %s3781_s23  ;;  %3375 = vmatmul.mubr.msk.f32.gmra.mxu1 %vm477_vm1, %v1406_v40 }
 0x331   : > { %v3287_v20 = vpop.f32.mrf.mxu0  ;;  %3377 = vmatprep.mubr.msk.f32.mxu1 %vm3780_vm0, %v3779_v0 }
 0x333   : > { %v1411_v4 = vpop.f32.mrf.mxu0 }
 0x334   : > { %1598 = vrot.lane.b32.xlu1 %v1411_v4, %s3781_s23  ;;  %3378 = vmatmul.mubr.msk.f32.gmra.mxu1 %vm477_vm1, %v1411_v4 }
 0x335   : > { %v3290_v54 = vpop.f32.mrf.mxu0  ;;  %3380 = vmatprep.mubr.msk.f32.mxu1 %vm3780_vm0, %v3779_v0 }
 0x336   : > { %v1534_v54 = vld [vmem:[%s5205_s4 + $0x20] sm:$0xff] }
 0x337   : > { %v1416_v26 = vpop.f32.mrf.mxu0 }
 0x338   : > { %1600 = vrot.lane.b32.xlu0 %v1416_v26, %s3781_s23  ;;  %3381 = vmatmul.mubr.msk.f32.gmra.mxu1 %vm477_vm1, %v1416_v26  ;;  %v2023_v26 = vld [vmem:[%s4547_s30 + $0x38] sm:$0xff] }
 0x339   : > { %v3293_v28 = vpop.f32.mrf.mxu0  ;;  %3383 = vmatprep.mubr.msk.f32.mxu1 %vm3780_vm0, %v3779_v0  ;;  %3473 = vmatmul.mubr.msk.f32.gmra.mxu0 %vm2046_vm6, %v2023_v26 }
 0x33a   : > { %3475 = vmatprep.mubr.msk.f32.mxu0 %vm3780_vm0, %v3779_v0 }
 0x35d   : > { %v1421_v30 = vpop.f32.mrf.mxu0 }
 0x35e   : > { %1602 = vrot.lane.b32.xlu1 %v1421_v30, %s3781_s23  ;;  %3384 = vmatmul.mubr.msk.f32.gmra.mxu1 %vm477_vm1, %v1421_v30 }
 0x35f   : > { %v3296_v63 = vpop.f32.mrf.mxu0  ;;  %3386 = vmatprep.mubr.msk.f32.mxu1 %vm3780_vm0, %v3779_v0 }
 0x361   : > { %v1426_v5 = vpop.f32.mrf.mxu0 }
 0x362   : > { %1604 = vrot.lane.b32.xlu0 %v1426_v5, %s3781_s23  ;;  %3387 = vmatmul.mubr.msk.f32.gmra.mxu1 %vm477_vm1, %v1426_v5  ;;  %v1535_v5 = vld [vmem:[%s5205_s4 + $0x28] sm:$0xff] }
 0x363   : > { %v3299_v24 = vpop.f32.mrf.mxu0  ;;  %3389 = vmatprep.mubr.msk.f32.mxu1 %vm3780_vm0, %v3779_v0 }
 0x364   : > { %v2024_v24 = vld [vmem:[%s4547_s30 + $0x40] sm:$0xff] }
 0x365   : > { %v1431_v16 = vpop.f32.mrf.mxu0  ;;  %v1446_v6 = vpop.f32.mrf.mxu1  ;;  %3476 = vmatmul.mubr.msk.f32.gmra.mxu0 %vm2046_vm6, %v2024_v24 }
 0x366   : > { %1606 = vrot.lane.b32.xlu1 %v1431_v16, %s3781_s23  ;;  %3390 = vmatmul.mubr.msk.f32.gmra.mxu1 %vm477_vm1, %v1431_v16 }
 0x367   : > { %v3302_v31 = vpop.f32.mrf.mxu0  ;;  %v3311_v14 = vpop.f32.mrf.mxu1  ;;  %3392 = vmatprep.mubr.msk.f32.mxu1 %vm3780_vm0, %v3779_v0  ;;  %3478 = vmatprep.mubr.msk.f32.mxu0 %vm3780_vm0, %v3779_v0 }
 0x368   : > { %v1536_v14 = vld [vmem:[%s5205_s4 + $0x30] sm:$0xff] }
 0x369   : > { %v1436_v7 = vpop.f32.mrf.mxu0  ;;  %v1451_v25 = vpop.f32.mrf.mxu1  ;;  %3479 = vmatmul.mubr.msk.f32.gmra.mxu0 %vm2046_vm6, %v2025_v8 }
 0x36a   : > { %1608 = vrot.lane.b32.xlu0 %v1436_v7, %s3781_s23  ;;  %3393 = vmatmul.mubr.msk.f32.gmra.mxu1 %vm477_vm1, %v1436_v7 }
 0x36b   : > { %v3305_v34 = vpop.f32.mrf.mxu0  ;;  %v3314_v9 = vpop.f32.mrf.mxu1  ;;  %3395 = vmatprep.mubr.msk.f32.mxu1 %vm3780_vm0, %v3779_v0  ;;  %3481 = vmatprep.mubr.msk.f32.mxu0 %vm3780_vm0, %v3779_v0 }
 0x36c   : > { %v2026_v34 = vld [vmem:[%s4547_s30 + $0x50] sm:$0xff]  ;;  %v2027_v9 = vld [vmem:[%s4547_s30 + $0x58] sm:$0xff] }
 0x36d   : > { %v1441_v33 = vpop.f32.mrf.mxu0  ;;  %v1456_v32 = vpop.f32.mrf.mxu1  ;;  %3482 = vmatmul.mubr.msk.f32.gmra.mxu0 %vm2046_vm6, %v2026_v34  ;;  %v1548_v34 = vld [vmem:[%s5205_s4 + $0x90] sm:$0xff] }
 0x36e   : > { %1612 = vrot.lane.b32.xlu0 %v1446_v6, %s3781_s23  ;;  %1610 = vrot.lane.b32.xlu1 %v1441_v33, %s3781_s23 }
 0x36f   : > { %3396 = vmatmul.mubr.msk.f32.gmra.mxu1 %vm477_vm1, %v1441_v33  ;;  %v3308_v21 = vpop.f32.mrf.mxu0  ;;  %v3317_v38 = vpop.f32.mrf.mxu1  ;;  %3484 = vmatprep.mubr.msk.f32.mxu0 %vm3780_vm0, %v3779_v0  ;;  %v2029_v33 = vld [vmem:[%s4547_s30 + $0x68] sm:$0xff] }
 0x370   : > { %3398 = vmatprep.mubr.msk.f32.mxu1 %vm3780_vm0, %v3779_v0  ;;  %v2031_v21 = vld [vmem:[%s4547_s30 + $0x78] sm:$0xff]  ;;  %v2032_v38 = vld [vmem:[%s4547_s30 + $0x80] sm:$0xff] }
 0x371   : > { %v1461_v29 = vpop.f32.mrf.mxu1  ;;  %3485 = vmatmul.mubr.msk.f32.gmra.mxu0 %vm2046_vm6, %v2027_v9 }
 0x372   : > { %1616 = vrot.lane.b32.xlu0 %v1456_v32, %s3781_s23  ;;  %1614 = vrot.lane.b32.xlu1 %v1451_v25, %s3781_s23 }
 0x373   : > { %3399 = vmatmul.mubr.msk.f32.gmra.mxu1 %vm477_vm1, %v1446_v6  ;;  %v3320_v39 = vpop.f32.mrf.mxu1  ;;  %3487 = vmatprep.mubr.msk.f32.mxu0 %vm3780_vm0, %v3779_v0 }
 0x374   : > { %3401 = vmatprep.mubr.msk.f32.mxu1 %vm3780_vm0, %v3779_v0  ;;  %v1537_v39 = vld [vmem:[%s5205_s4 + $0x38] sm:$0xff] }
 0x375   : > { %v1466_v45 = vpop.f32.mrf.mxu1  ;;  %3488 = vmatmul.mubr.msk.f32.gmra.mxu0 %vm2046_vm6, %v2028_v19  ;;  %v2043_v19 = vld [vmem:[%s4547_s30 + $0xd8] sm:$0xff] }
 0x376   : > { %1620 = vrot.lane.b32.xlu0 %v1466_v45, %s3781_s23  ;;  %1618 = vrot.lane.b32.xlu1 %v1461_v29, %s3781_s23 }
 0x377   : > { %3402 = vmatmul.mubr.msk.f32.gmra.mxu1 %vm477_vm1, %v1451_v25  ;;  %v3323_v48 = vpop.f32.mrf.mxu1  ;;  %3490 = vmatprep.mubr.msk.f32.mxu0 %vm3780_vm0, %v3779_v0 }
 0x378   : > { %3404 = vmatprep.mubr.msk.f32.mxu1 %vm3780_vm0, %v3779_v0 }
 0x379   : > { %v1471_v51 = vpop.f32.mrf.mxu1  ;;  %3491 = vmatmul.mubr.msk.f32.gmra.mxu0 %vm2046_vm6, %v2029_v33 }
 0x37a   : > { %1622 = vrot.lane.b32.xlu1 %v1471_v51, %s3781_s23  ;;  %3493 = vmatprep.mubr.msk.f32.mxu0 %vm3780_vm0, %v3779_v0 }
 0x37b   : > { %3405 = vmatmul.mubr.msk.f32.gmra.mxu1 %vm477_vm1, %v1456_v32  ;;  %v3326_v43 = vpop.f32.mrf.mxu1  ;;  %v2030_v32 = vld [vmem:[%s4547_s30 + $0x70] sm:$0xff] }
 0x37c   : > { %3407 = vmatprep.mubr.msk.f32.mxu1 %vm3780_vm0, %v3779_v0 }
 0x37d   : > { %v1476_v52 = vpop.f32.mrf.mxu1  ;;  %3494 = vmatmul.mubr.msk.f32.gmra.mxu0 %vm2046_vm6, %v2030_v32 }
 0x37e   : > { %1624 = vrot.lane.b32.xlu0 %v1476_v52, %s3781_s23  ;;  %3496 = vmatprep.mubr.msk.f32.mxu0 %vm3780_vm0, %v3779_v0 }
 0x37f   : > { %3408 = vmatmul.mubr.msk.f32.gmra.mxu1 %vm477_vm1, %v1461_v29  ;;  %v3329_v42 = vpop.f32.mrf.mxu1  ;;  %v2034_v29 = vld [vmem:[%s4547_s30 + $0x90] sm:$0xff] }
 0x380   : > { %3410 = vmatprep.mubr.msk.f32.mxu1 %vm3780_vm0, %v3779_v0  ;;  %v2037_v42 = vld [vmem:[%s4547_s30 + $0xa8] sm:$0xff] }
 0x381   : > { %v1481_v37 = vpop.f32.mrf.mxu1  ;;  %3497 = vmatmul.mubr.msk.f32.gmra.mxu0 %vm2046_vm6, %v2031_v21 }
 0x382   : > { %1626 = vrot.lane.b32.xlu1 %v1481_v37, %s3781_s23  ;;  %3499 = vmatprep.mubr.msk.f32.mxu0 %vm3780_vm0, %v3779_v0 }
 0x383   : > { %3411 = vmatmul.mubr.msk.f32.gmra.mxu1 %vm477_vm1, %v1466_v45  ;;  %v3332_v11 = vpop.f32.mrf.mxu1 }
 0x384   : > { %3413 = vmatprep.mubr.msk.f32.mxu1 %vm3780_vm0, %v3779_v0 }
 0x385   : > { %v1486_v36 = vpop.f32.mrf.mxu1  ;;  %3500 = vmatmul.mubr.msk.f32.gmra.mxu0 %vm2046_vm6, %v2032_v38 }
 0x386   : > { %1628 = vrot.lane.b32.xlu0 %v1486_v36, %s3781_s23  ;;  %3502 = vmatprep.mubr.msk.f32.mxu0 %vm3780_vm0, %v3779_v0 }
 0x387   : > { %3414 = vmatmul.mubr.msk.f32.gmra.mxu1 %vm477_vm1, %v1471_v51  ;;  %v3335_v2 = vpop.f32.mrf.mxu1  ;;  %v2036_v51 = vld [vmem:[%s4547_s30 + $0xa0] sm:$0xff] }
 0x388   : > { %3416 = vmatprep.mubr.msk.f32.mxu1 %vm3780_vm0, %v3779_v0  ;;  %v2038_v2 = vld [vmem:[%s4547_s30 + $0xb0] sm:$0xff] }
 0x389   : > { %v1491_v35 = vpop.f32.mrf.mxu1  ;;  %3503 = vmatmul.mubr.msk.f32.gmra.mxu0 %vm2046_vm6, %v2033_v53  ;;  %v1549_v53 = vld [vmem:[%s5205_s4 + $0x98] sm:$0xff] }
 0x38a   : > { %1630 = vrot.lane.b32.xlu1 %v1491_v35, %s3781_s23  ;;  %3505 = vmatprep.mubr.msk.f32.mxu0 %vm3780_vm0, %v3779_v0 }
 0x38b   : > { %3417 = vmatmul.mubr.msk.f32.gmra.mxu1 %vm477_vm1, %v1476_v52  ;;  %v3338_v61 = vpop.f32.mrf.mxu1  ;;  %v1539_v52 = vld [vmem:[%s5205_s4 + $0x48] sm:$0xff] }
 0x38c   : > { %3419 = vmatprep.mubr.msk.f32.mxu1 %vm3780_vm0, %v3779_v0 }
 0x38d   : > { %v1496_v49 = vpop.f32.mrf.mxu1  ;;  %3506 = vmatmul.mubr.msk.f32.gmra.mxu0 %vm2046_vm6, %v2034_v29 }
 0x38e   : > { %1632 = vrot.lane.b32.xlu0 %v1496_v49, %s3781_s23  ;;  %3508 = vmatprep.mubr.msk.f32.mxu0 %vm3780_vm0, %v3779_v0 }
 0x38f   : > { %3420 = vmatmul.mubr.msk.f32.gmra.mxu1 %vm477_vm1, %v1481_v37  ;;  %v3341_v50 = vpop.f32.mrf.mxu1 }
 0x390   : > { %3422 = vmatprep.mubr.msk.f32.mxu1 %vm3780_vm0, %v3779_v0  ;;  %v1542_v50 = vld [vmem:[%s5205_s4 + $0x60] sm:$0xff] }
 0x391   : > { %v1501_v58 = vpop.f32.mrf.mxu1  ;;  %3509 = vmatmul.mubr.msk.f32.gmra.mxu0 %vm2046_vm6, %v2035_v41 }
 0x392   : > { %v1589_v3 = vpop.permute.xlu0 %1588  ;;  %1634 = vrot.lane.b32.xlu1 %v1501_v58, %s3781_s23  ;;  %3511 = vmatprep.mubr.msk.f32.mxu0 %vm3780_vm0, %v3779_v0 }
 0x393   : > { %v1675_v44 = vsub.f32 %v1530_v27, %v1589_v3  ;;  %3423 = vmatmul.mubr.msk.f32.gmra.mxu1 %vm477_vm1, %v1486_v36  ;;  %v3344_v46 = vpop.f32.mrf.mxu1  ;;  %v1540_v36 = vld [vmem:[%s5205_s4 + $0x50] sm:$0xff]  ;;  %v1541_v27 = vld [vmem:[%s5205_s4 + $0x58] sm:$0xff] }
 0x394   : > { %3425 = vmatprep.mubr.msk.f32.mxu1 %vm3780_vm0, %v3779_v0  ;;  %v2039_v3 = vld [vmem:[%s4547_s30 + $0xb8] sm:$0xff] }
 0x395   : > { %1705 = vst.msk [vmem:[%s4633_s16] sm:$0xff] %vm1704_vm7, %v1675_v44  ;;  %v1506_v55 = vpop.f32.mrf.mxu1  ;;  %3512 = vmatmul.mubr.msk.f32.gmra.mxu0 %vm2046_vm6, %v2036_v51  ;;  %v1550_v51 = vld [vmem:[%s5205_s4 + $0xa0] sm:$0xff] }
 0x396   : > { %v1591_v15 = vpop.permute.xlu1 %1590  ;;  %1636 = vrot.lane.b32.xlu0 %v1506_v55, %s3781_s23  ;;  %3514 = vmatprep.mubr.msk.f32.mxu0 %vm3780_vm0, %v3779_v0 }
 0x397   : > { %v1676_v12 = vsub.f32 %v1531_v10, %v1591_v15  ;;  %3426 = vmatmul.mubr.msk.f32.gmra.mxu1 %vm477_vm1, %v1491_v35  ;;  %v3347_v57 = vpop.f32.mrf.mxu1 }
 0x398   : > { %3428 = vmatprep.mubr.msk.f32.mxu1 %vm3780_vm0, %v3779_v0  ;;  %v1544_v57 = vld [vmem:[%s5205_s4 + $0x70] sm:$0xff] }
 0x399   : > { %1706 = vst.msk [vmem:[%s4633_s16 + $0x8] sm:$0xff] %vm1704_vm7, %v1676_v12  ;;  %v1511_v22 = vpop.f32.mrf.mxu1  ;;  %3515 = vmatmul.mubr.msk.f32.gmra.mxu0 %vm2046_vm6, %v2037_v42 }
 0x39a   : > { %v1593_v13 = vpop.permute.xlu1 %1592  ;;  %1638 = vrot.lane.b32.xlu1 %v1511_v22, %s3781_s23  ;;  %3517 = vmatprep.mubr.msk.f32.mxu0 %vm3780_vm0, %v3779_v0 }
 0x39b   : > { %v1677_v1 = vsub.f32 %v1532_v17, %v1593_v13  ;;  %3429 = vmatmul.mubr.msk.f32.gmra.mxu1 %vm477_vm1, %v1496_v49  ;;  %v3350_v23 = vpop.f32.mrf.mxu1  ;;  %v4783_v49 = vld [vmem:[%s5207_s6] ss:$0 sm:$0xff]  ;;  %v1543_v17 = vld [vmem:[%s5205_s4 + $0x68] sm:$0xff] }
 0x39c   : > { %3431 = vmatprep.mubr.msk.f32.mxu1 %vm3780_vm0, %v3779_v0  ;;  %v2040_v13 = vld [vmem:[%s4547_s30 + $0xc0] sm:$0xff] }
 0x39d   : > { %1707 = vst.msk [vmem:[%s4633_s16 + $0x10] sm:$0xff] %vm1704_vm7, %v1677_v1  ;;  %v1516_v56 = vpop.f32.mrf.mxu1  ;;  %3518 = vmatmul.mubr.msk.f32.gmra.mxu0 %vm2046_vm6, %v2038_v2 }
 0x39e   : > { %v1595_v40 = vpop.permute.xlu1 %1594  ;;  %1640 = vrot.lane.b32.xlu0 %v1516_v56, %s3781_s23  ;;  %3520 = vmatprep.mubr.msk.f32.mxu0 %vm3780_vm0, %v3779_v0 }
 0x39f   : > { %v1678_v20 = vsub.f32 %v1533_v60, %v1595_v40  ;;  %3432 = vmatmul.mubr.msk.f32.gmra.mxu1 %vm477_vm1, %v1501_v58  ;;  %v3353_v4 = vpop.f32.mrf.mxu1 }
 0x3a0   : > { %3434 = vmatprep.mubr.msk.f32.mxu1 %vm3780_vm0, %v3779_v0  ;;  %v1546_v4 = vld [vmem:[%s5205_s4 + $0x80] sm:$0xff] }
 0x3a1   : > { %1708 = vst.msk [vmem:[%s4633_s16 + $0x18] sm:$0xff] %vm1704_vm7, %v1678_v20  ;;  %v1521_v28 = vpop.f32.mrf.mxu1  ;;  %3521 = vmatmul.mubr.msk.f32.gmra.mxu0 %vm2046_vm6, %v2039_v3 }
 0x3a2   : > { %v1597_v62 = vpop.permute.xlu0 %1596  ;;  %1642 = vrot.lane.b32.xlu1 %v1521_v28, %s3781_s23  ;;  %3523 = vmatprep.mubr.msk.f32.mxu0 %vm3780_vm0, %v3779_v0 }
 0x3a3   : > { %v1679_v30 = vsub.f32 %v1534_v54, %v1597_v62  ;;  %3435 = vmatmul.mubr.msk.f32.gmra.mxu1 %vm477_vm1, %v1506_v55  ;;  %v3356_v63 = vpop.f32.mrf.mxu1  ;;  %v1545_v54 = vld [vmem:[%s5205_s4 + $0x78] sm:$0xff] }
 0x3a4   : > { %3437 = vmatprep.mubr.msk.f32.mxu1 %vm3780_vm0, %v3779_v0 }
 0x3a5   : > { %1709 = vst.msk [vmem:[%s4633_s16 + $0x20] sm:$0xff] %vm1704_vm7, %v1679_v30  ;;  %v1526_v47 = vpop.f32.mrf.mxu1  ;;  %3524 = vmatmul.mubr.msk.f32.gmra.mxu0 %vm2046_vm6, %v2040_v13  ;;  %v1557_v13 = vld [vmem:[%s5205_s4 + $0xd8] sm:$0xff] }
 0x3a6   : > { %v1599_v16 = vpop.permute.xlu1 %1598  ;;  %1644 = vrot.lane.b32.xlu0 %v1526_v47, %s3781_s23  ;;  %3526 = vmatprep.mubr.msk.f32.mxu0 %vm3780_vm0, %v3779_v0 }
 0x3a7   : > { %v1680_v6 = vsub.f32 %v1535_v5, %v1599_v16  ;;  %3438 = vmatmul.mubr.msk.f32.gmra.mxu1 %vm477_vm1, %v1511_v22  ;;  %v3359_v31 = vpop.f32.mrf.mxu1  ;;  %v1547_v16 = vld [vmem:[%s5205_s4 + $0x88] sm:$0xff] }
 0x3a8   : > { %3440 = vmatprep.mubr.msk.f32.mxu1 %vm3780_vm0, %v3779_v0  ;;  %v2042_v31 = vld [vmem:[%s4547_s30 + $0xd0] sm:$0xff] }
 0x3a9   : > { %1710 = vst.msk [vmem:[%s4633_s16 + $0x28] sm:$0xff] %vm1704_vm7, %v1680_v6 }
 0x3aa   : > { %v1601_v7 = vpop.permute.xlu0 %1600 }
 0x3ab   : > { %v1681_v25 = vsub.f32 %v1536_v14, %v1601_v7  ;;  %3441 = vmatmul.mubr.msk.f32.gmra.mxu1 %vm477_vm1, %v1516_v56 }
 0x3ac   : > { %3443 = vmatprep.mubr.msk.f32.mxu1 %vm3780_vm0, %v3779_v0 }
 0x3ad   : > { %1711 = vst.msk [vmem:[%s4633_s16 + $0x30] sm:$0xff] %vm1704_vm7, %v1681_v25 }
 0x3af   : > { %3444 = vmatmul.mubr.msk.f32.gmra.mxu1 %vm477_vm1, %v1521_v28  ;;  %v2041_v28 = vld [vmem:[%s4547_s30 + $0xc8] sm:$0xff] }
 0x3b0   : > { %3446 = vmatprep.mubr.msk.f32.mxu1 %vm3780_vm0, %v3779_v0  ;;  %3527 = vmatmul.mubr.msk.f32.gmra.mxu0 %vm2046_vm6, %v2041_v28 }
 0x3b1   : > { %3529 = vmatprep.mubr.msk.f32.mxu0 %vm3780_vm0, %v3779_v0 }
 0x3b3   : > { %3447 = vmatmul.mubr.msk.f32.gmra.mxu1 %vm477_vm1, %v1526_v47 }
 0x3b4   : > { %3540 = vmatprep.mubr.msk.f32.mxu1 %vm3780_vm0, %v3779_v0  ;;  %3530 = vmatmul.mubr.msk.f32.gmra.mxu0 %vm2046_vm6, %v2042_v31 }
 0x3b5   : > { %3532 = vmatprep.mubr.msk.f32.mxu0 %vm3780_vm0, %v3779_v0 }
 0x3b8   : > { %3533 = vmatmul.mubr.msk.f32.gmra.mxu0 %vm2046_vm6, %v2043_v19 }
 0x3b9   : > { %3535 = vmatprep.mubr.msk.f32.mxu0 %vm3780_vm0, %v3779_v0 }
 0x3d0   : > { %v1603_v45 = vpop.permute.xlu1 %1602 }
 0x3d1   : > { %v1682_v48 = vsub.f32 %v1537_v39, %v1603_v45  ;;  %v2044_v39 = vld [vmem:[%s4547_s30 + $0xe0] sm:$0x1] }
 0x3d2   : > { %3536 = vmatmul.mubr.msk.f32.gmra.mxu0 %vm2046_vm6, %v2044_v39 }
 0x3d3   : > { %1712 = vst.msk [vmem:[%s4633_s16 + $0x38] sm:$0xff] %vm1704_vm7, %v1682_v48 }
 0x3d4   : > { %v1605_v43 = vpop.permute.xlu0 %1604 }
 0x3d5   : > { %v1683_v59 = vsub.f32 %v1538_v18, %v1605_v43 }
 0x3d7   : > { %1713 = vst.msk [vmem:[%s4633_s16 + $0x40] sm:$0xff] %vm1704_vm7, %v1683_v59 }
 0x3d8   : > { %v1607_v37 = vpop.permute.xlu1 %1606 }
 0x3d9   : > { %v1684_v11 = vsub.f32 %v1539_v52, %v1607_v37 }
 0x3db   : > { %1714 = vst.msk [vmem:[%s4633_s16 + $0x48] sm:$0xff] %vm1704_vm7, %v1684_v11  ;;  %v1551_v11 = vld [vmem:[%s5205_s4 + $0xa8] sm:$0xff] }
 0x3dc   : > { %v1609_v35 = vpop.permute.xlu0 %1608 }
 0x3dd   : > { %v1685_v61 = vsub.f32 %v1540_v36, %v1609_v35  ;;  %v1552_v35 = vld [vmem:[%s5205_s4 + $0xb0] sm:$0xff] }
 0x3df   : > { %1715 = vst.msk [vmem:[%s4633_s16 + $0x50] sm:$0xff] %vm1704_vm7, %v1685_v61 }
 0x3e0   : > { %v1871_v58 = vpop.f32.mrf.mxu1  ;;  %v1613_v46 = vpop.permute.xlu0 %1612 }
 0x3e1   : > { %v1872_v44 = vadd.f32 %v4783_v49, %v1871_v58  ;;  %v1611_v10 = vpop.permute.xlu1 %1610  ;;  %v1687_v55 = vsub.f32 %v1542_v50, %v1613_v46 }
 0x3e2   : > { %v1686_v15 = vsub.f32 %v1541_v27, %v1611_v10  ;;  %v3364_v12 = vpop.f32.mrf.mxu1  ;;  %v1553_v27 = vld [vmem:[%s5205_s4 + $0xb8] sm:$0xff] }
 0x3e3   : > { %3541 = vmatmul.mubr.msk.f32.vlgmr.msra.gmra.mxu1 %vm2046_vm6, %v1872_v44  ;;  %1717 = vst.msk [vmem:[%s4633_s16 + $0x60] sm:$0xff] %vm1704_vm7, %v1687_v55  ;;  %v1554_v44 = vld [vmem:[%s5205_s4 + $0xc0] sm:$0xff]  ;;  %v1555_v55 = vld [vmem:[%s5205_s4 + $0xc8] sm:$0xff] }
 0x3e4   : > { %1716 = vst.msk [vmem:[%s4633_s16 + $0x58] sm:$0xff] %vm1704_vm7, %v1686_v15  ;;  %v1876_v22 = vpop.f32.mrf.mxu1  ;;  %3543 = vmatprep.mubr.msk.f32.mxu1 %vm3780_vm0, %v3779_v0  ;;  %v1617_v23 = vpop.permute.xlu0 %1616 }
 0x3e5   : > { %v1877_v1 = vadd.f32 %v4783_v49, %v1876_v22  ;;  %v1615_v60 = vpop.permute.xlu1 %1614  ;;  %v1689_v56 = vsub.f32 %v1544_v57, %v1617_v23  ;;  %v1556_v57 = vld [vmem:[%s5205_s4 + $0xd0] sm:$0xff] }
 0x3e6   : > { %v1688_v40 = vsub.f32 %v1543_v17, %v1615_v60  ;;  %v3367_v20 = vpop.f32.mrf.mxu1  ;;  %v1558_v60 = vld [vmem:[%s5205_s4 + $0xe0] sm:$0x1] }
 0x3e7   : > { %3544 = vmatmul.mubr.msk.f32.gmra.mxu1 %vm2046_vm6, %v1877_v1  ;;  %1719 = vst.msk [vmem:[%s4633_s16 + $0x70] sm:$0xff] %vm1704_vm7, %v1689_v56 }
 0x3e8   : > { %1718 = vst.msk [vmem:[%s4633_s16 + $0x68] sm:$0xff] %vm1704_vm7, %v1688_v40  ;;  %v1881_v26 = vpop.f32.mrf.mxu1  ;;  %3546 = vmatprep.mubr.msk.f32.mxu1 %vm3780_vm0, %v3779_v0  ;;  %v1621_v30 = vpop.permute.xlu0 %1620 }
 0x3e9   : > { %v1882_v62 = vadd.f32 %v4783_v49, %v1881_v26  ;;  %v1619_v63 = vpop.permute.xlu1 %1618  ;;  %v1691_v5 = vsub.f32 %v1546_v4, %v1621_v30  ;;  %v4933_v30 = vpop.f32.mrf.mxu0 }
 0x3ea   : > { %v1690_v24 = vsub.f32 %v1545_v54, %v1619_v63  ;;  %v3370_v47 = vpop.f32.mrf.mxu1 }
 0x3eb   : > { %3547 = vmatmul.mubr.msk.f32.gmra.mxu1 %vm2046_vm6, %v1882_v62  ;;  %1721 = vst.msk [vmem:[%s4633_s16 + $0x80] sm:$0xff] %vm1704_vm7, %v1691_v5  ;;  %v3453_v5 = vpop.f32.mrf.mxu0 }
 0x3ec   : > { %1720 = vst.msk [vmem:[%s4633_s16 + $0x78] sm:$0xff] %vm1704_vm7, %v1690_v24  ;;  %v1886_v6 = vpop.f32.mrf.mxu1  ;;  %3549 = vmatprep.mubr.msk.f32.mxu1 %vm3780_vm0, %v3779_v0 }
 0x3ed   : > { %v1887_v14 = vadd.f32 %v4783_v49, %v1886_v6  ;;  %v1623_v8 = vpop.permute.xlu1 %1622 }
 0x3ee   : > { %v1692_v7 = vsub.f32 %v1547_v16, %v1623_v8  ;;  %v3373_v25 = vpop.f32.mrf.mxu1  ;;  %v4939_v16 = vpop.f32.mrf.mxu0 }
 0x3ef   : > { %3550 = vmatmul.mubr.msk.f32.gmra.mxu1 %vm2046_vm6, %v1887_v14 }
 0x3f0   : > { %1722 = vst.msk [vmem:[%s4633_s16 + $0x88] sm:$0xff] %vm1704_vm7, %v1692_v7  ;;  %v1891_v9 = vpop.f32.mrf.mxu1  ;;  %3552 = vmatprep.mubr.msk.f32.mxu1 %vm3780_vm0, %v3779_v0  ;;  %v1625_v32 = vpop.permute.xlu0 %1624 }
 0x3f1   : > { %v1892_v33 = vadd.f32 %v4783_v49, %v1891_v9  ;;  %v1693_v21 = vsub.f32 %v1548_v34, %v1625_v32  ;;  %v3456_v31 = vpop.f32.mrf.mxu0 }
 0x3f2   : > { %v3376_v38 = vpop.f32.mrf.mxu1 }
 0x3f3   : > { %3553 = vmatmul.mubr.msk.f32.gmra.mxu1 %vm2046_vm6, %v1892_v33  ;;  %1723 = vst.msk [vmem:[%s4633_s16 + $0x90] sm:$0xff] %vm1704_vm7, %v1693_v21  ;;  %v4945_v7 = vpop.f32.mrf.mxu0 }
 0x3f4   : > { %v1896_v29 = vpop.f32.mrf.mxu1  ;;  %3555 = vmatprep.mubr.msk.f32.mxu1 %vm3780_vm0, %v3779_v0  ;;  %v1627_v45 = vpop.permute.xlu1 %1626 }
 0x3f5   : > { %v1897_v41 = vadd.f32 %v4783_v49, %v1896_v29  ;;  %v1694_v48 = vsub.f32 %v1549_v53, %v1627_v45  ;;  %v3459_v25 = vpop.f32.mrf.mxu0 }
 0x3f6   : > { %v3379_v18 = vpop.f32.mrf.mxu1 }
 0x3f7   : > { %3556 = vmatmul.mubr.msk.f32.gmra.mxu1 %vm2046_vm6, %v1897_v41  ;;  %1724 = vst.msk [vmem:[%s4633_s16 + $0x98] sm:$0xff] %vm1704_vm7, %v1694_v48  ;;  %v4951_v19 = vpop.f32.mrf.mxu0 }
 0x3f8   : > { %v1901_v43 = vpop.f32.mrf.mxu1  ;;  %3558 = vmatprep.mubr.msk.f32.mxu1 %vm3780_vm0, %v3779_v0  ;;  %v1629_v52 = vpop.permute.xlu0 %1628 }
 0x3f9   : > { %v1902_v59 = vadd.f32 %v4783_v49, %v1901_v43  ;;  %v1695_v42 = vsub.f32 %v1550_v51, %v1629_v52  ;;  %v3462_v32 = vpop.f32.mrf.mxu0 }
 0x3fa   : > { %v3382_v37 = vpop.f32.mrf.mxu1 }
 0x3fb   : > { %3559 = vmatmul.mubr.msk.f32.gmra.mxu1 %vm2046_vm6, %v1902_v59  ;;  %1725 = vst.msk [vmem:[%s4633_s16 + $0xa0] sm:$0xff] %vm1704_vm7, %v1695_v42  ;;  %v4957_v53 = vpop.f32.mrf.mxu0 }
 0x3fc   : > { %3561 = vmatprep.mubr.msk.f32.mxu1 %vm3780_vm0, %v3779_v0  ;;  %v1631_v36 = vpop.permute.xlu1 %1630 }
 0x3fd   : > { %v1696_v2 = vsub.f32 %v1551_v11, %v1631_v36  ;;  %v3465_v39 = vpop.f32.mrf.mxu0 }
 0x3ff   : > { %1726 = vst.msk [vmem:[%s4633_s16 + $0xa8] sm:$0xff] %vm1704_vm7, %v1696_v2  ;;  %v4963_v48 = vpop.f32.mrf.mxu0 }
 0x400   : > { %v1633_v61 = vpop.permute.xlu0 %1632 }
 0x401   : > { %v1697_v50 = vsub.f32 %v1552_v35, %v1633_v61  ;;  %v3468_v51 = vpop.f32.mrf.mxu0 }
 0x403   : > { %1727 = vst.msk [vmem:[%s4633_s16 + $0xb0] sm:$0xff] %vm1704_vm7, %v1697_v50  ;;  %v4969_v52 = vpop.f32.mrf.mxu0 }
 0x404   : > { %v1635_v58 = vpop.permute.xlu1 %1634 }
 0x405   : > { %v1698_v3 = vsub.f32 %v1553_v27, %v1635_v58  ;;  %v3471_v37 = vpop.f32.mrf.mxu0 }
 0x407   : > { %1728 = vst.msk [vmem:[%s4633_s16 + $0xb8] sm:$0xff] %vm1704_vm7, %v1698_v3 }
 0x408   : > { %v1637_v46 = vpop.permute.xlu0 %1636 }
 0x409   : > { %v1699_v10 = vsub.f32 %v1554_v44, %v1637_v46 }
 0x40b   : > { %1729 = vst.msk [vmem:[%s4633_s16 + $0xc0] sm:$0xff] %vm1704_vm7, %v1699_v10 }
 0x40c   : > { %v1639_v15 = vpop.permute.xlu1 %1638 }
 0x40d   : > { %v1700_v12 = vsub.f32 %v1555_v55, %v1639_v15 }
 0x40f   : > { %1730 = vst.msk [vmem:[%s4633_s16 + $0xc8] sm:$0xff] %vm1704_vm7, %v1700_v12 }
 0x410   : > { %v1641_v17 = vpop.permute.xlu0 %1640 }
 0x411   : > { %v1701_v22 = vsub.f32 %v1556_v57, %v1641_v17 }
 0x413   : > { %1731 = vst.msk [vmem:[%s4633_s16 + $0xd0] sm:$0xff] %vm1704_vm7, %v1701_v22 }
 0x414   : > { %v1643_v1 = vpop.permute.xlu1 %1642 }
 0x415   : > { %v1702_v23 = vsub.f32 %v1557_v13, %v1643_v1 }
 0x417   : > { %1732 = vst.msk [vmem:[%s4633_s16 + $0xd8] sm:$0xff] %vm1704_vm7, %v1702_v23 }
 0x418   : > { %v1645_v56 = vpop.permute.xlu0 %1644 }
 0x419   : > { %v1703_v40 = vsub.f32 %v1558_v60, %v1645_v56 }
 0x41b   : > { %1734 = vst.msk [vmem:[%s4633_s16 + $0xe0] sm:$0x1] %vm1733_vm8, %v1703_v40 }
 0x41e   : > { %v1906_v20 = vpop.f32.mrf.mxu1 }
 0x41f   : > { %v1907_v4 = vadd.f32 %v4783_v49, %v1906_v20 }
 0x420   : > { %v3385_v54 = vpop.f32.mrf.mxu1 }
 0x421   : > { %3562 = vmatmul.mubr.msk.f32.gmra.mxu1 %vm2046_vm6, %v1907_v4  ;;  %v5007_v54 = vpop.f32.mrf.mxu0 }
 0x422   : > { %v1911_v26 = vpop.f32.mrf.mxu1  ;;  %3564 = vmatprep.mubr.msk.f32.mxu1 %vm3780_vm0, %v3779_v0 }
 0x423   : > { %v1912_v28 = vadd.f32 %v4783_v49, %v1911_v26 }
 0x424   : > { %v3388_v62 = vpop.f32.mrf.mxu1 }
 0x425   : > { %3565 = vmatmul.mubr.msk.f32.gmra.mxu1 %vm2046_vm6, %v1912_v28  ;;  %v3474_v28 = vpop.f32.mrf.mxu0 }
 0x426   : > { %v1916_v63 = vpop.f32.mrf.mxu1  ;;  %3567 = vmatprep.mubr.msk.f32.mxu1 %vm3780_vm0, %v3779_v0 }
 0x427   : > { %v1917_v24 = vadd.f32 %v4783_v49, %v1916_v63  ;;  %v5013_v5 = vpop.f32.mrf.mxu0 }
 0x428   : > { %v3391_v47 = vpop.f32.mrf.mxu1 }
 0x429   : > { %3568 = vmatmul.mubr.msk.f32.gmra.mxu1 %vm2046_vm6, %v1917_v24  ;;  %v3477_v47 = vpop.f32.mrf.mxu0 }
 0x42a   : > { %v1921_v6 = vpop.f32.mrf.mxu1  ;;  %3570 = vmatprep.mubr.msk.f32.mxu1 %vm3780_vm0, %v3779_v0 }
 0x42b   : > { %v1922_v14 = vadd.f32 %v4783_v49, %v1921_v6 }
 0x42c   : > { %v3394_v8 = vpop.f32.mrf.mxu1 }
 0x42d   : > { %3571 = vmatmul.mubr.msk.f32.gmra.mxu1 %vm2046_vm6, %v1922_v14  ;;  %v5019_v14 = vpop.f32.mrf.mxu0 }
 0x42e   : > { %3573 = vmatprep.mubr.msk.f32.mxu1 %vm3780_vm0, %v3779_v0 }
 0x42f   : > { %v1926_v34 = vpop.f32.mrf.mxu1  ;;  %v3480_v25 = vpop.f32.mrf.mxu0 }
 0x430   : > { %v1927_v9 = vadd.f32 %v4783_v49, %v1926_v34 }
 0x431   : > { %v3397_v33 = vpop.f32.mrf.mxu1 }
 0x432   : > { %3574 = vmatmul.mubr.msk.f32.gmra.mxu1 %vm2046_vm6, %v1927_v9  ;;  %v5025_v33 = vpop.f32.mrf.mxu0 }
 0x433   : > { %v1931_v21 = vpop.f32.mrf.mxu1  ;;  %3576 = vmatprep.mubr.msk.f32.mxu1 %vm3780_vm0, %v3779_v0 }
 0x434   : > { %v1932_v38 = vadd.f32 %v4783_v49, %v1931_v21  ;;  %v3483_v21 = vpop.f32.mrf.mxu0 }
 0x435   : > { %v3400_v29 = vpop.f32.mrf.mxu1 }
 0x436   : > { %3577 = vmatmul.mubr.msk.f32.gmra.mxu1 %vm2046_vm6, %v1932_v38  ;;  %v5031_v39 = vpop.f32.mrf.mxu0 }
 0x437   : > { %v1936_v41 = vpop.f32.mrf.mxu1  ;;  %3579 = vmatprep.mubr.msk.f32.mxu1 %vm3780_vm0, %v3779_v0 }
 0x438   : > { %v1937_v45 = vadd.f32 %v4783_v49, %v1936_v41 }
 0x439   : > { %v3403_v18 = vpop.f32.mrf.mxu1 }
 0x43a   : > { %3580 = vmatmul.mubr.msk.f32.gmra.mxu1 %vm2046_vm6, %v1937_v45  ;;  %v3486_v45 = vpop.f32.mrf.mxu0 }
 0x43b   : > { %v1941_v43 = vpop.f32.mrf.mxu1  ;;  %3582 = vmatprep.mubr.msk.f32.mxu1 %vm3780_vm0, %v3779_v0 }
 0x43c   : > { %v1942_v59 = vadd.f32 %v4783_v49, %v1941_v43  ;;  %v5037_v43 = vpop.f32.mrf.mxu0 }
 0x43d   : > { %v3406_v42 = vpop.f32.mrf.mxu1 }
 0x43e   : > { %3583 = vmatmul.mubr.msk.f32.gmra.mxu1 %vm2046_vm6, %v1942_v59  ;;  %v3489_v42 = vpop.f32.mrf.mxu0 }
 0x43f   : > { %v1946_v11 = vpop.f32.mrf.mxu1  ;;  %3585 = vmatprep.mubr.msk.f32.mxu1 %vm3780_vm0, %v3779_v0 }
 0x440   : > { %v1947_v36 = vadd.f32 %v4783_v49, %v1946_v11  ;;  %v5040_v37 = vpop.f32.mrf.mxu0 }
 0x441   : > { %v3409_v2 = vpop.f32.mrf.mxu1 }
 0x442   : > { %3586 = vmatmul.mubr.msk.f32.gmra.mxu1 %vm2046_vm6, %v1947_v36  ;;  %v3492_v11 = vpop.f32.mrf.mxu0 }
 0x443   : > { %v1951_v35 = vpop.f32.mrf.mxu1  ;;  %3588 = vmatprep.mubr.msk.f32.mxu1 %vm3780_vm0, %v3779_v0 }
 0x444   : > { %v1952_v61 = vadd.f32 %v4783_v49, %v1951_v35  ;;  %v5042_v36 = vpop.f32.mrf.mxu0 }
 0x445   : > { %v3412_v50 = vpop.f32.mrf.mxu1 }
 0x446   : > { %3589 = vmatmul.mubr.msk.f32.gmra.mxu1 %vm2046_vm6, %v1952_v61  ;;  %v3495_v2 = vpop.f32.mrf.mxu0 }
 0x447   : > { %v1956_v27 = vpop.f32.mrf.mxu1  ;;  %3591 = vmatprep.mubr.msk.f32.mxu1 %vm3780_vm0, %v3779_v0 }
 0x448   : > { %v1957_v58 = vadd.f32 %v4783_v49, %v1956_v27  ;;  %v5044_v35 = vpop.f32.mrf.mxu0 }
 0x449   : > { %v3415_v3 = vpop.f32.mrf.mxu1 }
 0x44a   : > { %3592 = vmatmul.mubr.msk.f32.gmra.mxu1 %vm2046_vm6, %v1957_v58  ;;  %v3498_v61 = vpop.f32.mrf.mxu0 }
 0x44b   : > { %v1961_v44 = vpop.f32.mrf.mxu1  ;;  %3594 = vmatprep.mubr.msk.f32.mxu1 %vm3780_vm0, %v3779_v0 }
 0x44c   : > { %v1962_v46 = vadd.f32 %v4783_v49, %v1961_v44  ;;  %v5046_v50 = vpop.f32.mrf.mxu0 }
 0x44d   : > { %v3418_v10 = vpop.f32.mrf.mxu1 }
 0x44e   : > { %3595 = vmatmul.mubr.msk.f32.gmra.mxu1 %vm2046_vm6, %v1962_v46 }
 0x44f   : > { %v1966_v55 = vpop.f32.mrf.mxu1  ;;  %3597 = vmatprep.mubr.msk.f32.mxu1 %vm3780_vm0, %v3779_v0 }
 0x450   : > { %v1967_v15 = vadd.f32 %v4783_v49, %v1966_v55 }
 0x451   : > { %v3421_v12 = vpop.f32.mrf.mxu1 }
 0x452   : > { %3598 = vmatmul.mubr.msk.f32.gmra.mxu1 %vm2046_vm6, %v1967_v15 }
 0x453   : > { %v1971_v57 = vpop.f32.mrf.mxu1  ;;  %3600 = vmatprep.mubr.msk.f32.mxu1 %vm3780_vm0, %v3779_v0 }
 0x454   : > { %v1972_v17 = vadd.f32 %v4783_v49, %v1971_v57 }
 0x455   : > { %v3424_v22 = vpop.f32.mrf.mxu1 }
 0x456   : > { %3601 = vmatmul.mubr.msk.f32.gmra.mxu1 %vm2046_vm6, %v1972_v17 }
 0x457   : > { %v1976_v13 = vpop.f32.mrf.mxu1  ;;  %3603 = vmatprep.mubr.msk.f32.mxu1 %vm3780_vm0, %v3779_v0 }
 0x458   : > { %v1977_v1 = vadd.f32 %v4783_v49, %v1976_v13 }
 0x459   : > { %v3427_v23 = vpop.f32.mrf.mxu1 }
 0x45a   : > { %3604 = vmatmul.mubr.msk.f32.gmra.mxu1 %vm2046_vm6, %v1977_v1  ;;  %v5065_v1 = vld [vmem:[%s5210_s9] ss:$0 sm:$0xff] }
 0x45b   : > { %v1981_v60 = vpop.f32.mrf.mxu1  ;;  %3606 = vmatprep.mubr.msk.f32.mxu1 %vm3780_vm0, %v3779_v0 }
 0x45c   : > { %v1982_v56 = vadd.f32 %v4783_v49, %v1981_v60 }
 0x45d   : > { %v3430_v40 = vpop.f32.mrf.mxu1 }
 0x45e   : > { %3607 = vmatmul.mubr.msk.f32.gmra.mxu1 %vm2046_vm6, %v1982_v56 }
 0x45f   : > { %v1986_v20 = vpop.f32.mrf.mxu1  ;;  %3609 = vmatprep.mubr.msk.f32.mxu1 %vm3780_vm0, %v3779_v0 }
 0x460   : > { %v1987_v4 = vadd.f32 %v4783_v49, %v1986_v20 }
 0x461   : > { %v3433_v26 = vpop.f32.mrf.mxu1 }
 0x462   : > { %3610 = vmatmul.mubr.msk.f32.gmra.mxu1 %vm2046_vm6, %v1987_v4 }
 0x463   : > { %v1991_v62 = vpop.f32.mrf.mxu1  ;;  %3612 = vmatprep.mubr.msk.f32.mxu1 %vm3780_vm0, %v3779_v0 }
 0x464   : > { %v1992_v63 = vadd.f32 %v4783_v49, %v1991_v62 }
 0x465   : > { %v3436_v24 = vpop.f32.mrf.mxu1 }
 0x466   : > { %3613 = vmatmul.mubr.msk.f32.gmra.mxu1 %vm2046_vm6, %v1992_v63 }
 0x467   : > { %v1996_v6 = vpop.f32.mrf.mxu1  ;;  %3615 = vmatprep.mubr.msk.f32.mxu1 %vm3780_vm0, %v3779_v0 }
 0x468   : > { %v1997_v31 = vadd.f32 %v4783_v49, %v1996_v6 }
 0x469   : > { %v3439_v8 = vpop.f32.mrf.mxu1 }
 0x46a   : > { %3616 = vmatmul.mubr.msk.f32.gmra.mxu1 %vm2046_vm6, %v1997_v31 }
 0x46b   : > { %v2001_v34 = vpop.f32.mrf.mxu1  ;;  %3618 = vmatprep.mubr.msk.f32.mxu1 %vm3780_vm0, %v3779_v0 }
 0x46c   : > { %v2002_v9 = vadd.f32 %v4783_v49, %v2001_v34 }
 0x46d   : > { %v3442_v32 = vpop.f32.mrf.mxu1 }
 0x46e   : > { %3619 = vmatmul.mubr.msk.f32.gmra.mxu1 %vm2046_vm6, %v2002_v9 }
 0x46f   : > { %v2006_v38 = vpop.f32.mrf.mxu1  ;;  %3621 = vmatprep.mubr.msk.f32.mxu1 %vm3780_vm0, %v3779_v0 }
 0x470   : > { %v2007_v29 = vadd.f32 %v4783_v49, %v2006_v38 }
 0x471   : > { %v3445_v41 = vpop.f32.mrf.mxu1 }
 0x472   : > { %3622 = vmatmul.mubr.msk.f32.gmra.mxu1 %vm2046_vm6, %v2007_v29 }
 0x473   : > { %v2011_v18 = vpop.f32.mrf.mxu1  ;;  %3624 = vmatprep.mubr.msk.f32.mxu1 %vm3780_vm0, %v3779_v0  ;;  %v3501_v0 = vpop.f32.mrf.mxu0 }
 0x474   : > { %v2012_v51 = vadd.f32 %v4783_v49, %v2011_v18 }
 0x475   : > { %v3448_v59 = vpop.f32.mrf.mxu1  ;;  %v5048_v27 = vpop.f32.mrf.mxu0 }
 0x476   : > { %3625 = vmatmul.mubr.msk.f32.gmra.mxu1 %vm2046_vm6, %v2012_v51 }
 0x477   : > { %v3504_v49 = vpop.f32.mrf.mxu0 }
 0x479   : > { %v5050_v58 = vpop.f32.mrf.mxu0 }
 0x47b   : > { %v3507_v3 = vpop.f32.mrf.mxu0 }
 0x47d   : > { %v5052_v44 = vpop.f32.mrf.mxu0 }
 0x47f   : > { %v3510_v46 = vpop.f32.mrf.mxu0 }
 0x481   : > { %v5054_v10 = vpop.f32.mrf.mxu0 }
 0x483   : > { %v3513_v55 = vpop.f32.mrf.mxu0 }
 0x485   : > { %v5056_v15 = vpop.f32.mrf.mxu0 }
 0x487   : > { %v3516_v12 = vpop.f32.mrf.mxu0 }
 0x489   : > { %v5058_v57 = vpop.f32.mrf.mxu0 }
 0x48b   : > { %v3519_v17 = vpop.f32.mrf.mxu0 }
 0x48d   : > { %v5060_v22 = vpop.f32.mrf.mxu0 }
 0x48f   : > { %v3522_v23 = vpop.f32.mrf.mxu0 }
 0x491   : > { %v5074_v40 = vpop.f32.mrf.mxu0 }
 0x493   : > { %v3525_v26 = vpop.f32.mrf.mxu0 }
 0x495   : > { %v5080_v62 = vpop.f32.mrf.mxu0 }
 0x497   : > { %v3528_v47 = vpop.f32.mrf.mxu0 }
 0x499   : > { %v5086_v8 = vpop.f32.mrf.mxu0 }
 0x4a3   : > { %v2497_v13 = vpop.f32.mrf.mxu1 }
 0x4a4   : > { %v2498_v60 = vadd.f32 %v2497_v13, %v4933_v30 }
 0x4a5   : > { %v3542_v56 = vpop.f32.mrf.mxu1 }
 0x4a6   : > { %v2648_v20 = vadd.f32 %v5065_v1, %v2498_v60 }
 0x4a7   : > { %v2502_v4 = vpop.f32.mrf.mxu1 }
 0x4a8   : > { %2677 = vst.msk [vmem:[%s5072_s15] sm:$0xff] %vm2046_vm6, %v2648_v20  ;;  %v2503_v28 = vadd.f32 %v2502_v4, %v4939_v16  ;;  %v3531_v16 = vpop.f32.mrf.mxu0 }
 0x4a9   : > { %v3545_v30 = vpop.f32.mrf.mxu1 }
 0x4aa   : > { %v2649_v63 = vadd.f32 %v5065_v1, %v2503_v28  ;;  %v5092_v21 = vpop.f32.mrf.mxu0 }
 0x4ab   : > { %v2507_v24 = vpop.f32.mrf.mxu1 }
 0x4ac   : > { %2678 = vst.msk [vmem:[%s5072_s15 + $0x8] sm:$0xff] %vm2046_vm6, %v2649_v63  ;;  %v2508_v6 = vadd.f32 %v2507_v24, %v4945_v7  ;;  %v3534_v7 = vpop.f32.mrf.mxu0 }
 0x4ad   : > { %v3548_v31 = vpop.f32.mrf.mxu1 }
 0x4ae   : > { %v2650_v25 = vadd.f32 %v5065_v1, %v2508_v6  ;;  %v5098_v18 = vpop.f32.mrf.mxu0 }
 0x4af   : > { %v2512_v34 = vpop.f32.mrf.mxu1 }
 0x4b0   : > { %2679 = vst.msk [vmem:[%s5072_s15 + $0x10] sm:$0xff] %vm2046_vm6, %v2650_v25  ;;  %v2513_v9 = vadd.f32 %v2512_v34, %v4951_v19  ;;  %v3537_v19 = vpop.f32.mrf.mxu0 }
 0x4b1   : > { %v3551_v32 = vpop.f32.mrf.mxu1 }
 0x4b2   : > { %v2651_v38 = vadd.f32 %v5065_v1, %v2513_v9 }
 0x4b3   : > { %v2517_v29 = vpop.f32.mrf.mxu1 }
 0x4b4   : > { %2680 = vst.msk [vmem:[%s5072_s15 + $0x18] sm:$0xff] %vm2046_vm6, %v2651_v38  ;;  %v2518_v41 = vadd.f32 %v2517_v29, %v4957_v53 }
 0x4b5   : > { %v3554_v45 = vpop.f32.mrf.mxu1 }
 0x4b6   : > { %v2652_v51 = vadd.f32 %v5065_v1, %v2518_v41 }
 0x4b7   : > { %v2522_v59 = vpop.f32.mrf.mxu1 }
 0x4b8   : > { %2681 = vst.msk [vmem:[%s5072_s15 + $0x20] sm:$0xff] %vm2046_vm6, %v2652_v51  ;;  %v2523_v42 = vadd.f32 %v2522_v59, %v4963_v48 }
 0x4b9   : > { %v3557_v11 = vpop.f32.mrf.mxu1 }
 0x4ba   : > { %v2653_v2 = vadd.f32 %v5065_v1, %v2523_v42 }
 0x4bb   : > { %v2527_v61 = vpop.f32.mrf.mxu1 }
 0x4bc   : > { %2682 = vst.msk [vmem:[%s5072_s15 + $0x28] sm:$0xff] %vm2046_vm6, %v2653_v2  ;;  %v2528_v53 = vadd.f32 %v2527_v61, %v4969_v52 }
 0x4bd   : > { %v3560_v0 = vpop.f32.mrf.mxu1 }
 0x4be   : > { %v2654_v49 = vadd.f32 %v5065_v1, %v2528_v53 }
 0x4c0   : > { %2683 = vst.msk [vmem:[%s5072_s15 + $0x30] sm:$0xff] %vm2046_vm6, %v2654_v49 }
 0x4e1   : > { %v2532_v3 = vpop.f32.mrf.mxu1 }
 0x4e2   : > { %v2533_v46 = vadd.f32 %v2532_v3, %v5007_v54 }
 0x4e3   : > { %v3563_v55 = vpop.f32.mrf.mxu1 }
 0x4e4   : > { %v2655_v48 = vadd.f32 %v5065_v1, %v2533_v46 }
 0x4e5   : > { %v2537_v12 = vpop.f32.mrf.mxu1 }
 0x4e6   : > { %2684 = vst.msk [vmem:[%s5072_s15 + $0x38] sm:$0xff] %vm2046_vm6, %v2655_v48  ;;  %v2538_v17 = vadd.f32 %v2537_v12, %v5013_v5 }
 0x4e7   : > { %v3566_v13 = vpop.f32.mrf.mxu1 }
 0x4e8   : > { %v2656_v52 = vadd.f32 %v5065_v1, %v2538_v17 }
 0x4e9   : > { %v2542_v23 = vpop.f32.mrf.mxu1 }
 0x4ea   : > { %2685 = vst.msk [vmem:[%s5072_s15 + $0x40] sm:$0xff] %vm2046_vm6, %v2656_v52  ;;  %v2543_v60 = vadd.f32 %v2542_v23, %v5019_v14 }
 0x4eb   : > { %v3569_v56 = vpop.f32.mrf.mxu1 }
 0x4ec   : > { %v2657_v54 = vadd.f32 %v5065_v1, %v2543_v60 }
 0x4ed   : > { %v2547_v20 = vpop.f32.mrf.mxu1 }
 0x4ee   : > { %2686 = vst.msk [vmem:[%s5072_s15 + $0x48] sm:$0xff] %vm2046_vm6, %v2657_v54  ;;  %v2548_v4 = vadd.f32 %v2547_v20, %v5025_v33 }
 0x4ef   : > { %v3572_v26 = vpop.f32.mrf.mxu1 }
 0x4f0   : > { %v2658_v5 = vadd.f32 %v5065_v1, %v2548_v4 }
 0x4f2   : > { %2687 = vst.msk [vmem:[%s5072_s15 + $0x50] sm:$0xff] %vm2046_vm6, %v2658_v5  ;;  %v2552_v28 = vpop.f32.mrf.mxu1 }
 0x4f3   : > { %v2553_v30 = vadd.f32 %v2552_v28, %v5031_v39 }
 0x4f4   : > { %v3575_v63 = vpop.f32.mrf.mxu1 }
 0x4f5   : > { %v2659_v14 = vadd.f32 %v5065_v1, %v2553_v30 }
 0x4f6   : > { %v2557_v24 = vpop.f32.mrf.mxu1 }
 0x4f7   : > { %2688 = vst.msk [vmem:[%s5072_s15 + $0x58] sm:$0xff] %vm2046_vm6, %v2659_v14  ;;  %v2558_v47 = vadd.f32 %v2557_v24, %v5037_v43 }
 0x4f8   : > { %v3578_v6 = vpop.f32.mrf.mxu1 }
 0x4f9   : > { %v2660_v33 = vadd.f32 %v5065_v1, %v2558_v47 }
 0x4fa   : > { %v2562_v31 = vpop.f32.mrf.mxu1 }
 0x4fb   : > { %2689 = vst.msk [vmem:[%s5072_s15 + $0x60] sm:$0xff] %vm2046_vm6, %v2660_v33  ;;  %v2563_v25 = vadd.f32 %v2562_v31, %v5040_v37 }
 0x4fc   : > { %v3581_v34 = vpop.f32.mrf.mxu1 }
 0x4fd   : > { %v2661_v39 = vadd.f32 %v5065_v1, %v2563_v25 }
 0x4fe   : > { %v2567_v16 = vpop.f32.mrf.mxu1 }
 0x4ff   : > { %2690 = vst.msk [vmem:[%s5072_s15 + $0x68] sm:$0xff] %vm2046_vm6, %v2661_v39  ;;  %v2568_v9 = vadd.f32 %v2567_v16, %v5042_v36 }
 0x500   : > { %v3584_v32 = vpop.f32.mrf.mxu1 }
 0x501   : > { %v2662_v43 = vadd.f32 %v5065_v1, %v2568_v9 }
 0x502   : > { %v2572_v38 = vpop.f32.mrf.mxu1 }
 0x503   : > { %2691 = vst.msk [vmem:[%s5072_s15 + $0x70] sm:$0xff] %vm2046_vm6, %v2662_v43  ;;  %v2573_v29 = vadd.f32 %v2572_v38, %v5044_v35 }
 0x504   : > { %v3587_v7 = vpop.f32.mrf.mxu1 }
 0x505   : > { %v2663_v37 = vadd.f32 %v5065_v1, %v2573_v29 }
 0x506   : > { %v2577_v41 = vpop.f32.mrf.mxu1 }
 0x507   : > { %2692 = vst.msk [vmem:[%s5072_s15 + $0x78] sm:$0xff] %vm2046_vm6, %v2663_v37  ;;  %v2578_v45 = vadd.f32 %v2577_v41, %v5046_v50 }
 0x508   : > { %v3590_v51 = vpop.f32.mrf.mxu1 }
 0x509   : > { %v2664_v36 = vadd.f32 %v5065_v1, %v2578_v45 }
 0x50a   : > { %v2582_v59 = vpop.f32.mrf.mxu1 }
 0x50b   : > { %2693 = vst.msk [vmem:[%s5072_s15 + $0x80] sm:$0xff] %vm2046_vm6, %v2664_v36  ;;  %v2583_v19 = vadd.f32 %v2582_v59, %v5048_v27 }
 0x50c   : > { %v3593_v42 = vpop.f32.mrf.mxu1 }
 0x50d   : > { %v2665_v35 = vadd.f32 %v5065_v1, %v2583_v19 }
 0x50e   : > { %v2587_v11 = vpop.f32.mrf.mxu1 }
 0x50f   : > { %2694 = vst.msk [vmem:[%s5072_s15 + $0x88] sm:$0xff] %vm2046_vm6, %v2665_v35  ;;  %v2588_v2 = vadd.f32 %v2587_v11, %v5050_v58 }
 0x510   : > { %v3596_v61 = vpop.f32.mrf.mxu1 }
 0x511   : > { %v2666_v50 = vadd.f32 %v5065_v1, %v2588_v2 }
 0x512   : > { %v2592_v53 = vpop.f32.mrf.mxu1 }
 0x513   : > { %2695 = vst.msk [vmem:[%s5072_s15 + $0x90] sm:$0xff] %vm2046_vm6, %v2666_v50  ;;  %v2593_v0 = vadd.f32 %v2592_v53, %v5052_v44 }
 0x514   : > { %v3599_v49 = vpop.f32.mrf.mxu1 }
 0x515   : > { %v2667_v27 = vadd.f32 %v5065_v1, %v2593_v0 }
 0x516   : > { %v2597_v3 = vpop.f32.mrf.mxu1 }
 0x517   : > { %2696 = vst.msk [vmem:[%s5072_s15 + $0x98] sm:$0xff] %vm2046_vm6, %v2667_v27  ;;  %v2598_v46 = vadd.f32 %v2597_v3, %v5054_v10 }
 0x518   : > { %v3602_v55 = vpop.f32.mrf.mxu1 }
 0x519   : > { %v2668_v58 = vadd.f32 %v5065_v1, %v2598_v46 }
 0x51a   : > { %v2602_v48 = vpop.f32.mrf.mxu1 }
 0x51b   : > { %2697 = vst.msk [vmem:[%s5072_s15 + $0xa0] sm:$0xff] %vm2046_vm6, %v2668_v58  ;;  %v2603_v12 = vadd.f32 %v2602_v48, %v5056_v15 }
 0x51c   : > { %v3605_v17 = vpop.f32.mrf.mxu1 }
 0x51d   : > { %v2669_v44 = vadd.f32 %v5065_v1, %v2603_v12 }
 0x51e   : > { %v2607_v13 = vpop.f32.mrf.mxu1 }
 0x51f   : > { %2698 = vst.msk [vmem:[%s5072_s15 + $0xa8] sm:$0xff] %vm2046_vm6, %v2669_v44  ;;  %v2608_v52 = vadd.f32 %v2607_v13, %v5058_v57 }
 0x520   : > { %v3608_v23 = vpop.f32.mrf.mxu1 }
 0x521   : > { %v2670_v10 = vadd.f32 %v5065_v1, %v2608_v52 }
 0x522   : > { %v2612_v60 = vpop.f32.mrf.mxu1 }
 0x523   : > { %2699 = vst.msk [vmem:[%s5072_s15 + $0xb0] sm:$0xff] %vm2046_vm6, %v2670_v10  ;;  %v2613_v56 = vadd.f32 %v2612_v60, %v5060_v22 }
 0x524   : > { %v3611_v54 = vpop.f32.mrf.mxu1 }
 0x525   : > { %v2671_v15 = vadd.f32 %v5065_v1, %v2613_v56 }
 0x526   : > { %v2617_v20 = vpop.f32.mrf.mxu1 }
 0x527   : > { %2700 = vst.msk [vmem:[%s5072_s15 + $0xb8] sm:$0xff] %vm2046_vm6, %v2671_v15  ;;  %v2618_v4 = vadd.f32 %v2617_v20, %v5074_v40 }
 0x528   : > { %v3614_v26 = vpop.f32.mrf.mxu1 }
 0x529   : > { %v2672_v57 = vadd.f32 %v5065_v1, %v2618_v4 }
 0x52a   : > { %v2622_v5 = vpop.f32.mrf.mxu1 }
 0x52b   : > { %2701 = vst.msk [vmem:[%s5072_s15 + $0xc0] sm:$0xff] %vm2046_vm6, %v2672_v57  ;;  %v2623_v28 = vadd.f32 %v2622_v5, %v5080_v62 }
 0x52c   : > { %v3617_v30 = vpop.f32.mrf.mxu1 }
 0x52d   : > { %v2673_v22 = vadd.f32 %v5065_v1, %v2623_v28 }
 0x52e   : > { %v2627_v63 = vpop.f32.mrf.mxu1 }
 0x52f   : > { %2702 = vst.msk [vmem:[%s5072_s15 + $0xc8] sm:$0xff] %vm2046_vm6, %v2673_v22  ;;  %v2628_v14 = vadd.f32 %v2627_v63, %v5086_v8 }
 0x530   : > { %v3620_v24 = vpop.f32.mrf.mxu1 }
 0x531   : > { %v2674_v40 = vadd.f32 %v5065_v1, %v2628_v14 }
 0x532   : > { %v2632_v47 = vpop.f32.mrf.mxu1 }
 0x533   : > { %2703 = vst.msk [vmem:[%s5072_s15 + $0xd0] sm:$0xff] %vm2046_vm6, %v2674_v40  ;;  %v2633_v6 = vadd.f32 %v2632_v47, %v5092_v21 }
 0x534   : > { %v3623_v33 = vpop.f32.mrf.mxu1 }
 0x535   : > { %v2675_v62 = vadd.f32 %v5065_v1, %v2633_v6 }
 0x536   : > { %v2637_v31 = vpop.f32.mrf.mxu1 }
 0x537   : > { %2704 = vst.msk [vmem:[%s5072_s15 + $0xd8] sm:$0xff] %vm2046_vm6, %v2675_v62  ;;  %v2638_v25 = vadd.f32 %v2637_v31, %v5098_v18 }
 0x538   : > { %v3626_v34 = vpop.f32.mrf.mxu1 }
 0x539   : > { %v2676_v8 = vadd.f32 %v5065_v1, %v2638_v25 }
 0x53b   : > { %2706 = vst.msk [vmem:[%s5072_s15 + $0xe0] sm:$0x1] %vm2705_vm9, %v2676_v8 }
 0x53c PF: > { %s22_s17 = sadd.s32 1, %s3777_s17  }
 0x53d   : > { %p19_p4 = scmp.ge.s32.totalorder %s22_s17, 4  }
 0x53f   :  { %21 = sbr.rel (!%p19_p4) target bundleno = 1 (0x1), region = 108 }

// kernel: apnb_forward.5
= control target key start
LH: loop header
LB: loop body
LE: loop exit
PB: predicated region body
PF: predicated region fallthrough
CT: control target
= control target key end

     0   :  { %vm307_vm0 = vcmask 1041408   ;;  %vm135_vm1 = vcmask 15360   ;;  %v1677_v0 = vmov 0.0   ;;  %vm1678_vm2 = vmmov 0   ;;  %s3556_s2 = inlined_call_operand.vmem [shape: f32[2,8], index: 2, kind: input, shape index: {}]   ;;  %s3557_s1 = inlined_call_operand.vmem [shape: f32[450,2], index: 1, kind: input, shape index: {}]   ;;  %s3558_s0 = inlined_call_operand.vmem [shape: f32[450,8], index: 0, kind: input, shape index: {}]   ;;  %s3559_s3 = inlined_call_operand.vmem [shape: f32[1,8], index: 3, kind: input, shape index: {}]   ;;  %s3560_s4 = inlined_call_operand.vmem [shape: f32[1,8], index: 4, kind: input, shape index: {}]   ;;  %s3561_s5 = inlined_call_operand.vmem [shape: f32[450,8], index: 5, kind: output, shape index: {}]  }
   0x1   :  { %1498 = vmatprep.subr.mxu0 %v1677_v0  ;;  %v134_v1 = vld [vmem:[%s3556_s2] sm:$0x3]  ;;  %1500 = vmatprep.mubr.msk.f32.mxu0 %vm1678_vm2, %v1677_v0  ;;  %v78_v3 = vld [vmem:[%s3557_s1 + $0x8] sm:$0xff]  ;;  %v79_v5 = vld [vmem:[%s3557_s1 + $0x10] sm:$0xff]  ;;  %vm718_vm3 = vcmask 64512   ;;  %vm830_vm4 = vcmask 58368  }
   0x2   :  { %v77_v2 = vld [vmem:[%s3557_s1] sm:$0xff]  ;;  %1499 = vmatpush3.msk.msra.mxu0 %vm307_vm0, %v134_v1  ;;  %1671 = vmatprep.subr.mxu1 %v1677_v0  ;;  %v106_v4 = vld [vmem:[%s3557_s1 + $0xe8] sm:$0xff]  ;;  %v107_v6 = vld [vmem:[%s3557_s1 + $0xf0] sm:$0xff] }
   0x3   :  { %1501 = vmatmul.mubr.msk.f32.vlgmr.msra.gmra.mxu0 %vm135_vm1, %v77_v2  ;;  %1672 = vmatpush3.msk.msra.mxu1 %vm307_vm0, %v134_v1  ;;  %v80_v7 = vld [vmem:[%s3557_s1 + $0x18] sm:$0xff]  ;;  %v81_v9 = vld [vmem:[%s3557_s1 + $0x20] sm:$0xff]  ;;  %v82_v11 = vld [vmem:[%s3557_s1 + $0x28] sm:$0xff] }
   0x4   :  { %1503 = vmatprep.mubr.msk.f32.mxu0 %vm1678_vm2, %v1677_v0  ;;  %1587 = vmatprep.mubr.msk.f32.mxu1 %vm1678_vm2, %v1677_v0  ;;  %v108_v8 = vld [vmem:[%s3557_s1 + $0xf8] sm:$0xff]  ;;  %v109_v10 = vld [vmem:[%s3557_s1 + $0x100] sm:$0xff]  ;;  %v110_v12 = vld [vmem:[%s3557_s1 + $0x108] sm:$0xff] }
   0x5   :  { %1588 = vmatmul.mubr.msk.f32.vlgmr.msra.gmra.mxu1 %vm135_vm1, %v106_v4  ;;  %v83_v13 = vld [vmem:[%s3557_s1 + $0x30] sm:$0xff]  ;;  %v84_v15 = vld [vmem:[%s3557_s1 + $0x38] sm:$0xff]  ;;  %v85_v17 = vld [vmem:[%s3557_s1 + $0x40] sm:$0xff] }
   0x6   :  { %1590 = vmatprep.mubr.msk.f32.mxu1 %vm1678_vm2, %v1677_v0  ;;  %v111_v14 = vld [vmem:[%s3557_s1 + $0x110] sm:$0xff]  ;;  %v112_v16 = vld [vmem:[%s3557_s1 + $0x118] sm:$0xff]  ;;  %v113_v18 = vld [vmem:[%s3557_s1 + $0x120] sm:$0xff] }
   0x7   :  { %1504 = vmatmul.mubr.msk.f32.gmra.mxu0 %vm135_vm1, %v78_v3  ;;  %v86_v19 = vld [vmem:[%s3557_s1 + $0x48] sm:$0xff]  ;;  %v87_v21 = vld [vmem:[%s3557_s1 + $0x50] sm:$0xff]  ;;  %v88_v23 = vld [vmem:[%s3557_s1 + $0x58] sm:$0xff] }
   0x8   :  { %1506 = vmatprep.mubr.msk.f32.mxu0 %vm1678_vm2, %v1677_v0  ;;  %v114_v20 = vld [vmem:[%s3557_s1 + $0x128] sm:$0xff]  ;;  %v115_v22 = vld [vmem:[%s3557_s1 + $0x130] sm:$0xff]  ;;  %v116_v24 = vld [vmem:[%s3557_s1 + $0x138] sm:$0xff] }
   0x9   :  { %1591 = vmatmul.mubr.msk.f32.gmra.mxu1 %vm135_vm1, %v107_v6  ;;  %v89_v25 = vld [vmem:[%s3557_s1 + $0x60] sm:$0xff]  ;;  %v90_v27 = vld [vmem:[%s3557_s1 + $0x68] sm:$0xff]  ;;  %v91_v29 = vld [vmem:[%s3557_s1 + $0x70] sm:$0xff] }
   0xa   :  { %1593 = vmatprep.mubr.msk.f32.mxu1 %vm1678_vm2, %v1677_v0  ;;  %v117_v26 = vld [vmem:[%s3557_s1 + $0x140] sm:$0xff]  ;;  %v118_v28 = vld [vmem:[%s3557_s1 + $0x148] sm:$0xff]  ;;  %v119_v30 = vld [vmem:[%s3557_s1 + $0x150] sm:$0xff] }
   0xb   :  { %1507 = vmatmul.mubr.msk.f32.gmra.mxu0 %vm135_vm1, %v79_v5  ;;  %v92_v31 = vld [vmem:[%s3557_s1 + $0x78] sm:$0xff]  ;;  %v93_v33 = vld [vmem:[%s3557_s1 + $0x80] sm:$0xff]  ;;  %v94_v35 = vld [vmem:[%s3557_s1 + $0x88] sm:$0xff] }
   0xc   :  { %1509 = vmatprep.mubr.msk.f32.mxu0 %vm1678_vm2, %v1677_v0  ;;  %v120_v32 = vld [vmem:[%s3557_s1 + $0x158] sm:$0xff]  ;;  %v121_v34 = vld [vmem:[%s3557_s1 + $0x160] sm:$0xff]  ;;  %v122_v36 = vld [vmem:[%s3557_s1 + $0x168] sm:$0xff] }
   0xd   :  { %1594 = vmatmul.mubr.msk.f32.gmra.mxu1 %vm135_vm1, %v108_v8  ;;  %v95_v37 = vld [vmem:[%s3557_s1 + $0x90] sm:$0xff]  ;;  %v96_v39 = vld [vmem:[%s3557_s1 + $0x98] sm:$0xff]  ;;  %v97_v41 = vld [vmem:[%s3557_s1 + $0xa0] sm:$0xff] }
   0xe   :  { %1596 = vmatprep.mubr.msk.f32.mxu1 %vm1678_vm2, %v1677_v0  ;;  %v123_v38 = vld [vmem:[%s3557_s1 + $0x170] sm:$0xff]  ;;  %v124_v40 = vld [vmem:[%s3557_s1 + $0x178] sm:$0xff]  ;;  %v125_v42 = vld [vmem:[%s3557_s1 + $0x180] sm:$0xff] }
   0xf   :  { %1510 = vmatmul.mubr.msk.f32.gmra.mxu0 %vm135_vm1, %v80_v7  ;;  %v98_v43 = vld [vmem:[%s3557_s1 + $0xa8] sm:$0xff]  ;;  %v99_v45 = vld [vmem:[%s3557_s1 + $0xb0] sm:$0xff]  ;;  %v100_v47 = vld [vmem:[%s3557_s1 + $0xb8] sm:$0xff] }
  0x10   :  { %1512 = vmatprep.mubr.msk.f32.mxu0 %vm1678_vm2, %v1677_v0  ;;  %v126_v44 = vld [vmem:[%s3557_s1 + $0x188] sm:$0xff]  ;;  %v127_v46 = vld [vmem:[%s3557_s1 + $0x190] sm:$0xff]  ;;  %v128_v48 = vld [vmem:[%s3557_s1 + $0x198] sm:$0xff] }
  0x11   :  { %1597 = vmatmul.mubr.msk.f32.gmra.mxu1 %vm135_vm1, %v109_v10  ;;  %v101_v49 = vld [vmem:[%s3557_s1 + $0xc0] sm:$0xff]  ;;  %v102_v51 = vld [vmem:[%s3557_s1 + $0xc8] sm:$0xff]  ;;  %v103_v53 = vld [vmem:[%s3557_s1 + $0xd0] sm:$0xff] }
  0x12   :  { %1599 = vmatprep.mubr.msk.f32.mxu1 %vm1678_vm2, %v1677_v0  ;;  %v129_v50 = vld [vmem:[%s3557_s1 + $0x1a0] sm:$0xff]  ;;  %v130_v52 = vld [vmem:[%s3557_s1 + $0x1a8] sm:$0xff]  ;;  %v131_v54 = vld [vmem:[%s3557_s1 + $0x1b0] sm:$0xff] }
  0x13   :  { %1513 = vmatmul.mubr.msk.f32.gmra.mxu0 %vm135_vm1, %v81_v9  ;;  %v104_v55 = vld [vmem:[%s3557_s1 + $0xd8] sm:$0xff]  ;;  %v105_v57 = vld [vmem:[%s3557_s1 + $0xe0] sm:$0xff] }
  0x14   :  { %1515 = vmatprep.mubr.msk.f32.mxu0 %vm1678_vm2, %v1677_v0  ;;  %v132_v56 = vld [vmem:[%s3557_s1 + $0x1b8] sm:$0xff]  ;;  %v133_v58 = vld [vmem:[%s3557_s1 + $0x1c0] sm:$0x3] }
  0x15   :  { %1600 = vmatmul.mubr.msk.f32.gmra.mxu1 %vm135_vm1, %v110_v12 }
  0x16   :  { %1602 = vmatprep.mubr.msk.f32.mxu1 %vm1678_vm2, %v1677_v0 }
  0x17   :  { %1516 = vmatmul.mubr.msk.f32.gmra.mxu0 %vm135_vm1, %v82_v11 }
  0x18   :  { %1518 = vmatprep.mubr.msk.f32.mxu0 %vm1678_vm2, %v1677_v0 }
  0x19   :  { %1603 = vmatmul.mubr.msk.f32.gmra.mxu1 %vm135_vm1, %v111_v14 }
  0x1a   :  { %1605 = vmatprep.mubr.msk.f32.mxu1 %vm1678_vm2, %v1677_v0 }
  0x1b   :  { %1519 = vmatmul.mubr.msk.f32.gmra.mxu0 %vm135_vm1, %v83_v13 }
  0x1c   :  { %1521 = vmatprep.mubr.msk.f32.mxu0 %vm1678_vm2, %v1677_v0 }
  0x1d   :  { %1606 = vmatmul.mubr.msk.f32.gmra.mxu1 %vm135_vm1, %v112_v16 }
  0x1e   :  { %1608 = vmatprep.mubr.msk.f32.mxu1 %vm1678_vm2, %v1677_v0 }
  0x1f   :  { %1522 = vmatmul.mubr.msk.f32.gmra.mxu0 %vm135_vm1, %v84_v15 }
  0x20   :  { %1524 = vmatprep.mubr.msk.f32.mxu0 %vm1678_vm2, %v1677_v0 }
  0x21   :  { %1609 = vmatmul.mubr.msk.f32.gmra.mxu1 %vm135_vm1, %v113_v18 }
  0x22   :  { %1611 = vmatprep.mubr.msk.f32.mxu1 %vm1678_vm2, %v1677_v0 }
  0x23   :  { %1525 = vmatmul.mubr.msk.f32.gmra.mxu0 %vm135_vm1, %v85_v17 }
  0x24   :  { %1527 = vmatprep.mubr.msk.f32.mxu0 %vm1678_vm2, %v1677_v0 }
  0x25   :  { %1612 = vmatmul.mubr.msk.f32.gmra.mxu1 %vm135_vm1, %v114_v20 }
  0x26   :  { %1614 = vmatprep.mubr.msk.f32.mxu1 %vm1678_vm2, %v1677_v0 }
  0x27   :  { %1528 = vmatmul.mubr.msk.f32.gmra.mxu0 %vm135_vm1, %v86_v19 }
  0x28   :  { %1530 = vmatprep.mubr.msk.f32.mxu0 %vm1678_vm2, %v1677_v0 }
  0x29   :  { %1615 = vmatmul.mubr.msk.f32.gmra.mxu1 %vm135_vm1, %v115_v22 }
  0x2a   :  { %1617 = vmatprep.mubr.msk.f32.mxu1 %vm1678_vm2, %v1677_v0 }
  0x2b   :  { %1531 = vmatmul.mubr.msk.f32.gmra.mxu0 %vm135_vm1, %v87_v21 }
  0x2c   :  { %1533 = vmatprep.mubr.msk.f32.mxu0 %vm1678_vm2, %v1677_v0 }
  0x2d   :  { %1618 = vmatmul.mubr.msk.f32.gmra.mxu1 %vm135_vm1, %v116_v24 }
  0x2e   :  { %1620 = vmatprep.mubr.msk.f32.mxu1 %vm1678_vm2, %v1677_v0 }
  0x2f   :  { %1534 = vmatmul.mubr.msk.f32.gmra.mxu0 %vm135_vm1, %v88_v23 }
  0x30   :  { %1536 = vmatprep.mubr.msk.f32.mxu0 %vm1678_vm2, %v1677_v0 }
  0x31   :  { %1621 = vmatmul.mubr.msk.f32.gmra.mxu1 %vm135_vm1, %v117_v26 }
  0x32   :  { %1623 = vmatprep.mubr.msk.f32.mxu1 %vm1678_vm2, %v1677_v0 }
  0x33   :  { %1537 = vmatmul.mubr.msk.f32.gmra.mxu0 %vm135_vm1, %v89_v25 }
  0x34   :  { %1539 = vmatprep.mubr.msk.f32.mxu0 %vm1678_vm2, %v1677_v0 }
  0x35   :  { %1624 = vmatmul.mubr.msk.f32.gmra.mxu1 %vm135_vm1, %v118_v28 }
  0x36   :  { %1626 = vmatprep.mubr.msk.f32.mxu1 %vm1678_vm2, %v1677_v0 }
  0x37   :  { %1540 = vmatmul.mubr.msk.f32.gmra.mxu0 %vm135_vm1, %v90_v27 }
  0x38   :  { %1542 = vmatprep.mubr.msk.f32.mxu0 %vm1678_vm2, %v1677_v0 }
  0x39   :  { %1627 = vmatmul.mubr.msk.f32.gmra.mxu1 %vm135_vm1, %v119_v30 }
  0x3a   :  { %1629 = vmatprep.mubr.msk.f32.mxu1 %vm1678_vm2, %v1677_v0 }
  0x3b   :  { %1543 = vmatmul.mubr.msk.f32.gmra.mxu0 %vm135_vm1, %v91_v29 }
  0x3c   :  { %1545 = vmatprep.mubr.msk.f32.mxu0 %vm1678_vm2, %v1677_v0 }
  0x3d   :  { %1630 = vmatmul.mubr.msk.f32.gmra.mxu1 %vm135_vm1, %v120_v32 }
  0x3e   :  { %1632 = vmatprep.mubr.msk.f32.mxu1 %vm1678_vm2, %v1677_v0 }
  0x3f   :  { %1546 = vmatmul.mubr.msk.f32.gmra.mxu0 %vm135_vm1, %v92_v31 }
  0x40   :  { %1548 = vmatprep.mubr.msk.f32.mxu0 %vm1678_vm2, %v1677_v0 }
  0x41   :  { %1633 = vmatmul.mubr.msk.f32.gmra.mxu1 %vm135_vm1, %v121_v34 }
  0x42   :  { %1635 = vmatprep.mubr.msk.f32.mxu1 %vm1678_vm2, %v1677_v0 }
  0x43   :  { %1549 = vmatmul.mubr.msk.f32.gmra.mxu0 %vm135_vm1, %v93_v33 }
  0x44   :  { %1551 = vmatprep.mubr.msk.f32.mxu0 %vm1678_vm2, %v1677_v0 }
  0x45   :  { %1636 = vmatmul.mubr.msk.f32.gmra.mxu1 %vm135_vm1, %v122_v36 }
  0x46   :  { %1638 = vmatprep.mubr.msk.f32.mxu1 %vm1678_vm2, %v1677_v0 }
  0x47   :  { %1552 = vmatmul.mubr.msk.f32.gmra.mxu0 %vm135_vm1, %v94_v35 }
  0x48   :  { %1554 = vmatprep.mubr.msk.f32.mxu0 %vm1678_vm2, %v1677_v0 }
  0x49   :  { %1639 = vmatmul.mubr.msk.f32.gmra.mxu1 %vm135_vm1, %v123_v38 }
  0x4a   :  { %1641 = vmatprep.mubr.msk.f32.mxu1 %vm1678_vm2, %v1677_v0 }
  0x4b   :  { %1555 = vmatmul.mubr.msk.f32.gmra.mxu0 %vm135_vm1, %v95_v37 }
  0x4c   :  { %1557 = vmatprep.mubr.msk.f32.mxu0 %vm1678_vm2, %v1677_v0 }
  0x4d   :  { %1642 = vmatmul.mubr.msk.f32.gmra.mxu1 %vm135_vm1, %v124_v40 }
  0x4e   :  { %1644 = vmatprep.mubr.msk.f32.mxu1 %vm1678_vm2, %v1677_v0 }
  0x4f   :  { %1558 = vmatmul.mubr.msk.f32.gmra.mxu0 %vm135_vm1, %v96_v39 }
  0x50   :  { %1560 = vmatprep.mubr.msk.f32.mxu0 %vm1678_vm2, %v1677_v0 }
  0x51   :  { %1645 = vmatmul.mubr.msk.f32.gmra.mxu1 %vm135_vm1, %v125_v42 }
  0x52   :  { %1647 = vmatprep.mubr.msk.f32.mxu1 %vm1678_vm2, %v1677_v0 }
  0x53   :  { %1561 = vmatmul.mubr.msk.f32.gmra.mxu0 %vm135_vm1, %v97_v41 }
  0x54   :  { %1563 = vmatprep.mubr.msk.f32.mxu0 %vm1678_vm2, %v1677_v0 }
  0x55   :  { %1648 = vmatmul.mubr.msk.f32.gmra.mxu1 %vm135_vm1, %v126_v44 }
  0x56   :  { %1650 = vmatprep.mubr.msk.f32.mxu1 %vm1678_vm2, %v1677_v0 }
  0x57   :  { %1564 = vmatmul.mubr.msk.f32.gmra.mxu0 %vm135_vm1, %v98_v43 }
  0x58   :  { %1566 = vmatprep.mubr.msk.f32.mxu0 %vm1678_vm2, %v1677_v0 }
  0x59   :  { %1651 = vmatmul.mubr.msk.f32.gmra.mxu1 %vm135_vm1, %v127_v46 }
  0x5a   :  { %1653 = vmatprep.mubr.msk.f32.mxu1 %vm1678_vm2, %v1677_v0 }
  0x5b   :  { %1567 = vmatmul.mubr.msk.f32.gmra.mxu0 %vm135_vm1, %v99_v45  ;;  %v21_v45 = vld [vmem:[%s3558_s0 + $0x8] sm:$0xff] }
  0x5c   :  { %1569 = vmatprep.mubr.msk.f32.mxu0 %vm1678_vm2, %v1677_v0 }
  0x5d   :  { %1654 = vmatmul.mubr.msk.f32.gmra.mxu1 %vm135_vm1, %v128_v48  ;;  %v20_v48 = vld [vmem:[%s3558_s0] sm:$0xff] }
  0x5e   :  { %1656 = vmatprep.mubr.msk.f32.mxu1 %vm1678_vm2, %v1677_v0 }
  0x5f   :  { %1570 = vmatmul.mubr.msk.f32.gmra.mxu0 %vm135_vm1, %v100_v47 }
  0x60   :  { %1572 = vmatprep.mubr.msk.f32.mxu0 %vm1678_vm2, %v1677_v0 }
  0x61   :  { %1657 = vmatmul.mubr.msk.f32.gmra.mxu1 %vm135_vm1, %v129_v50 }
  0x62   :  { %1659 = vmatprep.mubr.msk.f32.mxu1 %vm1678_vm2, %v1677_v0 }
  0x63   :  { %1573 = vmatmul.mubr.msk.f32.gmra.mxu0 %vm135_vm1, %v101_v49  ;;  %v22_v49 = vld [vmem:[%s3558_s0 + $0x10] sm:$0xff] }
  0x64   :  { %1575 = vmatprep.mubr.msk.f32.mxu0 %vm1678_vm2, %v1677_v0 }
  0x65   :  { %1660 = vmatmul.mubr.msk.f32.gmra.mxu1 %vm135_vm1, %v130_v52 }
  0x66   :  { %1662 = vmatprep.mubr.msk.f32.mxu1 %vm1678_vm2, %v1677_v0 }
  0x67   :  { %1576 = vmatmul.mubr.msk.f32.gmra.mxu0 %vm135_vm1, %v102_v51 }
  0x68   :  { %1578 = vmatprep.mubr.msk.f32.mxu0 %vm1678_vm2, %v1677_v0 }
  0x69   :  { %1663 = vmatmul.mubr.msk.f32.gmra.mxu1 %vm135_vm1, %v131_v54 }
  0x6a   :  { %1665 = vmatprep.mubr.msk.f32.mxu1 %vm1678_vm2, %v1677_v0 }
  0x6b   :  { %1579 = vmatmul.mubr.msk.f32.gmra.mxu0 %vm135_vm1, %v103_v53  ;;  %v23_v53 = vld [vmem:[%s3558_s0 + $0x18] sm:$0xff] }
  0x6c   :  { %1581 = vmatprep.mubr.msk.f32.mxu0 %vm1678_vm2, %v1677_v0 }
  0x6d   :  { %1666 = vmatmul.mubr.msk.f32.gmra.mxu1 %vm135_vm1, %v132_v56 }
  0x6e   :  { %1668 = vmatprep.mubr.msk.f32.mxu1 %vm1678_vm2, %v1677_v0 }
  0x6f   :  { %1582 = vmatmul.mubr.msk.f32.gmra.mxu0 %vm135_vm1, %v104_v55 }
  0x70   :  { %1584 = vmatprep.mubr.msk.f32.mxu0 %vm1678_vm2, %v1677_v0 }
  0x71   :  { %1669 = vmatmul.mubr.msk.f32.gmra.mxu1 %vm135_vm1, %v133_v58  ;;  %v24_v58 = vld [vmem:[%s3558_s0 + $0x20] sm:$0xff] }
  0x73   :  { %1585 = vmatmul.mubr.msk.f32.gmra.mxu0 %vm135_vm1, %v105_v57 }
  0xc3   :  { %v377_v59 = vpop.f32.mrf.mxu0 }
  0xc4   :  { %v2118_v56 = vadd.f32 %v377_v59, %v20_v48 }
  0xc5   :  { %v1502_v60 = vpop.f32.mrf.mxu0  ;;  %v2056_v62 = vpop.f32.mrf.mxu1 }
  0xc7   :  { %v382_v61 = vpop.f32.mrf.mxu0  ;;  %v1589_v1 = vpop.f32.mrf.mxu1 }
  0xc8   :  { %v2109_v52 = vadd.f32 %v382_v61, %v21_v45 }
  0xc9   :  { %v1505_v63 = vpop.f32.mrf.mxu0  ;;  %v2058_v3 = vpop.f32.mrf.mxu1 }
  0xca   :  { %v720_v63 = vsel %vm718_vm3, %v2109_v52, 0.0 }
  0xcb   :  { %v387_v2 = vpop.f32.mrf.mxu0  ;;  %v1592_v0 = vpop.f32.mrf.mxu1 }
  0xcc   :  { %v2120_v57 = vadd.f32 %v387_v2, %v22_v49  ;;  %v719_v0 = vsel %vm718_vm3, %v2118_v56, 0.0 }
  0xcd   :  { %v1508_v4 = vpop.f32.mrf.mxu0  ;;  %v2060_v6 = vpop.f32.mrf.mxu1 }
  0xce   :  { %v25_v4 = vld [vmem:[%s3558_s0 + $0x28] sm:$0xff] }
  0xcf   :  { %v392_v5 = vpop.f32.mrf.mxu0  ;;  %v1595_v8 = vpop.f32.mrf.mxu1 }
  0xd0   :  { %v2127_v1 = vadd.f32 %v392_v5, %v23_v53  ;;  %v26_v5 = vld [vmem:[%s3558_s0 + $0x30] sm:$0xff] }
  0xd1   :  { %v1511_v7 = vpop.f32.mrf.mxu0  ;;  %v2062_v10 = vpop.f32.mrf.mxu1 }
  0xd2   :  { %v722_v7 = vsel %vm718_vm3, %v2120_v57, 0.0 }
  0xd3   :  { %v397_v9 = vpop.f32.mrf.mxu0  ;;  %v1598_v12 = vpop.f32.mrf.mxu1 }
  0xd4   :  { %v2140_v8 = vadd.f32 %v397_v9, %v24_v58 }
  0xd5   :  { %v1514_v11 = vpop.f32.mrf.mxu0  ;;  %v2066_v14 = vpop.f32.mrf.mxu1 }
  0xd6   :  { %v721_v11 = vadd.f32 %v720_v63, %v719_v0 }
  0xd7   :  { %v2064_v13 = vpop.f32.mrf.mxu0  ;;  %v1601_v16 = vpop.f32.mrf.mxu1 }
  0xd8   :  { %v724_v16 = vsel %vm718_vm3, %v2127_v1, 0.0 }
  0xd9   :  { %v1517_v15 = vpop.f32.mrf.mxu0  ;;  %v2070_v18 = vpop.f32.mrf.mxu1 }
  0xdb   :  { %v2068_v17 = vpop.f32.mrf.mxu0  ;;  %v1604_v20 = vpop.f32.mrf.mxu1 }
  0xdc   :  { %v723_v20 = vadd.f32 %v722_v7, %v721_v11 }
  0xdd   :  { %v1520_v19 = vpop.f32.mrf.mxu0  ;;  %v2074_v22 = vpop.f32.mrf.mxu1 }
  0xde   :  { %v2148_v19 = vadd.f32 %v2064_v13, %v25_v4  ;;  %v28_v13 = vld [vmem:[%s3558_s0 + $0x40] sm:$0xff] }
  0xdf   :  { %v2072_v21 = vpop.f32.mrf.mxu0  ;;  %v1607_v24 = vpop.f32.mrf.mxu1 }
  0xe1   :  { %v1523_v23 = vpop.f32.mrf.mxu0  ;;  %v2078_v26 = vpop.f32.mrf.mxu1 }
  0xe2   :  { %v27_v23 = vld [vmem:[%s3558_s0 + $0x38] sm:$0xff] }
  0xe3   :  { %v2076_v25 = vpop.f32.mrf.mxu0  ;;  %v1610_v28 = vpop.f32.mrf.mxu1 }
  0xe4   :  { %v2160_v28 = vadd.f32 %v2068_v17, %v26_v5  ;;  %v2178_v48 = vadd.f32 %v2076_v25, %v28_v13 }
  0xe5   :  { %v1526_v27 = vpop.f32.mrf.mxu0  ;;  %v2082_v30 = vpop.f32.mrf.mxu1 }
  0xe6   :  { %v726_v27 = vsel %vm718_vm3, %v2140_v8, 0.0  ;;  %v730_v45 = vsel %vm718_vm3, %v2160_v28, 0.0  ;;  %v734_v4 = vsel %vm718_vm3, %v2178_v48, 0.0 }
  0xe7   :  { %v2080_v29 = vpop.f32.mrf.mxu0  ;;  %v1613_v32 = vpop.f32.mrf.mxu1 }
  0xe9   :  { %v1529_v31 = vpop.f32.mrf.mxu0  ;;  %v2086_v34 = vpop.f32.mrf.mxu1 }
  0xea   :  { %v725_v31 = vadd.f32 %v724_v16, %v723_v20  ;;  %v33_v20 = vld [vmem:[%s3558_s0 + $0x68] sm:$0xff] }
  0xeb   :  { %v2084_v33 = vpop.f32.mrf.mxu0  ;;  %v1616_v36 = vpop.f32.mrf.mxu1 }
  0xec   :  { %v728_v36 = vsel %vm718_vm3, %v2148_v19, 0.0 }
  0xed   :  { %v1532_v35 = vpop.f32.mrf.mxu0  ;;  %v2090_v38 = vpop.f32.mrf.mxu1 }
  0xef   :  { %v2088_v37 = vpop.f32.mrf.mxu0  ;;  %v1619_v40 = vpop.f32.mrf.mxu1 }
  0xf0   :  { %v727_v40 = vadd.f32 %v726_v27, %v725_v31 }
  0xf1   :  { %v1535_v39 = vpop.f32.mrf.mxu0  ;;  %v2094_v42 = vpop.f32.mrf.mxu1 }
  0xf2   :  { %v2168_v39 = vadd.f32 %v2072_v21, %v27_v23  ;;  %v729_v49 = vadd.f32 %v728_v36, %v727_v40  ;;  %v30_v21 = vld [vmem:[%s3558_s0 + $0x50] sm:$0xff] }
  0xf3   :  { %v2092_v41 = vpop.f32.mrf.mxu0  ;;  %v1622_v44 = vpop.f32.mrf.mxu1  ;;  %v2196_v0 = vadd.f32 %v2084_v33, %v30_v21 }
  0xf4   :  { %v732_v53 = vsel %vm718_vm3, %v2168_v39, 0.0 }
  0xf5   :  { %v1538_v43 = vpop.f32.mrf.mxu0  ;;  %v2101_v47 = vpop.f32.mrf.mxu1  ;;  %v738_v27 = vsel %vm718_vm3, %v2196_v0, 0.0 }
  0xf6   :  { %v29_v43 = vld [vmem:[%s3558_s0 + $0x48] sm:$0xff] }
  0xf7   :  { %v2099_v46 = vpop.f32.mrf.mxu0  ;;  %v1625_v51 = vpop.f32.mrf.mxu1  ;;  %v2186_v58 = vadd.f32 %v2080_v29, %v29_v43  ;;  %v32_v29 = vld [vmem:[%s3558_s0 + $0x60] sm:$0xff] }
  0xf8   :  { %v2214_v31 = vadd.f32 %v2092_v41, %v32_v29  ;;  %v2222_v40 = vadd.f32 %v2099_v46, %v33_v20  ;;  %v36_v46 = vld [vmem:[%s3558_s0 + $0x80] sm:$0xff]  ;;  %v37_v29 = vld [vmem:[%s3558_s0 + $0x88] sm:$0xff] }
  0xf9   :  { %v1541_v50 = vpop.f32.mrf.mxu0  ;;  %v2116_v55 = vpop.f32.mrf.mxu1 }
  0xfa   :  { %v742_v21 = vsel %vm718_vm3, %v2214_v31, 0.0 }
  0xfb   :  { %v2114_v54 = vpop.f32.mrf.mxu0  ;;  %v1628_v61 = vpop.f32.mrf.mxu1 }
  0xfc   :  { %v31_v61 = vld [vmem:[%s3558_s0 + $0x58] sm:$0xff] }
  0xfd   :  { %v1544_v60 = vpop.f32.mrf.mxu0  ;;  %v2134_v2 = vpop.f32.mrf.mxu1 }
  0xfe   :  { %v731_v60 = vadd.f32 %v730_v45, %v729_v49  ;;  %v35_v45 = vld [vmem:[%s3558_s0 + $0x78] sm:$0xff] }
  0xff   :  { %v2132_v59 = vpop.f32.mrf.mxu0  ;;  %v1631_v15 = vpop.f32.mrf.mxu1 }
 0x100   :  { %v733_v7 = vadd.f32 %v732_v53, %v731_v60  ;;  %v2204_v15 = vadd.f32 %v2088_v37, %v31_v61  ;;  %v34_v37 = vld [vmem:[%s3558_s0 + $0x70] sm:$0xff]  ;;  %v744_v61 = vsel %vm718_vm3, %v2222_v40, 0.0 }
 0x101   :  { %v1547_v12 = vpop.f32.mrf.mxu0  ;;  %v2155_v24 = vpop.f32.mrf.mxu1 }
 0x102   :  { %v736_v12 = vsel %vm718_vm3, %v2186_v58, 0.0  ;;  %v735_v16 = vadd.f32 %v734_v4, %v733_v7  ;;  %v740_v36 = vsel %vm718_vm3, %v2204_v15, 0.0  ;;  %v2240_v4 = vadd.f32 %v2132_v59, %v35_v45  ;;  %v38_v59 = vld [vmem:[%s3558_s0 + $0x90] sm:$0xff] }
 0x103   :  { %v2153_v9 = vpop.f32.mrf.mxu0  ;;  %v1634_v35 = vpop.f32.mrf.mxu1 }
 0x104   :  { %v737_v13 = vadd.f32 %v736_v12, %v735_v16  ;;  %v2250_v12 = vadd.f32 %v2153_v9, %v36_v46 }
 0x105   :  { %v1550_v32 = vpop.f32.mrf.mxu0  ;;  %v2173_v44 = vpop.f32.mrf.mxu1 }
 0x106   :  { %v739_v43 = vadd.f32 %v738_v27, %v737_v13  ;;  %v748_v13 = vsel %vm718_vm3, %v2240_v4, 0.0 }
 0x107   :  { %v462_v17 = vpop.f32.mrf.mxu0  ;;  %v1637_v51 = vpop.f32.mrf.mxu1 }
 0x108   :  { %v741_v51 = vadd.f32 %v740_v36, %v739_v43  ;;  %v750_v43 = vsel %vm718_vm3, %v2250_v12, 0.0 }
 0x109   :  { %v1553_v50 = vpop.f32.mrf.mxu0  ;;  %v2191_v63 = vpop.f32.mrf.mxu1 }
 0x10a   :  { %v2232_v50 = vadd.f32 %v2114_v54, %v34_v37  ;;  %v743_v7 = vadd.f32 %v742_v21, %v741_v51  ;;  %v2257_v37 = vadd.f32 %v462_v17, %v37_v29  ;;  %v40_v51 = vld [vmem:[%s3558_s0 + $0xa0] sm:$0xff] }
 0x10b   :  { %v467_v25 = vpop.f32.mrf.mxu0  ;;  %v1640_v5 = vpop.f32.mrf.mxu1 }
 0x10c   :  { %v746_v5 = vsel %vm718_vm3, %v2232_v50, 0.0  ;;  %v745_v16 = vadd.f32 %v744_v61, %v743_v7  ;;  %v2266_v45 = vadd.f32 %v467_v25, %v38_v59  ;;  %v41_v7 = vld [vmem:[%s3558_s0 + $0xa8] sm:$0xff] }
 0x10d   :  { %v1556_v11 = vpop.f32.mrf.mxu0  ;;  %v2209_v23 = vpop.f32.mrf.mxu1 }
 0x10f   :  { %v472_v33 = vpop.f32.mrf.mxu0  ;;  %v1643_v35 = vpop.f32.mrf.mxu1 }
 0x110   :  { %v39_v35 = vld [vmem:[%s3558_s0 + $0x98] sm:$0xff] }
 0x111   :  { %v1559_v32 = vpop.f32.mrf.mxu0  ;;  %v2227_v49 = vpop.f32.mrf.mxu1 }
 0x112   :  { %v747_v32 = vadd.f32 %v746_v5, %v745_v16  ;;  %v754_v5 = vsel %vm718_vm3, %v2266_v45, 0.0 }
 0x113   :  { %v477_v41 = vpop.f32.mrf.mxu0  ;;  %v1646_v60 = vpop.f32.mrf.mxu1 }
 0x114   :  { %v749_v21 = vadd.f32 %v748_v13, %v747_v32  ;;  %v2273_v60 = vadd.f32 %v472_v33, %v39_v35  ;;  %v2282_v16 = vadd.f32 %v477_v41, %v40_v51 }
 0x115   :  { %v1562_v53 = vpop.f32.mrf.mxu0  ;;  %v2245_v11 = vpop.f32.mrf.mxu1 }
 0x116   :  { %v752_v53 = vsel %vm718_vm3, %v2257_v37, 0.0  ;;  %v751_v61 = vadd.f32 %v750_v43, %v749_v21  ;;  %3586 = vst [vmem:[#allocation2_spill] sm:$0xff] %v2282_v16  ;;  %v756_v13 = vsel %vm718_vm3, %v2273_v60, 0.0  ;;  %v43_v43 = vld [vmem:[%s3558_s0 + $0xb8] sm:$0xff]  ;;  %v758_v51 = vsel %vm718_vm3, %v2282_v16, 0.0 }
 0x117   :  { %v482_v54 = vpop.f32.mrf.mxu0  ;;  %v1649_v27 = vpop.f32.mrf.mxu1 }
 0x118   :  { %v753_v59 = vadd.f32 %v752_v53, %v751_v61  ;;  %v2289_v32 = vadd.f32 %v482_v54, %v41_v7  ;;  %v44_v53 = vld [vmem:[%s3558_s0 + $0xc0] sm:$0xff] }
 0x119   :  { %v1565_v20 = vpop.f32.mrf.mxu0  ;;  %v2262_v9 = vpop.f32.mrf.mxu1 }
 0x11a   :  { %v42_v20 = vld [vmem:[%s3558_s0 + $0xb0] sm:$0xff]  ;;  %3587 = vst [vmem:[#allocation3_spill] sm:$0xff] %v2289_v32  ;;  %v755_v35 = vadd.f32 %v754_v5, %v753_v59  ;;  %v760_v7 = vsel %vm718_vm3, %v2289_v32, 0.0 }
 0x11b   :  { %v487_v36 = vpop.f32.mrf.mxu0  ;;  %v1652_v46 = vpop.f32.mrf.mxu1 }
 0x11c   :  { %v757_v46 = vadd.f32 %v756_v13, %v755_v35 }
 0x11d   :  { %v1568_v17 = vpop.f32.mrf.mxu0  ;;  %v2278_v25 = vpop.f32.mrf.mxu1 }
 0x11e   :  { %v2298_v17 = vadd.f32 %v487_v36, %v42_v20  ;;  %v759_v59 = vadd.f32 %v758_v51, %v757_v46 }
 0x11f   :  { %v492_v29 = vpop.f32.mrf.mxu0  ;;  %v1655_v27 = vpop.f32.mrf.mxu1 }
 0x120   :  { %v2305_v5 = vadd.f32 %v492_v29, %v43_v43  ;;  %v762_v20 = vsel %vm718_vm3, %v2298_v17, 0.0  ;;  %v761_v35 = vadd.f32 %v760_v7, %v759_v59  ;;  %v46_v29 = vld [vmem:[%s3558_s0 + $0xd0] sm:$0xff] }
 0x121   :  { %v1571_v33 = vpop.f32.mrf.mxu0  ;;  %v2294_v41 = vpop.f32.mrf.mxu1 }
 0x122   :  { %3588 = vst [vmem:[#allocation4_spill] sm:$0xff] %v2305_v5  ;;  %v45_v33 = vld [vmem:[%s3558_s0 + $0xc8] sm:$0xff]  ;;  %v764_v51 = vsel %vm718_vm3, %v2305_v5, 0.0 }
 0x123   :  { %v497_v21 = vpop.f32.mrf.mxu0  ;;  %v1658_v61 = vpop.f32.mrf.mxu1 }
 0x124   :  { %v2314_v13 = vadd.f32 %v497_v21, %v44_v53  ;;  %v763_v61 = vadd.f32 %v762_v20, %v761_v35 }
 0x125   :  { %v1574_v54 = vpop.f32.mrf.mxu0  ;;  %v2310_v36 = vpop.f32.mrf.mxu1 }
 0x126   :  { %3589 = vst [vmem:[#allocation5_spill] sm:$0xff] %v2314_v13  ;;  %v766_v21 = vsel %vm718_vm3, %v2314_v13, 0.0  ;;  %v765_v7 = vadd.f32 %v764_v51, %v763_v61  ;;  %v48_v61 = vld [vmem:[%s3558_s0 + $0xe0] sm:$0xff] }
 0x127   :  { %v502_v27 = vpop.f32.mrf.mxu0  ;;  %v1661_v43 = vpop.f32.mrf.mxu1 }
 0x128   :  { %v2321_v46 = vadd.f32 %v502_v27, %v45_v33  ;;  %v767_v27 = vadd.f32 %v766_v21, %v765_v7  ;;  %v50_v7 = vld [vmem:[%s3558_s0 + $0xf0] sm:$0xff] }
 0x129   :  { %v1577_v54 = vpop.f32.mrf.mxu0  ;;  %v2323_v16 = vpop.f32.mrf.mxu1 }
 0x12a   :  { %3590 = vst [vmem:[#allocation6_spill] sm:$0xff] %v2321_v46  ;;  %v47_v54 = vld [vmem:[%s3558_s0 + $0xd8] sm:$0xff]  ;;  %v768_v33 = vsel %vm718_vm3, %v2321_v46, 0.0  ;;  %v2362_v46 = vadd.f32 %v2058_v3, %v50_v7 }
 0x12b   :  { %v507_v32 = vpop.f32.mrf.mxu0  ;;  %v1664_v43 = vpop.f32.mrf.mxu1 }
 0x12c   :  { %v2327_v53 = vadd.f32 %v507_v32, %v46_v29  ;;  %v49_v32 = vld [vmem:[%s3558_s0 + $0xe8] sm:$0xff]  ;;  %v769_v29 = vadd.f32 %v768_v33, %v767_v27  ;;  %v51_v27 = vld [vmem:[%s3558_s0 + $0xf8] sm:$0xff] }
 0x12d   :  { %v1580_v59 = vpop.f32.mrf.mxu0  ;;  %v2334_v35 = vpop.f32.mrf.mxu1 }
 0x12e   :  { %3591 = vst [vmem:[#allocation7_spill] sm:$0xff] %v2327_v53  ;;  %v770_v5 = vsel %vm718_vm3, %v2327_v53, 0.0  ;;  %v2354_v53 = vadd.f32 %v2056_v62, %v49_v32  ;;  %v52_v62 = vld [vmem:[%s3558_s0 + $0x100] sm:$0xff] }
 0x12f   :  { %v512_v20 = vpop.f32.mrf.mxu0  ;;  %v1667_v59 = vpop.f32.mrf.mxu1  ;;  %v2380_v7 = vadd.f32 %v2062_v10, %v52_v62  ;;  %v56_v62 = vld [vmem:[%s3558_s0 + $0x120] sm:$0xff] }
 0x130   :  { %v2338_v13 = vadd.f32 %v512_v20, %v47_v54  ;;  %v771_v54 = vadd.f32 %v770_v5, %v769_v29  ;;  %v776_v29 = vsel %vm718_vm3, %v2354_v53, 0.0 }
 0x131   :  { %v1583_v51 = vpop.f32.mrf.mxu0  ;;  %v2351_v20 = vpop.f32.mrf.mxu1  ;;  %v782_v10 = vsel %vm718_vm3, %v2380_v7, 0.0 }
 0x132   :  { %3592 = vst [vmem:[#allocation8_spill] sm:$0xff] %v2338_v13  ;;  %v772_v21 = vsel %vm718_vm3, %v2338_v13, 0.0 }
 0x133   :  { %v517_v43 = vpop.f32.mrf.mxu0  ;;  %v773_v51 = vadd.f32 %v772_v21, %v771_v54  ;;  %v1670_v13 = vpop.f32.mrf.mxu1  ;;  %v778_v21 = vsel %vm718_vm3, %v2362_v46, 0.0  ;;  %v54_v54 = vld [vmem:[%s3558_s0 + $0x110] sm:$0xff] }
 0x134   :  { %v2356_v33 = vadd.f32 %v517_v43, %v48_v61  ;;  %v2372_v61 = vadd.f32 %v2060_v6, %v51_v27  ;;  %v53_v13 = vld [vmem:[%s3558_s0 + $0x108] sm:$0xff] }
 0x135   :  { %v1586_v59 = vpop.f32.mrf.mxu0  ;;  %v2388_v27 = vadd.f32 %v2066_v14, %v53_v13  ;;  %v57_v13 = vld [vmem:[%s3558_s0 + $0x128] sm:$0xff] }
 0x136   :  { %v774_v5 = vsel %vm718_vm3, %v2356_v33, 0.0  ;;  %v780_v6 = vsel %vm718_vm3, %v2372_v61, 0.0 }
 0x137   :  { %v775_v32 = vadd.f32 %v774_v5, %v773_v51  ;;  %v55_v51 = vld [vmem:[%s3558_s0 + $0x118] sm:$0xff]  ;;  %v2396_v5 = vadd.f32 %v2070_v18, %v54_v54  ;;  %v784_v14 = vsel %vm718_vm3, %v2388_v27, 0.0  ;;  %v58_v54 = vld [vmem:[%s3558_s0 + $0x130] sm:$0xff] }
 0x139   :  { %v777_v3 = vadd.f32 %v776_v29, %v775_v32  ;;  %v2404_v29 = vadd.f32 %v2074_v22, %v55_v51  ;;  %v786_v18 = vsel %vm718_vm3, %v2396_v5, 0.0  ;;  %v59_v51 = vld [vmem:[%s3558_s0 + $0x138] sm:$0xff] }
 0x13b   :  { %v779_v43 = vadd.f32 %v778_v21, %v777_v3  ;;  %v2412_v21 = vadd.f32 %v2078_v26, %v56_v62  ;;  %v788_v22 = vsel %vm718_vm3, %v2404_v29, 0.0  ;;  %v60_v62 = vld [vmem:[%s3558_s0 + $0x140] sm:$0xff] }
 0x13d   :  { %v781_v59 = vadd.f32 %v780_v6, %v779_v43  ;;  %v2420_v6 = vadd.f32 %v2082_v30, %v57_v13  ;;  %v790_v26 = vsel %vm718_vm3, %v2412_v21, 0.0  ;;  %v61_v13 = vld [vmem:[%s3558_s0 + $0x148] sm:$0xff] }
 0x13f   :  { %v783_v32 = vadd.f32 %v782_v10, %v781_v59  ;;  %v2428_v10 = vadd.f32 %v2086_v34, %v58_v54  ;;  %v792_v30 = vsel %vm718_vm3, %v2420_v6, 0.0  ;;  %v62_v54 = vld [vmem:[%s3558_s0 + $0x150] sm:$0xff] }
 0x141   :  { %v785_v3 = vadd.f32 %v784_v14, %v783_v32  ;;  %v2436_v14 = vadd.f32 %v2090_v38, %v59_v51  ;;  %v794_v34 = vsel %vm718_vm3, %v2428_v10, 0.0  ;;  %v63_v51 = vld [vmem:[%s3558_s0 + $0x158] sm:$0xff] }
 0x143   :  { %v787_v43 = vadd.f32 %v786_v18, %v785_v3  ;;  %v2444_v18 = vadd.f32 %v2094_v42, %v60_v62  ;;  %v796_v38 = vsel %vm718_vm3, %v2436_v14, 0.0 }
 0x145   :  { %v789_v59 = vadd.f32 %v788_v22, %v787_v43  ;;  %v2452_v22 = vadd.f32 %v2101_v47, %v61_v13  ;;  %v798_v42 = vsel %vm718_vm3, %v2444_v18, 0.0 }
 0x147   :  { %v791_v32 = vadd.f32 %v790_v26, %v789_v59  ;;  %v2460_v26 = vadd.f32 %v2116_v55, %v62_v54  ;;  %v800_v47 = vsel %vm718_vm3, %v2452_v22, 0.0 }
 0x149   :  { %v793_v3 = vadd.f32 %v792_v30, %v791_v32  ;;  %v64_v32 = vld [vmem:[%s3558_s0 + $0x160] sm:$0xff]  ;;  %v2468_v30 = vadd.f32 %v2134_v2, %v63_v51  ;;  %v802_v55 = vsel %vm718_vm3, %v2460_v26, 0.0 }
 0x14b   :  { %v795_v43 = vadd.f32 %v794_v34, %v793_v3  ;;  %v65_v3 = vld [vmem:[%s3558_s0 + $0x168] sm:$0xff]  ;;  %v2476_v34 = vadd.f32 %v2155_v24, %v64_v32  ;;  %v804_v2 = vsel %vm718_vm3, %v2468_v30, 0.0  ;;  %v68_v32 = vld [vmem:[%s3558_s0 + $0x180] sm:$0xff] }
 0x14d   :  { %v797_v59 = vadd.f32 %v796_v38, %v795_v43  ;;  %v66_v43 = vld [vmem:[%s3558_s0 + $0x170] sm:$0xff]  ;;  %v2484_v38 = vadd.f32 %v2173_v44, %v65_v3  ;;  %v806_v24 = vsel %vm718_vm3, %v2476_v34, 0.0  ;;  %v69_v3 = vld [vmem:[%s3558_s0 + $0x188] sm:$0xff] }
 0x14f   :  { %v799_v62 = vadd.f32 %v798_v42, %v797_v59  ;;  %v67_v59 = vld [vmem:[%s3558_s0 + $0x178] sm:$0xff]  ;;  %v2492_v42 = vadd.f32 %v2191_v63, %v66_v43  ;;  %v808_v44 = vsel %vm718_vm3, %v2484_v38, 0.0  ;;  %v70_v43 = vld [vmem:[%s3558_s0 + $0x190] sm:$0xff] }
 0x151   :  { %v801_v13 = vadd.f32 %v800_v47, %v799_v62  ;;  %v2500_v47 = vadd.f32 %v2209_v23, %v67_v59  ;;  %v810_v63 = vsel %vm718_vm3, %v2492_v42, 0.0  ;;  %v71_v59 = vld [vmem:[%s3558_s0 + $0x198] sm:$0xff] }
 0x153   :  { %v803_v54 = vadd.f32 %v802_v55, %v801_v13  ;;  %v2508_v55 = vadd.f32 %v2227_v49, %v68_v32  ;;  %v812_v23 = vsel %vm718_vm3, %v2500_v47, 0.0  ;;  %v72_v32 = vld [vmem:[%s3558_s0 + $0x1a0] sm:$0xff] }
 0x155   :  { %v805_v51 = vadd.f32 %v804_v2, %v803_v54  ;;  %v2516_v2 = vadd.f32 %v2245_v11, %v69_v3  ;;  %v814_v49 = vsel %vm718_vm3, %v2508_v55, 0.0  ;;  %v73_v3 = vld [vmem:[%s3558_s0 + $0x1a8] sm:$0xff] }
 0x157   :  { %v807_v62 = vadd.f32 %v806_v24, %v805_v51  ;;  %v2524_v24 = vadd.f32 %v2262_v9, %v70_v43  ;;  %v816_v11 = vsel %vm718_vm3, %v2516_v2, 0.0  ;;  %v74_v43 = vld [vmem:[%s3558_s0 + $0x1b0] sm:$0xff] }
 0x159   :  { %v809_v13 = vadd.f32 %v808_v44, %v807_v62  ;;  %v2532_v44 = vadd.f32 %v2278_v25, %v71_v59  ;;  %v818_v9 = vsel %vm718_vm3, %v2524_v24, 0.0 }
 0x15b   :  { %v811_v54 = vadd.f32 %v810_v63, %v809_v13  ;;  %v2540_v63 = vadd.f32 %v2294_v41, %v72_v32  ;;  %v820_v25 = vsel %vm718_vm3, %v2532_v44, 0.0 }
 0x15d   :  { %v813_v51 = vadd.f32 %v812_v23, %v811_v54  ;;  %v2548_v23 = vadd.f32 %v2310_v36, %v73_v3  ;;  %v822_v59 = vsel %vm718_vm3, %v2540_v63, 0.0  ;;  %v76_v36 = vld [vmem:[%s3558_s0 + $0x1c0] sm:$0x3] }
 0x15f   :  { %v815_v62 = vadd.f32 %v814_v49, %v813_v51  ;;  %3593 = vst [vmem:[#allocation9_spill] sm:$0xff] %v2548_v23  ;;  %v2553_v49 = vadd.f32 %v2323_v16, %v74_v43  ;;  %v824_v32 = vsel %vm718_vm3, %v2548_v23, 0.0 }
 0x161   :  { %v817_v13 = vadd.f32 %v816_v11, %v815_v62  ;;  %3594 = vst [vmem:[#allocation10_spill] sm:$0xff] %v2553_v49  ;;  %v75_v62 = vld [vmem:[%s3558_s0 + $0x1b8] sm:$0xff] }
 0x162   :  { %v2566_v3 = vadd.f32 %v2334_v35, %v75_v62 }
 0x163   :  { %v819_v54 = vadd.f32 %v818_v9, %v817_v13  ;;  %v826_v13 = vsel %vm718_vm3, %v2553_v49, 0.0  ;;  %v2569_v9 = vadd.f32 %v2351_v20, %v76_v36 }
 0x165   :  { %v821_v51 = vadd.f32 %v820_v25, %v819_v54  ;;  %v828_v54 = vsel %vm718_vm3, %v2566_v3, 0.0  ;;  %v831_v25 = vsel %vm830_vm4, %v2569_v9, 0.0 }
 0x167   :  { %v823_v41 = vadd.f32 %v822_v59, %v821_v51 }
 0x169   :  { %v825_v11 = vadd.f32 %v824_v32, %v823_v41 }
 0x16b   :  { %v827_v16 = vadd.f32 %v826_v13, %v825_v11 }
 0x16d   :  { %v829_v43 = vadd.f32 %v828_v54, %v827_v16 }
 0x16f   :  { %v832_v51 = vadd.f32 %v831_v25, %v829_v43 }
 0x171   :  { %v833_v59 = vrot.slane %v832_v51, 4 }
 0x173   :  { %v834_v41 = vadd.f32 %v833_v59, %v832_v51 }
 0x175   :  { %v835_v32 = vrot.slane %v834_v41, 2 }
 0x177   :  { %v836_v49 = vadd.f32 %v835_v32, %v834_v41 }
 0x179   :  { %v837_v23 = vrot.slane %v836_v49, 1 }
 0x17b   :  { %v838_v35 = vadd.f32 %v837_v23, %v836_v49 }
 0x17d   :  { %v2575_v62 = vmul.f32 0.0022222223, %v838_v35 }
 0x17f   :  { %v2579_v20 = vsub.f32 %v2118_v56, %v2575_v62  ;;  %v2583_v11 = vsub.f32 %v2109_v52, %v2575_v62  ;;  %v2587_v36 = vsub.f32 %v2120_v57, %v2575_v62  ;;  %v2591_v13 = vsub.f32 %v2127_v1, %v2575_v62 }
 0x180   :  { %v2599_v56 = vsub.f32 %v2140_v8, %v2575_v62  ;;  %v2605_v57 = vsub.f32 %v2148_v19, %v2575_v62  ;;  %v2613_v25 = vsub.f32 %v2160_v28, %v2575_v62  ;;  %v2620_v19 = vsub.f32 %v2168_v39, %v2575_v62 }
 0x181   :  { %v898_v23 = vmul.f32 %v2579_v20, %v2579_v20  ;;  %v899_v49 = vmul.f32 %v2583_v11, %v2583_v11  ;;  %v900_v52 = vmul.f32 %v2587_v36, %v2587_v36  ;;  %v901_v1 = vmul.f32 %v2591_v13, %v2591_v13 }
 0x182   :  { %v902_v8 = vmul.f32 %v2599_v56, %v2599_v56  ;;  %v903_v41 = vmul.f32 %v2605_v57, %v2605_v57  ;;  %v2627_v28 = vsub.f32 %v2178_v48, %v2575_v62  ;;  %v2634_v39 = vsub.f32 %v2186_v58, %v2575_v62 }
 0x183   :  { %v955_v16 = vsel %vm718_vm3, %v898_v23, 0.0  ;;  %v956_v54 = vsel %vm718_vm3, %v899_v49, 0.0  ;;  %v958_v51 = vsel %vm718_vm3, %v900_v52, 0.0  ;;  %v960_v32 = vsel %vm718_vm3, %v901_v1, 0.0 }
 0x184   :  { %v957_v43 = vadd.f32 %v956_v54, %v955_v16  ;;  %v904_v23 = vmul.f32 %v2613_v25, %v2613_v25  ;;  %v962_v49 = vsel %vm718_vm3, %v902_v8, 0.0  ;;  %v905_v16 = vmul.f32 %v2620_v19, %v2620_v19 }
 0x185   :  { %v964_v1 = vsel %vm718_vm3, %v903_v41, 0.0  ;;  %v2641_v48 = vsub.f32 %v2196_v0, %v2575_v62  ;;  %v2648_v58 = vsub.f32 %v2204_v15, %v2575_v62  ;;  %v2655_v0 = vsub.f32 %v2214_v31, %v2575_v62 }
 0x186   :  { %v959_v59 = vadd.f32 %v958_v51, %v957_v43  ;;  %v906_v43 = vmul.f32 %v2627_v28, %v2627_v28  ;;  %v966_v8 = vsel %vm718_vm3, %v904_v23, 0.0  ;;  %v968_v41 = vsel %vm718_vm3, %v905_v16, 0.0 }
 0x187   :  { %v2662_v15 = vsub.f32 %v2222_v40, %v2575_v62  ;;  %v2669_v31 = vsub.f32 %v2232_v50, %v2575_v62  ;;  %v2676_v40 = vsub.f32 %v2240_v4, %v2575_v62  ;;  %v2683_v50 = vsub.f32 %v2250_v12, %v2575_v62 }
 0x188   :  { %v961_v35 = vadd.f32 %v960_v32, %v959_v59  ;;  %v907_v59 = vmul.f32 %v2634_v39, %v2634_v39  ;;  %v970_v23 = vsel %vm718_vm3, %v906_v43, 0.0  ;;  %v2690_v4 = vsub.f32 %v2257_v37, %v2575_v62 }
 0x189   :  { %v2697_v12 = vsub.f32 %v2266_v45, %v2575_v62  ;;  %v2704_v37 = vsub.f32 %v2273_v60, %v2575_v62 }
 0x18a   :  { %v963_v52 = vadd.f32 %v962_v49, %v961_v35  ;;  %v908_v35 = vmul.f32 %v2641_v48, %v2641_v48  ;;  %v972_v16 = vsel %vm718_vm3, %v907_v59, 0.0 }
 0x18c   :  { %v965_v54 = vadd.f32 %v964_v1, %v963_v52  ;;  %v909_v52 = vmul.f32 %v2648_v58, %v2648_v58  ;;  %v974_v43 = vsel %vm718_vm3, %v908_v35, 0.0 }
 0x18e   :  { %v967_v51 = vadd.f32 %v966_v8, %v965_v54  ;;  %v910_v54 = vmul.f32 %v2655_v0, %v2655_v0  ;;  %v976_v59 = vsel %vm718_vm3, %v909_v52, 0.0 }
 0x190   :  { %v969_v32 = vadd.f32 %v968_v41, %v967_v51  ;;  %v911_v51 = vmul.f32 %v2662_v15, %v2662_v15  ;;  %v978_v35 = vsel %vm718_vm3, %v910_v54, 0.0 }
 0x192   :  { %v971_v49 = vadd.f32 %v970_v23, %v969_v32  ;;  %v912_v32 = vmul.f32 %v2669_v31, %v2669_v31  ;;  %v980_v52 = vsel %vm718_vm3, %v911_v51, 0.0 }
 0x194   :  { %v973_v1 = vadd.f32 %v972_v16, %v971_v49  ;;  %v913_v49 = vmul.f32 %v2676_v40, %v2676_v40  ;;  %v982_v54 = vsel %vm718_vm3, %v912_v32, 0.0 }
 0x196   :  { %v975_v8 = vadd.f32 %v974_v43, %v973_v1  ;;  %v914_v1 = vmul.f32 %v2683_v50, %v2683_v50  ;;  %v984_v51 = vsel %vm718_vm3, %v913_v49, 0.0 }
 0x198   :  { %v977_v41 = vadd.f32 %v976_v59, %v975_v8  ;;  %v915_v8 = vmul.f32 %v2690_v4, %v2690_v4  ;;  %v986_v32 = vsel %vm718_vm3, %v914_v1, 0.0 }
 0x19a   :  { %v979_v23 = vadd.f32 %v978_v35, %v977_v41  ;;  %v3595_v41 = vld [vmem:[#allocation2_spill] sm:$0xff]  ;;  %v916_v35 = vmul.f32 %v2697_v12, %v2697_v12  ;;  %v988_v49 = vsel %vm718_vm3, %v915_v8, 0.0 }
 0x19b   :  { %v2711_v45 = vsub.f32 %v3595_v41, %v2575_v62  ;;  %v3600_v41 = vld [vmem:[#allocation4_spill] sm:$0xff] }
 0x19c   :  { %v981_v16 = vadd.f32 %v980_v52, %v979_v23  ;;  %v3597_v52 = vld [vmem:[#allocation3_spill] sm:$0xff]  ;;  %v990_v1 = vsel %vm718_vm3, %v916_v35, 0.0 }
 0x19d   :  { %3596 = vst [vmem:[#allocation2_spill] sm:$0xff] %v2711_v45  ;;  %v2718_v60 = vsub.f32 %v3597_v52, %v2575_v62 }
 0x19e   :  { %v983_v43 = vadd.f32 %v982_v54, %v981_v16  ;;  %v917_v16 = vmul.f32 %v2704_v37, %v2704_v37 }
 0x19f   :  { %3598 = vst [vmem:[#allocation3_spill] sm:$0xff] %v2718_v60  ;;  %v919_v52 = vmul.f32 %v2718_v60, %v2718_v60 }
 0x1a0   :  { %v985_v59 = vadd.f32 %v984_v51, %v983_v43  ;;  %v2725_v43 = vsub.f32 %v2298_v17, %v2575_v62  ;;  %v918_v51 = vmul.f32 %v2711_v45, %v2711_v45  ;;  %v992_v8 = vsel %vm718_vm3, %v917_v16, 0.0 }
 0x1a1   :  { %v996_v16 = vsel %vm718_vm3, %v919_v52, 0.0 }
 0x1a2   :  { %v987_v23 = vadd.f32 %v986_v32, %v985_v59  ;;  %3599 = vst [vmem:[#allocation11_spill] sm:$0xff] %v2725_v43  ;;  %v2732_v32 = vsub.f32 %v3600_v41, %v2575_v62  ;;  %v920_v45 = vmul.f32 %v2725_v43, %v2725_v43  ;;  %v994_v35 = vsel %vm718_vm3, %v918_v51, 0.0 }
 0x1a4   :  { %v989_v54 = vadd.f32 %v988_v49, %v987_v23  ;;  %3601 = vst [vmem:[#allocation4_spill] sm:$0xff] %v2732_v32  ;;  %v3602_v49 = vld [vmem:[#allocation5_spill] sm:$0xff]  ;;  %v921_v60 = vmul.f32 %v2732_v32, %v2732_v32  ;;  %v998_v51 = vsel %vm718_vm3, %v920_v45, 0.0 }
 0x1a5   :  { %v2739_v17 = vsub.f32 %v3602_v49, %v2575_v62 }
 0x1a6   :  { %v991_v59 = vadd.f32 %v990_v1, %v989_v54  ;;  %v3603_v1 = vld [vmem:[#allocation6_spill] sm:$0xff]  ;;  %v1000_v52 = vsel %vm718_vm3, %v921_v60, 0.0 }
 0x1a7   :  { %v2746_v41 = vsub.f32 %v3603_v1, %v2575_v62  ;;  %v922_v43 = vmul.f32 %v2739_v17, %v2739_v17 }
 0x1a8   :  { %v993_v23 = vadd.f32 %v992_v8, %v991_v59  ;;  %v3604_v8 = vld [vmem:[#allocation7_spill] sm:$0xff] }
 0x1a9   :  { %v2753_v49 = vsub.f32 %v3604_v8, %v2575_v62  ;;  %v923_v32 = vmul.f32 %v2746_v41, %v2746_v41  ;;  %v1002_v45 = vsel %vm718_vm3, %v922_v43, 0.0 }
 0x1aa   :  { %v995_v54 = vadd.f32 %v994_v35, %v993_v23  ;;  %v3605_v35 = vld [vmem:[#allocation8_spill] sm:$0xff] }
 0x1ab   :  { %v2760_v1 = vsub.f32 %v3605_v35, %v2575_v62  ;;  %v924_v8 = vmul.f32 %v2753_v49, %v2753_v49  ;;  %v1004_v60 = vsel %vm718_vm3, %v923_v32, 0.0 }
 0x1ac   :  { %v997_v59 = vadd.f32 %v996_v16, %v995_v54  ;;  %v2767_v16 = vsub.f32 %v2356_v33, %v2575_v62  ;;  %v2781_v33 = vsub.f32 %v2362_v46, %v2575_v62  ;;  %v2795_v46 = vsub.f32 %v2380_v7, %v2575_v62 }
 0x1ad   :  { %v925_v35 = vmul.f32 %v2760_v1, %v2760_v1  ;;  %v1006_v43 = vsel %vm718_vm3, %v924_v8, 0.0  ;;  %v2809_v7 = vsub.f32 %v2396_v5, %v2575_v62  ;;  %v2823_v5 = vsub.f32 %v2412_v21, %v2575_v62 }
 0x1ae   :  { %v999_v23 = vadd.f32 %v998_v51, %v997_v59  ;;  %v2774_v51 = vsub.f32 %v2354_v53, %v2575_v62  ;;  %v2788_v53 = vsub.f32 %v2372_v61, %v2575_v62  ;;  %v2802_v61 = vsub.f32 %v2388_v27, %v2575_v62 }
 0x1af   :  { %v1008_v32 = vsel %vm718_vm3, %v925_v35, 0.0  ;;  %v2816_v27 = vsub.f32 %v2404_v29, %v2575_v62  ;;  %v2830_v29 = vsub.f32 %v2420_v6, %v2575_v62  ;;  %v2837_v21 = vsub.f32 %v2428_v10, %v2575_v62 }
 0x1b0   :  { %v1001_v54 = vadd.f32 %v1000_v52, %v999_v23  ;;  %v926_v52 = vmul.f32 %v2767_v16, %v2767_v16  ;;  %v2844_v6 = vsub.f32 %v2436_v14, %v2575_v62  ;;  %v2851_v10 = vsub.f32 %v2444_v18, %v2575_v62 }
 0x1b1   :  { %v2858_v14 = vsub.f32 %v2452_v22, %v2575_v62  ;;  %v2865_v18 = vsub.f32 %v2460_v26, %v2575_v62  ;;  %v2872_v22 = vsub.f32 %v2468_v30, %v2575_v62  ;;  %v2879_v26 = vsub.f32 %v2476_v34, %v2575_v62 }
 0x1b2   :  { %v1003_v59 = vadd.f32 %v1002_v45, %v1001_v54  ;;  %v927_v45 = vmul.f32 %v2774_v51, %v2774_v51  ;;  %v1010_v8 = vsel %vm718_vm3, %v926_v52, 0.0  ;;  %v2886_v30 = vsub.f32 %v2484_v38, %v2575_v62 }
 0x1b3   :  { %v2893_v34 = vsub.f32 %v2492_v42, %v2575_v62  ;;  %v2900_v38 = vsub.f32 %v2500_v47, %v2575_v62  ;;  %v2907_v42 = vsub.f32 %v2508_v55, %v2575_v62  ;;  %v2914_v47 = vsub.f32 %v2516_v2, %v2575_v62 }
 0x1b4   :  { %v1005_v23 = vadd.f32 %v1004_v60, %v1003_v59  ;;  %v928_v60 = vmul.f32 %v2781_v33, %v2781_v33  ;;  %v1012_v35 = vsel %vm718_vm3, %v927_v45, 0.0  ;;  %v2921_v55 = vsub.f32 %v2524_v24, %v2575_v62 }
 0x1b5   :  { %3606 = vst [vmem:[#allocation5_spill] sm:$0xff] %v2907_v42  ;;  %3607 = vst [vmem:[#allocation6_spill] sm:$0xff] %v2914_v47  ;;  %v2928_v2 = vsub.f32 %v2532_v44, %v2575_v62  ;;  %v2935_v24 = vsub.f32 %v2540_v63, %v2575_v62 }
 0x1b6   :  { %v1007_v54 = vadd.f32 %v1006_v43, %v1005_v23  ;;  %v929_v43 = vmul.f32 %v2788_v53, %v2788_v53  ;;  %v1014_v52 = vsel %vm718_vm3, %v928_v60, 0.0  ;;  %3608 = vst [vmem:[#allocation7_spill] sm:$0xff] %v2921_v55 }
 0x1b7   :  { %3609 = vst [vmem:[#allocation8_spill] sm:$0xff] %v2928_v2  ;;  %3610 = vst [vmem:[#allocation12_spill] sm:$0xff] %v2935_v24 }
 0x1b8   :  { %v1009_v59 = vadd.f32 %v1008_v32, %v1007_v54  ;;  %v930_v32 = vmul.f32 %v2795_v46, %v2795_v46  ;;  %v1016_v45 = vsel %vm718_vm3, %v929_v43, 0.0 }
 0x1ba   :  { %v1011_v23 = vadd.f32 %v1010_v8, %v1009_v59  ;;  %v931_v8 = vmul.f32 %v2802_v61, %v2802_v61  ;;  %v1018_v60 = vsel %vm718_vm3, %v930_v32, 0.0 }
 0x1bc   :  { %v1013_v54 = vadd.f32 %v1012_v35, %v1011_v23  ;;  %v932_v35 = vmul.f32 %v2809_v7, %v2809_v7  ;;  %v1020_v43 = vsel %vm718_vm3, %v931_v8, 0.0 }
 0x1be   :  { %v1015_v59 = vadd.f32 %v1014_v52, %v1013_v54  ;;  %v933_v52 = vmul.f32 %v2816_v27, %v2816_v27  ;;  %v1022_v32 = vsel %vm718_vm3, %v932_v35, 0.0 }
 0x1c0   :  { %v1017_v23 = vadd.f32 %v1016_v45, %v1015_v59  ;;  %v934_v45 = vmul.f32 %v2823_v5, %v2823_v5  ;;  %v1024_v8 = vsel %vm718_vm3, %v933_v52, 0.0 }
 0x1c2   :  { %v1019_v54 = vadd.f32 %v1018_v60, %v1017_v23  ;;  %v935_v60 = vmul.f32 %v2830_v29, %v2830_v29  ;;  %v1026_v35 = vsel %vm718_vm3, %v934_v45, 0.0 }
 0x1c4   :  { %v1021_v59 = vadd.f32 %v1020_v43, %v1019_v54  ;;  %v936_v43 = vmul.f32 %v2837_v21, %v2837_v21  ;;  %v1028_v52 = vsel %vm718_vm3, %v935_v60, 0.0 }
 0x1c6   :  { %v1023_v23 = vadd.f32 %v1022_v32, %v1021_v59  ;;  %v937_v32 = vmul.f32 %v2844_v6, %v2844_v6  ;;  %v1030_v45 = vsel %vm718_vm3, %v936_v43, 0.0 }
 0x1c8   :  { %v1025_v54 = vadd.f32 %v1024_v8, %v1023_v23  ;;  %v938_v8 = vmul.f32 %v2851_v10, %v2851_v10  ;;  %v1032_v60 = vsel %vm718_vm3, %v937_v32, 0.0 }
 0x1ca   :  { %v1027_v59 = vadd.f32 %v1026_v35, %v1025_v54  ;;  %v939_v35 = vmul.f32 %v2858_v14, %v2858_v14  ;;  %v1034_v43 = vsel %vm718_vm3, %v938_v8, 0.0 }
 0x1cc   :  { %v1029_v23 = vadd.f32 %v1028_v52, %v1027_v59  ;;  %v940_v52 = vmul.f32 %v2865_v18, %v2865_v18  ;;  %v1036_v32 = vsel %vm718_vm3, %v939_v35, 0.0 }
 0x1ce   :  { %v1031_v54 = vadd.f32 %v1030_v45, %v1029_v23  ;;  %v941_v45 = vmul.f32 %v2872_v22, %v2872_v22  ;;  %v1038_v8 = vsel %vm718_vm3, %v940_v52, 0.0 }
 0x1d0   :  { %v1033_v59 = vadd.f32 %v1032_v60, %v1031_v54  ;;  %v942_v60 = vmul.f32 %v2879_v26, %v2879_v26  ;;  %v1040_v35 = vsel %vm718_vm3, %v941_v45, 0.0 }
 0x1d2   :  { %v1035_v23 = vadd.f32 %v1034_v43, %v1033_v59  ;;  %v943_v43 = vmul.f32 %v2886_v30, %v2886_v30  ;;  %v1042_v52 = vsel %vm718_vm3, %v942_v60, 0.0 }
 0x1d4   :  { %v1037_v54 = vadd.f32 %v1036_v32, %v1035_v23  ;;  %v944_v32 = vmul.f32 %v2893_v34, %v2893_v34  ;;  %v1044_v45 = vsel %vm718_vm3, %v943_v43, 0.0 }
 0x1d6   :  { %v1039_v59 = vadd.f32 %v1038_v8, %v1037_v54  ;;  %v945_v8 = vmul.f32 %v2900_v38, %v2900_v38  ;;  %v1046_v60 = vsel %vm718_vm3, %v944_v32, 0.0 }
 0x1d8   :  { %v1041_v23 = vadd.f32 %v1040_v35, %v1039_v59  ;;  %v946_v35 = vmul.f32 %v2907_v42, %v2907_v42  ;;  %v1048_v43 = vsel %vm718_vm3, %v945_v8, 0.0 }
 0x1da   :  { %v1043_v54 = vadd.f32 %v1042_v52, %v1041_v23  ;;  %v947_v52 = vmul.f32 %v2914_v47, %v2914_v47  ;;  %v1050_v32 = vsel %vm718_vm3, %v946_v35, 0.0  ;;  %v949_v47 = vmul.f32 %v2928_v2, %v2928_v2 }
 0x1dc   :  { %v1045_v59 = vadd.f32 %v1044_v45, %v1043_v54  ;;  %v948_v45 = vmul.f32 %v2921_v55, %v2921_v55  ;;  %v1052_v8 = vsel %vm718_vm3, %v947_v52, 0.0  ;;  %v950_v55 = vmul.f32 %v2935_v24, %v2935_v24 }
 0x1dd   :  { %v1056_v52 = vsel %vm718_vm3, %v949_v47, 0.0 }
 0x1de   :  { %v1047_v23 = vadd.f32 %v1046_v60, %v1045_v59  ;;  %v3611_v60 = vld [vmem:[#allocation9_spill] sm:$0xff]  ;;  %v1054_v35 = vsel %vm718_vm3, %v948_v45, 0.0  ;;  %v1058_v45 = vsel %vm718_vm3, %v950_v55, 0.0 }
 0x1df   :  { %v2942_v44 = vsub.f32 %v3611_v60, %v2575_v62 }
 0x1e0   :  { %v1049_v54 = vadd.f32 %v1048_v43, %v1047_v23  ;;  %v3613_v43 = vld [vmem:[#allocation10_spill] sm:$0xff] }
 0x1e1   :  { %3612 = vst [vmem:[#allocation9_spill] sm:$0xff] %v2942_v44  ;;  %v2949_v63 = vsub.f32 %v3613_v43, %v2575_v62  ;;  %v951_v60 = vmul.f32 %v2942_v44, %v2942_v44 }
 0x1e2   :  { %v1051_v59 = vadd.f32 %v1050_v32, %v1049_v54  ;;  %v2956_v32 = vsub.f32 %v2566_v3, %v2575_v62 }
 0x1e3   :  { %3614 = vst [vmem:[#allocation10_spill] sm:$0xff] %v2949_v63  ;;  %v952_v43 = vmul.f32 %v2949_v63, %v2949_v63 }
 0x1e4   :  { %v1053_v23 = vadd.f32 %v1052_v8, %v1051_v59  ;;  %3615 = vst [vmem:[#allocation13_spill] sm:$0xff] %v2956_v32  ;;  %v2963_v8 = vsub.f32 %v2569_v9, %v2575_v62  ;;  %v953_v3 = vmul.f32 %v2956_v32, %v2956_v32 }
 0x1e6   :  { %v1055_v54 = vadd.f32 %v1054_v35, %v1053_v23  ;;  %3616 = vst [vmem:[#allocation14_spill] sm:$0xff] %v2963_v8  ;;  %v1060_v35 = vsel %vm718_vm3, %v951_v60, 0.0  ;;  %v954_v47 = vmul.f32 %v2963_v8, %v2963_v8  ;;  %v1064_v9 = vsel %vm718_vm3, %v953_v3, 0.0 }
 0x1e8   :  { %v1057_v59 = vadd.f32 %v1056_v52, %v1055_v54  ;;  %v1062_v54 = vsel %vm718_vm3, %v952_v43, 0.0  ;;  %v1066_v63 = vsel %vm830_vm4, %v954_v47, 0.0 }
 0x1ea   :  { %v1059_v23 = vadd.f32 %v1058_v45, %v1057_v59 }
 0x1ec   :  { %v1061_v24 = vadd.f32 %v1060_v35, %v1059_v23 }
 0x1ee   :  { %v1063_v52 = vadd.f32 %v1062_v54, %v1061_v24  ;;  %v3617_v54 = vld [vmem:[#allocation2_spill] sm:$0xff] }
 0x1f0   :  { %v1065_v62 = vadd.f32 %v1064_v9, %v1063_v52  ;;  %v3618_v52 = vld [vmem:[#allocation3_spill] sm:$0xff] }
 0x1f1   :  { %v3619_v9 = vld [vmem:[#allocation11_spill] sm:$0xff] }
 0x1f2   :  { %v1067_v44 = vadd.f32 %v1066_v63, %v1065_v62  ;;  %v3620_v62 = vld [vmem:[#allocation4_spill] sm:$0xff] }
 0x1f4   :  { %v1068_v55 = vrot.slane %v1067_v44, 4 }
 0x1f6   :  { %v1069_v59 = vadd.f32 %v1068_v55, %v1067_v44 }
 0x1f8   :  { %v1070_v45 = vrot.slane %v1069_v59, 2 }
 0x1fa   :  { %v1071_v2 = vadd.f32 %v1070_v45, %v1069_v59 }
 0x1fc   :  { %v1072_v32 = vrot.slane %v1071_v2, 1 }
 0x1fe   :  { %v1073_v42 = vadd.f32 %v1072_v32, %v1071_v2 }
 0x200   :  { %v1074_v60 = vmul.f32 0.0022222223, %v1073_v42 }
 0x202   :  { %v1075_v23 = vadd.f32 1e-05, %v1074_v60 }
 0x204   :  { %1675 = vrsqrt.f32 %v1075_v23 }
 0x211   :  { %v1676_v35 = vpop.eup %1675 }
 0x212   :  { %v1077_v8 = vmul.f32 %v1676_v35, %v2579_v20  ;;  %v1078_v24 = vmul.f32 %v1676_v35, %v2583_v11  ;;  %v1079_v43 = vmul.f32 %v1676_v35, %v2587_v36  ;;  %v1080_v3 = vmul.f32 %v1676_v35, %v2591_v13 }
 0x213   :  { %v1081_v63 = vmul.f32 %v1676_v35, %v2599_v56  ;;  %v1082_v44 = vmul.f32 %v1676_v35, %v2605_v57  ;;  %v1083_v47 = vmul.f32 %v1676_v35, %v2613_v25  ;;  %v1084_v2 = vmul.f32 %v1676_v35, %v2620_v19 }
 0x214   :  { %v1085_v42 = vmul.f32 %v1676_v35, %v2627_v28  ;;  %v1086_v32 = vmul.f32 %v1676_v35, %v2634_v39  ;;  %v1087_v20 = vmul.f32 %v1676_v35, %v2641_v48  ;;  %v1088_v11 = vmul.f32 %v1676_v35, %v2648_v58 }
 0x215   :  { %v1089_v36 = vmul.f32 %v1676_v35, %v2655_v0  ;;  %v1090_v13 = vmul.f32 %v1676_v35, %v2662_v15  ;;  %v1091_v56 = vmul.f32 %v1676_v35, %v2669_v31  ;;  %v1092_v57 = vmul.f32 %v1676_v35, %v2676_v40 }
 0x216   :  { %v1093_v25 = vmul.f32 %v1676_v35, %v2683_v50  ;;  %v1094_v19 = vmul.f32 %v1676_v35, %v2690_v4  ;;  %v1095_v28 = vmul.f32 %v1676_v35, %v2697_v12  ;;  %v1096_v39 = vmul.f32 %v1676_v35, %v2704_v37 }
 0x217   :  { %v1097_v48 = vmul.f32 %v1676_v35, %v3617_v54  ;;  %v1098_v58 = vmul.f32 %v1676_v35, %v3618_v52  ;;  %v1099_v0 = vmul.f32 %v1676_v35, %v3619_v9  ;;  %v1100_v15 = vmul.f32 %v1676_v35, %v3620_v62 }
 0x218   :  { %v1101_v31 = vmul.f32 %v1676_v35, %v2739_v17  ;;  %v1102_v40 = vmul.f32 %v1676_v35, %v2746_v41  ;;  %v1103_v50 = vmul.f32 %v1676_v35, %v2753_v49  ;;  %v1104_v4 = vmul.f32 %v1676_v35, %v2760_v1 }
 0x219   :  { %v1105_v12 = vmul.f32 %v1676_v35, %v2767_v16  ;;  %v1106_v37 = vmul.f32 %v1676_v35, %v2774_v51  ;;  %v1107_v55 = vmul.f32 %v1676_v35, %v2781_v33  ;;  %v1108_v59 = vmul.f32 %v1676_v35, %v2788_v53 }
 0x21a   :  { %v1109_v45 = vmul.f32 %v1676_v35, %v2795_v46  ;;  %v1110_v60 = vmul.f32 %v1676_v35, %v2802_v61  ;;  %v1111_v17 = vmul.f32 %v1676_v35, %v2809_v7  ;;  %v1112_v41 = vmul.f32 %v1676_v35, %v2816_v27 }
 0x21b   :  { %v1113_v49 = vmul.f32 %v1676_v35, %v2823_v5  ;;  %v1114_v1 = vmul.f32 %v1676_v35, %v2830_v29  ;;  %v1115_v16 = vmul.f32 %v1676_v35, %v2837_v21  ;;  %v1116_v51 = vmul.f32 %v1676_v35, %v2844_v6  ;;  %v3027_v21 = vld [vmem:[%s3559_s3] ss:$0 sm:$0xff]  ;;  %v3622_v6 = vld [vmem:[#allocation5_spill] sm:$0xff] }
 0x21c   :  { %v1117_v33 = vmul.f32 %v1676_v35, %v2851_v10  ;;  %v1118_v53 = vmul.f32 %v1676_v35, %v2858_v14  ;;  %v1119_v46 = vmul.f32 %v1676_v35, %v2865_v18  ;;  %v1120_v61 = vmul.f32 %v1676_v35, %v2872_v22  ;;  %3621 = vst [vmem:[#allocation2_spill] sm:$0xff] %v3027_v21  ;;  %v3623_v14 = vld [vmem:[#allocation6_spill] sm:$0xff]  ;;  %v3624_v18 = vld [vmem:[#allocation7_spill] sm:$0xff]  ;;  %v3625_v22 = vld [vmem:[#allocation8_spill] sm:$0xff] }
 0x21d   :  { %v1121_v7 = vmul.f32 %v1676_v35, %v2879_v26  ;;  %v1122_v27 = vmul.f32 %v1676_v35, %v2886_v30  ;;  %v1123_v5 = vmul.f32 %v1676_v35, %v2893_v34  ;;  %v1124_v29 = vmul.f32 %v1676_v35, %v2900_v38  ;;  %v3626_v26 = vld [vmem:[#allocation12_spill] sm:$0xff]  ;;  %v3627_v30 = vld [vmem:[#allocation9_spill] sm:$0xff]  ;;  %v3628_v34 = vld [vmem:[#allocation10_spill] sm:$0xff] }
 0x21e   :  { %v1125_v10 = vmul.f32 %v1676_v35, %v3622_v6  ;;  %v1126_v23 = vmul.f32 %v1676_v35, %v3623_v14  ;;  %v1127_v54 = vmul.f32 %v1676_v35, %v3624_v18  ;;  %v1128_v52 = vmul.f32 %v1676_v35, %v3625_v22  ;;  %v3629_v21 = vld [vmem:[#allocation13_spill] sm:$0xff]  ;;  %v3630_v14 = vld [vmem:[#allocation14_spill] sm:$0xff] }
 0x21f   :  { %v1129_v9 = vmul.f32 %v1676_v35, %v3626_v26  ;;  %v1130_v62 = vmul.f32 %v1676_v35, %v3627_v30  ;;  %v1131_v38 = vmul.f32 %v1676_v35, %v3628_v34  ;;  %v1132_v6 = vmul.f32 %v1676_v35, %v3629_v21 }
 0x220   :  { %v1133_v18 = vmul.f32 %v1676_v35, %v3630_v14 }
 0x223   :  { %v3631_v22 = vld [vmem:[#allocation2_spill] sm:$0xff] }
 0x224   :  { %v1141_v26 = vmul.f32 %v3631_v22, %v1077_v8  ;;  %v1142_v30 = vmul.f32 %v3631_v22, %v1078_v24  ;;  %v1143_v34 = vmul.f32 %v3631_v22, %v1079_v43  ;;  %v1144_v21 = vmul.f32 %v3631_v22, %v1080_v3 }
 0x225   :  { %v1145_v14 = vmul.f32 %v3631_v22, %v1081_v63  ;;  %v1146_v35 = vmul.f32 %v3631_v22, %v1082_v44  ;;  %v1147_v8 = vmul.f32 %v3631_v22, %v1083_v47  ;;  %v1148_v24 = vmul.f32 %v3631_v22, %v1084_v2 }
 0x226   :  { %v1149_v43 = vmul.f32 %v3631_v22, %v1085_v42  ;;  %v1150_v3 = vmul.f32 %v3631_v22, %v1086_v32  ;;  %v1151_v63 = vmul.f32 %v3631_v22, %v1087_v20  ;;  %v1152_v44 = vmul.f32 %v3631_v22, %v1088_v11 }
 0x227   :  { %v1153_v47 = vmul.f32 %v3631_v22, %v1089_v36  ;;  %v1154_v2 = vmul.f32 %v3631_v22, %v1090_v13  ;;  %v1155_v42 = vmul.f32 %v3631_v22, %v1091_v56  ;;  %v1156_v32 = vmul.f32 %v3631_v22, %v1092_v57 }
 0x228   :  { %v1157_v20 = vmul.f32 %v3631_v22, %v1093_v25  ;;  %v1158_v11 = vmul.f32 %v3631_v22, %v1094_v19  ;;  %v1159_v36 = vmul.f32 %v3631_v22, %v1095_v28  ;;  %v1160_v13 = vmul.f32 %v3631_v22, %v1096_v39 }
 0x229   :  { %v1161_v56 = vmul.f32 %v3631_v22, %v1097_v48  ;;  %v1162_v57 = vmul.f32 %v3631_v22, %v1098_v58  ;;  %v1163_v25 = vmul.f32 %v3631_v22, %v1099_v0  ;;  %v1164_v19 = vmul.f32 %v3631_v22, %v1100_v15 }
 0x22a   :  { %v1165_v28 = vmul.f32 %v3631_v22, %v1101_v31  ;;  %v1166_v39 = vmul.f32 %v3631_v22, %v1102_v40  ;;  %v1167_v48 = vmul.f32 %v3631_v22, %v1103_v50  ;;  %v1168_v58 = vmul.f32 %v3631_v22, %v1104_v4 }
 0x22b   :  { %v1169_v0 = vmul.f32 %v3631_v22, %v1105_v12  ;;  %v1170_v15 = vmul.f32 %v3631_v22, %v1106_v37  ;;  %v1171_v31 = vmul.f32 %v3631_v22, %v1107_v55  ;;  %v1172_v40 = vmul.f32 %v3631_v22, %v1108_v59 }
 0x22c   :  { %v1173_v50 = vmul.f32 %v3631_v22, %v1109_v45  ;;  %v1174_v4 = vmul.f32 %v3631_v22, %v1110_v60  ;;  %v1175_v12 = vmul.f32 %v3631_v22, %v1111_v17  ;;  %v1176_v37 = vmul.f32 %v3631_v22, %v1112_v41 }
 0x22d   :  { %v1177_v55 = vmul.f32 %v3631_v22, %v1113_v49  ;;  %v1178_v59 = vmul.f32 %v3631_v22, %v1114_v1  ;;  %v1179_v45 = vmul.f32 %v3631_v22, %v1115_v16  ;;  %v1180_v60 = vmul.f32 %v3631_v22, %v1116_v51 }
 0x22e   :  { %v1181_v17 = vmul.f32 %v3631_v22, %v1117_v33  ;;  %v1182_v41 = vmul.f32 %v3631_v22, %v1118_v53  ;;  %v1183_v49 = vmul.f32 %v3631_v22, %v1119_v46  ;;  %v1184_v1 = vmul.f32 %v3631_v22, %v1120_v61  ;;  %v3088_v53 = vld [vmem:[%s3560_s4] ss:$0 sm:$0xff] }
 0x22f   :  { %v1185_v16 = vmul.f32 %v3631_v22, %v1121_v7  ;;  %v1186_v51 = vmul.f32 %v3631_v22, %v1122_v27  ;;  %v1187_v33 = vmul.f32 %v3631_v22, %v1123_v5  ;;  %3632 = vst [vmem:[#allocation3_spill] sm:$0xff] %v3088_v53  ;;  %v1188_v46 = vmul.f32 %v3631_v22, %v1124_v29 }
 0x230   :  { %v1189_v61 = vmul.f32 %v3631_v22, %v1125_v10  ;;  %v1190_v7 = vmul.f32 %v3631_v22, %v1126_v23  ;;  %v1191_v27 = vmul.f32 %v3631_v22, %v1127_v54  ;;  %v1192_v5 = vmul.f32 %v3631_v22, %v1128_v52 }
 0x231   :  { %v1193_v53 = vmul.f32 %v3631_v22, %v1129_v9  ;;  %v1194_v29 = vmul.f32 %v3631_v22, %v1130_v62  ;;  %v1195_v10 = vmul.f32 %v3631_v22, %v1131_v38  ;;  %v1196_v23 = vmul.f32 %v3631_v22, %v1132_v6 }
 0x232   :  { %v1197_v54 = vmul.f32 %v3631_v22, %v1133_v18 }
 0x236   :  { %v3633_v52 = vld [vmem:[#allocation3_spill] sm:$0xff] }
 0x237   :  { %v3101_v9 = vadd.f32 %v3633_v52, %v1141_v26  ;;  %v3104_v62 = vadd.f32 %v3633_v52, %v1142_v30  ;;  %v3107_v38 = vadd.f32 %v3633_v52, %v1143_v34  ;;  %v3110_v6 = vadd.f32 %v3633_v52, %v1144_v21 }
 0x238   :  { %v3113_v18 = vadd.f32 %v3633_v52, %v1145_v14  ;;  %v3116_v22 = vadd.f32 %v3633_v52, %v1146_v35  ;;  %v3119_v26 = vadd.f32 %v3633_v52, %v1147_v8  ;;  %v3125_v30 = vadd.f32 %v3633_v52, %v1149_v43 }
 0x239   :  { %3634 = vst [vmem:[#allocation11_spill] sm:$0xff] %v3101_v9  ;;  %v3122_v9 = vadd.f32 %v3633_v52, %v1148_v24  ;;  %v3128_v34 = vadd.f32 %v3633_v52, %v1150_v3  ;;  %v3131_v21 = vadd.f32 %v3633_v52, %v1151_v63  ;;  %v3134_v14 = vadd.f32 %v3633_v52, %v1152_v44 }
 0x23a   :  { %v3137_v35 = vadd.f32 %v3633_v52, %v1153_v47  ;;  %v3140_v8 = vadd.f32 %v3633_v52, %v1154_v2  ;;  %v3143_v24 = vadd.f32 %v3633_v52, %v1155_v42  ;;  %v3146_v43 = vadd.f32 %v3633_v52, %v1156_v32 }
 0x23b   :  { %v3149_v3 = vadd.f32 %v3633_v52, %v1157_v20  ;;  %v3152_v63 = vadd.f32 %v3633_v52, %v1158_v11  ;;  %v3155_v44 = vadd.f32 %v3633_v52, %v1159_v36  ;;  %v3158_v47 = vadd.f32 %v3633_v52, %v1160_v13 }
 0x23c   :  { %v3161_v2 = vadd.f32 %v3633_v52, %v1161_v56  ;;  %v3164_v42 = vadd.f32 %v3633_v52, %v1162_v57  ;;  %v3167_v32 = vadd.f32 %v3633_v52, %v1163_v25  ;;  %v3170_v20 = vadd.f32 %v3633_v52, %v1164_v19 }
 0x23d   :  { %v3173_v11 = vadd.f32 %v3633_v52, %v1165_v28  ;;  %v3176_v36 = vadd.f32 %v3633_v52, %v1166_v39  ;;  %v3179_v13 = vadd.f32 %v3633_v52, %v1167_v48  ;;  %v3182_v56 = vadd.f32 %v3633_v52, %v1168_v58 }
 0x23e   :  { %v3185_v57 = vadd.f32 %v3633_v52, %v1169_v0  ;;  %v3188_v25 = vadd.f32 %v3633_v52, %v1170_v15  ;;  %v3191_v19 = vadd.f32 %v3633_v52, %v1171_v31  ;;  %v3194_v28 = vadd.f32 %v3633_v52, %v1172_v40 }
 0x23f   :  { %v3197_v39 = vadd.f32 %v3633_v52, %v1173_v50  ;;  %v3200_v48 = vadd.f32 %v3633_v52, %v1174_v4  ;;  %v3203_v58 = vadd.f32 %v3633_v52, %v1175_v12  ;;  %v3206_v0 = vadd.f32 %v3633_v52, %v1176_v37 }
 0x240   :  { %v3209_v15 = vadd.f32 %v3633_v52, %v1177_v55  ;;  %v3212_v31 = vadd.f32 %v3633_v52, %v1178_v59  ;;  %v3215_v40 = vadd.f32 %v3633_v52, %v1179_v45  ;;  %v3218_v50 = vadd.f32 %v3633_v52, %v1180_v60 }
 0x241   :  { %v3221_v4 = vadd.f32 %v3633_v52, %v1181_v17  ;;  %v3224_v12 = vadd.f32 %v3633_v52, %v1182_v41  ;;  %v3227_v37 = vadd.f32 %v3633_v52, %v1183_v49  ;;  %v3230_v55 = vadd.f32 %v3633_v52, %v1184_v1 }
 0x242   :  { %v3233_v59 = vadd.f32 %v3633_v52, %v1185_v16  ;;  %v3236_v45 = vadd.f32 %v3633_v52, %v1186_v51  ;;  %v3239_v60 = vadd.f32 %v3633_v52, %v1187_v33  ;;  %v3242_v17 = vadd.f32 %v3633_v52, %v1188_v46 }
 0x243   :  { %v3245_v41 = vadd.f32 %v3633_v52, %v1189_v61  ;;  %v3248_v49 = vadd.f32 %v3633_v52, %v1190_v7  ;;  %v3251_v1 = vadd.f32 %v3633_v52, %v1191_v27  ;;  %v3254_v16 = vadd.f32 %v3633_v52, %v1192_v5  ;;  %v3639_v27 = vld [vmem:[#allocation11_spill] sm:$0xff] }
 0x244   :  { %v3257_v51 = vadd.f32 %v3633_v52, %v1193_v53  ;;  %v3260_v33 = vadd.f32 %v3633_v52, %v1194_v29  ;;  %v3263_v46 = vadd.f32 %v3633_v52, %v1195_v10  ;;  %v3266_v61 = vadd.f32 %v3633_v52, %v1196_v23 }
 0x245   :  { %3635 = vst [vmem:[#allocation4_spill] sm:$0xff] %v3251_v1  ;;  %3636 = vst [vmem:[#allocation5_spill] sm:$0xff] %v3254_v16  ;;  %v3269_v7 = vadd.f32 %v3633_v52, %v1197_v54  ;;  %v1262_v1 = vmax.f32 %v3639_v27, 0.0  ;;  %v1263_v5 = vmax.f32 %v3104_v62, 0.0  ;;  %v1264_v16 = vmax.f32 %v3107_v38, 0.0 }
 0x246   :  { %3637 = vst [vmem:[#allocation6_spill] sm:$0xff] %v3260_v33  ;;  %3638 = vst [vmem:[#allocation7_spill] sm:$0xff] %v3266_v61  ;;  %v1265_v53 = vmax.f32 %v3110_v6, 0.0  ;;  %v1266_v29 = vmax.f32 %v3113_v18, 0.0  ;;  %v1267_v33 = vmax.f32 %v3116_v22, 0.0  ;;  %v1268_v10 = vmax.f32 %v3119_v26, 0.0 }
 0x247   :  { %v1269_v23 = vmax.f32 %v3122_v9, 0.0  ;;  %v1270_v61 = vmax.f32 %v3125_v30, 0.0  ;;  %1319 = vst.msk [vmem:[%s3561_s5] sm:$0xff] %vm718_vm3, %v1262_v1  ;;  %v1271_v54 = vmax.f32 %v3128_v34, 0.0  ;;  %v1272_v52 = vmax.f32 %v3131_v21, 0.0  ;;  %1320 = vst.msk [vmem:[%s3561_s5 + $0x8] sm:$0xff] %vm718_vm3, %v1263_v5 }
 0x248   :  { %v1273_v62 = vmax.f32 %v3134_v14, 0.0  ;;  %v1274_v38 = vmax.f32 %v3137_v35, 0.0  ;;  %1321 = vst.msk [vmem:[%s3561_s5 + $0x10] sm:$0xff] %vm718_vm3, %v1264_v16  ;;  %1322 = vst.msk [vmem:[%s3561_s5 + $0x18] sm:$0xff] %vm718_vm3, %v1265_v53  ;;  %v1275_v9 = vmax.f32 %v3140_v8, 0.0  ;;  %v1276_v6 = vmax.f32 %v3143_v24, 0.0 }
 0x249   :  { %1323 = vst.msk [vmem:[%s3561_s5 + $0x20] sm:$0xff] %vm718_vm3, %v1266_v29  ;;  %v1277_v18 = vmax.f32 %v3146_v43, 0.0  ;;  %v1278_v22 = vmax.f32 %v3149_v3, 0.0  ;;  %1324 = vst.msk [vmem:[%s3561_s5 + $0x28] sm:$0xff] %vm718_vm3, %v1267_v33  ;;  %v1279_v26 = vmax.f32 %v3152_v63, 0.0  ;;  %v1280_v30 = vmax.f32 %v3155_v44, 0.0 }
 0x24a   :  { %1325 = vst.msk [vmem:[%s3561_s5 + $0x30] sm:$0xff] %vm718_vm3, %v1268_v10  ;;  %1326 = vst.msk [vmem:[%s3561_s5 + $0x38] sm:$0xff] %vm718_vm3, %v1269_v23  ;;  %v1281_v34 = vmax.f32 %v3158_v47, 0.0  ;;  %v1282_v21 = vmax.f32 %v3161_v2, 0.0  ;;  %v1283_v14 = vmax.f32 %v3164_v42, 0.0  ;;  %v1284_v35 = vmax.f32 %v3167_v32, 0.0 }
 0x24b   :  { %1327 = vst.msk [vmem:[%s3561_s5 + $0x40] sm:$0xff] %vm718_vm3, %v1270_v61  ;;  %1328 = vst.msk [vmem:[%s3561_s5 + $0x48] sm:$0xff] %vm718_vm3, %v1271_v54  ;;  %v1285_v8 = vmax.f32 %v3170_v20, 0.0  ;;  %v1286_v24 = vmax.f32 %v3173_v11, 0.0  ;;  %v1287_v43 = vmax.f32 %v3176_v36, 0.0  ;;  %v1288_v3 = vmax.f32 %v3179_v13, 0.0 }
 0x24c   :  { %1329 = vst.msk [vmem:[%s3561_s5 + $0x50] sm:$0xff] %vm718_vm3, %v1272_v52  ;;  %1330 = vst.msk [vmem:[%s3561_s5 + $0x58] sm:$0xff] %vm718_vm3, %v1273_v62  ;;  %v1289_v63 = vmax.f32 %v3182_v56, 0.0  ;;  %v1290_v44 = vmax.f32 %v3185_v57, 0.0  ;;  %v1291_v47 = vmax.f32 %v3188_v25, 0.0  ;;  %v1292_v2 = vmax.f32 %v3191_v19, 0.0 }
 0x24d   :  { %1331 = vst.msk [vmem:[%s3561_s5 + $0x60] sm:$0xff] %vm718_vm3, %v1274_v38  ;;  %1332 = vst.msk [vmem:[%s3561_s5 + $0x68] sm:$0xff] %vm718_vm3, %v1275_v9  ;;  %v1293_v42 = vmax.f32 %v3194_v28, 0.0  ;;  %v1294_v32 = vmax.f32 %v3197_v39, 0.0  ;;  %v1295_v20 = vmax.f32 %v3200_v48, 0.0  ;;  %v1296_v11 = vmax.f32 %v3203_v58, 0.0 }
 0x24e   :  { %1333 = vst.msk [vmem:[%s3561_s5 + $0x70] sm:$0xff] %vm718_vm3, %v1276_v6  ;;  %1334 = vst.msk [vmem:[%s3561_s5 + $0x78] sm:$0xff] %vm718_vm3, %v1277_v18  ;;  %v1297_v36 = vmax.f32 %v3206_v0, 0.0  ;;  %v1298_v13 = vmax.f32 %v3209_v15, 0.0  ;;  %v1299_v56 = vmax.f32 %v3212_v31, 0.0  ;;  %v1300_v57 = vmax.f32 %v3215_v40, 0.0 }
 0x24f   :  { %1335 = vst.msk [vmem:[%s3561_s5 + $0x80] sm:$0xff] %vm718_vm3, %v1278_v22  ;;  %1336 = vst.msk [vmem:[%s3561_s5 + $0x88] sm:$0xff] %vm718_vm3, %v1279_v26  ;;  %v1301_v25 = vmax.f32 %v3218_v50, 0.0  ;;  %v1302_v19 = vmax.f32 %v3221_v4, 0.0  ;;  %v1303_v28 = vmax.f32 %v3224_v12, 0.0  ;;  %v1304_v39 = vmax.f32 %v3227_v37, 0.0 }
 0x250   :  { %1337 = vst.msk [vmem:[%s3561_s5 + $0x90] sm:$0xff] %vm718_vm3, %v1280_v30  ;;  %1338 = vst.msk [vmem:[%s3561_s5 + $0x98] sm:$0xff] %vm718_vm3, %v1281_v34  ;;  %v1305_v48 = vmax.f32 %v3230_v55, 0.0  ;;  %v1306_v58 = vmax.f32 %v3233_v59, 0.0  ;;  %v1307_v0 = vmax.f32 %v3236_v45, 0.0  ;;  %v1308_v15 = vmax.f32 %v3239_v60, 0.0 }
 0x251   :  { %1339 = vst.msk [vmem:[%s3561_s5 + $0xa0] sm:$0xff] %vm718_vm3, %v1282_v21  ;;  %1340 = vst.msk [vmem:[%s3561_s5 + $0xa8] sm:$0xff] %vm718_vm3, %v1283_v14  ;;  %v1309_v31 = vmax.f32 %v3242_v17, 0.0  ;;  %v1310_v40 = vmax.f32 %v3245_v41, 0.0  ;;  %v1311_v50 = vmax.f32 %v3248_v49, 0.0  ;;  %v3640_v4 = vld [vmem:[#allocation4_spill] sm:$0xff] }
 0x252   :  { %1341 = vst.msk [vmem:[%s3561_s5 + $0xb0] sm:$0xff] %vm718_vm3, %v1284_v35  ;;  %1342 = vst.msk [vmem:[%s3561_s5 + $0xb8] sm:$0xff] %vm718_vm3, %v1285_v8  ;;  %v1312_v12 = vmax.f32 %v3640_v4, 0.0  ;;  %v3641_v37 = vld [vmem:[#allocation5_spill] sm:$0xff]  ;;  %v1314_v59 = vmax.f32 %v3257_v51, 0.0  ;;  %v3642_v45 = vld [vmem:[#allocation6_spill] sm:$0xff] }
 0x253   :  { %1343 = vst.msk [vmem:[%s3561_s5 + $0xc0] sm:$0xff] %vm718_vm3, %v1286_v24  ;;  %1344 = vst.msk [vmem:[%s3561_s5 + $0xc8] sm:$0xff] %vm718_vm3, %v1287_v43  ;;  %v1313_v55 = vmax.f32 %v3641_v37, 0.0  ;;  %v1315_v60 = vmax.f32 %v3642_v45, 0.0  ;;  %v1316_v17 = vmax.f32 %v3263_v46, 0.0  ;;  %v3643_v41 = vld [vmem:[#allocation7_spill] sm:$0xff] }
 0x254   :  { %1345 = vst.msk [vmem:[%s3561_s5 + $0xd0] sm:$0xff] %vm718_vm3, %v1288_v3  ;;  %1346 = vst.msk [vmem:[%s3561_s5 + $0xd8] sm:$0xff] %vm718_vm3, %v1289_v63  ;;  %v1317_v49 = vmax.f32 %v3643_v41, 0.0  ;;  %v1318_v1 = vmax.f32 %v3269_v7, 0.0 }
 0x255   :  { %1347 = vst.msk [vmem:[%s3561_s5 + $0xe0] sm:$0xff] %vm718_vm3, %v1290_v44  ;;  %1348 = vst.msk [vmem:[%s3561_s5 + $0xe8] sm:$0xff] %vm718_vm3, %v1291_v47 }
 0x256   :  { %1349 = vst.msk [vmem:[%s3561_s5 + $0xf0] sm:$0xff] %vm718_vm3, %v1292_v2  ;;  %1350 = vst.msk [vmem:[%s3561_s5 + $0xf8] sm:$0xff] %vm718_vm3, %v1293_v42 }
 0x257   :  { %1351 = vst.msk [vmem:[%s3561_s5 + $0x100] sm:$0xff] %vm718_vm3, %v1294_v32  ;;  %1352 = vst.msk [vmem:[%s3561_s5 + $0x108] sm:$0xff] %vm718_vm3, %v1295_v20 }
 0x258   :  { %1353 = vst.msk [vmem:[%s3561_s5 + $0x110] sm:$0xff] %vm718_vm3, %v1296_v11  ;;  %1354 = vst.msk [vmem:[%s3561_s5 + $0x118] sm:$0xff] %vm718_vm3, %v1297_v36 }
 0x259   :  { %1355 = vst.msk [vmem:[%s3561_s5 + $0x120] sm:$0xff] %vm718_vm3, %v1298_v13  ;;  %1356 = vst.msk [vmem:[%s3561_s5 + $0x128] sm:$0xff] %vm718_vm3, %v1299_v56 }
 0x25a   :  { %1357 = vst.msk [vmem:[%s3561_s5 + $0x130] sm:$0xff] %vm718_vm3, %v1300_v57  ;;  %1358 = vst.msk [vmem:[%s3561_s5 + $0x138] sm:$0xff] %vm718_vm3, %v1301_v25 }
 0x25b   :  { %1359 = vst.msk [vmem:[%s3561_s5 + $0x140] sm:$0xff] %vm718_vm3, %v1302_v19  ;;  %1360 = vst.msk [vmem:[%s3561_s5 + $0x148] sm:$0xff] %vm718_vm3, %v1303_v28 }
 0x25c   :  { %1361 = vst.msk [vmem:[%s3561_s5 + $0x150] sm:$0xff] %vm718_vm3, %v1304_v39  ;;  %1362 = vst.msk [vmem:[%s3561_s5 + $0x158] sm:$0xff] %vm718_vm3, %v1305_v48 }
 0x25d   :  { %1363 = vst.msk [vmem:[%s3561_s5 + $0x160] sm:$0xff] %vm718_vm3, %v1306_v58  ;;  %1364 = vst.msk [vmem:[%s3561_s5 + $0x168] sm:$0xff] %vm718_vm3, %v1307_v0 }
 0x25e   :  { %1365 = vst.msk [vmem:[%s3561_s5 + $0x170] sm:$0xff] %vm718_vm3, %v1308_v15  ;;  %1366 = vst.msk [vmem:[%s3561_s5 + $0x178] sm:$0xff] %vm718_vm3, %v1309_v31 }
 0x25f   :  { %1367 = vst.msk [vmem:[%s3561_s5 + $0x180] sm:$0xff] %vm718_vm3, %v1310_v40  ;;  %1368 = vst.msk [vmem:[%s3561_s5 + $0x188] sm:$0xff] %vm718_vm3, %v1311_v50 }
 0x260   :  { %1369 = vst.msk [vmem:[%s3561_s5 + $0x190] sm:$0xff] %vm718_vm3, %v1312_v12  ;;  %1370 = vst.msk [vmem:[%s3561_s5 + $0x198] sm:$0xff] %vm718_vm3, %v1313_v55 }
 0x261   :  { %1371 = vst.msk [vmem:[%s3561_s5 + $0x1a0] sm:$0xff] %vm718_vm3, %v1314_v59  ;;  %1372 = vst.msk [vmem:[%s3561_s5 + $0x1a8] sm:$0xff] %vm718_vm3, %v1315_v60 }
 0x262   :  { %1373 = vst.msk [vmem:[%s3561_s5 + $0x1b0] sm:$0xff] %vm718_vm3, %v1316_v17  ;;  %1374 = vst.msk [vmem:[%s3561_s5 + $0x1b8] sm:$0xff] %vm718_vm3, %v1317_v49 }
 0x263   :  { %1375 = vst.msk [vmem:[%s3561_s5 + $0x1c0] sm:$0x3] %vm830_vm4, %v1318_v1 }

</bundles_post_ra>
